<compile_context>
chip_gen: v5e
topology: v5e:2x2
jax: 0.10.0
libtpu: 0.0.40
codegen_flags: <defaults>
</compile_context>

<pallas_src>
import jax
import jax.numpy as jnp
from jax.experimental import pallas as pl
from jax.experimental.pallas import tpu as pltpu

MEAN = 0.0  # module default `mean`
STD = 1.0   # module default `std`


def _lstm_cell(gates, c, H):
    """PyTorch-style LSTM cell combine. Gate order: i, f, g, o.

    Nonlinearities run on the full (B, 4H) vreg; only the cheap VPU combine
    uses the 32-lane slices.
    """
    sig = jax.nn.sigmoid(gates)
    th = jnp.tanh(gates)
    i = sig[:, 0 * H:1 * H]
    f = sig[:, 1 * H:2 * H]
    g = th[:, 2 * H:3 * H]
    o = sig[:, 3 * H:4 * H]
    c_new = f * c + i * g
    h_new = o * jnp.tanh(c_new)
    return h_new, c_new


def vae_kernel(seq_ref, eps_ref,
               e_wih0, e_b0, e_whh0, e_w1f, e_b1,
               wm, bm, wlv, blv,
               w_l2h, b_l2h,
               d_wih0, d_b0, d_whh0, d_w1f, d_b1,
               w_out, b_out,
               out_ref):
    T_enc, B, _ = seq_ref.shape           # T_enc = condition_size + 1
    H = e_whh0.shape[0]                   # encoder hidden size
    Hd = d_whh0.shape[0]                  # decoder hidden size
    T_dec = T_enc - 1                     # decoder sees only the condition rows

    bf16 = jnp.bfloat16
    seq = seq_ref[...]                    # (T_enc, B, 1), already f32

    # ---- Hoisted, non-recurrent layer-0 input projections (MEAN/STD folded in
    # ---- the wrapper). One vectorized VPU broadcast instead of per-step work.
    g0_enc = seq * e_wih0[...][None] + e_b0[...][None]         # (T_enc, B, 4H)
    g0_dec = seq[1:] * d_wih0[...][None] + d_b0[...][None]     # (T_dec, B, 4Hd)

    # ---- Hoist recurrent weights into values once (bf16 operands).
    whh0_e = e_whh0[...]
    w1f_e = e_w1f[...]
    b1_e = e_b1[...]
    whh0_d = d_whh0[...]
    w1f_d = d_w1f[...]
    b1_d = d_b1[...]

    # ---------------- Encoder: 2-layer LSTM over (y, x), h_0 = c_0 = 0 ----------------
    z = jnp.zeros((B, H), jnp.float32)
    h0, c0, h1, c1 = z, z, z, z
    for t in range(T_enc):                # fully unrolled (small static trip count)
        g0 = g0_enc[t] + jnp.dot(h0.astype(bf16), whh0_e,
                                 preferred_element_type=jnp.float32)
        h0, c0 = _lstm_cell(g0, c0, H)
        # layer-1: fused [wih1; whh1] -> single MXU pass
        hcat = jnp.concatenate([h0, h1], axis=1).astype(bf16)   # (B, 2H)
        g1 = jnp.dot(hcat, w1f_e, preferred_element_type=jnp.float32) + b1_e
        h1, c1 = _lstm_cell(g1, c1, H)

    h_enc = h1                            # h_end[-1]

    # ---------------- Reparameterize (one-shot dots kept in f32) ----------------
    lat_mean = jnp.dot(h_enc, wm[...], preferred_element_type=jnp.float32) + bm[...]
    lat_logvar = jnp.dot(h_enc, wlv[...], preferred_element_type=jnp.float32) + blv[...]
    latent = eps_ref[...] * jnp.exp(0.5 * lat_logvar) + lat_mean    # (B, L)

    # ---------------- Decoder: 2-layer LSTM over x, both layers' h_0 primed ----------
    h_init = jnp.dot(latent, w_l2h[...], preferred_element_type=jnp.float32) + b_l2h[...]
    zd = jnp.zeros((B, Hd), jnp.float32)
    h0, c0, h1, c1 = h_init, zd, h_init, zd
    for t in range(T_dec):                # fully unrolled
        g0 = g0_dec[t] + jnp.dot(h0.astype(bf16), whh0_d,
                                 preferred_element_type=jnp.float32)
        h0, c0 = _lstm_cell(g0, c0, Hd)
        hcat = jnp.concatenate([h0, h1], axis=1).astype(bf16)
        g1 = jnp.dot(hcat, w1f_d, preferred_element_type=jnp.float32) + b1_d
        h1, c1 = _lstm_cell(g1, c1, Hd)

    # hidden_to_output (STD/MEAN already folded into w_out/b_out)
    out_ref[...] = jnp.dot(h1, w_out[...], preferred_element_type=jnp.float32) + b_out[...]


def _prepare_params(params):
    """Fold MEAN/STD into layer-0/output weights, fuse layer-1 weights, cast
    recurrent matmul operands to bf16."""
    (e_wih0, e_whh0, e_b0, e_wih1, e_whh1, e_b1,
     wm, bm, wlv, blv,
     w_l2h, b_l2h,
     d_wih0, d_whh0, d_b0, d_wih1, d_whh1, d_b1,
     w_out, b_out) = params

    inv_std = 1.0 / STD
    # g0 = ((x - MEAN)/STD) * wih0 + b0  ==  x * (wih0/STD) + (b0 - (MEAN/STD)*wih0)
    e_wih0f = e_wih0 * inv_std
    e_b0f = e_b0 - (MEAN * inv_std) * e_wih0
    d_wih0f = d_wih0 * inv_std
    d_b0f = d_b0 - (MEAN * inv_std) * d_wih0
    # out = (h @ w_out + b_out) * STD + MEAN
    w_outf = w_out * STD
    b_outf = b_out * STD + MEAN

    bf16 = jnp.bfloat16
    e_w1f = jnp.concatenate([e_wih1, e_whh1], axis=0).astype(bf16)   # (2H, 4H)
    d_w1f = jnp.concatenate([d_wih1, d_whh1], axis=0).astype(bf16)   # (2Hd, 4Hd)

    return (e_wih0f, e_b0f, e_whh0.astype(bf16), e_w1f, e_b1,
            wm, bm, wlv, blv,
            w_l2h, b_l2h,
            d_wih0f, d_b0f, d_whh0.astype(bf16), d_w1f, d_b1,
            w_outf, b_outf)


def vae_forward(y, x, eps, params):
    """y: (B, 1) future value, x: (B, C) condition window, eps: (B, L) reparam noise."""
    B = y.shape[0]
    # glue: build the time-major encoder sequence cat(y, x) -> (T_enc, B, 1)
    data = jnp.concatenate([y.astype(jnp.float32), x.astype(jnp.float32)], axis=1)
    seq = jnp.transpose(data, (1, 0))[:, :, None]
    args = (seq, eps.astype(jnp.float32)) + tuple(_prepare_params(params))

    vmem = pl.BlockSpec(memory_space=pltpu.MemorySpace.VMEM)
    return pl.pallas_call(
        vae_kernel,
        out_shape=jax.ShapeDtypeStruct((B, 1), jnp.float32),
        in_specs=[vmem] * len(args),
        out_specs=vmem,
    )(*args)


def init_params(key, H, Hd, L):
    """Deterministic synthetic parameters with the module's shapes (pre-transposed)."""
    keys = iter(jax.random.split(key, 40))

    def uni(shape, bound):
        return jax.random.uniform(next(keys), shape, jnp.float32, -bound, bound)

    def xavier(shape):  # stored as (fan_in, fan_out)
        bound = (6.0 / (shape[0] + shape[1])) ** 0.5
        return uni(shape, bound)

    sH, sHd, sL = 1.0 / (H ** 0.5), 1.0 / (Hd ** 0.5), 1.0 / (L ** 0.5)

    # Encoder LSTM (input_size=1, hidden=H, layers=2); biases b_ih+b_hh pre-summed.
    e_wih0 = uni((1, 4 * H), sH)
    e_whh0 = uni((H, 4 * H), sH)
    e_b0 = uni((1, 4 * H), sH) + uni((1, 4 * H), sH)
    e_wih1 = uni((H, 4 * H), sH)
    e_whh1 = uni((H, 4 * H), sH)
    e_b1 = uni((1, 4 * H), sH) + uni((1, 4 * H), sH)
    # Reparameterize (hidden_to_mean / hidden_to_logvar), xavier weights.
    wm, bm = xavier((H, L)), uni((1, L), sH)
    wlv, blv = xavier((H, L)), uni((1, L), sH)
    # Decoder: latent_to_hidden (xavier), LSTM (input_size=1, hidden=Hd, layers=2),
    # hidden_to_output (xavier).
    w_l2h, b_l2h = xavier((L, Hd)), uni((1, Hd), sL)
    d_wih0 = uni((1, 4 * Hd), sHd)
    d_whh0 = uni((Hd, 4 * Hd), sHd)
    d_b0 = uni((1, 4 * Hd), sHd) + uni((1, 4 * Hd), sHd)
    d_wih1 = uni((Hd, 4 * Hd), sHd)
    d_whh1 = uni((Hd, 4 * Hd), sHd)
    d_b1 = uni((1, 4 * Hd), sHd) + uni((1, 4 * Hd), sHd)
    w_out, b_out = xavier((Hd, 1)), uni((1, 1), sHd)

    return (e_wih0, e_whh0, e_b0, e_wih1, e_whh1, e_b1,
            wm, bm, wlv, blv,
            w_l2h, b_l2h,
            d_wih0, d_whh0, d_b0, d_wih1, d_whh1, d_b1,
            w_out, b_out)


if __name__ == "__main__":
    B = 8            # batch (multiple of 8 -> fills sublanes / MXU rows for free)
    C = 16           # condition_size
    H = 32           # enc_hidden_size  (4H = 128 -> lane-aligned gate matrices)
    Hd = 32          # dec_hidden_size
    L = 16           # latent_length
    depth = 2        # hidden_layer_depth (hard-wired: kernel implements 2 layers)

    key = jax.random.PRNGKey(0)
    k_y, k_x, k_eps, k_p = jax.random.split(key, 4)
    y = jax.random.normal(k_y, (B, 1), jnp.float32)       # future data input
    x = jax.random.normal(k_x, (B, C), jnp.float32)       # condition data input
    # TODO(synk): torch.randn_like RNG cannot be matched bit-for-bit; eps is drawn
    # deterministically with jax.random and fed to the kernel as an input.
    eps = jax.random.normal(k_eps, (B, L), jnp.float32)

    params = init_params(k_p, H, Hd, L)

    out = vae_forward(y, x, eps, params)
    out = jax.block_until_ready(out)
    assert out.shape == (B, 1) and out.dtype == jnp.float32
    print("KERNEL_OK")
</pallas_src>

<mosaic_0001>
module attributes {stable_mosaic.version = 11 : i64} {
  func.func @vae_kernel(%arg0: memref<17x8x1xf32, #tpu.memory_space<vmem>>, %arg1: memref<8x16xf32, #tpu.memory_space<vmem>>, %arg2: memref<1x128xf32, #tpu.memory_space<vmem>>, %arg3: memref<1x128xf32, #tpu.memory_space<vmem>>, %arg4: memref<32x128xbf16, #tpu.memory_space<vmem>>, %arg5: memref<64x128xbf16, #tpu.memory_space<vmem>>, %arg6: memref<1x128xf32, #tpu.memory_space<vmem>>, %arg7: memref<32x16xf32, #tpu.memory_space<vmem>>, %arg8: memref<1x16xf32, #tpu.memory_space<vmem>>, %arg9: memref<32x16xf32, #tpu.memory_space<vmem>>, %arg10: memref<1x16xf32, #tpu.memory_space<vmem>>, %arg11: memref<16x32xf32, #tpu.memory_space<vmem>>, %arg12: memref<1x32xf32, #tpu.memory_space<vmem>>, %arg13: memref<1x128xf32, #tpu.memory_space<vmem>>, %arg14: memref<1x128xf32, #tpu.memory_space<vmem>>, %arg15: memref<32x128xbf16, #tpu.memory_space<vmem>>, %arg16: memref<64x128xbf16, #tpu.memory_space<vmem>>, %arg17: memref<1x128xf32, #tpu.memory_space<vmem>>, %arg18: memref<32x1xf32, #tpu.memory_space<vmem>>, %arg19: memref<1x1xf32, #tpu.memory_space<vmem>>, %arg20: memref<8x1xf32, #tpu.memory_space<vmem>>) attributes {dimension_semantics = [], scalar_prefetch = 0 : i64, scratch_operands = 0 : i64, tpu.core_type = #tpu.core_type<tc>} {
    %c0 = arith.constant 0 : index
    %c0_0 = arith.constant 0 : index
    %c0_1 = arith.constant 0 : index
    %0 = vector.load %arg0[%c0, %c0_0, %c0_1] : memref<17x8x1xf32, #tpu.memory_space<vmem>>, vector<17x8x1xf32>
    %c0_2 = arith.constant 0 : index
    %c0_3 = arith.constant 0 : index
    %1 = vector.load %arg2[%c0_2, %c0_3] : memref<1x128xf32, #tpu.memory_space<vmem>>, vector<1x128xf32>
    %2 = vector.shape_cast %1 : vector<1x128xf32> to vector<1x1x128xf32>
    %3 = vector.broadcast %0 : vector<17x8x1xf32> to vector<17x8x128xf32>
    %4 = vector.broadcast %2 : vector<1x1x128xf32> to vector<17x8x128xf32>
    %5 = arith.mulf %3, %4 : vector<17x8x128xf32>
    %c0_4 = arith.constant 0 : index
    %c0_5 = arith.constant 0 : index
    %6 = vector.load %arg3[%c0_4, %c0_5] : memref<1x128xf32, #tpu.memory_space<vmem>>, vector<1x128xf32>
    %7 = vector.shape_cast %6 : vector<1x128xf32> to vector<1x1x128xf32>
    %8 = vector.broadcast %7 : vector<1x1x128xf32> to vector<17x8x128xf32>
    %9 = arith.addf %5, %8 : vector<17x8x128xf32>
    %10 = vector.extract_strided_slice %0 {offsets = [1, 0, 0], sizes = [16, 8, 1], strides = [1, 1, 1]} : vector<17x8x1xf32> to vector<16x8x1xf32>
    %c0_6 = arith.constant 0 : index
    %c0_7 = arith.constant 0 : index
    %11 = vector.load %arg13[%c0_6, %c0_7] : memref<1x128xf32, #tpu.memory_space<vmem>>, vector<1x128xf32>
    %12 = vector.shape_cast %11 : vector<1x128xf32> to vector<1x1x128xf32>
    %13 = vector.broadcast %10 : vector<16x8x1xf32> to vector<16x8x128xf32>
    %14 = vector.broadcast %12 : vector<1x1x128xf32> to vector<16x8x128xf32>
    %15 = arith.mulf %13, %14 : vector<16x8x128xf32>
    %c0_8 = arith.constant 0 : index
    %c0_9 = arith.constant 0 : index
    %16 = vector.load %arg14[%c0_8, %c0_9] : memref<1x128xf32, #tpu.memory_space<vmem>>, vector<1x128xf32>
    %17 = vector.shape_cast %16 : vector<1x128xf32> to vector<1x1x128xf32>
    %18 = vector.broadcast %17 : vector<1x1x128xf32> to vector<16x8x128xf32>
    %19 = arith.addf %15, %18 : vector<16x8x128xf32>
    %c0_10 = arith.constant 0 : index
    %c0_11 = arith.constant 0 : index
    %20 = vector.load %arg4[%c0_10, %c0_11] : memref<32x128xbf16, #tpu.memory_space<vmem>>, vector<32x128xbf16>
    %c0_12 = arith.constant 0 : index
    %c0_13 = arith.constant 0 : index
    %21 = vector.load %arg5[%c0_12, %c0_13] : memref<64x128xbf16, #tpu.memory_space<vmem>>, vector<64x128xbf16>
    %c0_14 = arith.constant 0 : index
    %c0_15 = arith.constant 0 : index
    %22 = vector.load %arg6[%c0_14, %c0_15] : memref<1x128xf32, #tpu.memory_space<vmem>>, vector<1x128xf32>
    %c0_16 = arith.constant 0 : index
    %c0_17 = arith.constant 0 : index
    %23 = vector.load %arg15[%c0_16, %c0_17] : memref<32x128xbf16, #tpu.memory_space<vmem>>, vector<32x128xbf16>
    %c0_18 = arith.constant 0 : index
    %c0_19 = arith.constant 0 : index
    %24 = vector.load %arg16[%c0_18, %c0_19] : memref<64x128xbf16, #tpu.memory_space<vmem>>, vector<64x128xbf16>
    %c0_20 = arith.constant 0 : index
    %c0_21 = arith.constant 0 : index
    %25 = vector.load %arg17[%c0_20, %c0_21] : memref<1x128xf32, #tpu.memory_space<vmem>>, vector<1x128xf32>
    %cst = arith.constant 0.000000e+00 : f32
    %26 = vector.broadcast %cst : f32 to vector<8x32xf32>
    %27 = vector.extract_strided_slice %9 {offsets = [0, 0, 0], sizes = [1, 8, 128], strides = [1, 1, 1]} : vector<17x8x128xf32> to vector<1x8x128xf32>
    %28 = vector.shape_cast %27 : vector<1x8x128xf32> to vector<8x128xf32>
    %29 = arith.truncf %26 : vector<8x32xf32> to vector<8x32xbf16>
    %cst_22 = arith.constant dense<0.000000e+00> : vector<8x128xf32>
    %30 = tpu.matmul %29, %20, %cst_22 {dimension_numbers = #tpu.dot_dimension_numbers<[1], [0], [0], [1], [0, 0, 1, 1], [], []>} : vector<8x32xbf16>, vector<32x128xbf16>, vector<8x128xf32> -> vector<8x128xf32>
    %31 = arith.addf %28, %30 : vector<8x128xf32>
    %32 = arith.negf %31 : vector<8x128xf32>
    %33 = math.exp %32 : vector<8x128xf32>
    %cst_23 = arith.constant 1.000000e+00 : f32
    %34 = vector.broadcast %cst_23 : f32 to vector<8x128xf32>
    %35 = arith.addf %34, %33 : vector<8x128xf32>
    %36 = arith.divf %34, %35 : vector<8x128xf32>
    %37 = math.tanh %31 : vector<8x128xf32>
    %38 = vector.extract_strided_slice %36 {offsets = [0, 0], sizes = [8, 32], strides = [1, 1]} : vector<8x128xf32> to vector<8x32xf32>
    %39 = vector.extract_strided_slice %36 {offsets = [0, 32], sizes = [8, 32], strides = [1, 1]} : vector<8x128xf32> to vector<8x32xf32>
    %40 = vector.extract_strided_slice %37 {offsets = [0, 64], sizes = [8, 32], strides = [1, 1]} : vector<8x128xf32> to vector<8x32xf32>
    %41 = vector.extract_strided_slice %36 {offsets = [0, 96], sizes = [8, 32], strides = [1, 1]} : vector<8x128xf32> to vector<8x32xf32>
    %42 = arith.mulf %39, %26 : vector<8x32xf32>
    %43 = arith.mulf %38, %40 : vector<8x32xf32>
    %44 = arith.addf %42, %43 : vector<8x32xf32>
    %45 = math.tanh %44 : vector<8x32xf32>
    %46 = arith.mulf %41, %45 : vector<8x32xf32>
    %47 = tpu.concatenate %46, %26 in 1 : vector<8x32xf32>, vector<8x32xf32> -> vector<8x64xf32>
    %48 = arith.truncf %47 : vector<8x64xf32> to vector<8x64xbf16>
    %cst_24 = arith.constant dense<0.000000e+00> : vector<8x128xf32>
    %49 = tpu.matmul %48, %21, %cst_24 {dimension_numbers = #tpu.dot_dimension_numbers<[1], [0], [0], [1], [0, 0, 1, 1], [], []>} : vector<8x64xbf16>, vector<64x128xbf16>, vector<8x128xf32> -> vector<8x128xf32>
    %50 = vector.broadcast %22 : vector<1x128xf32> to vector<8x128xf32>
    %51 = arith.addf %49, %50 : vector<8x128xf32>
    %52 = arith.negf %51 : vector<8x128xf32>
    %53 = math.exp %52 : vector<8x128xf32>
    %cst_25 = arith.constant 1.000000e+00 : f32
    %54 = vector.broadcast %cst_25 : f32 to vector<8x128xf32>
    %55 = arith.addf %54, %53 : vector<8x128xf32>
    %56 = arith.divf %54, %55 : vector<8x128xf32>
    %57 = math.tanh %51 : vector<8x128xf32>
    %58 = vector.extract_strided_slice %56 {offsets = [0, 0], sizes = [8, 32], strides = [1, 1]} : vector<8x128xf32> to vector<8x32xf32>
    %59 = vector.extract_strided_slice %56 {offsets = [0, 32], sizes = [8, 32], strides = [1, 1]} : vector<8x128xf32> to vector<8x32xf32>
    %60 = vector.extract_strided_slice %57 {offsets = [0, 64], sizes = [8, 32], strides = [1, 1]} : vector<8x128xf32> to vector<8x32xf32>
    %61 = vector.extract_strided_slice %56 {offsets = [0, 96], sizes = [8, 32], strides = [1, 1]} : vector<8x128xf32> to vector<8x32xf32>
    %62 = arith.mulf %59, %26 : vector<8x32xf32>
    %63 = arith.mulf %58, %60 : vector<8x32xf32>
    %64 = arith.addf %62, %63 : vector<8x32xf32>
    %65 = math.tanh %64 : vector<8x32xf32>
    %66 = arith.mulf %61, %65 : vector<8x32xf32>
    %67 = vector.extract_strided_slice %9 {offsets = [1, 0, 0], sizes = [1, 8, 128], strides = [1, 1, 1]} : vector<17x8x128xf32> to vector<1x8x128xf32>
    %68 = vector.shape_cast %67 : vector<1x8x128xf32> to vector<8x128xf32>
    %69 = arith.truncf %46 : vector<8x32xf32> to vector<8x32xbf16>
    %cst_26 = arith.constant dense<0.000000e+00> : vector<8x128xf32>
    %70 = tpu.matmul %69, %20, %cst_26 {dimension_numbers = #tpu.dot_dimension_numbers<[1], [0], [0], [1], [0, 0, 1, 1], [], []>} : vector<8x32xbf16>, vector<32x128xbf16>, vector<8x128xf32> -> vector<8x128xf32>
    %71 = arith.addf %68, %70 : vector<8x128xf32>
    %72 = arith.negf %71 : vector<8x128xf32>
    %73 = math.exp %72 : vector<8x128xf32>
    %cst_27 = arith.constant 1.000000e+00 : f32
    %74 = vector.broadcast %cst_27 : f32 to vector<8x128xf32>
    %75 = arith.addf %74, %73 : vector<8x128xf32>
    %76 = arith.divf %74, %75 : vector<8x128xf32>
    %77 = math.tanh %71 : vector<8x128xf32>
    %78 = vector.extract_strided_slice %76 {offsets = [0, 0], sizes = [8, 32], strides = [1, 1]} : vector<8x128xf32> to vector<8x32xf32>
    %79 = vector.extract_strided_slice %76 {offsets = [0, 32], sizes = [8, 32], strides = [1, 1]} : vector<8x128xf32> to vector<8x32xf32>
    %80 = vector.extract_strided_slice %77 {offsets = [0, 64], sizes = [8, 32], strides = [1, 1]} : vector<8x128xf32> to vector<8x32xf32>
    %81 = vector.extract_strided_slice %76 {offsets = [0, 96], sizes = [8, 32], strides = [1, 1]} : vector<8x128xf32> to vector<8x32xf32>
    %82 = arith.mulf %79, %44 : vector<8x32xf32>
    %83 = arith.mulf %78, %80 : vector<8x32xf32>
    %84 = arith.addf %82, %83 : vector<8x32xf32>
    %85 = math.tanh %84 : vector<8x32xf32>
    %86 = arith.mulf %81, %85 : vector<8x32xf32>
    %87 = tpu.concatenate %86, %66 in 1 : vector<8x32xf32>, vector<8x32xf32> -> vector<8x64xf32>
    %88 = arith.truncf %87 : vector<8x64xf32> to vector<8x64xbf16>
    %cst_28 = arith.constant dense<0.000000e+00> : vector<8x128xf32>
    %89 = tpu.matmul %88, %21, %cst_28 {dimension_numbers = #tpu.dot_dimension_numbers<[1], [0], [0], [1], [0, 0, 1, 1], [], []>} : vector<8x64xbf16>, vector<64x128xbf16>, vector<8x128xf32> -> vector<8x128xf32>
    %90 = vector.broadcast %22 : vector<1x128xf32> to vector<8x128xf32>
    %91 = arith.addf %89, %90 : vector<8x128xf32>
    %92 = arith.negf %91 : vector<8x128xf32>
    %93 = math.exp %92 : vector<8x128xf32>
    %cst_29 = arith.constant 1.000000e+00 : f32
    %94 = vector.broadcast %cst_29 : f32 to vector<8x128xf32>
    %95 = arith.addf %94, %93 : vector<8x128xf32>
    %96 = arith.divf %94, %95 : vector<8x128xf32>
    %97 = math.tanh %91 : vector<8x128xf32>
    %98 = vector.extract_strided_slice %96 {offsets = [0, 0], sizes = [8, 32], strides = [1, 1]} : vector<8x128xf32> to vector<8x32xf32>
    %99 = vector.extract_strided_slice %96 {offsets = [0, 32], sizes = [8, 32], strides = [1, 1]} : vector<8x128xf32> to vector<8x32xf32>
    %100 = vector.extract_strided_slice %97 {offsets = [0, 64], sizes = [8, 32], strides = [1, 1]} : vector<8x128xf32> to vector<8x32xf32>
    %101 = vector.extract_strided_slice %96 {offsets = [0, 96], sizes = [8, 32], strides = [1, 1]} : vector<8x128xf32> to vector<8x32xf32>
    %102 = arith.mulf %99, %64 : vector<8x32xf32>
    %103 = arith.mulf %98, %100 : vector<8x32xf32>
    %104 = arith.addf %102, %103 : vector<8x32xf32>
    %105 = math.tanh %104 : vector<8x32xf32>
    %106 = arith.mulf %101, %105 : vector<8x32xf32>
    %107 = vector.extract_strided_slice %9 {offsets = [2, 0, 0], sizes = [1, 8, 128], strides = [1, 1, 1]} : vector<17x8x128xf32> to vector<1x8x128xf32>
    %108 = vector.shape_cast %107 : vector<1x8x128xf32> to vector<8x128xf32>
    %109 = arith.truncf %86 : vector<8x32xf32> to vector<8x32xbf16>
    %cst_30 = arith.constant dense<0.000000e+00> : vector<8x128xf32>
    %110 = tpu.matmul %109, %20, %cst_30 {dimension_numbers = #tpu.dot_dimension_numbers<[1], [0], [0], [1], [0, 0, 1, 1], [], []>} : vector<8x32xbf16>, vector<32x128xbf16>, vector<8x128xf32> -> vector<8x128xf32>
    %111 = arith.addf %108, %110 : vector<8x128xf32>
    %112 = arith.negf %111 : vector<8x128xf32>
    %113 = math.exp %112 : vector<8x128xf32>
    %cst_31 = arith.constant 1.000000e+00 : f32
    %114 = vector.broadcast %cst_31 : f32 to vector<8x128xf32>
    %115 = arith.addf %114, %113 : vector<8x128xf32>
    %116 = arith.divf %114, %115 : vector<8x128xf32>
    %117 = math.tanh %111 : vector<8x128xf32>
    %118 = vector.extract_strided_slice %116 {offsets = [0, 0], sizes = [8, 32], strides = [1, 1]} : vector<8x128xf32> to vector<8x32xf32>
    %119 = vector.extract_strided_slice %116 {offsets = [0, 32], sizes = [8, 32], strides = [1, 1]} : vector<8x128xf32> to vector<8x32xf32>
    %120 = vector.extract_strided_slice %117 {offsets = [0, 64], sizes = [8, 32], strides = [1, 1]} : vector<8x128xf32> to vector<8x32xf32>
    %121 = vector.extract_strided_slice %116 {offsets = [0, 96], sizes = [8, 32], strides = [1, 1]} : vector<8x128xf32> to vector<8x32xf32>
    %122 = arith.mulf %119, %84 : vector<8x32xf32>
    %123 = arith.mulf %118, %120 : vector<8x32xf32>
    %124 = arith.addf %122, %123 : vector<8x32xf32>
    %125 = math.tanh %124 : vector<8x32xf32>
    %126 = arith.mulf %121, %125 : vector<8x32xf32>
    %127 = tpu.concatenate %126, %106 in 1 : vector<8x32xf32>, vector<8x32xf32> -> vector<8x64xf32>
    %128 = arith.truncf %127 : vector<8x64xf32> to vector<8x64xbf16>
    %cst_32 = arith.constant dense<0.000000e+00> : vector<8x128xf32>
    %129 = tpu.matmul %128, %21, %cst_32 {dimension_numbers = #tpu.dot_dimension_numbers<[1], [0], [0], [1], [0, 0, 1, 1], [], []>} : vector<8x64xbf16>, vector<64x128xbf16>, vector<8x128xf32> -> vector<8x128xf32>
    %130 = vector.broadcast %22 : vector<1x128xf32> to vector<8x128xf32>
    %131 = arith.addf %129, %130 : vector<8x128xf32>
    %132 = arith.negf %131 : vector<8x128xf32>
    %133 = math.exp %132 : vector<8x128xf32>
    %cst_33 = arith.constant 1.000000e+00 : f32
    %134 = vector.broadcast %cst_33 : f32 to vector<8x128xf32>
    %135 = arith.addf %134, %133 : vector<8x128xf32>
    %136 = arith.divf %134, %135 : vector<8x128xf32>
    %137 = math.tanh %131 : vector<8x128xf32>
    %138 = vector.extract_strided_slice %136 {offsets = [0, 0], sizes = [8, 32], strides = [1, 1]} : vector<8x128xf32> to vector<8x32xf32>
    %139 = vector.extract_strided_slice %136 {offsets = [0, 32], sizes = [8, 32], strides = [1, 1]} : vector<8x128xf32> to vector<8x32xf32>
    %140 = vector.extract_strided_slice %137 {offsets = [0, 64], sizes = [8, 32], strides = [1, 1]} : vector<8x128xf32> to vector<8x32xf32>
    %141 = vector.extract_strided_slice %136 {offsets = [0, 96], sizes = [8, 32], strides = [1, 1]} : vector<8x128xf32> to vector<8x32xf32>
    %142 = arith.mulf %139, %104 : vector<8x32xf32>
    %143 = arith.mulf %138, %140 : vector<8x32xf32>
    %144 = arith.addf %142, %143 : vector<8x32xf32>
    %145 = math.tanh %144 : vector<8x32xf32>
    %146 = arith.mulf %141, %145 : vector<8x32xf32>
    %147 = vector.extract_strided_slice %9 {offsets = [3, 0, 0], sizes = [1, 8, 128], strides = [1, 1, 1]} : vector<17x8x128xf32> to vector<1x8x128xf32>
    %148 = vector.shape_cast %147 : vector<1x8x128xf32> to vector<8x128xf32>
    %149 = arith.truncf %126 : vector<8x32xf32> to vector<8x32xbf16>
    %cst_34 = arith.constant dense<0.000000e+00> : vector<8x128xf32>
    %150 = tpu.matmul %149, %20, %cst_34 {dimension_numbers = #tpu.dot_dimension_numbers<[1], [0], [0], [1], [0, 0, 1, 1], [], []>} : vector<8x32xbf16>, vector<32x128xbf16>, vector<8x128xf32> -> vector<8x128xf32>
    %151 = arith.addf %148, %150 : vector<8x128xf32>
    %152 = arith.negf %151 : vector<8x128xf32>
    %153 = math.exp %152 : vector<8x128xf32>
    %cst_35 = arith.constant 1.000000e+00 : f32
    %154 = vector.broadcast %cst_35 : f32 to vector<8x128xf32>
    %155 = arith.addf %154, %153 : vector<8x128xf32>
    %156 = arith.divf %154, %155 : vector<8x128xf32>
    %157 = math.tanh %151 : vector<8x128xf32>
    %158 = vector.extract_strided_slice %156 {offsets = [0, 0], sizes = [8, 32], strides = [1, 1]} : vector<8x128xf32> to vector<8x32xf32>
    %159 = vector.extract_strided_slice %156 {offsets = [0, 32], sizes = [8, 32], strides = [1, 1]} : vector<8x128xf32> to vector<8x32xf32>
    %160 = vector.extract_strided_slice %157 {offsets = [0, 64], sizes = [8, 32], strides = [1, 1]} : vector<8x128xf32> to vector<8x32xf32>
    %161 = vector.extract_strided_slice %156 {offsets = [0, 96], sizes = [8, 32], strides = [1, 1]} : vector<8x128xf32> to vector<8x32xf32>
    %162 = arith.mulf %159, %124 : vector<8x32xf32>
    %163 = arith.mulf %158, %160 : vector<8x32xf32>
    %164 = arith.addf %162, %163 : vector<8x32xf32>
    %165 = math.tanh %164 : vector<8x32xf32>
    %166 = arith.mulf %161, %165 : vector<8x32xf32>
    %167 = tpu.concatenate %166, %146 in 1 : vector<8x32xf32>, vector<8x32xf32> -> vector<8x64xf32>
    %168 = arith.truncf %167 : vector<8x64xf32> to vector<8x64xbf16>
    %cst_36 = arith.constant dense<0.000000e+00> : vector<8x128xf32>
    %169 = tpu.matmul %168, %21, %cst_36 {dimension_numbers = #tpu.dot_dimension_numbers<[1], [0], [0], [1], [0, 0, 1, 1], [], []>} : vector<8x64xbf16>, vector<64x128xbf16>, vector<8x128xf32> -> vector<8x128xf32>
    %170 = vector.broadcast %22 : vector<1x128xf32> to vector<8x128xf32>
    %171 = arith.addf %169, %170 : vector<8x128xf32>
    %172 = arith.negf %171 : vector<8x128xf32>
    %173 = math.exp %172 : vector<8x128xf32>
    %cst_37 = arith.constant 1.000000e+00 : f32
    %174 = vector.broadcast %cst_37 : f32 to vector<8x128xf32>
    %175 = arith.addf %174, %173 : vector<8x128xf32>
    %176 = arith.divf %174, %175 : vector<8x128xf32>
    %177 = math.tanh %171 : vector<8x128xf32>
    %178 = vector.extract_strided_slice %176 {offsets = [0, 0], sizes = [8, 32], strides = [1, 1]} : vector<8x128xf32> to vector<8x32xf32>
    %179 = vector.extract_strided_slice %176 {offsets = [0, 32], sizes = [8, 32], strides = [1, 1]} : vector<8x128xf32> to vector<8x32xf32>
    %180 = vector.extract_strided_slice %177 {offsets = [0, 64], sizes = [8, 32], strides = [1, 1]} : vector<8x128xf32> to vector<8x32xf32>
    %181 = vector.extract_strided_slice %176 {offsets = [0, 96], sizes = [8, 32], strides = [1, 1]} : vector<8x128xf32> to vector<8x32xf32>
    %182 = arith.mulf %179, %144 : vector<8x32xf32>
    %183 = arith.mulf %178, %180 : vector<8x32xf32>
    %184 = arith.addf %182, %183 : vector<8x32xf32>
    %185 = math.tanh %184 : vector<8x32xf32>
    %186 = arith.mulf %181, %185 : vector<8x32xf32>
    %187 = vector.extract_strided_slice %9 {offsets = [4, 0, 0], sizes = [1, 8, 128], strides = [1, 1, 1]} : vector<17x8x128xf32> to vector<1x8x128xf32>
    %188 = vector.shape_cast %187 : vector<1x8x128xf32> to vector<8x128xf32>
    %189 = arith.truncf %166 : vector<8x32xf32> to vector<8x32xbf16>
    %cst_38 = arith.constant dense<0.000000e+00> : vector<8x128xf32>
    %190 = tpu.matmul %189, %20, %cst_38 {dimension_numbers = #tpu.dot_dimension_numbers<[1], [0], [0], [1], [0, 0, 1, 1], [], []>} : vector<8x32xbf16>, vector<32x128xbf16>, vector<8x128xf32> -> vector<8x128xf32>
    %191 = arith.addf %188, %190 : vector<8x128xf32>
    %192 = arith.negf %191 : vector<8x128xf32>
    %193 = math.exp %192 : vector<8x128xf32>
    %cst_39 = arith.constant 1.000000e+00 : f32
    %194 = vector.broadcast %cst_39 : f32 to vector<8x128xf32>
    %195 = arith.addf %194, %193 : vector<8x128xf32>
    %196 = arith.divf %194, %195 : vector<8x128xf32>
    %197 = math.tanh %191 : vector<8x128xf32>
    %198 = vector.extract_strided_slice %196 {offsets = [0, 0], sizes = [8, 32], strides = [1, 1]} : vector<8x128xf32> to vector<8x32xf32>
    %199 = vector.extract_strided_slice %196 {offsets = [0, 32], sizes = [8, 32], strides = [1, 1]} : vector<8x128xf32> to vector<8x32xf32>
    %200 = vector.extract_strided_slice %197 {offsets = [0, 64], sizes = [8, 32], strides = [1, 1]} : vector<8x128xf32> to vector<8x32xf32>
    %201 = vector.extract_strided_slice %196 {offsets = [0, 96], sizes = [8, 32], strides = [1, 1]} : vector<8x128xf32> to vector<8x32xf32>
    %202 = arith.mulf %199, %164 : vector<8x32xf32>
    %203 = arith.mulf %198, %200 : vector<8x32xf32>
    %204 = arith.addf %202, %203 : vector<8x32xf32>
    %205 = math.tanh %204 : vector<8x32xf32>
    %206 = arith.mulf %201, %205 : vector<8x32xf32>
    %207 = tpu.concatenate %206, %186 in 1 : vector<8x32xf32>, vector<8x32xf32> -> vector<8x64xf32>
    %208 = arith.truncf %207 : vector<8x64xf32> to vector<8x64xbf16>
    %cst_40 = arith.constant dense<0.000000e+00> : vector<8x128xf32>
    %209 = tpu.matmul %208, %21, %cst_40 {dimension_numbers = #tpu.dot_dimension_numbers<[1], [0], [0], [1], [0, 0, 1, 1], [], []>} : vector<8x64xbf16>, vector<64x128xbf16>, vector<8x128xf32> -> vector<8x128xf32>
    %210 = vector.broadcast %22 : vector<1x128xf32> to vector<8x128xf32>
    %211 = arith.addf %209, %210 : vector<8x128xf32>
    %212 = arith.negf %211 : vector<8x128xf32>
    %213 = math.exp %212 : vector<8x128xf32>
    %cst_41 = arith.constant 1.000000e+00 : f32
    %214 = vector.broadcast %cst_41 : f32 to vector<8x128xf32>
    %215 = arith.addf %214, %213 : vector<8x128xf32>
    %216 = arith.divf %214, %215 : vector<8x128xf32>
    %217 = math.tanh %211 : vector<8x128xf32>
    %218 = vector.extract_strided_slice %216 {offsets = [0, 0], sizes = [8, 32], strides = [1, 1]} : vector<8x128xf32> to vector<8x32xf32>
    %219 = vector.extract_strided_slice %216 {offsets = [0, 32], sizes = [8, 32], strides = [1, 1]} : vector<8x128xf32> to vector<8x32xf32>
    %220 = vector.extract_strided_slice %217 {offsets = [0, 64], sizes = [8, 32], strides = [1, 1]} : vector<8x128xf32> to vector<8x32xf32>
    %221 = vector.extract_strided_slice %216 {offsets = [0, 96], sizes = [8, 32], strides = [1, 1]} : vector<8x128xf32> to vector<8x32xf32>
    %222 = arith.mulf %219, %184 : vector<8x32xf32>
    %223 = arith.mulf %218, %220 : vector<8x32xf32>
    %224 = arith.addf %222, %223 : vector<8x32xf32>
    %225 = math.tanh %224 : vector<8x32xf32>
    %226 = arith.mulf %221, %225 : vector<8x32xf32>
    %227 = vector.extract_strided_slice %9 {offsets = [5, 0, 0], sizes = [1, 8, 128], strides = [1, 1, 1]} : vector<17x8x128xf32> to vector<1x8x128xf32>
    %228 = vector.shape_cast %227 : vector<1x8x128xf32> to vector<8x128xf32>
    %229 = arith.truncf %206 : vector<8x32xf32> to vector<8x32xbf16>
    %cst_42 = arith.constant dense<0.000000e+00> : vector<8x128xf32>
    %230 = tpu.matmul %229, %20, %cst_42 {dimension_numbers = #tpu.dot_dimension_numbers<[1], [0], [0], [1], [0, 0, 1, 1], [], []>} : vector<8x32xbf16>, vector<32x128xbf16>, vector<8x128xf32> -> vector<8x128xf32>
    %231 = arith.addf %228, %230 : vector<8x128xf32>
    %232 = arith.negf %231 : vector<8x128xf32>
    %233 = math.exp %232 : vector<8x128xf32>
    %cst_43 = arith.constant 1.000000e+00 : f32
    %234 = vector.broadcast %cst_43 : f32 to vector<8x128xf32>
    %235 = arith.addf %234, %233 : vector<8x128xf32>
    %236 = arith.divf %234, %235 : vector<8x128xf32>
    %237 = math.tanh %231 : vector<8x128xf32>
    %238 = vector.extract_strided_slice %236 {offsets = [0, 0], sizes = [8, 32], strides = [1, 1]} : vector<8x128xf32> to vector<8x32xf32>
    %239 = vector.extract_strided_slice %236 {offsets = [0, 32], sizes = [8, 32], strides = [1, 1]} : vector<8x128xf32> to vector<8x32xf32>
    %240 = vector.extract_strided_slice %237 {offsets = [0, 64], sizes = [8, 32], strides = [1, 1]} : vector<8x128xf32> to vector<8x32xf32>
    %241 = vector.extract_strided_slice %236 {offsets = [0, 96], sizes = [8, 32], strides = [1, 1]} : vector<8x128xf32> to vector<8x32xf32>
    %242 = arith.mulf %239, %204 : vector<8x32xf32>
    %243 = arith.mulf %238, %240 : vector<8x32xf32>
    %244 = arith.addf %242, %243 : vector<8x32xf32>
    %245 = math.tanh %244 : vector<8x32xf32>
    %246 = arith.mulf %241, %245 : vector<8x32xf32>
    %247 = tpu.concatenate %246, %226 in 1 : vector<8x32xf32>, vector<8x32xf32> -> vector<8x64xf32>
    %248 = arith.truncf %247 : vector<8x64xf32> to vector<8x64xbf16>
    %cst_44 = arith.constant dense<0.000000e+00> : vector<8x128xf32>
    %249 = tpu.matmul %248, %21, %cst_44 {dimension_numbers = #tpu.dot_dimension_numbers<[1], [0], [0], [1], [0, 0, 1, 1], [], []>} : vector<8x64xbf16>, vector<64x128xbf16>, vector<8x128xf32> -> vector<8x128xf32>
    %250 = vector.broadcast %22 : vector<1x128xf32> to vector<8x128xf32>
    %251 = arith.addf %249, %250 : vector<8x128xf32>
    %252 = arith.negf %251 : vector<8x128xf32>
    %253 = math.exp %252 : vector<8x128xf32>
    %cst_45 = arith.constant 1.000000e+00 : f32
    %254 = vector.broadcast %cst_45 : f32 to vector<8x128xf32>
    %255 = arith.addf %254, %253 : vector<8x128xf32>
    %256 = arith.divf %254, %255 : vector<8x128xf32>
    %257 = math.tanh %251 : vector<8x128xf32>
    %258 = vector.extract_strided_slice %256 {offsets = [0, 0], sizes = [8, 32], strides = [1, 1]} : vector<8x128xf32> to vector<8x32xf32>
    %259 = vector.extract_strided_slice %256 {offsets = [0, 32], sizes = [8, 32], strides = [1, 1]} : vector<8x128xf32> to vector<8x32xf32>
    %260 = vector.extract_strided_slice %257 {offsets = [0, 64], sizes = [8, 32], strides = [1, 1]} : vector<8x128xf32> to vector<8x32xf32>
    %261 = vector.extract_strided_slice %256 {offsets = [0, 96], sizes = [8, 32], strides = [1, 1]} : vector<8x128xf32> to vector<8x32xf32>
    %262 = arith.mulf %259, %224 : vector<8x32xf32>
    %263 = arith.mulf %258, %260 : vector<8x32xf32>
    %264 = arith.addf %262, %263 : vector<8x32xf32>
    %265 = math.tanh %264 : vector<8x32xf32>
    %266 = arith.mulf %261, %265 : vector<8x32xf32>
    %267 = vector.extract_strided_slice %9 {offsets = [6, 0, 0], sizes = [1, 8, 128], strides = [1, 1, 1]} : vector<17x8x128xf32> to vector<1x8x128xf32>
    %268 = vector.shape_cast %267 : vector<1x8x128xf32> to vector<8x128xf32>
    %269 = arith.truncf %246 : vector<8x32xf32> to vector<8x32xbf16>
    %cst_46 = arith.constant dense<0.000000e+00> : vector<8x128xf32>
    %270 = tpu.matmul %269, %20, %cst_46 {dimension_numbers = #tpu.dot_dimension_numbers<[1], [0], [0], [1], [0, 0, 1, 1], [], []>} : vector<8x32xbf16>, vector<32x128xbf16>, vector<8x128xf32> -> vector<8x128xf32>
    %271 = arith.addf %268, %270 : vector<8x128xf32>
    %272 = arith.negf %271 : vector<8x128xf32>
    %273 = math.exp %272 : vector<8x128xf32>
    %cst_47 = arith.constant 1.000000e+00 : f32
    %274 = vector.broadcast %cst_47 : f32 to vector<8x128xf32>
    %275 = arith.addf %274, %273 : vector<8x128xf32>
    %276 = arith.divf %274, %275 : vector<8x128xf32>
    %277 = math.tanh %271 : vector<8x128xf32>
    %278 = vector.extract_strided_slice %276 {offsets = [0, 0], sizes = [8, 32], strides = [1, 1]} : vector<8x128xf32> to vector<8x32xf32>
    %279 = vector.extract_strided_slice %276 {offsets = [0, 32], sizes = [8, 32], strides = [1, 1]} : vector<8x128xf32> to vector<8x32xf32>
    %280 = vector.extract_strided_slice %277 {offsets = [0, 64], sizes = [8, 32], strides = [1, 1]} : vector<8x128xf32> to vector<8x32xf32>
    %281 = vector.extract_strided_slice %276 {offsets = [0, 96], sizes = [8, 32], strides = [1, 1]} : vector<8x128xf32> to vector<8x32xf32>
    %282 = arith.mulf %279, %244 : vector<8x32xf32>
    %283 = arith.mulf %278, %280 : vector<8x32xf32>
    %284 = arith.addf %282, %283 : vector<8x32xf32>
    %285 = math.tanh %284 : vector<8x32xf32>
    %286 = arith.mulf %281, %285 : vector<8x32xf32>
    %287 = tpu.concatenate %286, %266 in 1 : vector<8x32xf32>, vector<8x32xf32> -> vector<8x64xf32>
    %288 = arith.truncf %287 : vector<8x64xf32> to vector<8x64xbf16>
    %cst_48 = arith.constant dense<0.000000e+00> : vector<8x128xf32>
    %289 = tpu.matmul %288, %21, %cst_48 {dimension_numbers = #tpu.dot_dimension_numbers<[1], [0], [0], [1], [0, 0, 1, 1], [], []>} : vector<8x64xbf16>, vector<64x128xbf16>, vector<8x128xf32> -> vector<8x128xf32>
    %290 = vector.broadcast %22 : vector<1x128xf32> to vector<8x128xf32>
    %291 = arith.addf %289, %290 : vector<8x128xf32>
    %292 = arith.negf %291 : vector<8x128xf32>
    %293 = math.exp %292 : vector<8x128xf32>
    %cst_49 = arith.constant 1.000000e+00 : f32
    %294 = vector.broadcast %cst_49 : f32 to vector<8x128xf32>
    %295 = arith.addf %294, %293 : vector<8x128xf32>
    %296 = arith.divf %294, %295 : vector<8x128xf32>
    %297 = math.tanh %291 : vector<8x128xf32>
    %298 = vector.extract_strided_slice %296 {offsets = [0, 0], sizes = [8, 32], strides = [1, 1]} : vector<8x128xf32> to vector<8x32xf32>
    %299 = vector.extract_strided_slice %296 {offsets = [0, 32], sizes = [8, 32], strides = [1, 1]} : vector<8x128xf32> to vector<8x32xf32>
    %300 = vector.extract_strided_slice %297 {offsets = [0, 64], sizes = [8, 32], strides = [1, 1]} : vector<8x128xf32> to vector<8x32xf32>
    %301 = vector.extract_strided_slice %296 {offsets = [0, 96], sizes = [8, 32], strides = [1, 1]} : vector<8x128xf32> to vector<8x32xf32>
    %302 = arith.mulf %299, %264 : vector<8x32xf32>
    %303 = arith.mulf %298, %300 : vector<8x32xf32>
    %304 = arith.addf %302, %303 : vector<8x32xf32>
    %305 = math.tanh %304 : vector<8x32xf32>
    %306 = arith.mulf %301, %305 : vector<8x32xf32>
    %307 = vector.extract_strided_slice %9 {offsets = [7, 0, 0], sizes = [1, 8, 128], strides = [1, 1, 1]} : vector<17x8x128xf32> to vector<1x8x128xf32>
    %308 = vector.shape_cast %307 : vector<1x8x128xf32> to vector<8x128xf32>
    %309 = arith.truncf %286 : vector<8x32xf32> to vector<8x32xbf16>
    %cst_50 = arith.constant dense<0.000000e+00> : vector<8x128xf32>
    %310 = tpu.matmul %309, %20, %cst_50 {dimension_numbers = #tpu.dot_dimension_numbers<[1], [0], [0], [1], [0, 0, 1, 1], [], []>} : vector<8x32xbf16>, vector<32x128xbf16>, vector<8x128xf32> -> vector<8x128xf32>
    %311 = arith.addf %308, %310 : vector<8x128xf32>
    %312 = arith.negf %311 : vector<8x128xf32>
    %313 = math.exp %312 : vector<8x128xf32>
    %cst_51 = arith.constant 1.000000e+00 : f32
    %314 = vector.broadcast %cst_51 : f32 to vector<8x128xf32>
    %315 = arith.addf %314, %313 : vector<8x128xf32>
    %316 = arith.divf %314, %315 : vector<8x128xf32>
    %317 = math.tanh %311 : vector<8x128xf32>
    %318 = vector.extract_strided_slice %316 {offsets = [0, 0], sizes = [8, 32], strides = [1, 1]} : vector<8x128xf32> to vector<8x32xf32>
    %319 = vector.extract_strided_slice %316 {offsets = [0, 32], sizes = [8, 32], strides = [1, 1]} : vector<8x128xf32> to vector<8x32xf32>
    %320 = vector.extract_strided_slice %317 {offsets = [0, 64], sizes = [8, 32], strides = [1, 1]} : vector<8x128xf32> to vector<8x32xf32>
    %321 = vector.extract_strided_slice %316 {offsets = [0, 96], sizes = [8, 32], strides = [1, 1]} : vector<8x128xf32> to vector<8x32xf32>
    %322 = arith.mulf %319, %284 : vector<8x32xf32>
    %323 = arith.mulf %318, %320 : vector<8x32xf32>
    %324 = arith.addf %322, %323 : vector<8x32xf32>
    %325 = math.tanh %324 : vector<8x32xf32>
    %326 = arith.mulf %321, %325 : vector<8x32xf32>
    %327 = tpu.concatenate %326, %306 in 1 : vector<8x32xf32>, vector<8x32xf32> -> vector<8x64xf32>
    %328 = arith.truncf %327 : vector<8x64xf32> to vector<8x64xbf16>
    %cst_52 = arith.constant dense<0.000000e+00> : vector<8x128xf32>
    %329 = tpu.matmul %328, %21, %cst_52 {dimension_numbers = #tpu.dot_dimension_numbers<[1], [0], [0], [1], [0, 0, 1, 1], [], []>} : vector<8x64xbf16>, vector<64x128xbf16>, vector<8x128xf32> -> vector<8x128xf32>
    %330 = vector.broadcast %22 : vector<1x128xf32> to vector<8x128xf32>
    %331 = arith.addf %329, %330 : vector<8x128xf32>
    %332 = arith.negf %331 : vector<8x128xf32>
    %333 = math.exp %332 : vector<8x128xf32>
    %cst_53 = arith.constant 1.000000e+00 : f32
    %334 = vector.broadcast %cst_53 : f32 to vector<8x128xf32>
    %335 = arith.addf %334, %333 : vector<8x128xf32>
    %336 = arith.divf %334, %335 : vector<8x128xf32>
    %337 = math.tanh %331 : vector<8x128xf32>
    %338 = vector.extract_strided_slice %336 {offsets = [0, 0], sizes = [8, 32], strides = [1, 1]} : vector<8x128xf32> to vector<8x32xf32>
    %339 = vector.extract_strided_slice %336 {offsets = [0, 32], sizes = [8, 32], strides = [1, 1]} : vector<8x128xf32> to vector<8x32xf32>
    %340 = vector.extract_strided_slice %337 {offsets = [0, 64], sizes = [8, 32], strides = [1, 1]} : vector<8x128xf32> to vector<8x32xf32>
    %341 = vector.extract_strided_slice %336 {offsets = [0, 96], sizes = [8, 32], strides = [1, 1]} : vector<8x128xf32> to vector<8x32xf32>
    %342 = arith.mulf %339, %304 : vector<8x32xf32>
    %343 = arith.mulf %338, %340 : vector<8x32xf32>
    %344 = arith.addf %342, %343 : vector<8x32xf32>
    %345 = math.tanh %344 : vector<8x32xf32>
    %346 = arith.mulf %341, %345 : vector<8x32xf32>
    %347 = vector.extract_strided_slice %9 {offsets = [8, 0, 0], sizes = [1, 8, 128], strides = [1, 1, 1]} : vector<17x8x128xf32> to vector<1x8x128xf32>
    %348 = vector.shape_cast %347 : vector<1x8x128xf32> to vector<8x128xf32>
    %349 = arith.truncf %326 : vector<8x32xf32> to vector<8x32xbf16>
    %cst_54 = arith.constant dense<0.000000e+00> : vector<8x128xf32>
    %350 = tpu.matmul %349, %20, %cst_54 {dimension_numbers = #tpu.dot_dimension_numbers<[1], [0], [0], [1], [0, 0, 1, 1], [], []>} : vector<8x32xbf16>, vector<32x128xbf16>, vector<8x128xf32> -> vector<8x128xf32>
    %351 = arith.addf %348, %350 : vector<8x128xf32>
    %352 = arith.negf %351 : vector<8x128xf32>
    %353 = math.exp %352 : vector<8x128xf32>
    %cst_55 = arith.constant 1.000000e+00 : f32
    %354 = vector.broadcast %cst_55 : f32 to vector<8x128xf32>
    %355 = arith.addf %354, %353 : vector<8x128xf32>
    %356 = arith.divf %354, %355 : vector<8x128xf32>
    %357 = math.tanh %351 : vector<8x128xf32>
    %358 = vector.extract_strided_slice %356 {offsets = [0, 0], sizes = [8, 32], strides = [1, 1]} : vector<8x128xf32> to vector<8x32xf32>
    %359 = vector.extract_strided_slice %356 {offsets = [0, 32], sizes = [8, 32], strides = [1, 1]} : vector<8x128xf32> to vector<8x32xf32>
    %360 = vector.extract_strided_slice %357 {offsets = [0, 64], sizes = [8, 32], strides = [1, 1]} : vector<8x128xf32> to vector<8x32xf32>
    %361 = vector.extract_strided_slice %356 {offsets = [0, 96], sizes = [8, 32], strides = [1, 1]} : vector<8x128xf32> to vector<8x32xf32>
    %362 = arith.mulf %359, %324 : vector<8x32xf32>
    %363 = arith.mulf %358, %360 : vector<8x32xf32>
    %364 = arith.addf %362, %363 : vector<8x32xf32>
    %365 = math.tanh %364 : vector<8x32xf32>
    %366 = arith.mulf %361, %365 : vector<8x32xf32>
    %367 = tpu.concatenate %366, %346 in 1 : vector<8x32xf32>, vector<8x32xf32> -> vector<8x64xf32>
    %368 = arith.truncf %367 : vector<8x64xf32> to vector<8x64xbf16>
    %cst_56 = arith.constant dense<0.000000e+00> : vector<8x128xf32>
    %369 = tpu.matmul %368, %21, %cst_56 {dimension_numbers = #tpu.dot_dimension_numbers<[1], [0], [0], [1], [0, 0, 1, 1], [], []>} : vector<8x64xbf16>, vector<64x128xbf16>, vector<8x128xf32> -> vector<8x128xf32>
    %370 = vector.broadcast %22 : vector<1x128xf32> to vector<8x128xf32>
    %371 = arith.addf %369, %370 : vector<8x128xf32>
    %372 = arith.negf %371 : vector<8x128xf32>
    %373 = math.exp %372 : vector<8x128xf32>
    %cst_57 = arith.constant 1.000000e+00 : f32
    %374 = vector.broadcast %cst_57 : f32 to vector<8x128xf32>
    %375 = arith.addf %374, %373 : vector<8x128xf32>
    %376 = arith.divf %374, %375 : vector<8x128xf32>
    %377 = math.tanh %371 : vector<8x128xf32>
    %378 = vector.extract_strided_slice %376 {offsets = [0, 0], sizes = [8, 32], strides = [1, 1]} : vector<8x128xf32> to vector<8x32xf32>
    %379 = vector.extract_strided_slice %376 {offsets = [0, 32], sizes = [8, 32], strides = [1, 1]} : vector<8x128xf32> to vector<8x32xf32>
    %380 = vector.extract_strided_slice %377 {offsets = [0, 64], sizes = [8, 32], strides = [1, 1]} : vector<8x128xf32> to vector<8x32xf32>
    %381 = vector.extract_strided_slice %376 {offsets = [0, 96], sizes = [8, 32], strides = [1, 1]} : vector<8x128xf32> to vector<8x32xf32>
    %382 = arith.mulf %379, %344 : vector<8x32xf32>
    %383 = arith.mulf %378, %380 : vector<8x32xf32>
    %384 = arith.addf %382, %383 : vector<8x32xf32>
    %385 = math.tanh %384 : vector<8x32xf32>
    %386 = arith.mulf %381, %385 : vector<8x32xf32>
    %387 = vector.extract_strided_slice %9 {offsets = [9, 0, 0], sizes = [1, 8, 128], strides = [1, 1, 1]} : vector<17x8x128xf32> to vector<1x8x128xf32>
    %388 = vector.shape_cast %387 : vector<1x8x128xf32> to vector<8x128xf32>
    %389 = arith.truncf %366 : vector<8x32xf32> to vector<8x32xbf16>
    %cst_58 = arith.constant dense<0.000000e+00> : vector<8x128xf32>
    %390 = tpu.matmul %389, %20, %cst_58 {dimension_numbers = #tpu.dot_dimension_numbers<[1], [0], [0], [1], [0, 0, 1, 1], [], []>} : vector<8x32xbf16>, vector<32x128xbf16>, vector<8x128xf32> -> vector<8x128xf32>
    %391 = arith.addf %388, %390 : vector<8x128xf32>
    %392 = arith.negf %391 : vector<8x128xf32>
    %393 = math.exp %392 : vector<8x128xf32>
    %cst_59 = arith.constant 1.000000e+00 : f32
    %394 = vector.broadcast %cst_59 : f32 to vector<8x128xf32>
    %395 = arith.addf %394, %393 : vector<8x128xf32>
    %396 = arith.divf %394, %395 : vector<8x128xf32>
    %397 = math.tanh %391 : vector<8x128xf32>
    %398 = vector.extract_strided_slice %396 {offsets = [0, 0], sizes = [8, 32], strides = [1, 1]} : vector<8x128xf32> to vector<8x32xf32>
    %399 = vector.extract_strided_slice %396 {offsets = [0, 32], sizes = [8, 32], strides = [1, 1]} : vector<8x128xf32> to vector<8x32xf32>
    %400 = vector.extract_strided_slice %397 {offsets = [0, 64], sizes = [8, 32], strides = [1, 1]} : vector<8x128xf32> to vector<8x32xf32>
    %401 = vector.extract_strided_slice %396 {offsets = [0, 96], sizes = [8, 32], strides = [1, 1]} : vector<8x128xf32> to vector<8x32xf32>
    %402 = arith.mulf %399, %364 : vector<8x32xf32>
    %403 = arith.mulf %398, %400 : vector<8x32xf32>
    %404 = arith.addf %402, %403 : vector<8x32xf32>
    %405 = math.tanh %404 : vector<8x32xf32>
    %406 = arith.mulf %401, %405 : vector<8x32xf32>
    %407 = tpu.concatenate %406, %386 in 1 : vector<8x32xf32>, vector<8x32xf32> -> vector<8x64xf32>
    %408 = arith.truncf %407 : vector<8x64xf32> to vector<8x64xbf16>
    %cst_60 = arith.constant dense<0.000000e+00> : vector<8x128xf32>
    %409 = tpu.matmul %408, %21, %cst_60 {dimension_numbers = #tpu.dot_dimension_numbers<[1], [0], [0], [1], [0, 0, 1, 1], [], []>} : vector<8x64xbf16>, vector<64x128xbf16>, vector<8x128xf32> -> vector<8x128xf32>
    %410 = vector.broadcast %22 : vector<1x128xf32> to vector<8x128xf32>
    %411 = arith.addf %409, %410 : vector<8x128xf32>
    %412 = arith.negf %411 : vector<8x128xf32>
    %413 = math.exp %412 : vector<8x128xf32>
    %cst_61 = arith.constant 1.000000e+00 : f32
    %414 = vector.broadcast %cst_61 : f32 to vector<8x128xf32>
    %415 = arith.addf %414, %413 : vector<8x128xf32>
    %416 = arith.divf %414, %415 : vector<8x128xf32>
    %417 = math.tanh %411 : vector<8x128xf32>
    %418 = vector.extract_strided_slice %416 {offsets = [0, 0], sizes = [8, 32], strides = [1, 1]} : vector<8x128xf32> to vector<8x32xf32>
    %419 = vector.extract_strided_slice %416 {offsets = [0, 32], sizes = [8, 32], strides = [1, 1]} : vector<8x128xf32> to vector<8x32xf32>
    %420 = vector.extract_strided_slice %417 {offsets = [0, 64], sizes = [8, 32], strides = [1, 1]} : vector<8x128xf32> to vector<8x32xf32>
    %421 = vector.extract_strided_slice %416 {offsets = [0, 96], sizes = [8, 32], strides = [1, 1]} : vector<8x128xf32> to vector<8x32xf32>
    %422 = arith.mulf %419, %384 : vector<8x32xf32>
    %423 = arith.mulf %418, %420 : vector<8x32xf32>
    %424 = arith.addf %422, %423 : vector<8x32xf32>
    %425 = math.tanh %424 : vector<8x32xf32>
    %426 = arith.mulf %421, %425 : vector<8x32xf32>
    %427 = vector.extract_strided_slice %9 {offsets = [10, 0, 0], sizes = [1, 8, 128], strides = [1, 1, 1]} : vector<17x8x128xf32> to vector<1x8x128xf32>
    %428 = vector.shape_cast %427 : vector<1x8x128xf32> to vector<8x128xf32>
    %429 = arith.truncf %406 : vector<8x32xf32> to vector<8x32xbf16>
    %cst_62 = arith.constant dense<0.000000e+00> : vector<8x128xf32>
    %430 = tpu.matmul %429, %20, %cst_62 {dimension_numbers = #tpu.dot_dimension_numbers<[1], [0], [0], [1], [0, 0, 1, 1], [], []>} : vector<8x32xbf16>, vector<32x128xbf16>, vector<8x128xf32> -> vector<8x128xf32>
    %431 = arith.addf %428, %430 : vector<8x128xf32>
    %432 = arith.negf %431 : vector<8x128xf32>
    %433 = math.exp %432 : vector<8x128xf32>
    %cst_63 = arith.constant 1.000000e+00 : f32
    %434 = vector.broadcast %cst_63 : f32 to vector<8x128xf32>
    %435 = arith.addf %434, %433 : vector<8x128xf32>
    %436 = arith.divf %434, %435 : vector<8x128xf32>
    %437 = math.tanh %431 : vector<8x128xf32>
    %438 = vector.extract_strided_slice %436 {offsets = [0, 0], sizes = [8, 32], strides = [1, 1]} : vector<8x128xf32> to vector<8x32xf32>
    %439 = vector.extract_strided_slice %436 {offsets = [0, 32], sizes = [8, 32], strides = [1, 1]} : vector<8x128xf32> to vector<8x32xf32>
    %440 = vector.extract_strided_slice %437 {offsets = [0, 64], sizes = [8, 32], strides = [1, 1]} : vector<8x128xf32> to vector<8x32xf32>
    %441 = vector.extract_strided_slice %436 {offsets = [0, 96], sizes = [8, 32], strides = [1, 1]} : vector<8x128xf32> to vector<8x32xf32>
    %442 = arith.mulf %439, %404 : vector<8x32xf32>
    %443 = arith.mulf %438, %440 : vector<8x32xf32>
    %444 = arith.addf %442, %443 : vector<8x32xf32>
    %445 = math.tanh %444 : vector<8x32xf32>
    %446 = arith.mulf %441, %445 : vector<8x32xf32>
    %447 = tpu.concatenate %446, %426 in 1 : vector<8x32xf32>, vector<8x32xf32> -> vector<8x64xf32>
    %448 = arith.truncf %447 : vector<8x64xf32> to vector<8x64xbf16>
    %cst_64 = arith.constant dense<0.000000e+00> : vector<8x128xf32>
    %449 = tpu.matmul %448, %21, %cst_64 {dimension_numbers = #tpu.dot_dimension_numbers<[1], [0], [0], [1], [0, 0, 1, 1], [], []>} : vector<8x64xbf16>, vector<64x128xbf16>, vector<8x128xf32> -> vector<8x128xf32>
    %450 = vector.broadcast %22 : vector<1x128xf32> to vector<8x128xf32>
    %451 = arith.addf %449, %450 : vector<8x128xf32>
    %452 = arith.negf %451 : vector<8x128xf32>
    %453 = math.exp %452 : vector<8x128xf32>
    %cst_65 = arith.constant 1.000000e+00 : f32
    %454 = vector.broadcast %cst_65 : f32 to vector<8x128xf32>
    %455 = arith.addf %454, %453 : vector<8x128xf32>
    %456 = arith.divf %454, %455 : vector<8x128xf32>
    %457 = math.tanh %451 : vector<8x128xf32>
    %458 = vector.extract_strided_slice %456 {offsets = [0, 0], sizes = [8, 32], strides = [1, 1]} : vector<8x128xf32> to vector<8x32xf32>
    %459 = vector.extract_strided_slice %456 {offsets = [0, 32], sizes = [8, 32], strides = [1, 1]} : vector<8x128xf32> to vector<8x32xf32>
    %460 = vector.extract_strided_slice %457 {offsets = [0, 64], sizes = [8, 32], strides = [1, 1]} : vector<8x128xf32> to vector<8x32xf32>
    %461 = vector.extract_strided_slice %456 {offsets = [0, 96], sizes = [8, 32], strides = [1, 1]} : vector<8x128xf32> to vector<8x32xf32>
    %462 = arith.mulf %459, %424 : vector<8x32xf32>
    %463 = arith.mulf %458, %460 : vector<8x32xf32>
    %464 = arith.addf %462, %463 : vector<8x32xf32>
    %465 = math.tanh %464 : vector<8x32xf32>
    %466 = arith.mulf %461, %465 : vector<8x32xf32>
    %467 = vector.extract_strided_slice %9 {offsets = [11, 0, 0], sizes = [1, 8, 128], strides = [1, 1, 1]} : vector<17x8x128xf32> to vector<1x8x128xf32>
    %468 = vector.shape_cast %467 : vector<1x8x128xf32> to vector<8x128xf32>
    %469 = arith.truncf %446 : vector<8x32xf32> to vector<8x32xbf16>
    %cst_66 = arith.constant dense<0.000000e+00> : vector<8x128xf32>
    %470 = tpu.matmul %469, %20, %cst_66 {dimension_numbers = #tpu.dot_dimension_numbers<[1], [0], [0], [1], [0, 0, 1, 1], [], []>} : vector<8x32xbf16>, vector<32x128xbf16>, vector<8x128xf32> -> vector<8x128xf32>
    %471 = arith.addf %468, %470 : vector<8x128xf32>
    %472 = arith.negf %471 : vector<8x128xf32>
    %473 = math.exp %472 : vector<8x128xf32>
    %cst_67 = arith.constant 1.000000e+00 : f32
    %474 = vector.broadcast %cst_67 : f32 to vector<8x128xf32>
    %475 = arith.addf %474, %473 : vector<8x128xf32>
    %476 = arith.divf %474, %475 : vector<8x128xf32>
    %477 = math.tanh %471 : vector<8x128xf32>
    %478 = vector.extract_strided_slice %476 {offsets = [0, 0], sizes = [8, 32], strides = [1, 1]} : vector<8x128xf32> to vector<8x32xf32>
    %479 = vector.extract_strided_slice %476 {offsets = [0, 32], sizes = [8, 32], strides = [1, 1]} : vector<8x128xf32> to vector<8x32xf32>
    %480 = vector.extract_strided_slice %477 {offsets = [0, 64], sizes = [8, 32], strides = [1, 1]} : vector<8x128xf32> to vector<8x32xf32>
    %481 = vector.extract_strided_slice %476 {offsets = [0, 96], sizes = [8, 32], strides = [1, 1]} : vector<8x128xf32> to vector<8x32xf32>
    %482 = arith.mulf %479, %444 : vector<8x32xf32>
    %483 = arith.mulf %478, %480 : vector<8x32xf32>
    %484 = arith.addf %482, %483 : vector<8x32xf32>
    %485 = math.tanh %484 : vector<8x32xf32>
    %486 = arith.mulf %481, %485 : vector<8x32xf32>
    %487 = tpu.concatenate %486, %466 in 1 : vector<8x32xf32>, vector<8x32xf32> -> vector<8x64xf32>
    %488 = arith.truncf %487 : vector<8x64xf32> to vector<8x64xbf16>
    %cst_68 = arith.constant dense<0.000000e+00> : vector<8x128xf32>
    %489 = tpu.matmul %488, %21, %cst_68 {dimension_numbers = #tpu.dot_dimension_numbers<[1], [0], [0], [1], [0, 0, 1, 1], [], []>} : vector<8x64xbf16>, vector<64x128xbf16>, vector<8x128xf32> -> vector<8x128xf32>
    %490 = vector.broadcast %22 : vector<1x128xf32> to vector<8x128xf32>
    %491 = arith.addf %489, %490 : vector<8x128xf32>
    %492 = arith.negf %491 : vector<8x128xf32>
    %493 = math.exp %492 : vector<8x128xf32>
    %cst_69 = arith.constant 1.000000e+00 : f32
    %494 = vector.broadcast %cst_69 : f32 to vector<8x128xf32>
    %495 = arith.addf %494, %493 : vector<8x128xf32>
    %496 = arith.divf %494, %495 : vector<8x128xf32>
    %497 = math.tanh %491 : vector<8x128xf32>
    %498 = vector.extract_strided_slice %496 {offsets = [0, 0], sizes = [8, 32], strides = [1, 1]} : vector<8x128xf32> to vector<8x32xf32>
    %499 = vector.extract_strided_slice %496 {offsets = [0, 32], sizes = [8, 32], strides = [1, 1]} : vector<8x128xf32> to vector<8x32xf32>
    %500 = vector.extract_strided_slice %497 {offsets = [0, 64], sizes = [8, 32], strides = [1, 1]} : vector<8x128xf32> to vector<8x32xf32>
    %501 = vector.extract_strided_slice %496 {offsets = [0, 96], sizes = [8, 32], strides = [1, 1]} : vector<8x128xf32> to vector<8x32xf32>
    %502 = arith.mulf %499, %464 : vector<8x32xf32>
    %503 = arith.mulf %498, %500 : vector<8x32xf32>
    %504 = arith.addf %502, %503 : vector<8x32xf32>
    %505 = math.tanh %504 : vector<8x32xf32>
    %506 = arith.mulf %501, %505 : vector<8x32xf32>
    %507 = vector.extract_strided_slice %9 {offsets = [12, 0, 0], sizes = [1, 8, 128], strides = [1, 1, 1]} : vector<17x8x128xf32> to vector<1x8x128xf32>
    %508 = vector.shape_cast %507 : vector<1x8x128xf32> to vector<8x128xf32>
    %509 = arith.truncf %486 : vector<8x32xf32> to vector<8x32xbf16>
    %cst_70 = arith.constant dense<0.000000e+00> : vector<8x128xf32>
    %510 = tpu.matmul %509, %20, %cst_70 {dimension_numbers = #tpu.dot_dimension_numbers<[1], [0], [0], [1], [0, 0, 1, 1], [], []>} : vector<8x32xbf16>, vector<32x128xbf16>, vector<8x128xf32> -> vector<8x128xf32>
    %511 = arith.addf %508, %510 : vector<8x128xf32>
    %512 = arith.negf %511 : vector<8x128xf32>
    %513 = math.exp %512 : vector<8x128xf32>
    %cst_71 = arith.constant 1.000000e+00 : f32
    %514 = vector.broadcast %cst_71 : f32 to vector<8x128xf32>
    %515 = arith.addf %514, %513 : vector<8x128xf32>
    %516 = arith.divf %514, %515 : vector<8x128xf32>
    %517 = math.tanh %511 : vector<8x128xf32>
    %518 = vector.extract_strided_slice %516 {offsets = [0, 0], sizes = [8, 32], strides = [1, 1]} : vector<8x128xf32> to vector<8x32xf32>
    %519 = vector.extract_strided_slice %516 {offsets = [0, 32], sizes = [8, 32], strides = [1, 1]} : vector<8x128xf32> to vector<8x32xf32>
    %520 = vector.extract_strided_slice %517 {offsets = [0, 64], sizes = [8, 32], strides = [1, 1]} : vector<8x128xf32> to vector<8x32xf32>
    %521 = vector.extract_strided_slice %516 {offsets = [0, 96], sizes = [8, 32], strides = [1, 1]} : vector<8x128xf32> to vector<8x32xf32>
    %522 = arith.mulf %519, %484 : vector<8x32xf32>
    %523 = arith.mulf %518, %520 : vector<8x32xf32>
    %524 = arith.addf %522, %523 : vector<8x32xf32>
    %525 = math.tanh %524 : vector<8x32xf32>
    %526 = arith.mulf %521, %525 : vector<8x32xf32>
    %527 = tpu.concatenate %526, %506 in 1 : vector<8x32xf32>, vector<8x32xf32> -> vector<8x64xf32>
    %528 = arith.truncf %527 : vector<8x64xf32> to vector<8x64xbf16>
    %cst_72 = arith.constant dense<0.000000e+00> : vector<8x128xf32>
    %529 = tpu.matmul %528, %21, %cst_72 {dimension_numbers = #tpu.dot_dimension_numbers<[1], [0], [0], [1], [0, 0, 1, 1], [], []>} : vector<8x64xbf16>, vector<64x128xbf16>, vector<8x128xf32> -> vector<8x128xf32>
    %530 = vector.broadcast %22 : vector<1x128xf32> to vector<8x128xf32>
    %531 = arith.addf %529, %530 : vector<8x128xf32>
    %532 = arith.negf %531 : vector<8x128xf32>
    %533 = math.exp %532 : vector<8x128xf32>
    %cst_73 = arith.constant 1.000000e+00 : f32
    %534 = vector.broadcast %cst_73 : f32 to vector<8x128xf32>
    %535 = arith.addf %534, %533 : vector<8x128xf32>
    %536 = arith.divf %534, %535 : vector<8x128xf32>
    %537 = math.tanh %531 : vector<8x128xf32>
    %538 = vector.extract_strided_slice %536 {offsets = [0, 0], sizes = [8, 32], strides = [1, 1]} : vector<8x128xf32> to vector<8x32xf32>
    %539 = vector.extract_strided_slice %536 {offsets = [0, 32], sizes = [8, 32], strides = [1, 1]} : vector<8x128xf32> to vector<8x32xf32>
    %540 = vector.extract_strided_slice %537 {offsets = [0, 64], sizes = [8, 32], strides = [1, 1]} : vector<8x128xf32> to vector<8x32xf32>
    %541 = vector.extract_strided_slice %536 {offsets = [0, 96], sizes = [8, 32], strides = [1, 1]} : vector<8x128xf32> to vector<8x32xf32>
    %542 = arith.mulf %539, %504 : vector<8x32xf32>
    %543 = arith.mulf %538, %540 : vector<8x32xf32>
    %544 = arith.addf %542, %543 : vector<8x32xf32>
    %545 = math.tanh %544 : vector<8x32xf32>
    %546 = arith.mulf %541, %545 : vector<8x32xf32>
    %547 = vector.extract_strided_slice %9 {offsets = [13, 0, 0], sizes = [1, 8, 128], strides = [1, 1, 1]} : vector<17x8x128xf32> to vector<1x8x128xf32>
    %548 = vector.shape_cast %547 : vector<1x8x128xf32> to vector<8x128xf32>
    %549 = arith.truncf %526 : vector<8x32xf32> to vector<8x32xbf16>
    %cst_74 = arith.constant dense<0.000000e+00> : vector<8x128xf32>
    %550 = tpu.matmul %549, %20, %cst_74 {dimension_numbers = #tpu.dot_dimension_numbers<[1], [0], [0], [1], [0, 0, 1, 1], [], []>} : vector<8x32xbf16>, vector<32x128xbf16>, vector<8x128xf32> -> vector<8x128xf32>
    %551 = arith.addf %548, %550 : vector<8x128xf32>
    %552 = arith.negf %551 : vector<8x128xf32>
    %553 = math.exp %552 : vector<8x128xf32>
    %cst_75 = arith.constant 1.000000e+00 : f32
    %554 = vector.broadcast %cst_75 : f32 to vector<8x128xf32>
    %555 = arith.addf %554, %553 : vector<8x128xf32>
    %556 = arith.divf %554, %555 : vector<8x128xf32>
    %557 = math.tanh %551 : vector<8x128xf32>
    %558 = vector.extract_strided_slice %556 {offsets = [0, 0], sizes = [8, 32], strides = [1, 1]} : vector<8x128xf32> to vector<8x32xf32>
    %559 = vector.extract_strided_slice %556 {offsets = [0, 32], sizes = [8, 32], strides = [1, 1]} : vector<8x128xf32> to vector<8x32xf32>
    %560 = vector.extract_strided_slice %557 {offsets = [0, 64], sizes = [8, 32], strides = [1, 1]} : vector<8x128xf32> to vector<8x32xf32>
    %561 = vector.extract_strided_slice %556 {offsets = [0, 96], sizes = [8, 32], strides = [1, 1]} : vector<8x128xf32> to vector<8x32xf32>
    %562 = arith.mulf %559, %524 : vector<8x32xf32>
    %563 = arith.mulf %558, %560 : vector<8x32xf32>
    %564 = arith.addf %562, %563 : vector<8x32xf32>
    %565 = math.tanh %564 : vector<8x32xf32>
    %566 = arith.mulf %561, %565 : vector<8x32xf32>
    %567 = tpu.concatenate %566, %546 in 1 : vector<8x32xf32>, vector<8x32xf32> -> vector<8x64xf32>
    %568 = arith.truncf %567 : vector<8x64xf32> to vector<8x64xbf16>
    %cst_76 = arith.constant dense<0.000000e+00> : vector<8x128xf32>
    %569 = tpu.matmul %568, %21, %cst_76 {dimension_numbers = #tpu.dot_dimension_numbers<[1], [0], [0], [1], [0, 0, 1, 1], [], []>} : vector<8x64xbf16>, vector<64x128xbf16>, vector<8x128xf32> -> vector<8x128xf32>
    %570 = vector.broadcast %22 : vector<1x128xf32> to vector<8x128xf32>
    %571 = arith.addf %569, %570 : vector<8x128xf32>
    %572 = arith.negf %571 : vector<8x128xf32>
    %573 = math.exp %572 : vector<8x128xf32>
    %cst_77 = arith.constant 1.000000e+00 : f32
    %574 = vector.broadcast %cst_77 : f32 to vector<8x128xf32>
    %575 = arith.addf %574, %573 : vector<8x128xf32>
    %576 = arith.divf %574, %575 : vector<8x128xf32>
    %577 = math.tanh %571 : vector<8x128xf32>
    %578 = vector.extract_strided_slice %576 {offsets = [0, 0], sizes = [8, 32], strides = [1, 1]} : vector<8x128xf32> to vector<8x32xf32>
    %579 = vector.extract_strided_slice %576 {offsets = [0, 32], sizes = [8, 32], strides = [1, 1]} : vector<8x128xf32> to vector<8x32xf32>
    %580 = vector.extract_strided_slice %577 {offsets = [0, 64], sizes = [8, 32], strides = [1, 1]} : vector<8x128xf32> to vector<8x32xf32>
    %581 = vector.extract_strided_slice %576 {offsets = [0, 96], sizes = [8, 32], strides = [1, 1]} : vector<8x128xf32> to vector<8x32xf32>
    %582 = arith.mulf %579, %544 : vector<8x32xf32>
    %583 = arith.mulf %578, %580 : vector<8x32xf32>
    %584 = arith.addf %582, %583 : vector<8x32xf32>
    %585 = math.tanh %584 : vector<8x32xf32>
    %586 = arith.mulf %581, %585 : vector<8x32xf32>
    %587 = vector.extract_strided_slice %9 {offsets = [14, 0, 0], sizes = [1, 8, 128], strides = [1, 1, 1]} : vector<17x8x128xf32> to vector<1x8x128xf32>
    %588 = vector.shape_cast %587 : vector<1x8x128xf32> to vector<8x128xf32>
    %589 = arith.truncf %566 : vector<8x32xf32> to vector<8x32xbf16>
    %cst_78 = arith.constant dense<0.000000e+00> : vector<8x128xf32>
    %590 = tpu.matmul %589, %20, %cst_78 {dimension_numbers = #tpu.dot_dimension_numbers<[1], [0], [0], [1], [0, 0, 1, 1], [], []>} : vector<8x32xbf16>, vector<32x128xbf16>, vector<8x128xf32> -> vector<8x128xf32>
    %591 = arith.addf %588, %590 : vector<8x128xf32>
    %592 = arith.negf %591 : vector<8x128xf32>
    %593 = math.exp %592 : vector<8x128xf32>
    %cst_79 = arith.constant 1.000000e+00 : f32
    %594 = vector.broadcast %cst_79 : f32 to vector<8x128xf32>
    %595 = arith.addf %594, %593 : vector<8x128xf32>
    %596 = arith.divf %594, %595 : vector<8x128xf32>
    %597 = math.tanh %591 : vector<8x128xf32>
    %598 = vector.extract_strided_slice %596 {offsets = [0, 0], sizes = [8, 32], strides = [1, 1]} : vector<8x128xf32> to vector<8x32xf32>
    %599 = vector.extract_strided_slice %596 {offsets = [0, 32], sizes = [8, 32], strides = [1, 1]} : vector<8x128xf32> to vector<8x32xf32>
    %600 = vector.extract_strided_slice %597 {offsets = [0, 64], sizes = [8, 32], strides = [1, 1]} : vector<8x128xf32> to vector<8x32xf32>
    %601 = vector.extract_strided_slice %596 {offsets = [0, 96], sizes = [8, 32], strides = [1, 1]} : vector<8x128xf32> to vector<8x32xf32>
    %602 = arith.mulf %599, %564 : vector<8x32xf32>
    %603 = arith.mulf %598, %600 : vector<8x32xf32>
    %604 = arith.addf %602, %603 : vector<8x32xf32>
    %605 = math.tanh %604 : vector<8x32xf32>
    %606 = arith.mulf %601, %605 : vector<8x32xf32>
    %607 = tpu.concatenate %606, %586 in 1 : vector<8x32xf32>, vector<8x32xf32> -> vector<8x64xf32>
    %608 = arith.truncf %607 : vector<8x64xf32> to vector<8x64xbf16>
    %cst_80 = arith.constant dense<0.000000e+00> : vector<8x128xf32>
    %609 = tpu.matmul %608, %21, %cst_80 {dimension_numbers = #tpu.dot_dimension_numbers<[1], [0], [0], [1], [0, 0, 1, 1], [], []>} : vector<8x64xbf16>, vector<64x128xbf16>, vector<8x128xf32> -> vector<8x128xf32>
    %610 = vector.broadcast %22 : vector<1x128xf32> to vector<8x128xf32>
    %611 = arith.addf %609, %610 : vector<8x128xf32>
    %612 = arith.negf %611 : vector<8x128xf32>
    %613 = math.exp %612 : vector<8x128xf32>
    %cst_81 = arith.constant 1.000000e+00 : f32
    %614 = vector.broadcast %cst_81 : f32 to vector<8x128xf32>
    %615 = arith.addf %614, %613 : vector<8x128xf32>
    %616 = arith.divf %614, %615 : vector<8x128xf32>
    %617 = math.tanh %611 : vector<8x128xf32>
    %618 = vector.extract_strided_slice %616 {offsets = [0, 0], sizes = [8, 32], strides = [1, 1]} : vector<8x128xf32> to vector<8x32xf32>
    %619 = vector.extract_strided_slice %616 {offsets = [0, 32], sizes = [8, 32], strides = [1, 1]} : vector<8x128xf32> to vector<8x32xf32>
    %620 = vector.extract_strided_slice %617 {offsets = [0, 64], sizes = [8, 32], strides = [1, 1]} : vector<8x128xf32> to vector<8x32xf32>
    %621 = vector.extract_strided_slice %616 {offsets = [0, 96], sizes = [8, 32], strides = [1, 1]} : vector<8x128xf32> to vector<8x32xf32>
    %622 = arith.mulf %619, %584 : vector<8x32xf32>
    %623 = arith.mulf %618, %620 : vector<8x32xf32>
    %624 = arith.addf %622, %623 : vector<8x32xf32>
    %625 = math.tanh %624 : vector<8x32xf32>
    %626 = arith.mulf %621, %625 : vector<8x32xf32>
    %627 = vector.extract_strided_slice %9 {offsets = [15, 0, 0], sizes = [1, 8, 128], strides = [1, 1, 1]} : vector<17x8x128xf32> to vector<1x8x128xf32>
    %628 = vector.shape_cast %627 : vector<1x8x128xf32> to vector<8x128xf32>
    %629 = arith.truncf %606 : vector<8x32xf32> to vector<8x32xbf16>
    %cst_82 = arith.constant dense<0.000000e+00> : vector<8x128xf32>
    %630 = tpu.matmul %629, %20, %cst_82 {dimension_numbers = #tpu.dot_dimension_numbers<[1], [0], [0], [1], [0, 0, 1, 1], [], []>} : vector<8x32xbf16>, vector<32x128xbf16>, vector<8x128xf32> -> vector<8x128xf32>
    %631 = arith.addf %628, %630 : vector<8x128xf32>
    %632 = arith.negf %631 : vector<8x128xf32>
    %633 = math.exp %632 : vector<8x128xf32>
    %cst_83 = arith.constant 1.000000e+00 : f32
    %634 = vector.broadcast %cst_83 : f32 to vector<8x128xf32>
    %635 = arith.addf %634, %633 : vector<8x128xf32>
    %636 = arith.divf %634, %635 : vector<8x128xf32>
    %637 = math.tanh %631 : vector<8x128xf32>
    %638 = vector.extract_strided_slice %636 {offsets = [0, 0], sizes = [8, 32], strides = [1, 1]} : vector<8x128xf32> to vector<8x32xf32>
    %639 = vector.extract_strided_slice %636 {offsets = [0, 32], sizes = [8, 32], strides = [1, 1]} : vector<8x128xf32> to vector<8x32xf32>
    %640 = vector.extract_strided_slice %637 {offsets = [0, 64], sizes = [8, 32], strides = [1, 1]} : vector<8x128xf32> to vector<8x32xf32>
    %641 = vector.extract_strided_slice %636 {offsets = [0, 96], sizes = [8, 32], strides = [1, 1]} : vector<8x128xf32> to vector<8x32xf32>
    %642 = arith.mulf %639, %604 : vector<8x32xf32>
    %643 = arith.mulf %638, %640 : vector<8x32xf32>
    %644 = arith.addf %642, %643 : vector<8x32xf32>
    %645 = math.tanh %644 : vector<8x32xf32>
    %646 = arith.mulf %641, %645 : vector<8x32xf32>
    %647 = tpu.concatenate %646, %626 in 1 : vector<8x32xf32>, vector<8x32xf32> -> vector<8x64xf32>
    %648 = arith.truncf %647 : vector<8x64xf32> to vector<8x64xbf16>
    %cst_84 = arith.constant dense<0.000000e+00> : vector<8x128xf32>
    %649 = tpu.matmul %648, %21, %cst_84 {dimension_numbers = #tpu.dot_dimension_numbers<[1], [0], [0], [1], [0, 0, 1, 1], [], []>} : vector<8x64xbf16>, vector<64x128xbf16>, vector<8x128xf32> -> vector<8x128xf32>
    %650 = vector.broadcast %22 : vector<1x128xf32> to vector<8x128xf32>
    %651 = arith.addf %649, %650 : vector<8x128xf32>
    %652 = arith.negf %651 : vector<8x128xf32>
    %653 = math.exp %652 : vector<8x128xf32>
    %cst_85 = arith.constant 1.000000e+00 : f32
    %654 = vector.broadcast %cst_85 : f32 to vector<8x128xf32>
    %655 = arith.addf %654, %653 : vector<8x128xf32>
    %656 = arith.divf %654, %655 : vector<8x128xf32>
    %657 = math.tanh %651 : vector<8x128xf32>
    %658 = vector.extract_strided_slice %656 {offsets = [0, 0], sizes = [8, 32], strides = [1, 1]} : vector<8x128xf32> to vector<8x32xf32>
    %659 = vector.extract_strided_slice %656 {offsets = [0, 32], sizes = [8, 32], strides = [1, 1]} : vector<8x128xf32> to vector<8x32xf32>
    %660 = vector.extract_strided_slice %657 {offsets = [0, 64], sizes = [8, 32], strides = [1, 1]} : vector<8x128xf32> to vector<8x32xf32>
    %661 = vector.extract_strided_slice %656 {offsets = [0, 96], sizes = [8, 32], strides = [1, 1]} : vector<8x128xf32> to vector<8x32xf32>
    %662 = arith.mulf %659, %624 : vector<8x32xf32>
    %663 = arith.mulf %658, %660 : vector<8x32xf32>
    %664 = arith.addf %662, %663 : vector<8x32xf32>
    %665 = math.tanh %664 : vector<8x32xf32>
    %666 = arith.mulf %661, %665 : vector<8x32xf32>
    %667 = vector.extract_strided_slice %9 {offsets = [16, 0, 0], sizes = [1, 8, 128], strides = [1, 1, 1]} : vector<17x8x128xf32> to vector<1x8x128xf32>
    %668 = vector.shape_cast %667 : vector<1x8x128xf32> to vector<8x128xf32>
    %669 = arith.truncf %646 : vector<8x32xf32> to vector<8x32xbf16>
    %cst_86 = arith.constant dense<0.000000e+00> : vector<8x128xf32>
    %670 = tpu.matmul %669, %20, %cst_86 {dimension_numbers = #tpu.dot_dimension_numbers<[1], [0], [0], [1], [0, 0, 1, 1], [], []>} : vector<8x32xbf16>, vector<32x128xbf16>, vector<8x128xf32> -> vector<8x128xf32>
    %671 = arith.addf %668, %670 : vector<8x128xf32>
    %672 = arith.negf %671 : vector<8x128xf32>
    %673 = math.exp %672 : vector<8x128xf32>
    %cst_87 = arith.constant 1.000000e+00 : f32
    %674 = vector.broadcast %cst_87 : f32 to vector<8x128xf32>
    %675 = arith.addf %674, %673 : vector<8x128xf32>
    %676 = arith.divf %674, %675 : vector<8x128xf32>
    %677 = math.tanh %671 : vector<8x128xf32>
    %678 = vector.extract_strided_slice %676 {offsets = [0, 0], sizes = [8, 32], strides = [1, 1]} : vector<8x128xf32> to vector<8x32xf32>
    %679 = vector.extract_strided_slice %676 {offsets = [0, 32], sizes = [8, 32], strides = [1, 1]} : vector<8x128xf32> to vector<8x32xf32>
    %680 = vector.extract_strided_slice %677 {offsets = [0, 64], sizes = [8, 32], strides = [1, 1]} : vector<8x128xf32> to vector<8x32xf32>
    %681 = vector.extract_strided_slice %676 {offsets = [0, 96], sizes = [8, 32], strides = [1, 1]} : vector<8x128xf32> to vector<8x32xf32>
    %682 = arith.mulf %679, %644 : vector<8x32xf32>
    %683 = arith.mulf %678, %680 : vector<8x32xf32>
    %684 = arith.addf %682, %683 : vector<8x32xf32>
    %685 = math.tanh %684 : vector<8x32xf32>
    %686 = arith.mulf %681, %685 : vector<8x32xf32>
    %687 = tpu.concatenate %686, %666 in 1 : vector<8x32xf32>, vector<8x32xf32> -> vector<8x64xf32>
    %688 = arith.truncf %687 : vector<8x64xf32> to vector<8x64xbf16>
    %cst_88 = arith.constant dense<0.000000e+00> : vector<8x128xf32>
    %689 = tpu.matmul %688, %21, %cst_88 {dimension_numbers = #tpu.dot_dimension_numbers<[1], [0], [0], [1], [0, 0, 1, 1], [], []>} : vector<8x64xbf16>, vector<64x128xbf16>, vector<8x128xf32> -> vector<8x128xf32>
    %690 = vector.broadcast %22 : vector<1x128xf32> to vector<8x128xf32>
    %691 = arith.addf %689, %690 : vector<8x128xf32>
    %692 = arith.negf %691 : vector<8x128xf32>
    %693 = math.exp %692 : vector<8x128xf32>
    %cst_89 = arith.constant 1.000000e+00 : f32
    %694 = vector.broadcast %cst_89 : f32 to vector<8x128xf32>
    %695 = arith.addf %694, %693 : vector<8x128xf32>
    %696 = arith.divf %694, %695 : vector<8x128xf32>
    %697 = math.tanh %691 : vector<8x128xf32>
    %698 = vector.extract_strided_slice %696 {offsets = [0, 0], sizes = [8, 32], strides = [1, 1]} : vector<8x128xf32> to vector<8x32xf32>
    %699 = vector.extract_strided_slice %696 {offsets = [0, 32], sizes = [8, 32], strides = [1, 1]} : vector<8x128xf32> to vector<8x32xf32>
    %700 = vector.extract_strided_slice %697 {offsets = [0, 64], sizes = [8, 32], strides = [1, 1]} : vector<8x128xf32> to vector<8x32xf32>
    %701 = vector.extract_strided_slice %696 {offsets = [0, 96], sizes = [8, 32], strides = [1, 1]} : vector<8x128xf32> to vector<8x32xf32>
    %702 = arith.mulf %699, %664 : vector<8x32xf32>
    %703 = arith.mulf %698, %700 : vector<8x32xf32>
    %704 = arith.addf %702, %703 : vector<8x32xf32>
    %705 = math.tanh %704 : vector<8x32xf32>
    %706 = arith.mulf %701, %705 : vector<8x32xf32>
    %c0_90 = arith.constant 0 : index
    %c0_91 = arith.constant 0 : index
    %707 = vector.load %arg7[%c0_90, %c0_91] : memref<32x16xf32, #tpu.memory_space<vmem>>, vector<32x16xf32>
    %cst_92 = arith.constant dense<0.000000e+00> : vector<8x16xf32>
    %708 = tpu.matmul %706, %707, %cst_92 {dimension_numbers = #tpu.dot_dimension_numbers<[1], [0], [0], [1], [0, 0, 1, 1], [], []>} : vector<8x32xf32>, vector<32x16xf32>, vector<8x16xf32> -> vector<8x16xf32>
    %c0_93 = arith.constant 0 : index
    %c0_94 = arith.constant 0 : index
    %709 = vector.load %arg8[%c0_93, %c0_94] : memref<1x16xf32, #tpu.memory_space<vmem>>, vector<1x16xf32>
    %710 = vector.broadcast %709 : vector<1x16xf32> to vector<8x16xf32>
    %711 = arith.addf %708, %710 : vector<8x16xf32>
    %c0_95 = arith.constant 0 : index
    %c0_96 = arith.constant 0 : index
    %712 = vector.load %arg9[%c0_95, %c0_96] : memref<32x16xf32, #tpu.memory_space<vmem>>, vector<32x16xf32>
    %cst_97 = arith.constant dense<0.000000e+00> : vector<8x16xf32>
    %713 = tpu.matmul %706, %712, %cst_97 {dimension_numbers = #tpu.dot_dimension_numbers<[1], [0], [0], [1], [0, 0, 1, 1], [], []>} : vector<8x32xf32>, vector<32x16xf32>, vector<8x16xf32> -> vector<8x16xf32>
    %c0_98 = arith.constant 0 : index
    %c0_99 = arith.constant 0 : index
    %714 = vector.load %arg10[%c0_98, %c0_99] : memref<1x16xf32, #tpu.memory_space<vmem>>, vector<1x16xf32>
    %715 = vector.broadcast %714 : vector<1x16xf32> to vector<8x16xf32>
    %716 = arith.addf %713, %715 : vector<8x16xf32>
    %c0_100 = arith.constant 0 : index
    %c0_101 = arith.constant 0 : index
    %717 = vector.load %arg1[%c0_100, %c0_101] : memref<8x16xf32, #tpu.memory_space<vmem>>, vector<8x16xf32>
    %cst_102 = arith.constant 5.000000e-01 : f32
    %718 = vector.broadcast %cst_102 : f32 to vector<8x16xf32>
    %719 = arith.mulf %718, %716 : vector<8x16xf32>
    %720 = math.exp %719 : vector<8x16xf32>
    %721 = arith.mulf %717, %720 : vector<8x16xf32>
    %722 = arith.addf %721, %711 : vector<8x16xf32>
    %c0_103 = arith.constant 0 : index
    %c0_104 = arith.constant 0 : index
    %723 = vector.load %arg11[%c0_103, %c0_104] : memref<16x32xf32, #tpu.memory_space<vmem>>, vector<16x32xf32>
    %cst_105 = arith.constant dense<0.000000e+00> : vector<8x32xf32>
    %724 = tpu.matmul %722, %723, %cst_105 {dimension_numbers = #tpu.dot_dimension_numbers<[1], [0], [0], [1], [0, 0, 1, 1], [], []>} : vector<8x16xf32>, vector<16x32xf32>, vector<8x32xf32> -> vector<8x32xf32>
    %c0_106 = arith.constant 0 : index
    %c0_107 = arith.constant 0 : index
    %725 = vector.load %arg12[%c0_106, %c0_107] : memref<1x32xf32, #tpu.memory_space<vmem>>, vector<1x32xf32>
    %726 = vector.broadcast %725 : vector<1x32xf32> to vector<8x32xf32>
    %727 = arith.addf %724, %726 : vector<8x32xf32>
    %cst_108 = arith.constant 0.000000e+00 : f32
    %728 = vector.broadcast %cst_108 : f32 to vector<8x32xf32>
    %729 = vector.extract_strided_slice %19 {offsets = [0, 0, 0], sizes = [1, 8, 128], strides = [1, 1, 1]} : vector<16x8x128xf32> to vector<1x8x128xf32>
    %730 = vector.shape_cast %729 : vector<1x8x128xf32> to vector<8x128xf32>
    %731 = arith.truncf %727 : vector<8x32xf32> to vector<8x32xbf16>
    %cst_109 = arith.constant dense<0.000000e+00> : vector<8x128xf32>
    %732 = tpu.matmul %731, %23, %cst_109 {dimension_numbers = #tpu.dot_dimension_numbers<[1], [0], [0], [1], [0, 0, 1, 1], [], []>} : vector<8x32xbf16>, vector<32x128xbf16>, vector<8x128xf32> -> vector<8x128xf32>
    %733 = arith.addf %730, %732 : vector<8x128xf32>
    %734 = arith.negf %733 : vector<8x128xf32>
    %735 = math.exp %734 : vector<8x128xf32>
    %cst_110 = arith.constant 1.000000e+00 : f32
    %736 = vector.broadcast %cst_110 : f32 to vector<8x128xf32>
    %737 = arith.addf %736, %735 : vector<8x128xf32>
    %738 = arith.divf %736, %737 : vector<8x128xf32>
    %739 = math.tanh %733 : vector<8x128xf32>
    %740 = vector.extract_strided_slice %738 {offsets = [0, 0], sizes = [8, 32], strides = [1, 1]} : vector<8x128xf32> to vector<8x32xf32>
    %741 = vector.extract_strided_slice %738 {offsets = [0, 32], sizes = [8, 32], strides = [1, 1]} : vector<8x128xf32> to vector<8x32xf32>
    %742 = vector.extract_strided_slice %739 {offsets = [0, 64], sizes = [8, 32], strides = [1, 1]} : vector<8x128xf32> to vector<8x32xf32>
    %743 = vector.extract_strided_slice %738 {offsets = [0, 96], sizes = [8, 32], strides = [1, 1]} : vector<8x128xf32> to vector<8x32xf32>
    %744 = arith.mulf %741, %728 : vector<8x32xf32>
    %745 = arith.mulf %740, %742 : vector<8x32xf32>
    %746 = arith.addf %744, %745 : vector<8x32xf32>
    %747 = math.tanh %746 : vector<8x32xf32>
    %748 = arith.mulf %743, %747 : vector<8x32xf32>
    %749 = tpu.concatenate %748, %727 in 1 : vector<8x32xf32>, vector<8x32xf32> -> vector<8x64xf32>
    %750 = arith.truncf %749 : vector<8x64xf32> to vector<8x64xbf16>
    %cst_111 = arith.constant dense<0.000000e+00> : vector<8x128xf32>
    %751 = tpu.matmul %750, %24, %cst_111 {dimension_numbers = #tpu.dot_dimension_numbers<[1], [0], [0], [1], [0, 0, 1, 1], [], []>} : vector<8x64xbf16>, vector<64x128xbf16>, vector<8x128xf32> -> vector<8x128xf32>
    %752 = vector.broadcast %25 : vector<1x128xf32> to vector<8x128xf32>
    %753 = arith.addf %751, %752 : vector<8x128xf32>
    %754 = arith.negf %753 : vector<8x128xf32>
    %755 = math.exp %754 : vector<8x128xf32>
    %cst_112 = arith.constant 1.000000e+00 : f32
    %756 = vector.broadcast %cst_112 : f32 to vector<8x128xf32>
    %757 = arith.addf %756, %755 : vector<8x128xf32>
    %758 = arith.divf %756, %757 : vector<8x128xf32>
    %759 = math.tanh %753 : vector<8x128xf32>
    %760 = vector.extract_strided_slice %758 {offsets = [0, 0], sizes = [8, 32], strides = [1, 1]} : vector<8x128xf32> to vector<8x32xf32>
    %761 = vector.extract_strided_slice %758 {offsets = [0, 32], sizes = [8, 32], strides = [1, 1]} : vector<8x128xf32> to vector<8x32xf32>
    %762 = vector.extract_strided_slice %759 {offsets = [0, 64], sizes = [8, 32], strides = [1, 1]} : vector<8x128xf32> to vector<8x32xf32>
    %763 = vector.extract_strided_slice %758 {offsets = [0, 96], sizes = [8, 32], strides = [1, 1]} : vector<8x128xf32> to vector<8x32xf32>
    %764 = arith.mulf %761, %728 : vector<8x32xf32>
    %765 = arith.mulf %760, %762 : vector<8x32xf32>
    %766 = arith.addf %764, %765 : vector<8x32xf32>
    %767 = math.tanh %766 : vector<8x32xf32>
    %768 = arith.mulf %763, %767 : vector<8x32xf32>
    %769 = vector.extract_strided_slice %19 {offsets = [1, 0, 0], sizes = [1, 8, 128], strides = [1, 1, 1]} : vector<16x8x128xf32> to vector<1x8x128xf32>
    %770 = vector.shape_cast %769 : vector<1x8x128xf32> to vector<8x128xf32>
    %771 = arith.truncf %748 : vector<8x32xf32> to vector<8x32xbf16>
    %cst_113 = arith.constant dense<0.000000e+00> : vector<8x128xf32>
    %772 = tpu.matmul %771, %23, %cst_113 {dimension_numbers = #tpu.dot_dimension_numbers<[1], [0], [0], [1], [0, 0, 1, 1], [], []>} : vector<8x32xbf16>, vector<32x128xbf16>, vector<8x128xf32> -> vector<8x128xf32>
    %773 = arith.addf %770, %772 : vector<8x128xf32>
    %774 = arith.negf %773 : vector<8x128xf32>
    %775 = math.exp %774 : vector<8x128xf32>
    %cst_114 = arith.constant 1.000000e+00 : f32
    %776 = vector.broadcast %cst_114 : f32 to vector<8x128xf32>
    %777 = arith.addf %776, %775 : vector<8x128xf32>
    %778 = arith.divf %776, %777 : vector<8x128xf32>
    %779 = math.tanh %773 : vector<8x128xf32>
    %780 = vector.extract_strided_slice %778 {offsets = [0, 0], sizes = [8, 32], strides = [1, 1]} : vector<8x128xf32> to vector<8x32xf32>
    %781 = vector.extract_strided_slice %778 {offsets = [0, 32], sizes = [8, 32], strides = [1, 1]} : vector<8x128xf32> to vector<8x32xf32>
    %782 = vector.extract_strided_slice %779 {offsets = [0, 64], sizes = [8, 32], strides = [1, 1]} : vector<8x128xf32> to vector<8x32xf32>
    %783 = vector.extract_strided_slice %778 {offsets = [0, 96], sizes = [8, 32], strides = [1, 1]} : vector<8x128xf32> to vector<8x32xf32>
    %784 = arith.mulf %781, %746 : vector<8x32xf32>
    %785 = arith.mulf %780, %782 : vector<8x32xf32>
    %786 = arith.addf %784, %785 : vector<8x32xf32>
    %787 = math.tanh %786 : vector<8x32xf32>
    %788 = arith.mulf %783, %787 : vector<8x32xf32>
    %789 = tpu.concatenate %788, %768 in 1 : vector<8x32xf32>, vector<8x32xf32> -> vector<8x64xf32>
    %790 = arith.truncf %789 : vector<8x64xf32> to vector<8x64xbf16>
    %cst_115 = arith.constant dense<0.000000e+00> : vector<8x128xf32>
    %791 = tpu.matmul %790, %24, %cst_115 {dimension_numbers = #tpu.dot_dimension_numbers<[1], [0], [0], [1], [0, 0, 1, 1], [], []>} : vector<8x64xbf16>, vector<64x128xbf16>, vector<8x128xf32> -> vector<8x128xf32>
    %792 = vector.broadcast %25 : vector<1x128xf32> to vector<8x128xf32>
    %793 = arith.addf %791, %792 : vector<8x128xf32>
    %794 = arith.negf %793 : vector<8x128xf32>
    %795 = math.exp %794 : vector<8x128xf32>
    %cst_116 = arith.constant 1.000000e+00 : f32
    %796 = vector.broadcast %cst_116 : f32 to vector<8x128xf32>
    %797 = arith.addf %796, %795 : vector<8x128xf32>
    %798 = arith.divf %796, %797 : vector<8x128xf32>
    %799 = math.tanh %793 : vector<8x128xf32>
    %800 = vector.extract_strided_slice %798 {offsets = [0, 0], sizes = [8, 32], strides = [1, 1]} : vector<8x128xf32> to vector<8x32xf32>
    %801 = vector.extract_strided_slice %798 {offsets = [0, 32], sizes = [8, 32], strides = [1, 1]} : vector<8x128xf32> to vector<8x32xf32>
    %802 = vector.extract_strided_slice %799 {offsets = [0, 64], sizes = [8, 32], strides = [1, 1]} : vector<8x128xf32> to vector<8x32xf32>
    %803 = vector.extract_strided_slice %798 {offsets = [0, 96], sizes = [8, 32], strides = [1, 1]} : vector<8x128xf32> to vector<8x32xf32>
    %804 = arith.mulf %801, %766 : vector<8x32xf32>
    %805 = arith.mulf %800, %802 : vector<8x32xf32>
    %806 = arith.addf %804, %805 : vector<8x32xf32>
    %807 = math.tanh %806 : vector<8x32xf32>
    %808 = arith.mulf %803, %807 : vector<8x32xf32>
    %809 = vector.extract_strided_slice %19 {offsets = [2, 0, 0], sizes = [1, 8, 128], strides = [1, 1, 1]} : vector<16x8x128xf32> to vector<1x8x128xf32>
    %810 = vector.shape_cast %809 : vector<1x8x128xf32> to vector<8x128xf32>
    %811 = arith.truncf %788 : vector<8x32xf32> to vector<8x32xbf16>
    %cst_117 = arith.constant dense<0.000000e+00> : vector<8x128xf32>
    %812 = tpu.matmul %811, %23, %cst_117 {dimension_numbers = #tpu.dot_dimension_numbers<[1], [0], [0], [1], [0, 0, 1, 1], [], []>} : vector<8x32xbf16>, vector<32x128xbf16>, vector<8x128xf32> -> vector<8x128xf32>
    %813 = arith.addf %810, %812 : vector<8x128xf32>
    %814 = arith.negf %813 : vector<8x128xf32>
    %815 = math.exp %814 : vector<8x128xf32>
    %cst_118 = arith.constant 1.000000e+00 : f32
    %816 = vector.broadcast %cst_118 : f32 to vector<8x128xf32>
    %817 = arith.addf %816, %815 : vector<8x128xf32>
    %818 = arith.divf %816, %817 : vector<8x128xf32>
    %819 = math.tanh %813 : vector<8x128xf32>
    %820 = vector.extract_strided_slice %818 {offsets = [0, 0], sizes = [8, 32], strides = [1, 1]} : vector<8x128xf32> to vector<8x32xf32>
    %821 = vector.extract_strided_slice %818 {offsets = [0, 32], sizes = [8, 32], strides = [1, 1]} : vector<8x128xf32> to vector<8x32xf32>
    %822 = vector.extract_strided_slice %819 {offsets = [0, 64], sizes = [8, 32], strides = [1, 1]} : vector<8x128xf32> to vector<8x32xf32>
    %823 = vector.extract_strided_slice %818 {offsets = [0, 96], sizes = [8, 32], strides = [1, 1]} : vector<8x128xf32> to vector<8x32xf32>
    %824 = arith.mulf %821, %786 : vector<8x32xf32>
    %825 = arith.mulf %820, %822 : vector<8x32xf32>
    %826 = arith.addf %824, %825 : vector<8x32xf32>
    %827 = math.tanh %826 : vector<8x32xf32>
    %828 = arith.mulf %823, %827 : vector<8x32xf32>
    %829 = tpu.concatenate %828, %808 in 1 : vector<8x32xf32>, vector<8x32xf32> -> vector<8x64xf32>
    %830 = arith.truncf %829 : vector<8x64xf32> to vector<8x64xbf16>
    %cst_119 = arith.constant dense<0.000000e+00> : vector<8x128xf32>
    %831 = tpu.matmul %830, %24, %cst_119 {dimension_numbers = #tpu.dot_dimension_numbers<[1], [0], [0], [1], [0, 0, 1, 1], [], []>} : vector<8x64xbf16>, vector<64x128xbf16>, vector<8x128xf32> -> vector<8x128xf32>
    %832 = vector.broadcast %25 : vector<1x128xf32> to vector<8x128xf32>
    %833 = arith.addf %831, %832 : vector<8x128xf32>
    %834 = arith.negf %833 : vector<8x128xf32>
    %835 = math.exp %834 : vector<8x128xf32>
    %cst_120 = arith.constant 1.000000e+00 : f32
    %836 = vector.broadcast %cst_120 : f32 to vector<8x128xf32>
    %837 = arith.addf %836, %835 : vector<8x128xf32>
    %838 = arith.divf %836, %837 : vector<8x128xf32>
    %839 = math.tanh %833 : vector<8x128xf32>
    %840 = vector.extract_strided_slice %838 {offsets = [0, 0], sizes = [8, 32], strides = [1, 1]} : vector<8x128xf32> to vector<8x32xf32>
    %841 = vector.extract_strided_slice %838 {offsets = [0, 32], sizes = [8, 32], strides = [1, 1]} : vector<8x128xf32> to vector<8x32xf32>
    %842 = vector.extract_strided_slice %839 {offsets = [0, 64], sizes = [8, 32], strides = [1, 1]} : vector<8x128xf32> to vector<8x32xf32>
    %843 = vector.extract_strided_slice %838 {offsets = [0, 96], sizes = [8, 32], strides = [1, 1]} : vector<8x128xf32> to vector<8x32xf32>
    %844 = arith.mulf %841, %806 : vector<8x32xf32>
    %845 = arith.mulf %840, %842 : vector<8x32xf32>
    %846 = arith.addf %844, %845 : vector<8x32xf32>
    %847 = math.tanh %846 : vector<8x32xf32>
    %848 = arith.mulf %843, %847 : vector<8x32xf32>
    %849 = vector.extract_strided_slice %19 {offsets = [3, 0, 0], sizes = [1, 8, 128], strides = [1, 1, 1]} : vector<16x8x128xf32> to vector<1x8x128xf32>
    %850 = vector.shape_cast %849 : vector<1x8x128xf32> to vector<8x128xf32>
    %851 = arith.truncf %828 : vector<8x32xf32> to vector<8x32xbf16>
    %cst_121 = arith.constant dense<0.000000e+00> : vector<8x128xf32>
    %852 = tpu.matmul %851, %23, %cst_121 {dimension_numbers = #tpu.dot_dimension_numbers<[1], [0], [0], [1], [0, 0, 1, 1], [], []>} : vector<8x32xbf16>, vector<32x128xbf16>, vector<8x128xf32> -> vector<8x128xf32>
    %853 = arith.addf %850, %852 : vector<8x128xf32>
    %854 = arith.negf %853 : vector<8x128xf32>
    %855 = math.exp %854 : vector<8x128xf32>
    %cst_122 = arith.constant 1.000000e+00 : f32
    %856 = vector.broadcast %cst_122 : f32 to vector<8x128xf32>
    %857 = arith.addf %856, %855 : vector<8x128xf32>
    %858 = arith.divf %856, %857 : vector<8x128xf32>
    %859 = math.tanh %853 : vector<8x128xf32>
    %860 = vector.extract_strided_slice %858 {offsets = [0, 0], sizes = [8, 32], strides = [1, 1]} : vector<8x128xf32> to vector<8x32xf32>
    %861 = vector.extract_strided_slice %858 {offsets = [0, 32], sizes = [8, 32], strides = [1, 1]} : vector<8x128xf32> to vector<8x32xf32>
    %862 = vector.extract_strided_slice %859 {offsets = [0, 64], sizes = [8, 32], strides = [1, 1]} : vector<8x128xf32> to vector<8x32xf32>
    %863 = vector.extract_strided_slice %858 {offsets = [0, 96], sizes = [8, 32], strides = [1, 1]} : vector<8x128xf32> to vector<8x32xf32>
    %864 = arith.mulf %861, %826 : vector<8x32xf32>
    %865 = arith.mulf %860, %862 : vector<8x32xf32>
    %866 = arith.addf %864, %865 : vector<8x32xf32>
    %867 = math.tanh %866 : vector<8x32xf32>
    %868 = arith.mulf %863, %867 : vector<8x32xf32>
    %869 = tpu.concatenate %868, %848 in 1 : vector<8x32xf32>, vector<8x32xf32> -> vector<8x64xf32>
    %870 = arith.truncf %869 : vector<8x64xf32> to vector<8x64xbf16>
    %cst_123 = arith.constant dense<0.000000e+00> : vector<8x128xf32>
    %871 = tpu.matmul %870, %24, %cst_123 {dimension_numbers = #tpu.dot_dimension_numbers<[1], [0], [0], [1], [0, 0, 1, 1], [], []>} : vector<8x64xbf16>, vector<64x128xbf16>, vector<8x128xf32> -> vector<8x128xf32>
    %872 = vector.broadcast %25 : vector<1x128xf32> to vector<8x128xf32>
    %873 = arith.addf %871, %872 : vector<8x128xf32>
    %874 = arith.negf %873 : vector<8x128xf32>
    %875 = math.exp %874 : vector<8x128xf32>
    %cst_124 = arith.constant 1.000000e+00 : f32
    %876 = vector.broadcast %cst_124 : f32 to vector<8x128xf32>
    %877 = arith.addf %876, %875 : vector<8x128xf32>
    %878 = arith.divf %876, %877 : vector<8x128xf32>
    %879 = math.tanh %873 : vector<8x128xf32>
    %880 = vector.extract_strided_slice %878 {offsets = [0, 0], sizes = [8, 32], strides = [1, 1]} : vector<8x128xf32> to vector<8x32xf32>
    %881 = vector.extract_strided_slice %878 {offsets = [0, 32], sizes = [8, 32], strides = [1, 1]} : vector<8x128xf32> to vector<8x32xf32>
    %882 = vector.extract_strided_slice %879 {offsets = [0, 64], sizes = [8, 32], strides = [1, 1]} : vector<8x128xf32> to vector<8x32xf32>
    %883 = vector.extract_strided_slice %878 {offsets = [0, 96], sizes = [8, 32], strides = [1, 1]} : vector<8x128xf32> to vector<8x32xf32>
    %884 = arith.mulf %881, %846 : vector<8x32xf32>
    %885 = arith.mulf %880, %882 : vector<8x32xf32>
    %886 = arith.addf %884, %885 : vector<8x32xf32>
    %887 = math.tanh %886 : vector<8x32xf32>
    %888 = arith.mulf %883, %887 : vector<8x32xf32>
    %889 = vector.extract_strided_slice %19 {offsets = [4, 0, 0], sizes = [1, 8, 128], strides = [1, 1, 1]} : vector<16x8x128xf32> to vector<1x8x128xf32>
    %890 = vector.shape_cast %889 : vector<1x8x128xf32> to vector<8x128xf32>
    %891 = arith.truncf %868 : vector<8x32xf32> to vector<8x32xbf16>
    %cst_125 = arith.constant dense<0.000000e+00> : vector<8x128xf32>
    %892 = tpu.matmul %891, %23, %cst_125 {dimension_numbers = #tpu.dot_dimension_numbers<[1], [0], [0], [1], [0, 0, 1, 1], [], []>} : vector<8x32xbf16>, vector<32x128xbf16>, vector<8x128xf32> -> vector<8x128xf32>
    %893 = arith.addf %890, %892 : vector<8x128xf32>
    %894 = arith.negf %893 : vector<8x128xf32>
    %895 = math.exp %894 : vector<8x128xf32>
    %cst_126 = arith.constant 1.000000e+00 : f32
    %896 = vector.broadcast %cst_126 : f32 to vector<8x128xf32>
    %897 = arith.addf %896, %895 : vector<8x128xf32>
    %898 = arith.divf %896, %897 : vector<8x128xf32>
    %899 = math.tanh %893 : vector<8x128xf32>
    %900 = vector.extract_strided_slice %898 {offsets = [0, 0], sizes = [8, 32], strides = [1, 1]} : vector<8x128xf32> to vector<8x32xf32>
    %901 = vector.extract_strided_slice %898 {offsets = [0, 32], sizes = [8, 32], strides = [1, 1]} : vector<8x128xf32> to vector<8x32xf32>
    %902 = vector.extract_strided_slice %899 {offsets = [0, 64], sizes = [8, 32], strides = [1, 1]} : vector<8x128xf32> to vector<8x32xf32>
    %903 = vector.extract_strided_slice %898 {offsets = [0, 96], sizes = [8, 32], strides = [1, 1]} : vector<8x128xf32> to vector<8x32xf32>
    %904 = arith.mulf %901, %866 : vector<8x32xf32>
    %905 = arith.mulf %900, %902 : vector<8x32xf32>
    %906 = arith.addf %904, %905 : vector<8x32xf32>
    %907 = math.tanh %906 : vector<8x32xf32>
    %908 = arith.mulf %903, %907 : vector<8x32xf32>
    %909 = tpu.concatenate %908, %888 in 1 : vector<8x32xf32>, vector<8x32xf32> -> vector<8x64xf32>
    %910 = arith.truncf %909 : vector<8x64xf32> to vector<8x64xbf16>
    %cst_127 = arith.constant dense<0.000000e+00> : vector<8x128xf32>
    %911 = tpu.matmul %910, %24, %cst_127 {dimension_numbers = #tpu.dot_dimension_numbers<[1], [0], [0], [1], [0, 0, 1, 1], [], []>} : vector<8x64xbf16>, vector<64x128xbf16>, vector<8x128xf32> -> vector<8x128xf32>
    %912 = vector.broadcast %25 : vector<1x128xf32> to vector<8x128xf32>
    %913 = arith.addf %911, %912 : vector<8x128xf32>
    %914 = arith.negf %913 : vector<8x128xf32>
    %915 = math.exp %914 : vector<8x128xf32>
    %cst_128 = arith.constant 1.000000e+00 : f32
    %916 = vector.broadcast %cst_128 : f32 to vector<8x128xf32>
    %917 = arith.addf %916, %915 : vector<8x128xf32>
    %918 = arith.divf %916, %917 : vector<8x128xf32>
    %919 = math.tanh %913 : vector<8x128xf32>
    %920 = vector.extract_strided_slice %918 {offsets = [0, 0], sizes = [8, 32], strides = [1, 1]} : vector<8x128xf32> to vector<8x32xf32>
    %921 = vector.extract_strided_slice %918 {offsets = [0, 32], sizes = [8, 32], strides = [1, 1]} : vector<8x128xf32> to vector<8x32xf32>
    %922 = vector.extract_strided_slice %919 {offsets = [0, 64], sizes = [8, 32], strides = [1, 1]} : vector<8x128xf32> to vector<8x32xf32>
    %923 = vector.extract_strided_slice %918 {offsets = [0, 96], sizes = [8, 32], strides = [1, 1]} : vector<8x128xf32> to vector<8x32xf32>
    %924 = arith.mulf %921, %886 : vector<8x32xf32>
    %925 = arith.mulf %920, %922 : vector<8x32xf32>
    %926 = arith.addf %924, %925 : vector<8x32xf32>
    %927 = math.tanh %926 : vector<8x32xf32>
    %928 = arith.mulf %923, %927 : vector<8x32xf32>
    %929 = vector.extract_strided_slice %19 {offsets = [5, 0, 0], sizes = [1, 8, 128], strides = [1, 1, 1]} : vector<16x8x128xf32> to vector<1x8x128xf32>
    %930 = vector.shape_cast %929 : vector<1x8x128xf32> to vector<8x128xf32>
    %931 = arith.truncf %908 : vector<8x32xf32> to vector<8x32xbf16>
    %cst_129 = arith.constant dense<0.000000e+00> : vector<8x128xf32>
    %932 = tpu.matmul %931, %23, %cst_129 {dimension_numbers = #tpu.dot_dimension_numbers<[1], [0], [0], [1], [0, 0, 1, 1], [], []>} : vector<8x32xbf16>, vector<32x128xbf16>, vector<8x128xf32> -> vector<8x128xf32>
    %933 = arith.addf %930, %932 : vector<8x128xf32>
    %934 = arith.negf %933 : vector<8x128xf32>
    %935 = math.exp %934 : vector<8x128xf32>
    %cst_130 = arith.constant 1.000000e+00 : f32
    %936 = vector.broadcast %cst_130 : f32 to vector<8x128xf32>
    %937 = arith.addf %936, %935 : vector<8x128xf32>
    %938 = arith.divf %936, %937 : vector<8x128xf32>
    %939 = math.tanh %933 : vector<8x128xf32>
    %940 = vector.extract_strided_slice %938 {offsets = [0, 0], sizes = [8, 32], strides = [1, 1]} : vector<8x128xf32> to vector<8x32xf32>
    %941 = vector.extract_strided_slice %938 {offsets = [0, 32], sizes = [8, 32], strides = [1, 1]} : vector<8x128xf32> to vector<8x32xf32>
    %942 = vector.extract_strided_slice %939 {offsets = [0, 64], sizes = [8, 32], strides = [1, 1]} : vector<8x128xf32> to vector<8x32xf32>
    %943 = vector.extract_strided_slice %938 {offsets = [0, 96], sizes = [8, 32], strides = [1, 1]} : vector<8x128xf32> to vector<8x32xf32>
    %944 = arith.mulf %941, %906 : vector<8x32xf32>
    %945 = arith.mulf %940, %942 : vector<8x32xf32>
    %946 = arith.addf %944, %945 : vector<8x32xf32>
    %947 = math.tanh %946 : vector<8x32xf32>
    %948 = arith.mulf %943, %947 : vector<8x32xf32>
    %949 = tpu.concatenate %948, %928 in 1 : vector<8x32xf32>, vector<8x32xf32> -> vector<8x64xf32>
    %950 = arith.truncf %949 : vector<8x64xf32> to vector<8x64xbf16>
    %cst_131 = arith.constant dense<0.000000e+00> : vector<8x128xf32>
    %951 = tpu.matmul %950, %24, %cst_131 {dimension_numbers = #tpu.dot_dimension_numbers<[1], [0], [0], [1], [0, 0, 1, 1], [], []>} : vector<8x64xbf16>, vector<64x128xbf16>, vector<8x128xf32> -> vector<8x128xf32>
    %952 = vector.broadcast %25 : vector<1x128xf32> to vector<8x128xf32>
    %953 = arith.addf %951, %952 : vector<8x128xf32>
    %954 = arith.negf %953 : vector<8x128xf32>
    %955 = math.exp %954 : vector<8x128xf32>
    %cst_132 = arith.constant 1.000000e+00 : f32
    %956 = vector.broadcast %cst_132 : f32 to vector<8x128xf32>
    %957 = arith.addf %956, %955 : vector<8x128xf32>
    %958 = arith.divf %956, %957 : vector<8x128xf32>
    %959 = math.tanh %953 : vector<8x128xf32>
    %960 = vector.extract_strided_slice %958 {offsets = [0, 0], sizes = [8, 32], strides = [1, 1]} : vector<8x128xf32> to vector<8x32xf32>
    %961 = vector.extract_strided_slice %958 {offsets = [0, 32], sizes = [8, 32], strides = [1, 1]} : vector<8x128xf32> to vector<8x32xf32>
    %962 = vector.extract_strided_slice %959 {offsets = [0, 64], sizes = [8, 32], strides = [1, 1]} : vector<8x128xf32> to vector<8x32xf32>
    %963 = vector.extract_strided_slice %958 {offsets = [0, 96], sizes = [8, 32], strides = [1, 1]} : vector<8x128xf32> to vector<8x32xf32>
    %964 = arith.mulf %961, %926 : vector<8x32xf32>
    %965 = arith.mulf %960, %962 : vector<8x32xf32>
    %966 = arith.addf %964, %965 : vector<8x32xf32>
    %967 = math.tanh %966 : vector<8x32xf32>
    %968 = arith.mulf %963, %967 : vector<8x32xf32>
    %969 = vector.extract_strided_slice %19 {offsets = [6, 0, 0], sizes = [1, 8, 128], strides = [1, 1, 1]} : vector<16x8x128xf32> to vector<1x8x128xf32>
    %970 = vector.shape_cast %969 : vector<1x8x128xf32> to vector<8x128xf32>
    %971 = arith.truncf %948 : vector<8x32xf32> to vector<8x32xbf16>
    %cst_133 = arith.constant dense<0.000000e+00> : vector<8x128xf32>
    %972 = tpu.matmul %971, %23, %cst_133 {dimension_numbers = #tpu.dot_dimension_numbers<[1], [0], [0], [1], [0, 0, 1, 1], [], []>} : vector<8x32xbf16>, vector<32x128xbf16>, vector<8x128xf32> -> vector<8x128xf32>
    %973 = arith.addf %970, %972 : vector<8x128xf32>
    %974 = arith.negf %973 : vector<8x128xf32>
    %975 = math.exp %974 : vector<8x128xf32>
    %cst_134 = arith.constant 1.000000e+00 : f32
    %976 = vector.broadcast %cst_134 : f32 to vector<8x128xf32>
    %977 = arith.addf %976, %975 : vector<8x128xf32>
    %978 = arith.divf %976, %977 : vector<8x128xf32>
    %979 = math.tanh %973 : vector<8x128xf32>
    %980 = vector.extract_strided_slice %978 {offsets = [0, 0], sizes = [8, 32], strides = [1, 1]} : vector<8x128xf32> to vector<8x32xf32>
    %981 = vector.extract_strided_slice %978 {offsets = [0, 32], sizes = [8, 32], strides = [1, 1]} : vector<8x128xf32> to vector<8x32xf32>
    %982 = vector.extract_strided_slice %979 {offsets = [0, 64], sizes = [8, 32], strides = [1, 1]} : vector<8x128xf32> to vector<8x32xf32>
    %983 = vector.extract_strided_slice %978 {offsets = [0, 96], sizes = [8, 32], strides = [1, 1]} : vector<8x128xf32> to vector<8x32xf32>
    %984 = arith.mulf %981, %946 : vector<8x32xf32>
    %985 = arith.mulf %980, %982 : vector<8x32xf32>
    %986 = arith.addf %984, %985 : vector<8x32xf32>
    %987 = math.tanh %986 : vector<8x32xf32>
    %988 = arith.mulf %983, %987 : vector<8x32xf32>
    %989 = tpu.concatenate %988, %968 in 1 : vector<8x32xf32>, vector<8x32xf32> -> vector<8x64xf32>
    %990 = arith.truncf %989 : vector<8x64xf32> to vector<8x64xbf16>
    %cst_135 = arith.constant dense<0.000000e+00> : vector<8x128xf32>
    %991 = tpu.matmul %990, %24, %cst_135 {dimension_numbers = #tpu.dot_dimension_numbers<[1], [0], [0], [1], [0, 0, 1, 1], [], []>} : vector<8x64xbf16>, vector<64x128xbf16>, vector<8x128xf32> -> vector<8x128xf32>
    %992 = vector.broadcast %25 : vector<1x128xf32> to vector<8x128xf32>
    %993 = arith.addf %991, %992 : vector<8x128xf32>
    %994 = arith.negf %993 : vector<8x128xf32>
    %995 = math.exp %994 : vector<8x128xf32>
    %cst_136 = arith.constant 1.000000e+00 : f32
    %996 = vector.broadcast %cst_136 : f32 to vector<8x128xf32>
    %997 = arith.addf %996, %995 : vector<8x128xf32>
    %998 = arith.divf %996, %997 : vector<8x128xf32>
    %999 = math.tanh %993 : vector<8x128xf32>
    %1000 = vector.extract_strided_slice %998 {offsets = [0, 0], sizes = [8, 32], strides = [1, 1]} : vector<8x128xf32> to vector<8x32xf32>
    %1001 = vector.extract_strided_slice %998 {offsets = [0, 32], sizes = [8, 32], strides = [1, 1]} : vector<8x128xf32> to vector<8x32xf32>
    %1002 = vector.extract_strided_slice %999 {offsets = [0, 64], sizes = [8, 32], strides = [1, 1]} : vector<8x128xf32> to vector<8x32xf32>
    %1003 = vector.extract_strided_slice %998 {offsets = [0, 96], sizes = [8, 32], strides = [1, 1]} : vector<8x128xf32> to vector<8x32xf32>
    %1004 = arith.mulf %1001, %966 : vector<8x32xf32>
    %1005 = arith.mulf %1000, %1002 : vector<8x32xf32>
    %1006 = arith.addf %1004, %1005 : vector<8x32xf32>
    %1007 = math.tanh %1006 : vector<8x32xf32>
    %1008 = arith.mulf %1003, %1007 : vector<8x32xf32>
    %1009 = vector.extract_strided_slice %19 {offsets = [7, 0, 0], sizes = [1, 8, 128], strides = [1, 1, 1]} : vector<16x8x128xf32> to vector<1x8x128xf32>
    %1010 = vector.shape_cast %1009 : vector<1x8x128xf32> to vector<8x128xf32>
    %1011 = arith.truncf %988 : vector<8x32xf32> to vector<8x32xbf16>
    %cst_137 = arith.constant dense<0.000000e+00> : vector<8x128xf32>
    %1012 = tpu.matmul %1011, %23, %cst_137 {dimension_numbers = #tpu.dot_dimension_numbers<[1], [0], [0], [1], [0, 0, 1, 1], [], []>} : vector<8x32xbf16>, vector<32x128xbf16>, vector<8x128xf32> -> vector<8x128xf32>
    %1013 = arith.addf %1010, %1012 : vector<8x128xf32>
    %1014 = arith.negf %1013 : vector<8x128xf32>
    %1015 = math.exp %1014 : vector<8x128xf32>
    %cst_138 = arith.constant 1.000000e+00 : f32
    %1016 = vector.broadcast %cst_138 : f32 to vector<8x128xf32>
    %1017 = arith.addf %1016, %1015 : vector<8x128xf32>
    %1018 = arith.divf %1016, %1017 : vector<8x128xf32>
    %1019 = math.tanh %1013 : vector<8x128xf32>
    %1020 = vector.extract_strided_slice %1018 {offsets = [0, 0], sizes = [8, 32], strides = [1, 1]} : vector<8x128xf32> to vector<8x32xf32>
    %1021 = vector.extract_strided_slice %1018 {offsets = [0, 32], sizes = [8, 32], strides = [1, 1]} : vector<8x128xf32> to vector<8x32xf32>
    %1022 = vector.extract_strided_slice %1019 {offsets = [0, 64], sizes = [8, 32], strides = [1, 1]} : vector<8x128xf32> to vector<8x32xf32>
    %1023 = vector.extract_strided_slice %1018 {offsets = [0, 96], sizes = [8, 32], strides = [1, 1]} : vector<8x128xf32> to vector<8x32xf32>
    %1024 = arith.mulf %1021, %986 : vector<8x32xf32>
    %1025 = arith.mulf %1020, %1022 : vector<8x32xf32>
    %1026 = arith.addf %1024, %1025 : vector<8x32xf32>
    %1027 = math.tanh %1026 : vector<8x32xf32>
    %1028 = arith.mulf %1023, %1027 : vector<8x32xf32>
    %1029 = tpu.concatenate %1028, %1008 in 1 : vector<8x32xf32>, vector<8x32xf32> -> vector<8x64xf32>
    %1030 = arith.truncf %1029 : vector<8x64xf32> to vector<8x64xbf16>
    %cst_139 = arith.constant dense<0.000000e+00> : vector<8x128xf32>
    %1031 = tpu.matmul %1030, %24, %cst_139 {dimension_numbers = #tpu.dot_dimension_numbers<[1], [0], [0], [1], [0, 0, 1, 1], [], []>} : vector<8x64xbf16>, vector<64x128xbf16>, vector<8x128xf32> -> vector<8x128xf32>
    %1032 = vector.broadcast %25 : vector<1x128xf32> to vector<8x128xf32>
    %1033 = arith.addf %1031, %1032 : vector<8x128xf32>
    %1034 = arith.negf %1033 : vector<8x128xf32>
    %1035 = math.exp %1034 : vector<8x128xf32>
    %cst_140 = arith.constant 1.000000e+00 : f32
    %1036 = vector.broadcast %cst_140 : f32 to vector<8x128xf32>
    %1037 = arith.addf %1036, %1035 : vector<8x128xf32>
    %1038 = arith.divf %1036, %1037 : vector<8x128xf32>
    %1039 = math.tanh %1033 : vector<8x128xf32>
    %1040 = vector.extract_strided_slice %1038 {offsets = [0, 0], sizes = [8, 32], strides = [1, 1]} : vector<8x128xf32> to vector<8x32xf32>
    %1041 = vector.extract_strided_slice %1038 {offsets = [0, 32], sizes = [8, 32], strides = [1, 1]} : vector<8x128xf32> to vector<8x32xf32>
    %1042 = vector.extract_strided_slice %1039 {offsets = [0, 64], sizes = [8, 32], strides = [1, 1]} : vector<8x128xf32> to vector<8x32xf32>
    %1043 = vector.extract_strided_slice %1038 {offsets = [0, 96], sizes = [8, 32], strides = [1, 1]} : vector<8x128xf32> to vector<8x32xf32>
    %1044 = arith.mulf %1041, %1006 : vector<8x32xf32>
    %1045 = arith.mulf %1040, %1042 : vector<8x32xf32>
    %1046 = arith.addf %1044, %1045 : vector<8x32xf32>
    %1047 = math.tanh %1046 : vector<8x32xf32>
    %1048 = arith.mulf %1043, %1047 : vector<8x32xf32>
    %1049 = vector.extract_strided_slice %19 {offsets = [8, 0, 0], sizes = [1, 8, 128], strides = [1, 1, 1]} : vector<16x8x128xf32> to vector<1x8x128xf32>
    %1050 = vector.shape_cast %1049 : vector<1x8x128xf32> to vector<8x128xf32>
    %1051 = arith.truncf %1028 : vector<8x32xf32> to vector<8x32xbf16>
    %cst_141 = arith.constant dense<0.000000e+00> : vector<8x128xf32>
    %1052 = tpu.matmul %1051, %23, %cst_141 {dimension_numbers = #tpu.dot_dimension_numbers<[1], [0], [0], [1], [0, 0, 1, 1], [], []>} : vector<8x32xbf16>, vector<32x128xbf16>, vector<8x128xf32> -> vector<8x128xf32>
    %1053 = arith.addf %1050, %1052 : vector<8x128xf32>
    %1054 = arith.negf %1053 : vector<8x128xf32>
    %1055 = math.exp %1054 : vector<8x128xf32>
    %cst_142 = arith.constant 1.000000e+00 : f32
    %1056 = vector.broadcast %cst_142 : f32 to vector<8x128xf32>
    %1057 = arith.addf %1056, %1055 : vector<8x128xf32>
    %1058 = arith.divf %1056, %1057 : vector<8x128xf32>
    %1059 = math.tanh %1053 : vector<8x128xf32>
    %1060 = vector.extract_strided_slice %1058 {offsets = [0, 0], sizes = [8, 32], strides = [1, 1]} : vector<8x128xf32> to vector<8x32xf32>
    %1061 = vector.extract_strided_slice %1058 {offsets = [0, 32], sizes = [8, 32], strides = [1, 1]} : vector<8x128xf32> to vector<8x32xf32>
    %1062 = vector.extract_strided_slice %1059 {offsets = [0, 64], sizes = [8, 32], strides = [1, 1]} : vector<8x128xf32> to vector<8x32xf32>
    %1063 = vector.extract_strided_slice %1058 {offsets = [0, 96], sizes = [8, 32], strides = [1, 1]} : vector<8x128xf32> to vector<8x32xf32>
    %1064 = arith.mulf %1061, %1026 : vector<8x32xf32>
    %1065 = arith.mulf %1060, %1062 : vector<8x32xf32>
    %1066 = arith.addf %1064, %1065 : vector<8x32xf32>
    %1067 = math.tanh %1066 : vector<8x32xf32>
    %1068 = arith.mulf %1063, %1067 : vector<8x32xf32>
    %1069 = tpu.concatenate %1068, %1048 in 1 : vector<8x32xf32>, vector<8x32xf32> -> vector<8x64xf32>
    %1070 = arith.truncf %1069 : vector<8x64xf32> to vector<8x64xbf16>
    %cst_143 = arith.constant dense<0.000000e+00> : vector<8x128xf32>
    %1071 = tpu.matmul %1070, %24, %cst_143 {dimension_numbers = #tpu.dot_dimension_numbers<[1], [0], [0], [1], [0, 0, 1, 1], [], []>} : vector<8x64xbf16>, vector<64x128xbf16>, vector<8x128xf32> -> vector<8x128xf32>
    %1072 = vector.broadcast %25 : vector<1x128xf32> to vector<8x128xf32>
    %1073 = arith.addf %1071, %1072 : vector<8x128xf32>
    %1074 = arith.negf %1073 : vector<8x128xf32>
    %1075 = math.exp %1074 : vector<8x128xf32>
    %cst_144 = arith.constant 1.000000e+00 : f32
    %1076 = vector.broadcast %cst_144 : f32 to vector<8x128xf32>
    %1077 = arith.addf %1076, %1075 : vector<8x128xf32>
    %1078 = arith.divf %1076, %1077 : vector<8x128xf32>
    %1079 = math.tanh %1073 : vector<8x128xf32>
    %1080 = vector.extract_strided_slice %1078 {offsets = [0, 0], sizes = [8, 32], strides = [1, 1]} : vector<8x128xf32> to vector<8x32xf32>
    %1081 = vector.extract_strided_slice %1078 {offsets = [0, 32], sizes = [8, 32], strides = [1, 1]} : vector<8x128xf32> to vector<8x32xf32>
    %1082 = vector.extract_strided_slice %1079 {offsets = [0, 64], sizes = [8, 32], strides = [1, 1]} : vector<8x128xf32> to vector<8x32xf32>
    %1083 = vector.extract_strided_slice %1078 {offsets = [0, 96], sizes = [8, 32], strides = [1, 1]} : vector<8x128xf32> to vector<8x32xf32>
    %1084 = arith.mulf %1081, %1046 : vector<8x32xf32>
    %1085 = arith.mulf %1080, %1082 : vector<8x32xf32>
    %1086 = arith.addf %1084, %1085 : vector<8x32xf32>
    %1087 = math.tanh %1086 : vector<8x32xf32>
    %1088 = arith.mulf %1083, %1087 : vector<8x32xf32>
    %1089 = vector.extract_strided_slice %19 {offsets = [9, 0, 0], sizes = [1, 8, 128], strides = [1, 1, 1]} : vector<16x8x128xf32> to vector<1x8x128xf32>
    %1090 = vector.shape_cast %1089 : vector<1x8x128xf32> to vector<8x128xf32>
    %1091 = arith.truncf %1068 : vector<8x32xf32> to vector<8x32xbf16>
    %cst_145 = arith.constant dense<0.000000e+00> : vector<8x128xf32>
    %1092 = tpu.matmul %1091, %23, %cst_145 {dimension_numbers = #tpu.dot_dimension_numbers<[1], [0], [0], [1], [0, 0, 1, 1], [], []>} : vector<8x32xbf16>, vector<32x128xbf16>, vector<8x128xf32> -> vector<8x128xf32>
    %1093 = arith.addf %1090, %1092 : vector<8x128xf32>
    %1094 = arith.negf %1093 : vector<8x128xf32>
    %1095 = math.exp %1094 : vector<8x128xf32>
    %cst_146 = arith.constant 1.000000e+00 : f32
    %1096 = vector.broadcast %cst_146 : f32 to vector<8x128xf32>
    %1097 = arith.addf %1096, %1095 : vector<8x128xf32>
    %1098 = arith.divf %1096, %1097 : vector<8x128xf32>
    %1099 = math.tanh %1093 : vector<8x128xf32>
    %1100 = vector.extract_strided_slice %1098 {offsets = [0, 0], sizes = [8, 32], strides = [1, 1]} : vector<8x128xf32> to vector<8x32xf32>
    %1101 = vector.extract_strided_slice %1098 {offsets = [0, 32], sizes = [8, 32], strides = [1, 1]} : vector<8x128xf32> to vector<8x32xf32>
    %1102 = vector.extract_strided_slice %1099 {offsets = [0, 64], sizes = [8, 32], strides = [1, 1]} : vector<8x128xf32> to vector<8x32xf32>
    %1103 = vector.extract_strided_slice %1098 {offsets = [0, 96], sizes = [8, 32], strides = [1, 1]} : vector<8x128xf32> to vector<8x32xf32>
    %1104 = arith.mulf %1101, %1066 : vector<8x32xf32>
    %1105 = arith.mulf %1100, %1102 : vector<8x32xf32>
    %1106 = arith.addf %1104, %1105 : vector<8x32xf32>
    %1107 = math.tanh %1106 : vector<8x32xf32>
    %1108 = arith.mulf %1103, %1107 : vector<8x32xf32>
    %1109 = tpu.concatenate %1108, %1088 in 1 : vector<8x32xf32>, vector<8x32xf32> -> vector<8x64xf32>
    %1110 = arith.truncf %1109 : vector<8x64xf32> to vector<8x64xbf16>
    %cst_147 = arith.constant dense<0.000000e+00> : vector<8x128xf32>
    %1111 = tpu.matmul %1110, %24, %cst_147 {dimension_numbers = #tpu.dot_dimension_numbers<[1], [0], [0], [1], [0, 0, 1, 1], [], []>} : vector<8x64xbf16>, vector<64x128xbf16>, vector<8x128xf32> -> vector<8x128xf32>
    %1112 = vector.broadcast %25 : vector<1x128xf32> to vector<8x128xf32>
    %1113 = arith.addf %1111, %1112 : vector<8x128xf32>
    %1114 = arith.negf %1113 : vector<8x128xf32>
    %1115 = math.exp %1114 : vector<8x128xf32>
    %cst_148 = arith.constant 1.000000e+00 : f32
    %1116 = vector.broadcast %cst_148 : f32 to vector<8x128xf32>
    %1117 = arith.addf %1116, %1115 : vector<8x128xf32>
    %1118 = arith.divf %1116, %1117 : vector<8x128xf32>
    %1119 = math.tanh %1113 : vector<8x128xf32>
    %1120 = vector.extract_strided_slice %1118 {offsets = [0, 0], sizes = [8, 32], strides = [1, 1]} : vector<8x128xf32> to vector<8x32xf32>
    %1121 = vector.extract_strided_slice %1118 {offsets = [0, 32], sizes = [8, 32], strides = [1, 1]} : vector<8x128xf32> to vector<8x32xf32>
    %1122 = vector.extract_strided_slice %1119 {offsets = [0, 64], sizes = [8, 32], strides = [1, 1]} : vector<8x128xf32> to vector<8x32xf32>
    %1123 = vector.extract_strided_slice %1118 {offsets = [0, 96], sizes = [8, 32], strides = [1, 1]} : vector<8x128xf32> to vector<8x32xf32>
    %1124 = arith.mulf %1121, %1086 : vector<8x32xf32>
    %1125 = arith.mulf %1120, %1122 : vector<8x32xf32>
    %1126 = arith.addf %1124, %1125 : vector<8x32xf32>
    %1127 = math.tanh %1126 : vector<8x32xf32>
    %1128 = arith.mulf %1123, %1127 : vector<8x32xf32>
    %1129 = vector.extract_strided_slice %19 {offsets = [10, 0, 0], sizes = [1, 8, 128], strides = [1, 1, 1]} : vector<16x8x128xf32> to vector<1x8x128xf32>
    %1130 = vector.shape_cast %1129 : vector<1x8x128xf32> to vector<8x128xf32>
    %1131 = arith.truncf %1108 : vector<8x32xf32> to vector<8x32xbf16>
    %cst_149 = arith.constant dense<0.000000e+00> : vector<8x128xf32>
    %1132 = tpu.matmul %1131, %23, %cst_149 {dimension_numbers = #tpu.dot_dimension_numbers<[1], [0], [0], [1], [0, 0, 1, 1], [], []>} : vector<8x32xbf16>, vector<32x128xbf16>, vector<8x128xf32> -> vector<8x128xf32>
    %1133 = arith.addf %1130, %1132 : vector<8x128xf32>
    %1134 = arith.negf %1133 : vector<8x128xf32>
    %1135 = math.exp %1134 : vector<8x128xf32>
    %cst_150 = arith.constant 1.000000e+00 : f32
    %1136 = vector.broadcast %cst_150 : f32 to vector<8x128xf32>
    %1137 = arith.addf %1136, %1135 : vector<8x128xf32>
    %1138 = arith.divf %1136, %1137 : vector<8x128xf32>
    %1139 = math.tanh %1133 : vector<8x128xf32>
    %1140 = vector.extract_strided_slice %1138 {offsets = [0, 0], sizes = [8, 32], strides = [1, 1]} : vector<8x128xf32> to vector<8x32xf32>
    %1141 = vector.extract_strided_slice %1138 {offsets = [0, 32], sizes = [8, 32], strides = [1, 1]} : vector<8x128xf32> to vector<8x32xf32>
    %1142 = vector.extract_strided_slice %1139 {offsets = [0, 64], sizes = [8, 32], strides = [1, 1]} : vector<8x128xf32> to vector<8x32xf32>
    %1143 = vector.extract_strided_slice %1138 {offsets = [0, 96], sizes = [8, 32], strides = [1, 1]} : vector<8x128xf32> to vector<8x32xf32>
    %1144 = arith.mulf %1141, %1106 : vector<8x32xf32>
    %1145 = arith.mulf %1140, %1142 : vector<8x32xf32>
    %1146 = arith.addf %1144, %1145 : vector<8x32xf32>
    %1147 = math.tanh %1146 : vector<8x32xf32>
    %1148 = arith.mulf %1143, %1147 : vector<8x32xf32>
    %1149 = tpu.concatenate %1148, %1128 in 1 : vector<8x32xf32>, vector<8x32xf32> -> vector<8x64xf32>
    %1150 = arith.truncf %1149 : vector<8x64xf32> to vector<8x64xbf16>
    %cst_151 = arith.constant dense<0.000000e+00> : vector<8x128xf32>
    %1151 = tpu.matmul %1150, %24, %cst_151 {dimension_numbers = #tpu.dot_dimension_numbers<[1], [0], [0], [1], [0, 0, 1, 1], [], []>} : vector<8x64xbf16>, vector<64x128xbf16>, vector<8x128xf32> -> vector<8x128xf32>
    %1152 = vector.broadcast %25 : vector<1x128xf32> to vector<8x128xf32>
    %1153 = arith.addf %1151, %1152 : vector<8x128xf32>
    %1154 = arith.negf %1153 : vector<8x128xf32>
    %1155 = math.exp %1154 : vector<8x128xf32>
    %cst_152 = arith.constant 1.000000e+00 : f32
    %1156 = vector.broadcast %cst_152 : f32 to vector<8x128xf32>
    %1157 = arith.addf %1156, %1155 : vector<8x128xf32>
    %1158 = arith.divf %1156, %1157 : vector<8x128xf32>
    %1159 = math.tanh %1153 : vector<8x128xf32>
    %1160 = vector.extract_strided_slice %1158 {offsets = [0, 0], sizes = [8, 32], strides = [1, 1]} : vector<8x128xf32> to vector<8x32xf32>
    %1161 = vector.extract_strided_slice %1158 {offsets = [0, 32], sizes = [8, 32], strides = [1, 1]} : vector<8x128xf32> to vector<8x32xf32>
    %1162 = vector.extract_strided_slice %1159 {offsets = [0, 64], sizes = [8, 32], strides = [1, 1]} : vector<8x128xf32> to vector<8x32xf32>
    %1163 = vector.extract_strided_slice %1158 {offsets = [0, 96], sizes = [8, 32], strides = [1, 1]} : vector<8x128xf32> to vector<8x32xf32>
    %1164 = arith.mulf %1161, %1126 : vector<8x32xf32>
    %1165 = arith.mulf %1160, %1162 : vector<8x32xf32>
    %1166 = arith.addf %1164, %1165 : vector<8x32xf32>
    %1167 = math.tanh %1166 : vector<8x32xf32>
    %1168 = arith.mulf %1163, %1167 : vector<8x32xf32>
    %1169 = vector.extract_strided_slice %19 {offsets = [11, 0, 0], sizes = [1, 8, 128], strides = [1, 1, 1]} : vector<16x8x128xf32> to vector<1x8x128xf32>
    %1170 = vector.shape_cast %1169 : vector<1x8x128xf32> to vector<8x128xf32>
    %1171 = arith.truncf %1148 : vector<8x32xf32> to vector<8x32xbf16>
    %cst_153 = arith.constant dense<0.000000e+00> : vector<8x128xf32>
    %1172 = tpu.matmul %1171, %23, %cst_153 {dimension_numbers = #tpu.dot_dimension_numbers<[1], [0], [0], [1], [0, 0, 1, 1], [], []>} : vector<8x32xbf16>, vector<32x128xbf16>, vector<8x128xf32> -> vector<8x128xf32>
    %1173 = arith.addf %1170, %1172 : vector<8x128xf32>
    %1174 = arith.negf %1173 : vector<8x128xf32>
    %1175 = math.exp %1174 : vector<8x128xf32>
    %cst_154 = arith.constant 1.000000e+00 : f32
    %1176 = vector.broadcast %cst_154 : f32 to vector<8x128xf32>
    %1177 = arith.addf %1176, %1175 : vector<8x128xf32>
    %1178 = arith.divf %1176, %1177 : vector<8x128xf32>
    %1179 = math.tanh %1173 : vector<8x128xf32>
    %1180 = vector.extract_strided_slice %1178 {offsets = [0, 0], sizes = [8, 32], strides = [1, 1]} : vector<8x128xf32> to vector<8x32xf32>
    %1181 = vector.extract_strided_slice %1178 {offsets = [0, 32], sizes = [8, 32], strides = [1, 1]} : vector<8x128xf32> to vector<8x32xf32>
    %1182 = vector.extract_strided_slice %1179 {offsets = [0, 64], sizes = [8, 32], strides = [1, 1]} : vector<8x128xf32> to vector<8x32xf32>
    %1183 = vector.extract_strided_slice %1178 {offsets = [0, 96], sizes = [8, 32], strides = [1, 1]} : vector<8x128xf32> to vector<8x32xf32>
    %1184 = arith.mulf %1181, %1146 : vector<8x32xf32>
    %1185 = arith.mulf %1180, %1182 : vector<8x32xf32>
    %1186 = arith.addf %1184, %1185 : vector<8x32xf32>
    %1187 = math.tanh %1186 : vector<8x32xf32>
    %1188 = arith.mulf %1183, %1187 : vector<8x32xf32>
    %1189 = tpu.concatenate %1188, %1168 in 1 : vector<8x32xf32>, vector<8x32xf32> -> vector<8x64xf32>
    %1190 = arith.truncf %1189 : vector<8x64xf32> to vector<8x64xbf16>
    %cst_155 = arith.constant dense<0.000000e+00> : vector<8x128xf32>
    %1191 = tpu.matmul %1190, %24, %cst_155 {dimension_numbers = #tpu.dot_dimension_numbers<[1], [0], [0], [1], [0, 0, 1, 1], [], []>} : vector<8x64xbf16>, vector<64x128xbf16>, vector<8x128xf32> -> vector<8x128xf32>
    %1192 = vector.broadcast %25 : vector<1x128xf32> to vector<8x128xf32>
    %1193 = arith.addf %1191, %1192 : vector<8x128xf32>
    %1194 = arith.negf %1193 : vector<8x128xf32>
    %1195 = math.exp %1194 : vector<8x128xf32>
    %cst_156 = arith.constant 1.000000e+00 : f32
    %1196 = vector.broadcast %cst_156 : f32 to vector<8x128xf32>
    %1197 = arith.addf %1196, %1195 : vector<8x128xf32>
    %1198 = arith.divf %1196, %1197 : vector<8x128xf32>
    %1199 = math.tanh %1193 : vector<8x128xf32>
    %1200 = vector.extract_strided_slice %1198 {offsets = [0, 0], sizes = [8, 32], strides = [1, 1]} : vector<8x128xf32> to vector<8x32xf32>
    %1201 = vector.extract_strided_slice %1198 {offsets = [0, 32], sizes = [8, 32], strides = [1, 1]} : vector<8x128xf32> to vector<8x32xf32>
    %1202 = vector.extract_strided_slice %1199 {offsets = [0, 64], sizes = [8, 32], strides = [1, 1]} : vector<8x128xf32> to vector<8x32xf32>
    %1203 = vector.extract_strided_slice %1198 {offsets = [0, 96], sizes = [8, 32], strides = [1, 1]} : vector<8x128xf32> to vector<8x32xf32>
    %1204 = arith.mulf %1201, %1166 : vector<8x32xf32>
    %1205 = arith.mulf %1200, %1202 : vector<8x32xf32>
    %1206 = arith.addf %1204, %1205 : vector<8x32xf32>
    %1207 = math.tanh %1206 : vector<8x32xf32>
    %1208 = arith.mulf %1203, %1207 : vector<8x32xf32>
    %1209 = vector.extract_strided_slice %19 {offsets = [12, 0, 0], sizes = [1, 8, 128], strides = [1, 1, 1]} : vector<16x8x128xf32> to vector<1x8x128xf32>
    %1210 = vector.shape_cast %1209 : vector<1x8x128xf32> to vector<8x128xf32>
    %1211 = arith.truncf %1188 : vector<8x32xf32> to vector<8x32xbf16>
    %cst_157 = arith.constant dense<0.000000e+00> : vector<8x128xf32>
    %1212 = tpu.matmul %1211, %23, %cst_157 {dimension_numbers = #tpu.dot_dimension_numbers<[1], [0], [0], [1], [0, 0, 1, 1], [], []>} : vector<8x32xbf16>, vector<32x128xbf16>, vector<8x128xf32> -> vector<8x128xf32>
    %1213 = arith.addf %1210, %1212 : vector<8x128xf32>
    %1214 = arith.negf %1213 : vector<8x128xf32>
    %1215 = math.exp %1214 : vector<8x128xf32>
    %cst_158 = arith.constant 1.000000e+00 : f32
    %1216 = vector.broadcast %cst_158 : f32 to vector<8x128xf32>
    %1217 = arith.addf %1216, %1215 : vector<8x128xf32>
    %1218 = arith.divf %1216, %1217 : vector<8x128xf32>
    %1219 = math.tanh %1213 : vector<8x128xf32>
    %1220 = vector.extract_strided_slice %1218 {offsets = [0, 0], sizes = [8, 32], strides = [1, 1]} : vector<8x128xf32> to vector<8x32xf32>
    %1221 = vector.extract_strided_slice %1218 {offsets = [0, 32], sizes = [8, 32], strides = [1, 1]} : vector<8x128xf32> to vector<8x32xf32>
    %1222 = vector.extract_strided_slice %1219 {offsets = [0, 64], sizes = [8, 32], strides = [1, 1]} : vector<8x128xf32> to vector<8x32xf32>
    %1223 = vector.extract_strided_slice %1218 {offsets = [0, 96], sizes = [8, 32], strides = [1, 1]} : vector<8x128xf32> to vector<8x32xf32>
    %1224 = arith.mulf %1221, %1186 : vector<8x32xf32>
    %1225 = arith.mulf %1220, %1222 : vector<8x32xf32>
    %1226 = arith.addf %1224, %1225 : vector<8x32xf32>
    %1227 = math.tanh %1226 : vector<8x32xf32>
    %1228 = arith.mulf %1223, %1227 : vector<8x32xf32>
    %1229 = tpu.concatenate %1228, %1208 in 1 : vector<8x32xf32>, vector<8x32xf32> -> vector<8x64xf32>
    %1230 = arith.truncf %1229 : vector<8x64xf32> to vector<8x64xbf16>
    %cst_159 = arith.constant dense<0.000000e+00> : vector<8x128xf32>
    %1231 = tpu.matmul %1230, %24, %cst_159 {dimension_numbers = #tpu.dot_dimension_numbers<[1], [0], [0], [1], [0, 0, 1, 1], [], []>} : vector<8x64xbf16>, vector<64x128xbf16>, vector<8x128xf32> -> vector<8x128xf32>
    %1232 = vector.broadcast %25 : vector<1x128xf32> to vector<8x128xf32>
    %1233 = arith.addf %1231, %1232 : vector<8x128xf32>
    %1234 = arith.negf %1233 : vector<8x128xf32>
    %1235 = math.exp %1234 : vector<8x128xf32>
    %cst_160 = arith.constant 1.000000e+00 : f32
    %1236 = vector.broadcast %cst_160 : f32 to vector<8x128xf32>
    %1237 = arith.addf %1236, %1235 : vector<8x128xf32>
    %1238 = arith.divf %1236, %1237 : vector<8x128xf32>
    %1239 = math.tanh %1233 : vector<8x128xf32>
    %1240 = vector.extract_strided_slice %1238 {offsets = [0, 0], sizes = [8, 32], strides = [1, 1]} : vector<8x128xf32> to vector<8x32xf32>
    %1241 = vector.extract_strided_slice %1238 {offsets = [0, 32], sizes = [8, 32], strides = [1, 1]} : vector<8x128xf32> to vector<8x32xf32>
    %1242 = vector.extract_strided_slice %1239 {offsets = [0, 64], sizes = [8, 32], strides = [1, 1]} : vector<8x128xf32> to vector<8x32xf32>
    %1243 = vector.extract_strided_slice %1238 {offsets = [0, 96], sizes = [8, 32], strides = [1, 1]} : vector<8x128xf32> to vector<8x32xf32>
    %1244 = arith.mulf %1241, %1206 : vector<8x32xf32>
    %1245 = arith.mulf %1240, %1242 : vector<8x32xf32>
    %1246 = arith.addf %1244, %1245 : vector<8x32xf32>
    %1247 = math.tanh %1246 : vector<8x32xf32>
    %1248 = arith.mulf %1243, %1247 : vector<8x32xf32>
    %1249 = vector.extract_strided_slice %19 {offsets = [13, 0, 0], sizes = [1, 8, 128], strides = [1, 1, 1]} : vector<16x8x128xf32> to vector<1x8x128xf32>
    %1250 = vector.shape_cast %1249 : vector<1x8x128xf32> to vector<8x128xf32>
    %1251 = arith.truncf %1228 : vector<8x32xf32> to vector<8x32xbf16>
    %cst_161 = arith.constant dense<0.000000e+00> : vector<8x128xf32>
    %1252 = tpu.matmul %1251, %23, %cst_161 {dimension_numbers = #tpu.dot_dimension_numbers<[1], [0], [0], [1], [0, 0, 1, 1], [], []>} : vector<8x32xbf16>, vector<32x128xbf16>, vector<8x128xf32> -> vector<8x128xf32>
    %1253 = arith.addf %1250, %1252 : vector<8x128xf32>
    %1254 = arith.negf %1253 : vector<8x128xf32>
    %1255 = math.exp %1254 : vector<8x128xf32>
    %cst_162 = arith.constant 1.000000e+00 : f32
    %1256 = vector.broadcast %cst_162 : f32 to vector<8x128xf32>
    %1257 = arith.addf %1256, %1255 : vector<8x128xf32>
    %1258 = arith.divf %1256, %1257 : vector<8x128xf32>
    %1259 = math.tanh %1253 : vector<8x128xf32>
    %1260 = vector.extract_strided_slice %1258 {offsets = [0, 0], sizes = [8, 32], strides = [1, 1]} : vector<8x128xf32> to vector<8x32xf32>
    %1261 = vector.extract_strided_slice %1258 {offsets = [0, 32], sizes = [8, 32], strides = [1, 1]} : vector<8x128xf32> to vector<8x32xf32>
    %1262 = vector.extract_strided_slice %1259 {offsets = [0, 64], sizes = [8, 32], strides = [1, 1]} : vector<8x128xf32> to vector<8x32xf32>
    %1263 = vector.extract_strided_slice %1258 {offsets = [0, 96], sizes = [8, 32], strides = [1, 1]} : vector<8x128xf32> to vector<8x32xf32>
    %1264 = arith.mulf %1261, %1226 : vector<8x32xf32>
    %1265 = arith.mulf %1260, %1262 : vector<8x32xf32>
    %1266 = arith.addf %1264, %1265 : vector<8x32xf32>
    %1267 = math.tanh %1266 : vector<8x32xf32>
    %1268 = arith.mulf %1263, %1267 : vector<8x32xf32>
    %1269 = tpu.concatenate %1268, %1248 in 1 : vector<8x32xf32>, vector<8x32xf32> -> vector<8x64xf32>
    %1270 = arith.truncf %1269 : vector<8x64xf32> to vector<8x64xbf16>
    %cst_163 = arith.constant dense<0.000000e+00> : vector<8x128xf32>
    %1271 = tpu.matmul %1270, %24, %cst_163 {dimension_numbers = #tpu.dot_dimension_numbers<[1], [0], [0], [1], [0, 0, 1, 1], [], []>} : vector<8x64xbf16>, vector<64x128xbf16>, vector<8x128xf32> -> vector<8x128xf32>
    %1272 = vector.broadcast %25 : vector<1x128xf32> to vector<8x128xf32>
    %1273 = arith.addf %1271, %1272 : vector<8x128xf32>
    %1274 = arith.negf %1273 : vector<8x128xf32>
    %1275 = math.exp %1274 : vector<8x128xf32>
    %cst_164 = arith.constant 1.000000e+00 : f32
    %1276 = vector.broadcast %cst_164 : f32 to vector<8x128xf32>
    %1277 = arith.addf %1276, %1275 : vector<8x128xf32>
    %1278 = arith.divf %1276, %1277 : vector<8x128xf32>
    %1279 = math.tanh %1273 : vector<8x128xf32>
    %1280 = vector.extract_strided_slice %1278 {offsets = [0, 0], sizes = [8, 32], strides = [1, 1]} : vector<8x128xf32> to vector<8x32xf32>
    %1281 = vector.extract_strided_slice %1278 {offsets = [0, 32], sizes = [8, 32], strides = [1, 1]} : vector<8x128xf32> to vector<8x32xf32>
    %1282 = vector.extract_strided_slice %1279 {offsets = [0, 64], sizes = [8, 32], strides = [1, 1]} : vector<8x128xf32> to vector<8x32xf32>
    %1283 = vector.extract_strided_slice %1278 {offsets = [0, 96], sizes = [8, 32], strides = [1, 1]} : vector<8x128xf32> to vector<8x32xf32>
    %1284 = arith.mulf %1281, %1246 : vector<8x32xf32>
    %1285 = arith.mulf %1280, %1282 : vector<8x32xf32>
    %1286 = arith.addf %1284, %1285 : vector<8x32xf32>
    %1287 = math.tanh %1286 : vector<8x32xf32>
    %1288 = arith.mulf %1283, %1287 : vector<8x32xf32>
    %1289 = vector.extract_strided_slice %19 {offsets = [14, 0, 0], sizes = [1, 8, 128], strides = [1, 1, 1]} : vector<16x8x128xf32> to vector<1x8x128xf32>
    %1290 = vector.shape_cast %1289 : vector<1x8x128xf32> to vector<8x128xf32>
    %1291 = arith.truncf %1268 : vector<8x32xf32> to vector<8x32xbf16>
    %cst_165 = arith.constant dense<0.000000e+00> : vector<8x128xf32>
    %1292 = tpu.matmul %1291, %23, %cst_165 {dimension_numbers = #tpu.dot_dimension_numbers<[1], [0], [0], [1], [0, 0, 1, 1], [], []>} : vector<8x32xbf16>, vector<32x128xbf16>, vector<8x128xf32> -> vector<8x128xf32>
    %1293 = arith.addf %1290, %1292 : vector<8x128xf32>
    %1294 = arith.negf %1293 : vector<8x128xf32>
    %1295 = math.exp %1294 : vector<8x128xf32>
    %cst_166 = arith.constant 1.000000e+00 : f32
    %1296 = vector.broadcast %cst_166 : f32 to vector<8x128xf32>
    %1297 = arith.addf %1296, %1295 : vector<8x128xf32>
    %1298 = arith.divf %1296, %1297 : vector<8x128xf32>
    %1299 = math.tanh %1293 : vector<8x128xf32>
    %1300 = vector.extract_strided_slice %1298 {offsets = [0, 0], sizes = [8, 32], strides = [1, 1]} : vector<8x128xf32> to vector<8x32xf32>
    %1301 = vector.extract_strided_slice %1298 {offsets = [0, 32], sizes = [8, 32], strides = [1, 1]} : vector<8x128xf32> to vector<8x32xf32>
    %1302 = vector.extract_strided_slice %1299 {offsets = [0, 64], sizes = [8, 32], strides = [1, 1]} : vector<8x128xf32> to vector<8x32xf32>
    %1303 = vector.extract_strided_slice %1298 {offsets = [0, 96], sizes = [8, 32], strides = [1, 1]} : vector<8x128xf32> to vector<8x32xf32>
    %1304 = arith.mulf %1301, %1266 : vector<8x32xf32>
    %1305 = arith.mulf %1300, %1302 : vector<8x32xf32>
    %1306 = arith.addf %1304, %1305 : vector<8x32xf32>
    %1307 = math.tanh %1306 : vector<8x32xf32>
    %1308 = arith.mulf %1303, %1307 : vector<8x32xf32>
    %1309 = tpu.concatenate %1308, %1288 in 1 : vector<8x32xf32>, vector<8x32xf32> -> vector<8x64xf32>
    %1310 = arith.truncf %1309 : vector<8x64xf32> to vector<8x64xbf16>
    %cst_167 = arith.constant dense<0.000000e+00> : vector<8x128xf32>
    %1311 = tpu.matmul %1310, %24, %cst_167 {dimension_numbers = #tpu.dot_dimension_numbers<[1], [0], [0], [1], [0, 0, 1, 1], [], []>} : vector<8x64xbf16>, vector<64x128xbf16>, vector<8x128xf32> -> vector<8x128xf32>
    %1312 = vector.broadcast %25 : vector<1x128xf32> to vector<8x128xf32>
    %1313 = arith.addf %1311, %1312 : vector<8x128xf32>
    %1314 = arith.negf %1313 : vector<8x128xf32>
    %1315 = math.exp %1314 : vector<8x128xf32>
    %cst_168 = arith.constant 1.000000e+00 : f32
    %1316 = vector.broadcast %cst_168 : f32 to vector<8x128xf32>
    %1317 = arith.addf %1316, %1315 : vector<8x128xf32>
    %1318 = arith.divf %1316, %1317 : vector<8x128xf32>
    %1319 = math.tanh %1313 : vector<8x128xf32>
    %1320 = vector.extract_strided_slice %1318 {offsets = [0, 0], sizes = [8, 32], strides = [1, 1]} : vector<8x128xf32> to vector<8x32xf32>
    %1321 = vector.extract_strided_slice %1318 {offsets = [0, 32], sizes = [8, 32], strides = [1, 1]} : vector<8x128xf32> to vector<8x32xf32>
    %1322 = vector.extract_strided_slice %1319 {offsets = [0, 64], sizes = [8, 32], strides = [1, 1]} : vector<8x128xf32> to vector<8x32xf32>
    %1323 = vector.extract_strided_slice %1318 {offsets = [0, 96], sizes = [8, 32], strides = [1, 1]} : vector<8x128xf32> to vector<8x32xf32>
    %1324 = arith.mulf %1321, %1286 : vector<8x32xf32>
    %1325 = arith.mulf %1320, %1322 : vector<8x32xf32>
    %1326 = arith.addf %1324, %1325 : vector<8x32xf32>
    %1327 = math.tanh %1326 : vector<8x32xf32>
    %1328 = arith.mulf %1323, %1327 : vector<8x32xf32>
    %1329 = vector.extract_strided_slice %19 {offsets = [15, 0, 0], sizes = [1, 8, 128], strides = [1, 1, 1]} : vector<16x8x128xf32> to vector<1x8x128xf32>
    %1330 = vector.shape_cast %1329 : vector<1x8x128xf32> to vector<8x128xf32>
    %1331 = arith.truncf %1308 : vector<8x32xf32> to vector<8x32xbf16>
    %cst_169 = arith.constant dense<0.000000e+00> : vector<8x128xf32>
    %1332 = tpu.matmul %1331, %23, %cst_169 {dimension_numbers = #tpu.dot_dimension_numbers<[1], [0], [0], [1], [0, 0, 1, 1], [], []>} : vector<8x32xbf16>, vector<32x128xbf16>, vector<8x128xf32> -> vector<8x128xf32>
    %1333 = arith.addf %1330, %1332 : vector<8x128xf32>
    %1334 = arith.negf %1333 : vector<8x128xf32>
    %1335 = math.exp %1334 : vector<8x128xf32>
    %cst_170 = arith.constant 1.000000e+00 : f32
    %1336 = vector.broadcast %cst_170 : f32 to vector<8x128xf32>
    %1337 = arith.addf %1336, %1335 : vector<8x128xf32>
    %1338 = arith.divf %1336, %1337 : vector<8x128xf32>
    %1339 = math.tanh %1333 : vector<8x128xf32>
    %1340 = vector.extract_strided_slice %1338 {offsets = [0, 0], sizes = [8, 32], strides = [1, 1]} : vector<8x128xf32> to vector<8x32xf32>
    %1341 = vector.extract_strided_slice %1338 {offsets = [0, 32], sizes = [8, 32], strides = [1, 1]} : vector<8x128xf32> to vector<8x32xf32>
    %1342 = vector.extract_strided_slice %1339 {offsets = [0, 64], sizes = [8, 32], strides = [1, 1]} : vector<8x128xf32> to vector<8x32xf32>
    %1343 = vector.extract_strided_slice %1338 {offsets = [0, 96], sizes = [8, 32], strides = [1, 1]} : vector<8x128xf32> to vector<8x32xf32>
    %1344 = arith.mulf %1341, %1306 : vector<8x32xf32>
    %1345 = arith.mulf %1340, %1342 : vector<8x32xf32>
    %1346 = arith.addf %1344, %1345 : vector<8x32xf32>
    %1347 = math.tanh %1346 : vector<8x32xf32>
    %1348 = arith.mulf %1343, %1347 : vector<8x32xf32>
    %1349 = tpu.concatenate %1348, %1328 in 1 : vector<8x32xf32>, vector<8x32xf32> -> vector<8x64xf32>
    %1350 = arith.truncf %1349 : vector<8x64xf32> to vector<8x64xbf16>
    %cst_171 = arith.constant dense<0.000000e+00> : vector<8x128xf32>
    %1351 = tpu.matmul %1350, %24, %cst_171 {dimension_numbers = #tpu.dot_dimension_numbers<[1], [0], [0], [1], [0, 0, 1, 1], [], []>} : vector<8x64xbf16>, vector<64x128xbf16>, vector<8x128xf32> -> vector<8x128xf32>
    %1352 = vector.broadcast %25 : vector<1x128xf32> to vector<8x128xf32>
    %1353 = arith.addf %1351, %1352 : vector<8x128xf32>
    %1354 = arith.negf %1353 : vector<8x128xf32>
    %1355 = math.exp %1354 : vector<8x128xf32>
    %cst_172 = arith.constant 1.000000e+00 : f32
    %1356 = vector.broadcast %cst_172 : f32 to vector<8x128xf32>
    %1357 = arith.addf %1356, %1355 : vector<8x128xf32>
    %1358 = arith.divf %1356, %1357 : vector<8x128xf32>
    %1359 = math.tanh %1353 : vector<8x128xf32>
    %1360 = vector.extract_strided_slice %1358 {offsets = [0, 0], sizes = [8, 32], strides = [1, 1]} : vector<8x128xf32> to vector<8x32xf32>
    %1361 = vector.extract_strided_slice %1358 {offsets = [0, 32], sizes = [8, 32], strides = [1, 1]} : vector<8x128xf32> to vector<8x32xf32>
    %1362 = vector.extract_strided_slice %1359 {offsets = [0, 64], sizes = [8, 32], strides = [1, 1]} : vector<8x128xf32> to vector<8x32xf32>
    %1363 = vector.extract_strided_slice %1358 {offsets = [0, 96], sizes = [8, 32], strides = [1, 1]} : vector<8x128xf32> to vector<8x32xf32>
    %1364 = arith.mulf %1361, %1326 : vector<8x32xf32>
    %1365 = arith.mulf %1360, %1362 : vector<8x32xf32>
    %1366 = arith.addf %1364, %1365 : vector<8x32xf32>
    %1367 = math.tanh %1366 : vector<8x32xf32>
    %1368 = arith.mulf %1363, %1367 : vector<8x32xf32>
    %c0_173 = arith.constant 0 : index
    %c0_174 = arith.constant 0 : index
    %1369 = vector.load %arg18[%c0_173, %c0_174] : memref<32x1xf32, #tpu.memory_space<vmem>>, vector<32x1xf32>
    %cst_175 = arith.constant dense<0.000000e+00> : vector<8x1xf32>
    %1370 = tpu.matmul %1368, %1369, %cst_175 {dimension_numbers = #tpu.dot_dimension_numbers<[1], [0], [0], [1], [0, 0, 1, 1], [], []>} : vector<8x32xf32>, vector<32x1xf32>, vector<8x1xf32> -> vector<8x1xf32>
    %c0_176 = arith.constant 0 : index
    %c0_177 = arith.constant 0 : index
    %1371 = vector.load %arg19[%c0_176, %c0_177] : memref<1x1xf32, #tpu.memory_space<vmem>>, vector<1x1xf32>
    %1372 = vector.broadcast %1371 : vector<1x1xf32> to vector<8x1xf32>
    %1373 = arith.addf %1370, %1372 : vector<8x1xf32>
    %c0_178 = arith.constant 0 : index
    %c0_179 = arith.constant 0 : index
    %1374 = vector.load %arg20[%c0_178, %c0_179] : memref<8x1xf32, #tpu.memory_space<vmem>>, vector<8x1xf32>
    tpu.vector_store %arg20[%c0_178, %c0_179], %1373 {strides = array<i32>} : memref<8x1xf32, #tpu.memory_space<vmem>>, vector<8x1xf32>,
    return
  }
}

</mosaic_0001>

<bundles_post_ra>
// kernel: tpu_custom_call.1
= control target key start
LH: loop header
LB: loop body
LE: loop exit
PB: predicated region body
PF: predicated region fallthrough
CT: control target
= control target key end

     0   :  { %v5252_v1 = vmov 0   ;;  %s5253_s21 = smov 64   ;;  %s5254_s24 = smov 32   ;;  %vm290_vm4 = vcmask 261120   ;;  %vm378_vm5 = vcmask 523264   ;;  %s6690_s4 = inlined_call_operand.vmem [shape: bf16[32,128], index: 4, kind: input, shape index: {}]   ;;  %s6691_s0 = inlined_call_operand.vmem [shape: f32[17,8,1], index: 0, kind: input, shape index: {}]   ;;  %s6692_s2 = inlined_call_operand.vmem [shape: f32[1,128], index: 2, kind: input, shape index: {}]   ;;  %s6693_s3 = inlined_call_operand.vmem [shape: f32[1,128], index: 3, kind: input, shape index: {}]   ;;  %s6694_s13 = inlined_call_operand.vmem [shape: f32[1,128], index: 13, kind: input, shape index: {}]   ;;  %s6695_s14 = inlined_call_operand.vmem [shape: f32[1,128], index: 14, kind: input, shape index: {}]   ;;  %s6696_s5 = inlined_call_operand.vmem [shape: bf16[64,128], index: 5, kind: input, shape index: {}]   ;;  %s6697_s6 = inlined_call_operand.vmem [shape: f32[1,128], index: 6, kind: input, shape index: {}]   ;;  %s6698_s9 = inlined_call_operand.vmem [shape: f32[32,16], index: 9, kind: input, shape index: {}]   ;;  %s6699_s7 = inlined_call_operand.vmem [shape: f32[32,16], index: 7, kind: input, shape index: {}]   ;;  %s6700_s8 = inlined_call_operand.vmem [shape: f32[1,16], index: 8, kind: input, shape index: {}]   ;;  %s6701_s10 = inlined_call_operand.vmem [shape: f32[1,16], index: 10, kind: input, shape index: {}]   ;;  %s6702_s12 = inlined_call_operand.vmem [shape: f32[1,32], index: 12, kind: input, shape index: {}]   ;;  %s6703_s11 = inlined_call_operand.vmem [shape: f32[16,32], index: 11, kind: input, shape index: {}]   ;;  %s6704_s15 = inlined_call_operand.vmem [shape: bf16[32,128], index: 15, kind: input, shape index: {}]   ;;  %s6705_s1 = inlined_call_operand.vmem [shape: f32[8,16], index: 1, kind: input, shape index: {}]   ;;  %s6706_s16 = inlined_call_operand.vmem [shape: bf16[64,128], index: 16, kind: input, shape index: {}]   ;;  %s6707_s17 = inlined_call_operand.vmem [shape: f32[1,128], index: 17, kind: input, shape index: {}]   ;;  %s6708_s18 = inlined_call_operand.vmem [shape: f32[32,1], index: 18, kind: input, shape index: {}]   ;;  %s6709_s19 = inlined_call_operand.<no memory space> [shape: f32[1,1], index: 19, kind: input, shape index: {}]   ;;  %s6710_s20 = inlined_call_operand.vmem [shape: f32[8,1], index: 20, kind: output, shape index: {}]  }
   0x1   :  { %6716 = sst [smem:[#allocation3_spill]] %s6690_s4  ;;  %4674 = vset.pattern.permute.xlu0 %v5252_v1  ;;  %4675 = vset.pattern.permute.xlu1 %v5252_v1  ;;  %v5405_v33 = vld [vmem:[%s6696_s5 + $0x18] sm:$0xff]  ;;  %v5415_v37 = vld [vmem:[%s6696_s5 + $0x10] sm:$0xff]  ;;  %v5421_v38 = vld [vmem:[%s6696_s5 + $0x8] sm:$0xff] }
   0x2   :  { %6717 = sst [smem:[#allocation4_spill]] %s6691_s0  ;;  %4676 = vset.pattern.permute.xlu2 %v5252_v1  ;;  %386 = vmatpush.bf16.msra.mxu1 %v5405_v33  ;;  %v5431_v39 = vld [vmem:[%s6696_s5] sm:$0xff] }
   0x3   :  { %6718 = sst [smem:[#allocation5_spill]] %s6692_s2  ;;  %507 = vmatpush.bf16.msra.mxu3 %v5405_v33  ;;  %v5459_v49 = vld [vmem:[%s6697_s6] ss:$0 sm:$0xff] }
   0x4   :  { %6719 = sst [smem:[#allocation6_spill]] %s6693_s3 }
   0x5   :  { %6720 = sst [smem:[#allocation7_spill]] %s6694_s13 }
   0x6   :  { %s6721_s23 = sld [smem:[#allocation3_spill]]  ;;  %387 = vmatpush.bf16.msra.mxu1 %v5415_v37 }
   0x7   :  { %s6722_s25 = sld [smem:[#allocation4_spill]]  ;;  %508 = vmatpush.bf16.msra.mxu3 %v5415_v37 }
   0x8   :  { %s6723_s13 = sld [smem:[#allocation5_spill]] }
   0x9   :  { %s6724_s4 = sld [smem:[#allocation6_spill]] }
   0xa   :  { %388 = vmatpush.bf16.msra.mxu1 %v5421_v38  ;;  %s6725_s27 = sld [smem:[#allocation7_spill]] }
   0xb   :  { %509 = vmatpush.bf16.msra.mxu3 %v5421_v38 }
   0xc   :  { %v5363_v0 = vld [vmem:[%s6721_s23 + $0x8] sm:$0xff]  ;;  %v5372_v3 = vld [vmem:[%s6721_s23] sm:$0xff] }
   0xd   :  { %v68_v2 = vld [vmem:[%s6722_s25] sm:$0xff]  ;;  %300 = vmatpush.bf16.msra.mxu0 %v5363_v0  ;;  %445 = vmatpush.bf16.msra.mxu2 %v5363_v0  ;;  %v69_v13 = vld [vmem:[%s6722_s25 + $0x8] sm:$0xff] }
   0xe   :  { %88 = vperm.xlu0 %4674, %v68_v2   ;;  %v5384_v4 = vld [vmem:[%s6723_s13] ss:$0 sm:$0xff]  ;;  %389 = vmatpush.bf16.msra.mxu1 %v5431_v39 }
   0xf   :  { %v5390_v7 = vld [vmem:[%s6724_s4] ss:$0 sm:$0xff]  ;;  %510 = vmatpush.bf16.msra.mxu3 %v5431_v39 }
  0x11   :  { %301 = vmatpush.bf16.msra.mxu0 %v5372_v3  ;;  %446 = vmatpush.bf16.msra.mxu2 %v5372_v3 }
  0x12   :  { %687 = vmatpush.bf16.msrb.mxu1 %v5363_v0 }
  0x13   :  { %749 = vmatpush.bf16.msrb.mxu3 %v5405_v33 }
  0x14   :  { %302 = vmatmul.bf16.vlgmr.msra.gmra.mxu0 %v5252_v1 }
  0x15   :  { %566 = vmatpush.bf16.msrb.mxu0 %v5363_v0  ;;  %628 = vmatpush.bf16.msrb.mxu2 %v5405_v33 }
  0x16   :  { %688 = vmatpush.bf16.msrb.mxu1 %v5372_v3 }
  0x17   :  { %750 = vmatpush.bf16.msrb.mxu3 %v5415_v37 }
  0x19   :  { %567 = vmatpush.bf16.msrb.mxu0 %v5372_v3  ;;  %629 = vmatpush.bf16.msrb.mxu2 %v5415_v37 }
  0x1b   :  { %751 = vmatpush.bf16.msrb.mxu3 %v5421_v38 }
  0x1d   :  { %808 = vmatpush.bf16.msra.mxu0 %v5363_v0  ;;  %630 = vmatpush.bf16.msrb.mxu2 %v5421_v38 }
  0x1f   :  { %752 = vmatpush.bf16.msrb.mxu3 %v5431_v39 }
  0x21   :  { %809 = vmatpush.bf16.msra.mxu0 %v5372_v3  ;;  %631 = vmatpush.bf16.msrb.mxu2 %v5431_v39 }
  0x80   :  { %v89_v5 = vpop.permute.xlu0 %88 }
  0x81   :  { %v174_v6 = vmul.f32 %v5384_v4, %v89_v5 }
  0x83   :  { %v195_v8 = vadd.f32 %v5390_v7, %v174_v6 }
  0x91   :  { %v303_v9 = vpop.f32.mrf.mxu0 }
  0x92   :  { %v307_v10 = vadd.f32 %v303_v9, %v195_v8 }
  0x94   :  { %4692 = vtanh.f32 %v307_v10  ;;  %v4484_v14 = vmul.f32 -1.442695, %v307_v10 }
  0x96   :  { %4694 = vpow2.f32 %v4484_v14 }
  0x99   :  { %v305_v11 = vpop.f32.mrf.mxu0 }
  0x9a   :  { %v4693_v12 = vpop.eup %4692 }
  0x9b   :  { %330 = vrot.lane.b32.xlu0 %v4693_v12, %s5253_s21 }
  0x9c   :  { %v4695_v15 = vpop.eup %4694 }
  0x9d   :  { %v311_v16 = vadd.f32 1.0, %v4695_v15 }
  0x9f   :  { %4696 = vrcp.f32 %v311_v16  ;;  %v323_v22 = vand.u32 2147483648, %v311_v16  ;;  %vm317_vm1 = vweird.f32 %v311_v16  ;;  %v321_v23 = vand.u32 2147483647, %v311_v16 }
  0xa1   :  { %v324_v25 = vor.u32 1.1754944e-38, %v323_v22  ;;  %vm322_vm3 = vcmp.eq.f32.partialorder %v321_v23, 8.507059e+37 }
  0xa3   :  { %93 = vperm.xlu0 %4674, %v69_v13  }
  0xa5   :  { %v4697_v17 = vpop.eup %4696 }
  0xa6   :  { %v313_v18 = vmul.f32 %v4697_v17, %v311_v16  ;;  %vm318_vm0 = vweird.f32 %v4697_v17 }
  0xa7   :  { %vm319_vm2 = vmor %vm317_vm1, %vm318_vm0 }
  0xa8   :  { %v314_v19 = vsub.f32 1.0, %v313_v18 }
  0xaa   :  { %v315_v20 = vmul.f32 %v4697_v17, %v314_v19 }
  0xac   :  { %v316_v21 = vadd.f32 %v4697_v17, %v315_v20 }
  0xae   :  { %v320_v24 = vsel %vm319_vm2, %v4697_v17, %v316_v21 }
  0xaf   :  { %v325_v27 = vsel %vm322_vm3, %v324_v25, %v320_v24 }
  0xb0   :  { %v328_v29 = vmul.f32 0.0, %v325_v27 }
 0x10d   :  { %v331_v26 = vpop.permute.xlu0 %330 }
 0x10e   :  { %v333_v28 = vmul.f32 %v331_v26, %v325_v27 }
 0x110   :  { %335 = vrot.lane.b32.xlu1 %v333_v28, %s5254_s24 }
 0x115   :  { %v5451_v44 = vpop.permute.xlu0 %93 }
 0x116   :  { %v175_v45 = vmul.f32 %v5384_v4, %v5451_v44 }
 0x118   :  { %v196_v46 = vadd.f32 %v5390_v7, %v175_v45 }
 0x182   :  { %v336_v30 = vpop.permute.xlu1 %335 }
 0x183   :  { %v5398_v31 = vadd.f32 %v336_v30, %v328_v29 }
 0x185   :  { %4698 = vtanh.f32 %v5398_v31 }
 0x18b   :  { %v4699_v32 = vpop.eup %4698 }
 0x18c   :  { %341 = vrot.lane.b32.xlu1 %v4699_v32, %s5253_s21 }
 0x1fe   :  { %v342_v34 = vpop.permute.xlu1 %341 }
 0x1ff   :  { %v344_v35 = vmul.f32 %v342_v34, %v325_v27 }
 0x201   :  { %v432_v36 = vpack.c.bf16 %v344_v35, %v344_v35 }
 0x203   :  { %434 = vrot.lane.b32.xlu2 %v432_v36, %s5254_s24 }
 0x20b   :  { %346 = vrot.lane.b32.xlu2 %v344_v35, %s5254_s24 }
 0x25d   :  { %v435_v40 = vpop.permute.xlu2 %434 }
 0x25e   :  { %4503 = vmatmul.msk.bf16.vlgmr.msra.gmra.mxu2 %vm290_vm4, %v435_v40 }
 0x25f   :  { %870 = vmatpush.bf16.msra.mxu2 %v5405_v33 }
 0x263   :  { %871 = vmatpush.bf16.msra.mxu2 %v5415_v37 }
 0x265   :  { %v347_v41 = vpop.permute.xlu2 %346 }
 0x266   :  { %v349_v42 = vsel %vm290_vm4, %v347_v41, 0.0 }
 0x267   :  { %v350_v43 = vpack.c.bf16 %v349_v42, %v349_v42  ;;  %872 = vmatpush.bf16.msra.mxu2 %v5421_v38 }
 0x269   :  { %4501 = vmatmul.msk.bf16.vlgmr.msra.gmra.mxu1 %vm378_vm5, %v350_v43  ;;  %v70_v43 = vld [vmem:[%s6722_s25 + $0x10] sm:$0xff] }
 0x26a   :  { %929 = vmatpush.bf16.msra.mxu1 %v5363_v0 }
 0x26b   :  { %873 = vmatpush.bf16.msra.mxu2 %v5431_v39 }
 0x26e   :  { %930 = vmatpush.bf16.msra.mxu1 %v5372_v3 }
 0x2e1   :  { %v448_v47 = vpop.f32.mrf.mxu2 }
 0x2e2   :  { %v452_v48 = vadd.f32 %v448_v47, %v196_v46 }
 0x2e4   :  { %4700 = vtanh.f32 %v452_v48  ;;  %v4504_v56 = vmul.f32 -1.442695, %v452_v48 }
 0x2e6   :  { %v391_v50 = vpop.f32.mrf.mxu1 }
 0x2e7   :  { %v392_v51 = vadd.f32 %v5459_v49, %v391_v50 }
 0x2e9   :  { %4702 = vtanh.f32 %v392_v51  ;;  %v450_v52 = vpop.f32.mrf.mxu2  ;;  %v4502_v61 = vmul.f32 -1.442695, %v392_v51 }
 0x2ea   :  { %v4701_v53 = vpop.eup %4700  ;;  %4704 = vpow2.f32 %v4504_v56 }
 0x2eb   :  { %475 = vrot.lane.b32.xlu2 %v4701_v53, %s5253_s21 }
 0x2ee   :  { %v393_v54 = vpop.f32.mrf.mxu1 }
 0x2ef   :  { %v4703_v55 = vpop.eup %4702 }
 0x2f0   :  { %417 = vrot.lane.b32.xlu1 %v4703_v55, %s5253_s21  ;;  %v4705_v57 = vpop.eup %4704 }
 0x2f1   :  { %v456_v58 = vadd.f32 1.0, %v4705_v57 }
 0x2f3   :  { %4706 = vrcp.f32 %v456_v58  ;;  %v468_v5 = vand.u32 2147483648, %v456_v58  ;;  %vm462_vm7 = vweird.f32 %v456_v58  ;;  %v466_v6 = vand.u32 2147483647, %v456_v58 }
 0x2f4   :  { %4708 = vpow2.f32 %v4502_v61 }
 0x2f5   :  { %v469_v10 = vor.u32 1.1754944e-38, %v468_v5  ;;  %vm467_vm9 = vcmp.eq.f32.partialorder %v466_v6, 8.507059e+37 }
 0x2f9   :  { %v4707_v59 = vpop.eup %4706 }
 0x2fa   :  { %v458_v60 = vmul.f32 %v4707_v59, %v456_v58  ;;  %vm463_vm6 = vweird.f32 %v4707_v59  ;;  %v4709_v2 = vpop.eup %4708 }
 0x2fb   :  { %vm464_vm8 = vmor %vm462_vm7, %vm463_vm6  ;;  %v398_v8 = vadd.f32 1.0, %v4709_v2 }
 0x2fc   :  { %v459_v62 = vsub.f32 1.0, %v458_v60 }
 0x2fd   :  { %4710 = vrcp.f32 %v398_v8  ;;  %v410_v19 = vand.u32 2147483648, %v398_v8  ;;  %vm404_vm11 = vweird.f32 %v398_v8  ;;  %v408_v20 = vand.u32 2147483647, %v398_v8 }
 0x2fe   :  { %v460_v63 = vmul.f32 %v4707_v59, %v459_v62 }
 0x2ff   :  { %v411_v22 = vor.u32 1.1754944e-38, %v410_v19  ;;  %vm409_vm13 = vcmp.eq.f32.partialorder %v408_v20, 8.507059e+37 }
 0x300   :  { %v461_v1 = vadd.f32 %v4707_v59, %v460_v63 }
 0x302   :  { %v465_v9 = vsel %vm464_vm8, %v4707_v59, %v461_v1 }
 0x303   :  { %v470_v11 = vsel %vm467_vm9, %v469_v10, %v465_v9  ;;  %v4711_v14 = vpop.eup %4710 }
 0x304   :  { %v400_v15 = vmul.f32 %v4711_v14, %v398_v8  ;;  %vm405_vm10 = vweird.f32 %v4711_v14  ;;  %v473_v26 = vmul.f32 %v470_v11, %v5398_v31 }
 0x305   :  { %vm406_vm12 = vmor %vm404_vm11, %vm405_vm10 }
 0x306   :  { %v401_v16 = vsub.f32 1.0, %v400_v15 }
 0x308   :  { %v402_v17 = vmul.f32 %v4711_v14, %v401_v16 }
 0x30a   :  { %v403_v18 = vadd.f32 %v4711_v14, %v402_v17 }
 0x30c   :  { %v407_v21 = vsel %vm406_vm12, %v4711_v14, %v403_v18 }
 0x30d   :  { %v412_v24 = vsel %vm409_vm13, %v411_v22, %v407_v21 }
 0x30e   :  { %v415_v30 = vmul.f32 0.0, %v412_v24 }
 0x345   :  { %v476_v12 = vpop.permute.xlu2 %475 }
 0x346   :  { %v478_v13 = vmul.f32 %v476_v12, %v470_v11 }
 0x348   :  { %480 = vrot.lane.b32.xlu1 %v478_v13, %s5254_s24 }
 0x362   :  { %v418_v23 = vpop.permute.xlu1 %417 }
 0x363   :  { %v420_v25 = vmul.f32 %v418_v23, %v412_v24 }
 0x365   :  { %422 = vrot.lane.b32.xlu0 %v420_v25, %s5254_s24 }
 0x3ba   :  { %v481_v27 = vpop.permute.xlu1 %480 }
 0x3bb   :  { %v5467_v28 = vadd.f32 %v481_v27, %v473_v26 }
 0x3bd   :  { %4712 = vtanh.f32 %v5467_v28 }
 0x3c3   :  { %v4713_v29 = vpop.eup %4712 }
 0x3c4   :  { %486 = vrot.lane.b32.xlu0 %v4713_v29, %s5253_s21 }
 0x3d7   :  { %v423_v32 = vpop.permute.xlu0 %422 }
 0x3d8   :  { %v5471_v34 = vadd.f32 %v423_v32, %v415_v30 }
 0x3da   :  { %4714 = vtanh.f32 %v5471_v34 }
 0x3e0   :  { %v4715_v35 = vpop.eup %4714 }
 0x3e1   :  { %428 = vrot.lane.b32.xlu2 %v4715_v35, %s5253_s21 }
 0x436   :  { %v487_v36 = vpop.permute.xlu0 %486 }
 0x437   :  { %v489_v40 = vmul.f32 %v487_v36, %v470_v11 }
 0x439   :  { %v553_v31 = vpack.c.bf16 %v489_v40, %v489_v40  ;;  %491 = vrot.lane.b32.xlu1 %v489_v40, %s5254_s24 }
 0x43b   :  { %555 = vrot.lane.b32.xlu0 %v553_v31, %s5254_s24  ;;  %v429_v41 = vpop.permute.xlu2 %428 }
 0x43c   :  { %v431_v42 = vmul.f32 %v429_v41, %v412_v24 }
 0x43e   :  { %495 = vrot.lane.b32.xlu2 %v431_v42, %s5253_s21 }
 0x441   :  { %98 = vperm.xlu1 %4675, %v70_v43  }
 0x498   :  { %v496_v45 = vpop.permute.xlu2 %495 }
 0x4ab   :  { %v492_v46 = vpop.permute.xlu1 %491 }
 0x4ac   :  { %v498_v47 = vsel %vm290_vm4, %v492_v46, %v496_v45 }
 0x4ad   :  { %v499_v48 = vpack.c.bf16 %v498_v47, %v498_v47  ;;  %v556_v50 = vpop.permute.xlu0 %555 }
 0x4ae   :  { %4507 = vmatmul.msk.bf16.vlgmr.msrb.gmra.mxu0 %vm290_vm4, %v556_v50 }
 0x4af   :  { %4505 = vmatmul.msk.bf16.vlgmr.msra.gmra.mxu3 %vm378_vm5, %v499_v48  ;;  %1050 = vmatpush.bf16.msrb.mxu0 %v5363_v0 }
 0x4b0   :  { %991 = vmatpush.bf16.msra.mxu3 %v5405_v33 }
 0x4b3   :  { %1051 = vmatpush.bf16.msrb.mxu0 %v5372_v3  ;;  %v5490_v51 = vpop.permute.xlu1 %98 }
 0x4b4   :  { %992 = vmatpush.bf16.msra.mxu3 %v5415_v37  ;;  %v176_v52 = vmul.f32 %v5384_v4, %v5490_v51 }
 0x4b6   :  { %v197_v53 = vadd.f32 %v5390_v7, %v176_v52  ;;  %v71_v52 = vld [vmem:[%s6722_s25 + $0x18] sm:$0xff] }
 0x4b8   :  { %993 = vmatpush.bf16.msra.mxu3 %v5421_v38 }
 0x4bc   :  { %994 = vmatpush.bf16.msra.mxu3 %v5431_v39 }
 0x52b   :  { %v569_v54 = vpop.f32.mrf.mxu0 }
 0x52c   :  { %v573_v55 = vadd.f32 %v569_v54, %v197_v53 }
 0x52e   :  { %4716 = vtanh.f32 %v573_v55  ;;  %v4508_v2 = vmul.f32 -1.442695, %v573_v55 }
 0x532   :  { %v512_v56 = vpop.f32.mrf.mxu3 }
 0x533   :  { %v513_v57 = vadd.f32 %v5459_v49, %v512_v56  ;;  %v571_v58 = vpop.f32.mrf.mxu0 }
 0x534   :  { %v4717_v59 = vpop.eup %4716 }
 0x535   :  { %4718 = vtanh.f32 %v513_v57  ;;  %596 = vrot.lane.b32.xlu0 %v4717_v59, %s5253_s21  ;;  %v4506_v62 = vmul.f32 -1.442695, %v513_v57 }
 0x537   :  { %4720 = vpow2.f32 %v4506_v62 }
 0x53a   :  { %v514_v60 = vpop.f32.mrf.mxu3 }
 0x53b   :  { %v4719_v61 = vpop.eup %4718 }
 0x53c   :  { %538 = vrot.lane.b32.xlu2 %v4719_v61, %s5253_s21 }
 0x53d   :  { %v4721_v63 = vpop.eup %4720 }
 0x53e   :  { %v519_v1 = vadd.f32 1.0, %v4721_v63 }
 0x540   :  { %4722 = vrcp.f32 %v519_v1  ;;  %v531_v13 = vand.u32 2147483648, %v519_v1  ;;  %vm525_vm15 = vweird.f32 %v519_v1  ;;  %v529_v15 = vand.u32 2147483647, %v519_v1 }
 0x541   :  { %4724 = vpow2.f32 %v4508_v2 }
 0x542   :  { %v532_v17 = vor.u32 1.1754944e-38, %v531_v13  ;;  %vm530_vm1 = vcmp.eq.f32.partialorder %v529_v15, 8.507059e+37 }
 0x546   :  { %v4723_v5 = vpop.eup %4722 }
 0x547   :  { %v521_v6 = vmul.f32 %v4723_v5, %v519_v1  ;;  %v4725_v8 = vpop.eup %4724  ;;  %vm526_vm14 = vweird.f32 %v4723_v5 }
 0x548   :  { %v577_v9 = vadd.f32 1.0, %v4725_v8  ;;  %vm527_vm0 = vmor %vm525_vm15, %vm526_vm14 }
 0x549   :  { %v522_v10 = vsub.f32 1.0, %v521_v6 }
 0x54a   :  { %4726 = vrcp.f32 %v577_v9  ;;  %v589_v25 = vand.u32 2147483648, %v577_v9  ;;  %vm583_vm3 = vweird.f32 %v577_v9  ;;  %v587_v26 = vand.u32 2147483647, %v577_v9 }
 0x54b   :  { %v523_v11 = vmul.f32 %v4723_v5, %v522_v10 }
 0x54c   :  { %v590_v29 = vor.u32 1.1754944e-38, %v589_v25  ;;  %vm588_vm7 = vcmp.eq.f32.partialorder %v587_v26, 8.507059e+37 }
 0x54d   :  { %v524_v12 = vadd.f32 %v4723_v5, %v523_v11 }
 0x54f   :  { %v528_v16 = vsel %vm527_vm0, %v4723_v5, %v524_v12 }
 0x550   :  { %v4727_v14 = vpop.eup %4726  ;;  %v533_v20 = vsel %vm530_vm1, %v532_v17, %v528_v16 }
 0x551   :  { %v579_v18 = vmul.f32 %v4727_v14, %v577_v9  ;;  %vm584_vm2 = vweird.f32 %v4727_v14  ;;  %v536_v41 = vmul.f32 %v533_v20, %v5471_v34 }
 0x552   :  { %vm585_vm6 = vmor %vm583_vm3, %vm584_vm2 }
 0x553   :  { %v580_v22 = vsub.f32 1.0, %v579_v18 }
 0x555   :  { %v581_v23 = vmul.f32 %v4727_v14, %v580_v22 }
 0x557   :  { %v582_v24 = vadd.f32 %v4727_v14, %v581_v23 }
 0x559   :  { %v586_v27 = vsel %vm585_vm6, %v4727_v14, %v582_v24 }
 0x55a   :  { %v591_v32 = vsel %vm588_vm7, %v590_v29, %v586_v27 }
 0x55b   :  { %v594_v36 = vmul.f32 %v591_v32, %v5467_v28 }
 0x596   :  { %v539_v19 = vpop.permute.xlu2 %538 }
 0x597   :  { %v541_v21 = vmul.f32 %v539_v19, %v533_v20 }
 0x599   :  { %543 = vrot.lane.b32.xlu1 %v541_v21, %s5254_s24 }
 0x5a7   :  { %v597_v30 = vpop.permute.xlu0 %596 }
 0x5a8   :  { %v599_v35 = vmul.f32 %v597_v30, %v591_v32 }
 0x5aa   :  { %601 = vrot.lane.b32.xlu2 %v599_v35, %s5254_s24 }
 0x604   :  { %v602_v40 = vpop.permute.xlu2 %601 }
 0x605   :  { %v5501_v31 = vadd.f32 %v602_v40, %v594_v36 }
 0x607   :  { %4728 = vtanh.f32 %v5501_v31 }
 0x60b   :  { %v544_v42 = vpop.permute.xlu1 %543 }
 0x60c   :  { %v5505_v43 = vadd.f32 %v544_v42, %v536_v41 }
 0x60d   :  { %v4729_v45 = vpop.eup %4728 }
 0x60e   :  { %4730 = vtanh.f32 %v5505_v43  ;;  %607 = vrot.lane.b32.xlu1 %v4729_v45, %s5253_s21 }
 0x614   :  { %v4731_v46 = vpop.eup %4730 }
 0x615   :  { %549 = vrot.lane.b32.xlu0 %v4731_v46, %s5253_s21 }
 0x680   :  { %v608_v47 = vpop.permute.xlu1 %607 }
 0x681   :  { %v610_v28 = vmul.f32 %v608_v47, %v591_v32 }
 0x683   :  { %v674_v48 = vpack.c.bf16 %v610_v28, %v610_v28  ;;  %612 = vrot.lane.b32.xlu2 %v610_v28, %s5254_s24 }
 0x685   :  { %676 = vrot.lane.b32.xlu1 %v674_v48, %s5254_s24 }
 0x687   :  { %v550_v50 = vpop.permute.xlu0 %549 }
 0x688   :  { %v552_v34 = vmul.f32 %v550_v50, %v533_v20 }
 0x68a   :  { %616 = vrot.lane.b32.xlu0 %v552_v34, %s5253_s21 }
 0x68b   :  { %103 = vperm.xlu2 %4676, %v71_v52  }
 0x6dd   :  { %v613_v54 = vpop.permute.xlu2 %612 }
 0x6e5   :  { %v5525_v58 = vpop.permute.xlu2 %103 }
 0x6e6   :  { %v177_v59 = vmul.f32 %v5384_v4, %v5525_v58 }
 0x6e8   :  { %v198_v60 = vadd.f32 %v5390_v7, %v177_v59 }
 0x6f7   :  { %v677_v53 = vpop.permute.xlu1 %676 }
 0x6f8   :  { %4511 = vmatmul.msk.bf16.vlgmr.msrb.gmra.mxu1 %vm290_vm4, %v677_v53 }
 0x6f9   :  { %1171 = vmatpush.bf16.msrb.mxu1 %v5363_v0 }
 0x6fc   :  { %v617_v55 = vpop.permute.xlu0 %616 }
 0x6fd   :  { %v619_v56 = vsel %vm290_vm4, %v613_v54, %v617_v55  ;;  %1172 = vmatpush.bf16.msrb.mxu1 %v5372_v3 }
 0x6fe   :  { %v620_v57 = vpack.c.bf16 %v619_v56, %v619_v56 }
 0x700   :  { %4509 = vmatmul.msk.bf16.vlgmr.msrb.gmra.mxu2 %vm378_vm5, %v620_v57 }
 0x701   :  { %1112 = vmatpush.bf16.msrb.mxu2 %v5405_v33 }
 0x705   :  { %1113 = vmatpush.bf16.msrb.mxu2 %v5415_v37 }
 0x709   :  { %1114 = vmatpush.bf16.msrb.mxu2 %v5421_v38 }
 0x70d   :  { %1115 = vmatpush.bf16.msrb.mxu2 %v5431_v39 }
 0x775   :  { %v690_v61 = vpop.f32.mrf.mxu1 }
 0x776   :  { %v694_v62 = vadd.f32 %v690_v61, %v198_v60 }
 0x778   :  { %4732 = vtanh.f32 %v694_v62  ;;  %v4512_v9 = vmul.f32 -1.442695, %v694_v62 }
 0x77d   :  { %v692_v63 = vpop.f32.mrf.mxu1 }
 0x77e   :  { %v4733_v1 = vpop.eup %4732 }
 0x77f   :  { %717 = vrot.lane.b32.xlu1 %v4733_v1, %s5253_s21 }
 0x783   :  { %v633_v2 = vpop.f32.mrf.mxu2 }
 0x784   :  { %v634_v5 = vadd.f32 %v5459_v49, %v633_v2 }
 0x786   :  { %4734 = vtanh.f32 %v634_v5  ;;  %v4510_v12 = vmul.f32 -1.442695, %v634_v5 }
 0x787   :  { %4736 = vpow2.f32 %v4512_v9 }
 0x78b   :  { %v635_v6 = vpop.f32.mrf.mxu2 }
 0x78c   :  { %v4735_v8 = vpop.eup %4734 }
 0x78d   :  { %659 = vrot.lane.b32.xlu0 %v4735_v8, %s5253_s21  ;;  %v4737_v10 = vpop.eup %4736 }
 0x78e   :  { %v698_v11 = vadd.f32 1.0, %v4737_v10 }
 0x790   :  { %4738 = vrcp.f32 %v698_v11  ;;  %v710_v21 = vand.u32 2147483648, %v698_v11  ;;  %vm704_vm9 = vweird.f32 %v698_v11  ;;  %v708_v22 = vand.u32 2147483647, %v698_v11 }
 0x791   :  { %4740 = vpow2.f32 %v4510_v12 }
 0x792   :  { %v711_v25 = vor.u32 1.1754944e-38, %v710_v21  ;;  %vm709_vm11 = vcmp.eq.f32.partialorder %v708_v22, 8.507059e+37 }
 0x796   :  { %v4739_v13 = vpop.eup %4738 }
 0x797   :  { %v4741_v14 = vpop.eup %4740  ;;  %v700_v15 = vmul.f32 %v4739_v13, %v698_v11  ;;  %vm705_vm8 = vweird.f32 %v4739_v13 }
 0x798   :  { %v640_v16 = vadd.f32 1.0, %v4741_v14  ;;  %vm706_vm10 = vmor %vm704_vm9, %vm705_vm8 }
 0x799   :  { %v701_v17 = vsub.f32 1.0, %v700_v15 }
 0x79a   :  { %4742 = vrcp.f32 %v640_v16  ;;  %v652_v36 = vand.u32 2147483648, %v640_v16  ;;  %vm646_vm13 = vweird.f32 %v640_v16  ;;  %v650_v40 = vand.u32 2147483647, %v640_v16 }
 0x79b   :  { %v702_v18 = vmul.f32 %v4739_v13, %v701_v17 }
 0x79c   :  { %v653_v42 = vor.u32 1.1754944e-38, %v652_v36  ;;  %vm651_vm15 = vcmp.eq.f32.partialorder %v650_v40, 8.507059e+37 }
 0x79d   :  { %v703_v20 = vadd.f32 %v4739_v13, %v702_v18 }
 0x79f   :  { %v707_v24 = vsel %vm706_vm10, %v4739_v13, %v703_v20 }
 0x7a0   :  { %v4743_v19 = vpop.eup %4742  ;;  %v712_v29 = vsel %vm709_vm11, %v711_v25, %v707_v24 }
 0x7a1   :  { %v642_v23 = vmul.f32 %v4743_v19, %v640_v16  ;;  %vm647_vm12 = vweird.f32 %v4743_v19  ;;  %v715_v52 = vmul.f32 %v712_v29, %v5501_v31  ;;  %v72_v31 = vld [vmem:[%s6722_s25 + $0x20] sm:$0xff] }
 0x7a2   :  { %vm648_vm14 = vmor %vm646_vm13, %vm647_vm12 }
 0x7a3   :  { %v643_v26 = vsub.f32 1.0, %v642_v23 }
 0x7a5   :  { %v644_v32 = vmul.f32 %v4743_v19, %v643_v26 }
 0x7a7   :  { %v645_v35 = vadd.f32 %v4743_v19, %v644_v32 }
 0x7a9   :  { %v649_v41 = vsel %vm648_vm14, %v4743_v19, %v645_v35 }
 0x7aa   :  { %v654_v46 = vsel %vm651_vm15, %v653_v42, %v649_v41 }
 0x7ab   :  { %v657_v28 = vmul.f32 %v654_v46, %v5505_v43 }
 0x7f1   :  { %v718_v27 = vpop.permute.xlu1 %717 }
 0x7f2   :  { %v720_v30 = vmul.f32 %v718_v27, %v712_v29 }
 0x7f4   :  { %722 = vrot.lane.b32.xlu0 %v720_v30, %s5254_s24 }
 0x7ff   :  { %v660_v45 = vpop.permute.xlu0 %659 }
 0x800   :  { %v662_v47 = vmul.f32 %v660_v45, %v654_v46 }
 0x802   :  { %664 = vrot.lane.b32.xlu2 %v662_v47, %s5254_s24 }
 0x85c   :  { %v665_v48 = vpop.permute.xlu2 %664 }
 0x85d   :  { %v5536_v50 = vadd.f32 %v665_v48, %v657_v28 }
 0x85f   :  { %4744 = vtanh.f32 %v5536_v50 }
 0x865   :  { %v4745_v34 = vpop.eup %4744 }
 0x866   :  { %v723_v53 = vpop.permute.xlu0 %722  ;;  %670 = vrot.lane.b32.xlu1 %v4745_v34, %s5253_s21 }
 0x867   :  { %v5541_v54 = vadd.f32 %v723_v53, %v715_v52 }
 0x869   :  { %4746 = vtanh.f32 %v5541_v54 }
 0x86f   :  { %v4747_v55 = vpop.eup %4746 }
 0x870   :  { %728 = vrot.lane.b32.xlu2 %v4747_v55, %s5253_s21 }
 0x8ca   :  { %v729_v56 = vpop.permute.xlu2 %728 }
 0x8cb   :  { %v731_v43 = vmul.f32 %v729_v56, %v712_v29 }
 0x8cd   :  { %v795_v57 = vpack.c.bf16 %v731_v43, %v731_v43  ;;  %733 = vrot.lane.b32.xlu0 %v731_v43, %s5254_s24 }
 0x8cf   :  { %797 = vrot.lane.b32.xlu2 %v795_v57, %s5254_s24 }
 0x8d5   :  { %108 = vperm.xlu0 %4674, %v72_v31  }
 0x8d8   :  { %v671_v59 = vpop.permute.xlu1 %670 }
 0x8d9   :  { %v673_v60 = vmul.f32 %v671_v59, %v654_v46 }
 0x8db   :  { %737 = vrot.lane.b32.xlu1 %v673_v60, %s5253_s21 }
 0x929   :  { %v798_v61 = vpop.permute.xlu2 %797 }
 0x92a   :  { %4515 = vmatmul.msk.bf16.vlgmr.msra.gmra.mxu0 %vm290_vm4, %v798_v61 }
 0x92b   :  { %1292 = vmatpush.bf16.msra.mxu0 %v5363_v0 }
 0x92f   :  { %1293 = vmatpush.bf16.msra.mxu0 %v5372_v3 }
 0x93f   :  { %v734_v62 = vpop.permute.xlu0 %733 }
 0x947   :  { %v5560_v5 = vpop.permute.xlu0 %108 }
 0x948   :  { %v178_v6 = vmul.f32 %v5384_v4, %v5560_v5 }
 0x94a   :  { %v199_v8 = vadd.f32 %v5390_v7, %v178_v6 }
 0x94d   :  { %v738_v63 = vpop.permute.xlu1 %737 }
 0x94e   :  { %v740_v1 = vsel %vm290_vm4, %v734_v62, %v738_v63 }
 0x94f   :  { %v741_v2 = vpack.c.bf16 %v740_v1, %v740_v1 }
 0x951   :  { %4513 = vmatmul.msk.bf16.vlgmr.msrb.gmra.mxu3 %vm378_vm5, %v741_v2 }
 0x952   :  { %1233 = vmatpush.bf16.msrb.mxu3 %v5405_v33 }
 0x956   :  { %1234 = vmatpush.bf16.msrb.mxu3 %v5415_v37 }
 0x95a   :  { %1235 = vmatpush.bf16.msrb.mxu3 %v5421_v38 }
 0x95e   :  { %1236 = vmatpush.bf16.msrb.mxu3 %v5431_v39 }
 0x9a7   :  { %v811_v9 = vpop.f32.mrf.mxu0 }
 0x9a8   :  { %v815_v10 = vadd.f32 %v811_v9, %v199_v8  ;;  %v73_v8 = vld [vmem:[%s6722_s25 + $0x28] sm:$0xff] }
 0x9aa   :  { %4748 = vtanh.f32 %v815_v10  ;;  %v4516_v17 = vmul.f32 -1.442695, %v815_v10 }
 0x9af   :  { %v813_v11 = vpop.f32.mrf.mxu0 }
 0x9b0   :  { %v4749_v12 = vpop.eup %4748 }
 0x9b1   :  { %838 = vrot.lane.b32.xlu2 %v4749_v12, %s5253_s21 }
 0x9d4   :  { %v754_v13 = vpop.f32.mrf.mxu3 }
 0x9d5   :  { %v755_v14 = vadd.f32 %v5459_v49, %v754_v13 }
 0x9d7   :  { %4750 = vtanh.f32 %v755_v14  ;;  %v4514_v36 = vmul.f32 -1.442695, %v755_v14 }
 0x9d8   :  { %4752 = vpow2.f32 %v4516_v17 }
 0x9dc   :  { %v756_v15 = vpop.f32.mrf.mxu3 }
 0x9dd   :  { %v4751_v16 = vpop.eup %4750 }
 0x9de   :  { %780 = vrot.lane.b32.xlu1 %v4751_v16, %s5253_s21  ;;  %v4753_v18 = vpop.eup %4752 }
 0x9df   :  { %v819_v19 = vadd.f32 1.0, %v4753_v18 }
 0x9e1   :  { %4754 = vrcp.f32 %v819_v19  ;;  %v831_v25 = vand.u32 2147483648, %v819_v19  ;;  %vm825_vm1 = vweird.f32 %v819_v19  ;;  %v829_v26 = vand.u32 2147483647, %v819_v19 }
 0x9e2   :  { %4756 = vpow2.f32 %v4514_v36 }
 0x9e3   :  { %v832_v29 = vor.u32 1.1754944e-38, %v831_v25  ;;  %vm830_vm3 = vcmp.eq.f32.partialorder %v829_v26, 8.507059e+37 }
 0x9e7   :  { %v4755_v20 = vpop.eup %4754 }
 0x9e8   :  { %v821_v21 = vmul.f32 %v4755_v20, %v819_v19  ;;  %vm826_vm0 = vweird.f32 %v4755_v20  ;;  %v4757_v40 = vpop.eup %4756 }
 0x9e9   :  { %vm827_vm2 = vmor %vm825_vm1, %vm826_vm0  ;;  %v761_v41 = vadd.f32 1.0, %v4757_v40 }
 0x9ea   :  { %v822_v22 = vsub.f32 1.0, %v821_v21 }
 0x9eb   :  { %4758 = vrcp.f32 %v761_v41  ;;  %v773_v48 = vand.u32 2147483648, %v761_v41  ;;  %vm767_vm7 = vweird.f32 %v761_v41  ;;  %v771_v34 = vand.u32 2147483647, %v761_v41 }
 0x9ec   :  { %v823_v23 = vmul.f32 %v4755_v20, %v822_v22 }
 0x9ed   :  { %v774_v53 = vor.u32 1.1754944e-38, %v773_v48  ;;  %vm772_vm9 = vcmp.eq.f32.partialorder %v771_v34, 8.507059e+37 }
 0x9ee   :  { %v824_v24 = vadd.f32 %v4755_v20, %v823_v23 }
 0x9f0   :  { %v828_v27 = vsel %vm827_vm2, %v4755_v20, %v824_v24 }
 0x9f1   :  { %v833_v32 = vsel %vm830_vm3, %v832_v29, %v828_v27  ;;  %v4759_v42 = vpop.eup %4758 }
 0x9f2   :  { %v763_v45 = vmul.f32 %v4759_v42, %v761_v41  ;;  %vm768_vm6 = vweird.f32 %v4759_v42  ;;  %v836_v57 = vmul.f32 %v833_v32, %v5541_v54 }
 0x9f3   :  { %vm769_vm8 = vmor %vm767_vm7, %vm768_vm6 }
 0x9f4   :  { %v764_v46 = vsub.f32 1.0, %v763_v45 }
 0x9f6   :  { %v765_v47 = vmul.f32 %v4759_v42, %v764_v46 }
 0x9f8   :  { %v766_v28 = vadd.f32 %v4759_v42, %v765_v47 }
 0x9fa   :  { %v770_v52 = vsel %vm769_vm8, %v4759_v42, %v766_v28 }
 0x9fb   :  { %v775_v56 = vsel %vm772_vm9, %v774_v53, %v770_v52 }
 0x9fc   :  { %v778_v61 = vmul.f32 %v775_v56, %v5536_v50 }
 0xa0b   :  { %v839_v30 = vpop.permute.xlu2 %838 }
 0xa0c   :  { %v841_v35 = vmul.f32 %v839_v30, %v833_v32 }
 0xa0e   :  { %843 = vrot.lane.b32.xlu1 %v841_v35, %s5254_s24 }
 0xa50   :  { %v781_v55 = vpop.permute.xlu1 %780 }
 0xa51   :  { %v783_v43 = vmul.f32 %v781_v55, %v775_v56 }
 0xa53   :  { %785 = vrot.lane.b32.xlu0 %v783_v43, %s5254_s24 }
 0xa80   :  { %v844_v31 = vpop.permute.xlu1 %843 }
 0xa81   :  { %v5571_v59 = vadd.f32 %v844_v31, %v836_v57 }
 0xa83   :  { %4760 = vtanh.f32 %v5571_v59 }
 0xa89   :  { %v4761_v60 = vpop.eup %4760 }
 0xa8a   :  { %849 = vrot.lane.b32.xlu0 %v4761_v60, %s5253_s21 }
 0xac5   :  { %v786_v62 = vpop.permute.xlu0 %785 }
 0xac6   :  { %v5576_v63 = vadd.f32 %v786_v62, %v778_v61 }
 0xac8   :  { %4762 = vtanh.f32 %v5576_v63 }
 0xace   :  { %v4763_v1 = vpop.eup %4762 }
 0xacf   :  { %791 = vrot.lane.b32.xlu2 %v4763_v1, %s5253_s21 }
 0xafc   :  { %v850_v2 = vpop.permute.xlu0 %849 }
 0xafd   :  { %v852_v54 = vmul.f32 %v850_v2, %v833_v32 }
 0xaff   :  { %v916_v6 = vpack.c.bf16 %v852_v54, %v852_v54  ;;  %854 = vrot.lane.b32.xlu1 %v852_v54, %s5254_s24 }
 0xb01   :  { %918 = vrot.lane.b32.xlu0 %v916_v6, %s5254_s24 }
 0xb07   :  { %113 = vperm.xlu1 %4675, %v73_v8  }
 0xb29   :  { %v792_v50 = vpop.permute.xlu2 %791 }
 0xb2a   :  { %v794_v9 = vmul.f32 %v792_v50, %v775_v56 }
 0xb2c   :  { %858 = vrot.lane.b32.xlu2 %v794_v9, %s5253_s21 }
 0xb71   :  { %v855_v11 = vpop.permute.xlu1 %854 }
 0xb73   :  { %v919_v10 = vpop.permute.xlu0 %918 }
 0xb74   :  { %4519 = vmatmul.msk.bf16.vlgmr.msra.gmra.mxu1 %vm290_vm4, %v919_v10 }
 0xb75   :  { %1413 = vmatpush.bf16.msra.mxu1 %v5363_v0 }
 0xb79   :  { %1414 = vmatpush.bf16.msra.mxu1 %v5372_v3  ;;  %v5595_v15 = vpop.permute.xlu1 %113 }
 0xb7a   :  { %v179_v0 = vmul.f32 %v5384_v4, %v5595_v15 }
 0xb7c   :  { %v200_v3 = vadd.f32 %v5390_v7, %v179_v0 }
 0xb86   :  { %v859_v12 = vpop.permute.xlu2 %858 }
 0xb87   :  { %v861_v13 = vsel %vm290_vm4, %v855_v11, %v859_v12 }
 0xb88   :  { %v862_v14 = vpack.c.bf16 %v861_v13, %v861_v13  ;;  %v74_v13 = vld [vmem:[%s6722_s25 + $0x30] sm:$0xff] }
 0xb8a   :  { %4517 = vmatmul.msk.bf16.vlgmr.msra.gmra.mxu2 %vm378_vm5, %v862_v14 }
 0xb8b   :  { %1354 = vmatpush.bf16.msra.mxu2 %v5405_v33 }
 0xb8f   :  { %1355 = vmatpush.bf16.msra.mxu2 %v5415_v37 }
 0xb93   :  { %1356 = vmatpush.bf16.msra.mxu2 %v5421_v38 }
 0xb97   :  { %1357 = vmatpush.bf16.msra.mxu2 %v5431_v39 }
 0xbf1   :  { %v932_v16 = vpop.f32.mrf.mxu1 }
 0xbf2   :  { %v936_v17 = vadd.f32 %v932_v16, %v200_v3  ;;  %v5625_v3 = vld [vmem:[%s6721_s23 + $0x8] sm:$0xff]  ;;  %v5631_v16 = vld [vmem:[%s6721_s23] sm:$0xff] }
 0xbf4   :  { %4764 = vtanh.f32 %v936_v17  ;;  %v4520_v24 = vmul.f32 -1.442695, %v936_v17 }
 0xbf9   :  { %v934_v18 = vpop.f32.mrf.mxu1 }
 0xbfa   :  { %v4765_v19 = vpop.eup %4764 }
 0xbfb   :  { %959 = vrot.lane.b32.xlu0 %v4765_v19, %s5253_s21 }
 0xc0d   :  { %v875_v20 = vpop.f32.mrf.mxu2 }
 0xc0e   :  { %v876_v21 = vadd.f32 %v5459_v49, %v875_v20 }
 0xc10   :  { %4766 = vtanh.f32 %v876_v21  ;;  %v4518_v4 = vmul.f32 -1.442695, %v876_v21 }
 0xc11   :  { %4768 = vpow2.f32 %v4520_v24 }
 0xc12   :  { %4770 = vpow2.f32 %v4518_v4 }
 0xc15   :  { %v877_v22 = vpop.f32.mrf.mxu2 }
 0xc16   :  { %v4767_v23 = vpop.eup %4766  ;;  %v5645_v22 = vld [vmem:[%s6723_s13] ss:$0 sm:$0xff] }
 0xc17   :  { %901 = vrot.lane.b32.xlu2 %v4767_v23, %s5253_s21  ;;  %v4769_v7 = vpop.eup %4768 }
 0xc18   :  { %v940_v25 = vadd.f32 1.0, %v4769_v7  ;;  %v4771_v26 = vpop.eup %4770 }
 0xc19   :  { %v882_v27 = vadd.f32 1.0, %v4771_v26 }
 0xc1a   :  { %4772 = vrcp.f32 %v940_v25  ;;  %v952_v46 = vand.u32 2147483648, %v940_v25  ;;  %vm946_vm11 = vweird.f32 %v940_v25  ;;  %v950_v47 = vand.u32 2147483647, %v940_v25 }
 0xc1b   :  { %4774 = vrcp.f32 %v882_v27  ;;  %v894_v52 = vand.u32 2147483648, %v882_v27  ;;  %vm888_vm15 = vweird.f32 %v882_v27  ;;  %v892_v53 = vand.u32 2147483647, %v882_v27 }
 0xc1c   :  { %v953_v34 = vor.u32 1.1754944e-38, %v952_v46  ;;  %vm951_vm14 = vcmp.eq.f32.partialorder %v950_v47, 8.507059e+37 }
 0xc1d   :  { %v895_v31 = vor.u32 1.1754944e-38, %v894_v52  ;;  %vm893_vm1 = vcmp.eq.f32.partialorder %v892_v53, 8.507059e+37 }
 0xc20   :  { %v4773_v29 = vpop.eup %4772 }
 0xc21   :  { %v942_v30 = vmul.f32 %v4773_v29, %v940_v25  ;;  %v4775_v32 = vpop.eup %4774  ;;  %vm947_vm10 = vweird.f32 %v4773_v29 }
 0xc22   :  { %v884_v36 = vmul.f32 %v4775_v32, %v882_v27  ;;  %vm948_vm12 = vmor %vm946_vm11, %vm947_vm10  ;;  %vm889_vm13 = vweird.f32 %v4775_v32 }
 0xc23   :  { %v943_v35 = vsub.f32 1.0, %v942_v30  ;;  %vm890_vm0 = vmor %vm888_vm15, %vm889_vm13 }
 0xc24   :  { %v885_v41 = vsub.f32 1.0, %v884_v36 }
 0xc25   :  { %v944_v40 = vmul.f32 %v4773_v29, %v943_v35 }
 0xc26   :  { %v886_v45 = vmul.f32 %v4775_v32, %v885_v41 }
 0xc27   :  { %v945_v42 = vadd.f32 %v4773_v29, %v944_v40 }
 0xc28   :  { %v887_v48 = vadd.f32 %v4775_v32, %v886_v45 }
 0xc29   :  { %v949_v28 = vsel %vm948_vm12, %v4773_v29, %v945_v42 }
 0xc2a   :  { %v954_v56 = vsel %vm951_vm14, %v953_v34, %v949_v28  ;;  %v891_v57 = vsel %vm890_vm0, %v4775_v32, %v887_v48 }
 0xc2b   :  { %v896_v61 = vsel %vm893_vm1, %v895_v31, %v891_v57  ;;  %v957_v1 = vmul.f32 %v954_v56, %v5571_v59 }
 0xc2c   :  { %v899_v8 = vmul.f32 %v896_v61, %v5576_v63 }
 0xc6d   :  { %v960_v55 = vpop.permute.xlu0 %959 }
 0xc6e   :  { %v962_v43 = vmul.f32 %v960_v55, %v954_v56 }
 0xc70   :  { %964 = vrot.lane.b32.xlu2 %v962_v43, %s5254_s24 }
 0xc71   :  { %v902_v60 = vpop.permute.xlu2 %901 }
 0xc72   :  { %v904_v62 = vmul.f32 %v902_v60, %v896_v61 }
 0xc74   :  { %906 = vrot.lane.b32.xlu1 %v904_v62, %s5254_s24 }
 0xcca   :  { %v965_v2 = vpop.permute.xlu2 %964 }
 0xccb   :  { %v5606_v54 = vadd.f32 %v965_v2, %v957_v1 }
 0xccd   :  { %4776 = vtanh.f32 %v5606_v54 }
 0xcd3   :  { %v4777_v6 = vpop.eup %4776 }
 0xcd4   :  { %970 = vrot.lane.b32.xlu1 %v4777_v6, %s5253_s21 }
 0xce6   :  { %v907_v50 = vpop.permute.xlu1 %906 }
 0xce7   :  { %v5611_v9 = vadd.f32 %v907_v50, %v899_v8 }
 0xce9   :  { %4778 = vtanh.f32 %v5611_v9 }
 0xcef   :  { %v4779_v10 = vpop.eup %4778 }
 0xcf0   :  { %912 = vrot.lane.b32.xlu0 %v4779_v10, %s5253_s21 }
 0xd46   :  { %v971_v11 = vpop.permute.xlu1 %970 }
 0xd47   :  { %v973_v59 = vmul.f32 %v971_v11, %v954_v56 }
 0xd49   :  { %v1037_v12 = vpack.c.bf16 %v973_v59, %v973_v59  ;;  %975 = vrot.lane.b32.xlu2 %v973_v59, %s5254_s24 }
 0xd4b   :  { %1039 = vrot.lane.b32.xlu1 %v1037_v12, %s5254_s24 }
 0xd51   :  { %118 = vperm.xlu2 %4676, %v74_v13  }
 0xd62   :  { %v913_v63 = vpop.permute.xlu0 %912 }
 0xd63   :  { %v915_v14 = vmul.f32 %v913_v63, %v896_v61 }
 0xd65   :  { %979 = vrot.lane.b32.xlu0 %v915_v14, %s5253_s21 }
 0xda3   :  { %v976_v17 = vpop.permute.xlu2 %975 }
 0xdab   :  { %v5640_v21 = vpop.permute.xlu2 %118 }
 0xdac   :  { %v180_v23 = vmul.f32 %v5645_v22, %v5640_v21 }
 0xdbd   :  { %v1040_v0 = vpop.permute.xlu1 %1039 }
 0xdbe   :  { %4523 = vmatmul.msk.bf16.vlgmr.msrb.gmra.mxu0 %vm290_vm4, %v1040_v0 }
 0xdbf   :  { %1534 = vmatpush.bf16.msrb.mxu0 %v5625_v3 }
 0xdc3   :  { %1535 = vmatpush.bf16.msrb.mxu0 %v5631_v16 }
 0xdd7   :  { %v980_v18 = vpop.permute.xlu0 %979 }
 0xdd8   :  { %v982_v19 = vsel %vm290_vm4, %v976_v17, %v980_v18 }
 0xdd9   :  { %v983_v20 = vpack.c.bf16 %v982_v19, %v982_v19  ;;  %v75_v19 = vld [vmem:[%s6722_s25 + $0x38] sm:$0xff] }
 0xddb   :  { %4521 = vmatmul.msk.bf16.vlgmr.msra.gmra.mxu3 %vm378_vm5, %v983_v20 }
 0xddc   :  { %1475 = vmatpush.bf16.msra.mxu3 %v5405_v33  ;;  %v5652_v33 = vld [vmem:[%s6724_s4] ss:$0 sm:$0xff] }
 0xde0   :  { %1476 = vmatpush.bf16.msra.mxu3 %v5415_v37  ;;  %v201_v37 = vadd.f32 %v5652_v33, %v180_v23 }
 0xde4   :  { %1477 = vmatpush.bf16.msra.mxu3 %v5421_v38 }
 0xde8   :  { %1478 = vmatpush.bf16.msra.mxu3 %v5431_v39 }
 0xe3b   :  { %v1053_v38 = vpop.f32.mrf.mxu0 }
 0xe3c   :  { %v1057_v24 = vadd.f32 %v1053_v38, %v201_v37 }
 0xe3e   :  { %4780 = vtanh.f32 %v1057_v24  ;;  %v4524_v29 = vmul.f32 -1.442695, %v1057_v24 }
 0xe43   :  { %v1055_v39 = vpop.f32.mrf.mxu0 }
 0xe44   :  { %v4781_v4 = vpop.eup %4780 }
 0xe45   :  { %1080 = vrot.lane.b32.xlu1 %v4781_v4, %s5253_s21  ;;  %v5684_v4 = vld [vmem:[%s6696_s5 + $0x18] sm:$0xff] }
 0xe5e   :  { %v996_v7 = vpop.f32.mrf.mxu3 }
 0xe5f   :  { %v997_v25 = vadd.f32 %v5459_v49, %v996_v7  ;;  %v5690_v7 = vld [vmem:[%s6696_s5 + $0x10] sm:$0xff] }
 0xe61   :  { %4782 = vtanh.f32 %v997_v25  ;;  %v4522_v42 = vmul.f32 -1.442695, %v997_v25  ;;  %v5696_v25 = vld [vmem:[%s6696_s5 + $0x8] sm:$0xff] }
 0xe62   :  { %4784 = vpow2.f32 %v4524_v29 }
 0xe66   :  { %v998_v26 = vpop.f32.mrf.mxu3 }
 0xe67   :  { %v4783_v27 = vpop.eup %4782  ;;  %v5702_v26 = vld [vmem:[%s6696_s5] sm:$0xff] }
 0xe68   :  { %1022 = vrot.lane.b32.xlu0 %v4783_v27, %s5253_s21  ;;  %v4785_v30 = vpop.eup %4784 }
 0xe69   :  { %v1061_v32 = vadd.f32 1.0, %v4785_v30 }
 0xe6b   :  { %4786 = vrcp.f32 %v1061_v32  ;;  %v1073_v46 = vand.u32 2147483648, %v1061_v32  ;;  %vm1067_vm3 = vweird.f32 %v1061_v32  ;;  %v1071_v49 = vand.u32 2147483647, %v1061_v32 }
 0xe6c   :  { %4788 = vpow2.f32 %v4522_v42 }
 0xe6d   :  { %v1074_v28 = vor.u32 1.1754944e-38, %v1073_v46  ;;  %vm1072_vm7 = vcmp.eq.f32.partialorder %v1071_v49, 8.507059e+37  ;;  %v5714_v46 = vld [vmem:[%s6697_s6] ss:$0 sm:$0xff] }
 0xe71   :  { %v4787_v35 = vpop.eup %4786 }
 0xe72   :  { %v1063_v36 = vmul.f32 %v4787_v35, %v1061_v32  ;;  %vm1068_vm2 = vweird.f32 %v4787_v35  ;;  %v4789_v48 = vpop.eup %4788 }
 0xe73   :  { %vm1069_vm6 = vmor %vm1067_vm3, %vm1068_vm2  ;;  %v1003_v55 = vadd.f32 1.0, %v4789_v48 }
 0xe74   :  { %v1064_v40 = vsub.f32 1.0, %v1063_v36 }
 0xe75   :  { %4790 = vrcp.f32 %v1003_v55  ;;  %v1015_v61 = vand.u32 2147483648, %v1003_v55  ;;  %vm1009_vm9 = vweird.f32 %v1003_v55  ;;  %v1013_v62 = vand.u32 2147483647, %v1003_v55 }
 0xe76   :  { %v1065_v41 = vmul.f32 %v4787_v35, %v1064_v40 }
 0xe77   :  { %v1016_v2 = vor.u32 1.1754944e-38, %v1015_v61  ;;  %vm1014_vm11 = vcmp.eq.f32.partialorder %v1013_v62, 8.507059e+37 }
 0xe78   :  { %v1066_v45 = vadd.f32 %v4787_v35, %v1065_v41 }
 0xe7a   :  { %v1070_v47 = vsel %vm1069_vm6, %v4787_v35, %v1066_v45 }
 0xe7b   :  { %v1075_v52 = vsel %vm1072_vm7, %v1074_v28, %v1070_v47  ;;  %v4791_v56 = vpop.eup %4790 }
 0xe7c   :  { %v1005_v43 = vmul.f32 %v4791_v56, %v1003_v55  ;;  %vm1010_vm8 = vweird.f32 %v4791_v56  ;;  %v1078_v10 = vmul.f32 %v1075_v52, %v5606_v54 }
 0xe7d   :  { %vm1011_vm10 = vmor %vm1009_vm9, %vm1010_vm8 }
 0xe7e   :  { %v1006_v57 = vsub.f32 1.0, %v1005_v43 }
 0xe80   :  { %v1007_v31 = vmul.f32 %v4791_v56, %v1006_v57 }
 0xe82   :  { %v1008_v60 = vadd.f32 %v4791_v56, %v1007_v31 }
 0xe84   :  { %v1012_v1 = vsel %vm1011_vm10, %v4791_v56, %v1008_v60 }
 0xe85   :  { %v1017_v8 = vsel %vm1014_vm11, %v1016_v2, %v1012_v1 }
 0xe86   :  { %v1020_v13 = vmul.f32 %v1017_v8, %v5611_v9 }
 0xeb7   :  { %v1081_v34 = vpop.permute.xlu1 %1080 }
 0xeb8   :  { %v1083_v53 = vmul.f32 %v1081_v34, %v1075_v52 }
 0xeba   :  { %1085 = vrot.lane.b32.xlu0 %v1083_v53, %s5254_s24 }
 0xeda   :  { %v1023_v6 = vpop.permute.xlu0 %1022 }
 0xedb   :  { %v1025_v50 = vmul.f32 %v1023_v6, %v1017_v8 }
 0xedd   :  { %1027 = vrot.lane.b32.xlu2 %v1025_v50, %s5254_s24 }
 0xf2c   :  { %v1086_v11 = vpop.permute.xlu0 %1085 }
 0xf2d   :  { %v5661_v59 = vadd.f32 %v1086_v11, %v1078_v10 }
 0xf2f   :  { %4792 = vtanh.f32 %v5661_v59 }
 0xf35   :  { %v4793_v12 = vpop.eup %4792 }
 0xf36   :  { %1091 = vrot.lane.b32.xlu2 %v4793_v12, %s5253_s21 }
 0xf37   :  { %v1028_v63 = vpop.permute.xlu2 %1027 }
 0xf38   :  { %v5666_v14 = vadd.f32 %v1028_v63, %v1020_v13 }
 0xf3a   :  { %4794 = vtanh.f32 %v5666_v14 }
 0xf40   :  { %v4795_v0 = vpop.eup %4794 }
 0xf41   :  { %1033 = vrot.lane.b32.xlu1 %v4795_v0, %s5253_s21 }
 0xf90   :  { %v1092_v17 = vpop.permute.xlu2 %1091 }
 0xf91   :  { %v1094_v54 = vmul.f32 %v1092_v17, %v1075_v52 }
 0xf93   :  { %v1158_v18 = vpack.c.bf16 %v1094_v54, %v1094_v54  ;;  %1096 = vrot.lane.b32.xlu0 %v1094_v54, %s5254_s24 }
 0xf95   :  { %1160 = vrot.lane.b32.xlu2 %v1158_v18, %s5254_s24 }
 0xf9b   :  { %123 = vperm.xlu0 %4674, %v75_v19  }
 0xfb3   :  { %v1034_v9 = vpop.permute.xlu1 %1033 }
 0xfb4   :  { %v1036_v20 = vmul.f32 %v1034_v9, %v1017_v8 }
 0xfb6   :  { %1100 = vrot.lane.b32.xlu1 %v1036_v20, %s5253_s21 }
 0xfef   :  { %v1161_v23 = vpop.permute.xlu2 %1160 }
 0xff0   :  { %4527 = vmatmul.msk.bf16.vlgmr.msrb.gmra.mxu1 %vm290_vm4, %v1161_v23 }
 0xff1   :  { %1655 = vmatpush.bf16.msrb.mxu1 %v5625_v3 }
 0xff5   :  { %1656 = vmatpush.bf16.msrb.mxu1 %v5631_v16 }
0x1005   :  { %v1097_v37 = vpop.permute.xlu0 %1096 }
0x100d   :  { %v5705_v27 = vpop.permute.xlu0 %123 }
0x100e   :  { %v181_v29 = vmul.f32 %v5645_v22, %v5705_v27 }
0x1010   :  { %v202_v30 = vadd.f32 %v5652_v33, %v181_v29 }
0x1028   :  { %v1101_v38 = vpop.permute.xlu1 %1100 }
0x1029   :  { %v1103_v24 = vsel %vm290_vm4, %v1097_v37, %v1101_v38 }
0x102a   :  { %v1104_v39 = vpack.c.bf16 %v1103_v24, %v1103_v24 }
0x102c   :  { %4525 = vmatmul.msk.bf16.vlgmr.msrb.gmra.mxu2 %vm378_vm5, %v1104_v39 }
0x102d   :  { %1596 = vmatpush.bf16.msrb.mxu2 %v5684_v4 }
0x1031   :  { %1597 = vmatpush.bf16.msrb.mxu2 %v5690_v7 }
0x1035   :  { %1598 = vmatpush.bf16.msrb.mxu2 %v5696_v25 }
0x1039   :  { %1599 = vmatpush.bf16.msrb.mxu2 %v5702_v26 }
0x106d   :  { %v1174_v32 = vpop.f32.mrf.mxu1 }
0x106e   :  { %v1178_v35 = vadd.f32 %v1174_v32, %v202_v30 }
0x1070   :  { %4796 = vtanh.f32 %v1178_v35  ;;  %v4528_v41 = vmul.f32 -1.442695, %v1178_v35 }
0x1072   :  { %4798 = vpow2.f32 %v4528_v41 }
0x1075   :  { %v1176_v36 = vpop.f32.mrf.mxu1 }
0x1076   :  { %v4797_v40 = vpop.eup %4796  ;;  %v76_v36 = vld [vmem:[%s6722_s25 + $0x40] sm:$0xff] }
0x1077   :  { %1201 = vrot.lane.b32.xlu2 %v4797_v40, %s5253_s21 }
0x1078   :  { %v4799_v42 = vpop.eup %4798 }
0x1079   :  { %v1182_v47 = vadd.f32 1.0, %v4799_v42 }
0x107b   :  { %v1194_v43 = vand.u32 2147483648, %v1182_v47  ;;  %vm1188_vm13 = vweird.f32 %v1182_v47  ;;  %v1192_v57 = vand.u32 2147483647, %v1182_v47 }
0x107d   :  { %v1195_v60 = vor.u32 1.1754944e-38, %v1194_v43  ;;  %vm1193_vm15 = vcmp.eq.f32.partialorder %v1192_v57, 8.507059e+37 }
0x10af   :  { %v1117_v45 = vpop.f32.mrf.mxu2 }
0x10b0   :  { %v1118_v49 = vadd.f32 %v5714_v46, %v1117_v45 }
0x10b2   :  { %4800 = vtanh.f32 %v1118_v49  ;;  %v4526_v2 = vmul.f32 -1.442695, %v1118_v49 }
0x10b3   :  { %4802 = vrcp.f32 %v1182_v47 }
0x10b4   :  { %4804 = vpow2.f32 %v4526_v2 }
0x10b7   :  { %v1119_v28 = vpop.f32.mrf.mxu2 }
0x10b8   :  { %v4801_v48 = vpop.eup %4800 }
0x10b9   :  { %1143 = vrot.lane.b32.xlu1 %v4801_v48, %s5253_s21  ;;  %v4803_v34 = vpop.eup %4802 }
0x10ba   :  { %v1184_v52 = vmul.f32 %v4803_v34, %v1182_v47  ;;  %vm1189_vm12 = vweird.f32 %v4803_v34  ;;  %v4805_v6 = vpop.eup %4804 }
0x10bb   :  { %vm1190_vm14 = vmor %vm1188_vm13, %vm1189_vm12  ;;  %v1124_v8 = vadd.f32 1.0, %v4805_v6 }
0x10bc   :  { %v1185_v53 = vsub.f32 1.0, %v1184_v52 }
0x10bd   :  { %4806 = vrcp.f32 %v1124_v8  ;;  %v1136_v63 = vand.u32 2147483648, %v1124_v8  ;;  %vm1130_vm1 = vweird.f32 %v1124_v8  ;;  %v1134_v0 = vand.u32 2147483647, %v1124_v8 }
0x10be   :  { %v1186_v55 = vmul.f32 %v4803_v34, %v1185_v53 }
0x10bf   :  { %v1137_v54 = vor.u32 1.1754944e-38, %v1136_v63  ;;  %vm1135_vm3 = vcmp.eq.f32.partialorder %v1134_v0, 8.507059e+37 }
0x10c0   :  { %v1187_v56 = vadd.f32 %v4803_v34, %v1186_v55 }
0x10c2   :  { %v1191_v31 = vsel %vm1190_vm14, %v4803_v34, %v1187_v56 }
0x10c3   :  { %v1196_v62 = vsel %vm1193_vm15, %v1195_v60, %v1191_v31  ;;  %v4807_v50 = vpop.eup %4806 }
0x10c4   :  { %v1126_v10 = vmul.f32 %v4807_v50, %v1124_v8  ;;  %vm1131_vm0 = vweird.f32 %v4807_v50  ;;  %v1199_v20 = vmul.f32 %v1196_v62, %v5661_v59 }
0x10c5   :  { %vm1132_vm2 = vmor %vm1130_vm1, %vm1131_vm0 }
0x10c6   :  { %v1127_v11 = vsub.f32 1.0, %v1126_v10 }
0x10c8   :  { %v1128_v12 = vmul.f32 %v4807_v50, %v1127_v11 }
0x10ca   :  { %v1129_v13 = vadd.f32 %v4807_v50, %v1128_v12 }
0x10cc   :  { %v1133_v17 = vsel %vm1132_vm2, %v4807_v50, %v1129_v13 }
0x10cd   :  { %v1138_v19 = vsel %vm1135_vm3, %v1137_v54, %v1133_v17 }
0x10ce   :  { %v1141_v24 = vmul.f32 %v1138_v19, %v5666_v14 }
0x10d1   :  { %v1202_v61 = vpop.permute.xlu2 %1201 }
0x10d2   :  { %v1204_v1 = vmul.f32 %v1202_v61, %v1196_v62 }
0x10d4   :  { %1206 = vrot.lane.b32.xlu1 %v1204_v1, %s5254_s24 }
0x112b   :  { %v1144_v18 = vpop.permute.xlu1 %1143 }
0x112c   :  { %v1146_v9 = vmul.f32 %v1144_v18, %v1138_v19 }
0x112e   :  { %1148 = vrot.lane.b32.xlu0 %v1146_v9, %s5254_s24 }
0x1146   :  { %v1207_v23 = vpop.permute.xlu1 %1206 }
0x1147   :  { %v5721_v37 = vadd.f32 %v1207_v23, %v1199_v20 }
0x1149   :  { %4808 = vtanh.f32 %v5721_v37 }
0x114f   :  { %v4809_v38 = vpop.eup %4808 }
0x1150   :  { %1212 = vrot.lane.b32.xlu0 %v4809_v38, %s5253_s21 }
0x11a0   :  { %v1149_v39 = vpop.permute.xlu0 %1148 }
0x11a1   :  { %v5726_v29 = vadd.f32 %v1149_v39, %v1141_v24 }
0x11a3   :  { %4810 = vtanh.f32 %v5726_v29 }
0x11a9   :  { %v4811_v30 = vpop.eup %4810 }
0x11aa   :  { %1154 = vrot.lane.b32.xlu2 %v4811_v30, %s5253_s21 }
0x11c2   :  { %v1213_v32 = vpop.permute.xlu0 %1212 }
0x11c3   :  { %v1215_v59 = vmul.f32 %v1213_v32, %v1196_v62 }
0x11c5   :  { %v1279_v35 = vpack.c.bf16 %v1215_v59, %v1215_v59  ;;  %1217 = vrot.lane.b32.xlu1 %v1215_v59, %s5254_s24 }
0x11c7   :  { %1281 = vrot.lane.b32.xlu0 %v1279_v35, %s5254_s24 }
0x11cd   :  { %128 = vperm.xlu1 %4675, %v76_v36  }
0x1204   :  { %v1155_v14 = vpop.permute.xlu2 %1154 }
0x1205   :  { %v1157_v40 = vmul.f32 %v1155_v14, %v1138_v19 }
0x1207   :  { %1221 = vrot.lane.b32.xlu2 %v1157_v40, %s5253_s21 }
0x1237   :  { %v1218_v42 = vpop.permute.xlu1 %1217 }
0x1239   :  { %v1282_v41 = vpop.permute.xlu0 %1281 }
0x123a   :  { %4531 = vmatmul.msk.bf16.vlgmr.msra.gmra.mxu0 %vm290_vm4, %v1282_v41 }
0x123b   :  { %1776 = vmatpush.bf16.msra.mxu0 %v5625_v3 }
0x123f   :  { %1777 = vmatpush.bf16.msra.mxu0 %v5631_v16  ;;  %v5745_v28 = vpop.permute.xlu1 %128 }
0x1240   :  { %v182_v48 = vmul.f32 %v5645_v22, %v5745_v28 }
0x1242   :  { %v203_v34 = vadd.f32 %v5652_v33, %v182_v48 }
0x1261   :  { %v1222_v45 = vpop.permute.xlu2 %1221 }
0x1262   :  { %v1224_v49 = vsel %vm290_vm4, %v1218_v42, %v1222_v45 }
0x1263   :  { %v1225_v47 = vpack.c.bf16 %v1224_v49, %v1224_v49 }
0x1265   :  { %4529 = vmatmul.msk.bf16.vlgmr.msrb.gmra.mxu3 %vm378_vm5, %v1225_v47 }
0x1266   :  { %1717 = vmatpush.bf16.msrb.mxu3 %v5684_v4 }
0x126a   :  { %1718 = vmatpush.bf16.msrb.mxu3 %v5690_v7 }
0x126e   :  { %1719 = vmatpush.bf16.msrb.mxu3 %v5696_v25 }
0x1272   :  { %1720 = vmatpush.bf16.msrb.mxu3 %v5702_v26 }
0x12b7   :  { %v1295_v52 = vpop.f32.mrf.mxu0 }
0x12b8   :  { %v1299_v53 = vadd.f32 %v1295_v52, %v203_v34 }
0x12ba   :  { %4812 = vtanh.f32 %v1299_v53  ;;  %v4532_v61 = vmul.f32 -1.442695, %v1299_v53 }
0x12bf   :  { %v1297_v55 = vpop.f32.mrf.mxu0 }
0x12c0   :  { %v4813_v56 = vpop.eup %4812 }
0x12c1   :  { %1322 = vrot.lane.b32.xlu0 %v4813_v56, %s5253_s21  ;;  %v77_v56 = vld [vmem:[%s6722_s25 + $0x48] sm:$0xff] }
0x12e8   :  { %v1238_v43 = vpop.f32.mrf.mxu3 }
0x12e9   :  { %v1239_v57 = vadd.f32 %v5714_v46, %v1238_v43 }
0x12eb   :  { %4814 = vtanh.f32 %v1239_v57  ;;  %v4530_v6 = vmul.f32 -1.442695, %v1239_v57 }
0x12ec   :  { %4816 = vpow2.f32 %v4532_v61 }
0x12f0   :  { %v1240_v31 = vpop.f32.mrf.mxu3 }
0x12f1   :  { %v4815_v60 = vpop.eup %4814 }
0x12f2   :  { %1264 = vrot.lane.b32.xlu2 %v4815_v60, %s5253_s21  ;;  %v4817_v62 = vpop.eup %4816 }
0x12f3   :  { %v1303_v1 = vadd.f32 1.0, %v4817_v62 }
0x12f5   :  { %4818 = vrcp.f32 %v1303_v1  ;;  %v1315_v63 = vand.u32 2147483648, %v1303_v1  ;;  %vm1309_vm7 = vweird.f32 %v1303_v1  ;;  %v1313_v0 = vand.u32 2147483647, %v1303_v1 }
0x12f6   :  { %4820 = vpow2.f32 %v4530_v6 }
0x12f7   :  { %v1316_v54 = vor.u32 1.1754944e-38, %v1315_v63  ;;  %vm1314_vm9 = vcmp.eq.f32.partialorder %v1313_v0, 8.507059e+37 }
0x12fb   :  { %v4819_v2 = vpop.eup %4818 }
0x12fc   :  { %v1305_v8 = vmul.f32 %v4819_v2, %v1303_v1  ;;  %v4821_v11 = vpop.eup %4820  ;;  %vm1310_vm6 = vweird.f32 %v4819_v2 }
0x12fd   :  { %v1245_v12 = vadd.f32 1.0, %v4821_v11  ;;  %vm1311_vm8 = vmor %vm1309_vm7, %vm1310_vm6 }
0x12fe   :  { %v1306_v50 = vsub.f32 1.0, %v1305_v8 }
0x12ff   :  { %4822 = vrcp.f32 %v1245_v12  ;;  %v1257_v30 = vand.u32 2147483648, %v1245_v12  ;;  %vm1251_vm11 = vweird.f32 %v1245_v12  ;;  %v1255_v32 = vand.u32 2147483647, %v1245_v12 }
0x1300   :  { %v1307_v10 = vmul.f32 %v4819_v2, %v1306_v50 }
0x1301   :  { %v1258_v35 = vor.u32 1.1754944e-38, %v1257_v30  ;;  %vm1256_vm13 = vcmp.eq.f32.partialorder %v1255_v32, 8.507059e+37 }
0x1302   :  { %v1308_v13 = vadd.f32 %v4819_v2, %v1307_v10 }
0x1304   :  { %v1312_v17 = vsel %vm1311_vm8, %v4819_v2, %v1308_v13 }
0x1305   :  { %v1317_v19 = vsel %vm1314_vm9, %v1316_v54, %v1312_v17  ;;  %v4823_v20 = vpop.eup %4822 }
0x1306   :  { %v1247_v23 = vmul.f32 %v4823_v20, %v1245_v12  ;;  %vm1252_vm10 = vweird.f32 %v4823_v20  ;;  %v1320_v41 = vmul.f32 %v1317_v19, %v5721_v37 }
0x1307   :  { %vm1253_vm12 = vmor %vm1251_vm11, %vm1252_vm10 }
0x1308   :  { %v1248_v38 = vsub.f32 1.0, %v1247_v23 }
0x130a   :  { %v1249_v24 = vmul.f32 %v4823_v20, %v1248_v38 }
0x130c   :  { %v1250_v39 = vadd.f32 %v4823_v20, %v1249_v24 }
0x130e   :  { %v1254_v59 = vsel %vm1253_vm12, %v4823_v20, %v1250_v39 }
0x130f   :  { %v1259_v14 = vsel %vm1256_vm13, %v1258_v35, %v1254_v59 }
0x1310   :  { %v1262_v47 = vmul.f32 %v1259_v14, %v5726_v29 }
0x1333   :  { %v1323_v18 = vpop.permute.xlu0 %1322 }
0x1334   :  { %v1325_v9 = vmul.f32 %v1323_v18, %v1317_v19 }
0x1336   :  { %1327 = vrot.lane.b32.xlu2 %v1325_v9, %s5254_s24 }
0x134c   :  { %v1265_v36 = vpop.permute.xlu2 %1264 }
0x134d   :  { %v1267_v40 = vmul.f32 %v1265_v36, %v1259_v14 }
0x134f   :  { %1269 = vrot.lane.b32.xlu1 %v1267_v40, %s5254_s24 }
0x1390   :  { %v1328_v42 = vpop.permute.xlu2 %1327 }
0x1391   :  { %v5756_v45 = vadd.f32 %v1328_v42, %v1320_v41 }
0x1393   :  { %4824 = vtanh.f32 %v5756_v45 }
0x1399   :  { %v4825_v49 = vpop.eup %4824 }
0x139a   :  { %1333 = vrot.lane.b32.xlu1 %v4825_v49, %s5253_s21 }
0x13c1   :  { %v1270_v48 = vpop.permute.xlu1 %1269 }
0x13c2   :  { %v5761_v34 = vadd.f32 %v1270_v48, %v1262_v47 }
0x13c4   :  { %4826 = vtanh.f32 %v5761_v34 }
0x13ca   :  { %v4827_v52 = vpop.eup %4826 }
0x13cb   :  { %1275 = vrot.lane.b32.xlu0 %v4827_v52, %s5253_s21 }
0x140c   :  { %v1334_v53 = vpop.permute.xlu1 %1333 }
0x140d   :  { %v1336_v37 = vmul.f32 %v1334_v53, %v1317_v19 }
0x140f   :  { %v1400_v55 = vpack.c.bf16 %v1336_v37, %v1336_v37  ;;  %1338 = vrot.lane.b32.xlu2 %v1336_v37, %s5254_s24 }
0x1411   :  { %1402 = vrot.lane.b32.xlu1 %v1400_v55, %s5254_s24 }
0x1417   :  { %133 = vperm.xlu2 %4676, %v77_v56  }
0x143d   :  { %v1276_v29 = vpop.permute.xlu0 %1275 }
0x143e   :  { %v1278_v43 = vmul.f32 %v1276_v29, %v1259_v14 }
0x1440   :  { %1342 = vrot.lane.b32.xlu0 %v1278_v43, %s5253_s21 }
0x1469   :  { %v1339_v31 = vpop.permute.xlu2 %1338 }
0x1471   :  { %v5780_v1 = vpop.permute.xlu2 %133 }
0x1472   :  { %v183_v2 = vmul.f32 %v5645_v22, %v5780_v1 }
0x1474   :  { %v204_v6 = vadd.f32 %v5652_v33, %v183_v2 }
0x1483   :  { %v1403_v57 = vpop.permute.xlu1 %1402 }
0x1484   :  { %4535 = vmatmul.msk.bf16.vlgmr.msra.gmra.mxu1 %vm290_vm4, %v1403_v57 }
0x1485   :  { %1897 = vmatpush.bf16.msra.mxu1 %v5625_v3 }
0x1489   :  { %1898 = vmatpush.bf16.msra.mxu1 %v5631_v16 }
0x14b2   :  { %v1343_v60 = vpop.permute.xlu0 %1342 }
0x14b3   :  { %v1345_v61 = vsel %vm290_vm4, %v1339_v31, %v1343_v60 }
0x14b4   :  { %v1346_v62 = vpack.c.bf16 %v1345_v61, %v1345_v61 }
0x14b6   :  { %4533 = vmatmul.msk.bf16.vlgmr.msra.gmra.mxu2 %vm378_vm5, %v1346_v62 }
0x14b7   :  { %1838 = vmatpush.bf16.msra.mxu2 %v5684_v4 }
0x14bb   :  { %1839 = vmatpush.bf16.msra.mxu2 %v5690_v7 }
0x14bf   :  { %1840 = vmatpush.bf16.msra.mxu2 %v5696_v25 }
0x14c3   :  { %1841 = vmatpush.bf16.msra.mxu2 %v5702_v26 }
0x1501   :  { %v1416_v8 = vpop.f32.mrf.mxu1 }
0x1502   :  { %v1420_v50 = vadd.f32 %v1416_v8, %v204_v6 }
0x1504   :  { %4828 = vtanh.f32 %v1420_v50  ;;  %v4536_v17 = vmul.f32 -1.442695, %v1420_v50 }
0x1509   :  { %v1418_v10 = vpop.f32.mrf.mxu1 }
0x150a   :  { %v4829_v11 = vpop.eup %4828 }
0x150b   :  { %1443 = vrot.lane.b32.xlu1 %v4829_v11, %s5253_s21 }
0x1539   :  { %v1359_v12 = vpop.f32.mrf.mxu2 }
0x153a   :  { %v1360_v13 = vadd.f32 %v5714_v46, %v1359_v12  ;;  %v78_v12 = vld [vmem:[%s6722_s25 + $0x50] sm:$0xff] }
0x153c   :  { %4830 = vtanh.f32 %v1360_v13  ;;  %v4534_v14 = vmul.f32 -1.442695, %v1360_v13 }
0x153d   :  { %4832 = vpow2.f32 %v4536_v17 }
0x1541   :  { %v1361_v63 = vpop.f32.mrf.mxu2 }
0x1542   :  { %v4831_v0 = vpop.eup %4830 }
0x1543   :  { %1385 = vrot.lane.b32.xlu0 %v4831_v0, %s5253_s21  ;;  %v4833_v54 = vpop.eup %4832 }
0x1544   :  { %v1424_v18 = vadd.f32 1.0, %v4833_v54 }
0x1546   :  { %4834 = vrcp.f32 %v1424_v18  ;;  %v1436_v24 = vand.u32 2147483648, %v1424_v18  ;;  %vm1430_vm15 = vweird.f32 %v1424_v18  ;;  %v1434_v39 = vand.u32 2147483647, %v1424_v18 }
0x1547   :  { %4836 = vpow2.f32 %v4534_v14 }
0x1548   :  { %v1437_v32 = vor.u32 1.1754944e-38, %v1436_v24  ;;  %vm1435_vm1 = vcmp.eq.f32.partialorder %v1434_v39, 8.507059e+37 }
0x154c   :  { %v4835_v19 = vpop.eup %4834 }
0x154d   :  { %v1426_v9 = vmul.f32 %v4835_v19, %v1424_v18  ;;  %vm1431_vm14 = vweird.f32 %v4835_v19  ;;  %v4837_v40 = vpop.eup %4836 }
0x154e   :  { %vm1432_vm0 = vmor %vm1430_vm15, %vm1431_vm14  ;;  %v1366_v41 = vadd.f32 1.0, %v4837_v40 }
0x154f   :  { %v1427_v20 = vsub.f32 1.0, %v1426_v9 }
0x1550   :  { %4838 = vrcp.f32 %v1366_v41  ;;  %v1378_v53 = vand.u32 2147483648, %v1366_v41  ;;  %vm1372_vm3 = vweird.f32 %v1366_v41  ;;  %v1376_v37 = vand.u32 2147483647, %v1366_v41 }
0x1551   :  { %v1428_v23 = vmul.f32 %v4835_v19, %v1427_v20 }
0x1552   :  { %v1379_v56 = vor.u32 1.1754944e-38, %v1378_v53  ;;  %vm1377_vm7 = vcmp.eq.f32.partialorder %v1376_v37, 8.507059e+37 }
0x1553   :  { %v1429_v38 = vadd.f32 %v4835_v19, %v1428_v23 }
0x1555   :  { %v1433_v30 = vsel %vm1432_vm0, %v4835_v19, %v1429_v38 }
0x1556   :  { %v1438_v35 = vsel %vm1435_vm1, %v1437_v32, %v1433_v30  ;;  %v4839_v42 = vpop.eup %4838 }
0x1557   :  { %v1368_v49 = vmul.f32 %v4839_v42, %v1366_v41  ;;  %vm1373_vm2 = vweird.f32 %v4839_v42  ;;  %v1441_v31 = vmul.f32 %v1438_v35, %v5756_v45 }
0x1558   :  { %vm1374_vm6 = vmor %vm1372_vm3, %vm1373_vm2 }
0x1559   :  { %v1369_v47 = vsub.f32 1.0, %v1368_v49 }
0x155b   :  { %v1370_v48 = vmul.f32 %v4839_v42, %v1369_v47 }
0x155d   :  { %v1371_v52 = vadd.f32 %v4839_v42, %v1370_v48 }
0x155f   :  { %v1375_v55 = vsel %vm1374_vm6, %v4839_v42, %v1371_v52 }
0x1560   :  { %v1380_v43 = vsel %vm1377_vm7, %v1379_v56, %v1375_v55 }
0x1561   :  { %v1383_v2 = vmul.f32 %v1380_v43, %v5761_v34 }
0x157d   :  { %v1444_v59 = vpop.permute.xlu1 %1443 }
0x157e   :  { %v1446_v36 = vmul.f32 %v1444_v59, %v1438_v35 }
0x1580   :  { %1448 = vrot.lane.b32.xlu0 %v1446_v36, %s5254_s24 }
0x15b5   :  { %v1386_v29 = vpop.permute.xlu0 %1385 }
0x15b6   :  { %v1388_v57 = vmul.f32 %v1386_v29, %v1380_v43 }
0x15b8   :  { %1390 = vrot.lane.b32.xlu2 %v1388_v57, %s5254_s24 }
0x15f2   :  { %v1449_v60 = vpop.permute.xlu0 %1448 }
0x15f3   :  { %v5791_v61 = vadd.f32 %v1449_v60, %v1441_v31 }
0x15f5   :  { %4840 = vtanh.f32 %v5791_v61 }
0x15fb   :  { %v4841_v62 = vpop.eup %4840 }
0x15fc   :  { %1454 = vrot.lane.b32.xlu2 %v4841_v62, %s5253_s21 }
0x1612   :  { %v1391_v6 = vpop.permute.xlu2 %1390 }
0x1613   :  { %v5796_v8 = vadd.f32 %v1391_v6, %v1383_v2 }
0x1615   :  { %4842 = vtanh.f32 %v5796_v8 }
0x161b   :  { %v4843_v50 = vpop.eup %4842 }
0x161c   :  { %1396 = vrot.lane.b32.xlu1 %v4843_v50, %s5253_s21 }
0x1656   :  { %v1455_v10 = vpop.permute.xlu2 %1454 }
0x1657   :  { %v1457_v45 = vmul.f32 %v1455_v10, %v1438_v35 }
0x1659   :  { %v1521_v11 = vpack.c.bf16 %v1457_v45, %v1457_v45  ;;  %1459 = vrot.lane.b32.xlu0 %v1457_v45, %s5254_s24 }
0x165b   :  { %1523 = vrot.lane.b32.xlu2 %v1521_v11, %s5254_s24 }
0x1661   :  { %138 = vperm.xlu0 %4674, %v78_v12  }
0x168e   :  { %v1397_v34 = vpop.permute.xlu1 %1396 }
0x168f   :  { %v1399_v13 = vmul.f32 %v1397_v34, %v1380_v43 }
0x1691   :  { %1463 = vrot.lane.b32.xlu1 %v1399_v13, %s5253_s21 }
0x16b5   :  { %v1524_v63 = vpop.permute.xlu2 %1523 }
0x16b6   :  { %4539 = vmatmul.msk.bf16.vlgmr.msrb.gmra.mxu0 %vm290_vm4, %v1524_v63 }
0x16b7   :  { %2018 = vmatpush.bf16.msrb.mxu0 %v5625_v3 }
0x16bb   :  { %2019 = vmatpush.bf16.msrb.mxu0 %v5631_v16 }
0x16cb   :  { %v1460_v0 = vpop.permute.xlu0 %1459 }
0x16d3   :  { %v5815_v19 = vpop.permute.xlu0 %138 }
0x16d4   :  { %v184_v9 = vmul.f32 %v5645_v22, %v5815_v19 }
0x16d6   :  { %v205_v20 = vadd.f32 %v5652_v33, %v184_v9 }
0x1703   :  { %v1464_v17 = vpop.permute.xlu1 %1463 }
0x1704   :  { %v1466_v54 = vsel %vm290_vm4, %v1460_v0, %v1464_v17 }
0x1705   :  { %v1467_v18 = vpack.c.bf16 %v1466_v54, %v1466_v54 }
0x1707   :  { %4537 = vmatmul.msk.bf16.vlgmr.msra.gmra.mxu3 %vm378_vm5, %v1467_v18 }
0x1708   :  { %1959 = vmatpush.bf16.msra.mxu3 %v5684_v4 }
0x170c   :  { %1960 = vmatpush.bf16.msra.mxu3 %v5690_v7 }
0x1710   :  { %1961 = vmatpush.bf16.msra.mxu3 %v5696_v25 }
0x1714   :  { %1962 = vmatpush.bf16.msra.mxu3 %v5702_v26 }
0x1733   :  { %v1537_v23 = vpop.f32.mrf.mxu0 }
0x1734   :  { %v1541_v38 = vadd.f32 %v1537_v23, %v205_v20 }
0x1736   :  { %4844 = vtanh.f32 %v1541_v38  ;;  %v4540_v30 = vmul.f32 -1.442695, %v1541_v38 }
0x1738   :  { %4846 = vpow2.f32 %v4540_v30 }
0x173b   :  { %v1539_v24 = vpop.f32.mrf.mxu0 }
0x173c   :  { %v4845_v39 = vpop.eup %4844 }
0x173d   :  { %1564 = vrot.lane.b32.xlu2 %v4845_v39, %s5253_s21 }
0x173e   :  { %v4847_v32 = vpop.eup %4846 }
0x173f   :  { %v1545_v59 = vadd.f32 1.0, %v4847_v32  ;;  %v79_v32 = vld [vmem:[%s6722_s25 + $0x58] sm:$0xff] }
0x1741   :  { %4848 = vrcp.f32 %v1545_v59  ;;  %v1557_v52 = vand.u32 2147483648, %v1545_v59  ;;  %vm1551_vm9 = vweird.f32 %v1545_v59  ;;  %v1555_v53 = vand.u32 2147483647, %v1545_v59 }
0x1743   :  { %v1558_v56 = vor.u32 1.1754944e-38, %v1557_v52  ;;  %vm1556_vm11 = vcmp.eq.f32.partialorder %v1555_v53, 8.507059e+37 }
0x1747   :  { %v4849_v35 = vpop.eup %4848 }
0x1748   :  { %v1547_v36 = vmul.f32 %v4849_v35, %v1545_v59  ;;  %vm1552_vm8 = vweird.f32 %v4849_v35 }
0x1749   :  { %vm1553_vm10 = vmor %vm1551_vm9, %vm1552_vm8 }
0x174a   :  { %v1548_v40 = vsub.f32 1.0, %v1547_v36 }
0x174c   :  { %v1549_v42 = vmul.f32 %v4849_v35, %v1548_v40 }
0x174e   :  { %v1550_v47 = vadd.f32 %v4849_v35, %v1549_v42 }
0x1750   :  { %v1554_v37 = vsel %vm1553_vm10, %v4849_v35, %v1550_v47 }
0x1751   :  { %v1559_v29 = vsel %vm1556_vm11, %v1558_v56, %v1554_v37 }
0x1752   :  { %v1562_v17 = vmul.f32 %v1559_v29, %v5791_v61 }
0x178a   :  { %v1480_v14 = vpop.f32.mrf.mxu3 }
0x178b   :  { %v1481_v41 = vadd.f32 %v5714_v46, %v1480_v14 }
0x178d   :  { %4850 = vtanh.f32 %v1481_v41  ;;  %v4538_v57 = vmul.f32 -1.442695, %v1481_v41 }
0x178f   :  { %4852 = vpow2.f32 %v4538_v57 }
0x1792   :  { %v1482_v49 = vpop.f32.mrf.mxu3 }
0x1793   :  { %v4851_v48 = vpop.eup %4850 }
0x1794   :  { %1506 = vrot.lane.b32.xlu1 %v4851_v48, %s5253_s21 }
0x1795   :  { %v4853_v31 = vpop.eup %4852 }
0x1796   :  { %v1487_v60 = vadd.f32 1.0, %v4853_v31 }
0x1797   :  { %v1565_v55 = vpop.permute.xlu2 %1564 }
0x1798   :  { %v1567_v43 = vmul.f32 %v1565_v55, %v1559_v29  ;;  %4854 = vrcp.f32 %v1487_v60  ;;  %v1499_v45 = vand.u32 2147483648, %v1487_v60  ;;  %vm1493_vm13 = vweird.f32 %v1487_v60 }
0x1799   :  { %v1497_v11 = vand.u32 2147483647, %v1487_v60 }
0x179a   :  { %v1500_v34 = vor.u32 1.1754944e-38, %v1499_v45 }
0x179b   :  { %vm1498_vm15 = vcmp.eq.f32.partialorder %v1497_v11, 8.507059e+37 }
0x179c   :  { %1569 = vrot.lane.b32.xlu1 %v1567_v43, %s5254_s24 }
0x179e   :  { %v4855_v62 = vpop.eup %4854 }
0x179f   :  { %v1489_v2 = vmul.f32 %v4855_v62, %v1487_v60  ;;  %vm1494_vm12 = vweird.f32 %v4855_v62 }
0x17a0   :  { %vm1495_vm14 = vmor %vm1493_vm13, %vm1494_vm12 }
0x17a1   :  { %v1490_v6 = vsub.f32 1.0, %v1489_v2 }
0x17a3   :  { %v1491_v50 = vmul.f32 %v4855_v62, %v1490_v6 }
0x17a5   :  { %v1492_v10 = vadd.f32 %v4855_v62, %v1491_v50 }
0x17a7   :  { %v1496_v12 = vsel %vm1495_vm14, %v4855_v62, %v1492_v10 }
0x17a8   :  { %v1501_v63 = vsel %vm1498_vm15, %v1500_v34, %v1496_v12 }
0x17a9   :  { %v1504_v20 = vmul.f32 %v1501_v63, %v5796_v8 }
0x1806   :  { %v1507_v13 = vpop.permute.xlu1 %1506 }
0x1807   :  { %v1509_v0 = vmul.f32 %v1507_v13, %v1501_v63 }
0x1809   :  { %1511 = vrot.lane.b32.xlu0 %v1509_v0, %s5254_s24 }
0x180e   :  { %v1570_v54 = vpop.permute.xlu1 %1569 }
0x180f   :  { %v5826_v18 = vadd.f32 %v1570_v54, %v1562_v17 }
0x1811   :  { %4856 = vtanh.f32 %v5826_v18 }
0x1817   :  { %v4857_v9 = vpop.eup %4856 }
0x1818   :  { %1575 = vrot.lane.b32.xlu0 %v4857_v9, %s5253_s21 }
0x187b   :  { %v1512_v23 = vpop.permute.xlu0 %1511 }
0x187c   :  { %v5831_v38 = vadd.f32 %v1512_v23, %v1504_v20 }
0x187e   :  { %4858 = vtanh.f32 %v5831_v38 }
0x1884   :  { %v4859_v24 = vpop.eup %4858 }
0x1885   :  { %1517 = vrot.lane.b32.xlu2 %v4859_v24, %s5253_s21 }
0x188a   :  { %v1576_v39 = vpop.permute.xlu0 %1575 }
0x188b   :  { %v1578_v61 = vmul.f32 %v1576_v39, %v1559_v29 }
0x188d   :  { %v1642_v30 = vpack.c.bf16 %v1578_v61, %v1578_v61  ;;  %1580 = vrot.lane.b32.xlu1 %v1578_v61, %s5254_s24 }
0x188f   :  { %1644 = vrot.lane.b32.xlu0 %v1642_v30, %s5254_s24 }
0x1895   :  { %143 = vperm.xlu1 %4675, %v79_v32  }
0x18df   :  { %v1518_v8 = vpop.permute.xlu2 %1517 }
0x18e0   :  { %v1520_v59 = vmul.f32 %v1518_v8, %v1501_v63 }
0x18e2   :  { %1584 = vrot.lane.b32.xlu2 %v1520_v59, %s5253_s21 }
0x18ff   :  { %v1581_v36 = vpop.permute.xlu1 %1580 }
0x1901   :  { %v1645_v35 = vpop.permute.xlu0 %1644 }
0x1902   :  { %4543 = vmatmul.msk.bf16.vlgmr.msrb.gmra.mxu1 %vm290_vm4, %v1645_v35 }
0x1903   :  { %2139 = vmatpush.bf16.msrb.mxu1 %v5625_v3 }
0x1907   :  { %2140 = vmatpush.bf16.msrb.mxu1 %v5631_v16  ;;  %v5850_v42 = vpop.permute.xlu1 %143 }
0x1908   :  { %v185_v3 = vmul.f32 %v5645_v22, %v5850_v42 }
0x190a   :  { %v206_v16 = vadd.f32 %v5652_v33, %v185_v3 }
0x193c   :  { %v1585_v14 = vpop.permute.xlu2 %1584 }
0x193d   :  { %v1587_v40 = vsel %vm290_vm4, %v1581_v36, %v1585_v14 }
0x193e   :  { %v1588_v41 = vpack.c.bf16 %v1587_v40, %v1587_v40 }
0x1940   :  { %4541 = vmatmul.msk.bf16.vlgmr.msrb.gmra.mxu2 %vm378_vm5, %v1588_v41 }
0x1941   :  { %2080 = vmatpush.bf16.msrb.mxu2 %v5684_v4 }
0x1945   :  { %2081 = vmatpush.bf16.msrb.mxu2 %v5690_v7 }
0x1949   :  { %2082 = vmatpush.bf16.msrb.mxu2 %v5696_v25 }
0x194d   :  { %2083 = vmatpush.bf16.msrb.mxu2 %v5702_v26 }
0x197f   :  { %v1658_v49 = vpop.f32.mrf.mxu1 }
0x1980   :  { %v1662_v47 = vadd.f32 %v1658_v49, %v206_v16 }
0x1982   :  { %4860 = vtanh.f32 %v1662_v47  ;;  %v4544_v29 = vmul.f32 -1.442695, %v1662_v47 }
0x1987   :  { %v1660_v48 = vpop.f32.mrf.mxu1 }
0x1988   :  { %v4861_v52 = vpop.eup %4860  ;;  %v80_v48 = vld [vmem:[%s6722_s25 + $0x60] sm:$0xff] }
0x1989   :  { %1685 = vrot.lane.b32.xlu0 %v4861_v52, %s5253_s21 }
0x19c3   :  { %v1601_v53 = vpop.f32.mrf.mxu2 }
0x19c4   :  { %v1602_v37 = vadd.f32 %v5714_v46, %v1601_v53 }
0x19c6   :  { %4862 = vtanh.f32 %v1602_v37  ;;  %v4542_v45 = vmul.f32 -1.442695, %v1602_v37  ;;  %v5231_v37 = vld [vmem:[%s6721_s23 + $0x8] sm:$0xff] }
0x19c7   :  { %4864 = vpow2.f32 %v4544_v29 }
0x19cb   :  { %v1603_v55 = vpop.f32.mrf.mxu2 }
0x19cc   :  { %v4863_v56 = vpop.eup %4862  ;;  %v5232_v55 = vld [vmem:[%s6721_s23] sm:$0xff] }
0x19cd   :  { %1627 = vrot.lane.b32.xlu2 %v4863_v56, %s5253_s21  ;;  %v4865_v22 = vpop.eup %4864 }
0x19ce   :  { %v1666_v43 = vadd.f32 1.0, %v4865_v22 }
0x19d0   :  { %4866 = vrcp.f32 %v1666_v43  ;;  %v1678_v2 = vand.u32 2147483648, %v1666_v43  ;;  %vm1672_vm1 = vweird.f32 %v1666_v43  ;;  %v1676_v6 = vand.u32 2147483647, %v1666_v43 }
0x19d1   :  { %4868 = vpow2.f32 %v4542_v45 }
0x19d2   :  { %v1679_v10 = vor.u32 1.1754944e-38, %v1678_v2  ;;  %vm1677_vm3 = vcmp.eq.f32.partialorder %v1676_v6, 8.507059e+37 }
0x19d6   :  { %v4867_v33 = vpop.eup %4866 }
0x19d7   :  { %v1668_v57 = vmul.f32 %v4867_v33, %v1666_v43  ;;  %vm1673_vm0 = vweird.f32 %v4867_v33  ;;  %v4869_v13 = vpop.eup %4868 }
0x19d8   :  { %vm1674_vm2 = vmor %vm1672_vm1, %vm1673_vm0  ;;  %v1608_v63 = vadd.f32 1.0, %v4869_v13 }
0x19d9   :  { %v1669_v31 = vsub.f32 1.0, %v1668_v57  ;;  %v5894_v57 = vld [vmem:[%s6723_s13] ss:$0 sm:$0xff] }
0x19da   :  { %4870 = vrcp.f32 %v1608_v63  ;;  %v1620_v23 = vand.u32 2147483648, %v1608_v63  ;;  %vm1614_vm7 = vweird.f32 %v1608_v63  ;;  %v1618_v24 = vand.u32 2147483647, %v1608_v63 }
0x19db   :  { %v1670_v60 = vmul.f32 %v4867_v33, %v1669_v31 }
0x19dc   :  { %v1621_v61 = vor.u32 1.1754944e-38, %v1620_v23  ;;  %vm1619_vm9 = vcmp.eq.f32.partialorder %v1618_v24, 8.507059e+37 }
0x19dd   :  { %v1671_v62 = vadd.f32 %v4867_v33, %v1670_v60 }
0x19df   :  { %v1675_v50 = vsel %vm1674_vm2, %v4867_v33, %v1671_v62 }
0x19e0   :  { %v1680_v12 = vsel %vm1677_vm3, %v1679_v10, %v1675_v50  ;;  %v4871_v0 = vpop.eup %4870 }
0x19e1   :  { %v1610_v17 = vmul.f32 %v4871_v0, %v1608_v63  ;;  %vm1615_vm6 = vweird.f32 %v4871_v0  ;;  %v1683_v59 = vmul.f32 %v1680_v12, %v5826_v18 }
0x19e2   :  { %vm1616_vm8 = vmor %vm1614_vm7, %vm1615_vm6 }
0x19e3   :  { %v1611_v54 = vsub.f32 1.0, %v1610_v17 }
0x19e5   :  { %v1612_v9 = vmul.f32 %v4871_v0, %v1611_v54 }
0x19e7   :  { %v1613_v20 = vadd.f32 %v4871_v0, %v1612_v9 }
0x19e9   :  { %v1617_v39 = vsel %vm1616_vm8, %v4871_v0, %v1613_v20 }
0x19ea   :  { %v1622_v32 = vsel %vm1619_vm9, %v1621_v61, %v1617_v39 }
0x19eb   :  { %v1625_v40 = vmul.f32 %v1622_v32, %v5831_v38 }
0x19fb   :  { %v1686_v11 = vpop.permute.xlu0 %1685 }
0x19fc   :  { %v1688_v34 = vmul.f32 %v1686_v11, %v1680_v12 }
0x19fe   :  { %1690 = vrot.lane.b32.xlu2 %v1688_v34, %s5254_s24 }
0x1a27   :  { %v1628_v30 = vpop.permute.xlu2 %1627 }
0x1a28   :  { %v1630_v8 = vmul.f32 %v1628_v30, %v1622_v32 }
0x1a2a   :  { %1632 = vrot.lane.b32.xlu1 %v1630_v8, %s5254_s24 }
0x1a58   :  { %v1691_v35 = vpop.permute.xlu2 %1690 }
0x1a59   :  { %v5861_v36 = vadd.f32 %v1691_v35, %v1683_v59 }
0x1a5b   :  { %4872 = vtanh.f32 %v5861_v36 }
0x1a61   :  { %v4873_v14 = vpop.eup %4872 }
0x1a62   :  { %1696 = vrot.lane.b32.xlu1 %v4873_v14, %s5253_s21 }
0x1a9c   :  { %v1633_v41 = vpop.permute.xlu1 %1632 }
0x1a9d   :  { %v5866_v3 = vadd.f32 %v1633_v41, %v1625_v40 }
0x1a9f   :  { %4874 = vtanh.f32 %v5866_v3 }
0x1aa5   :  { %v4875_v16 = vpop.eup %4874 }
0x1aa6   :  { %1638 = vrot.lane.b32.xlu0 %v4875_v16, %s5253_s21 }
0x1ad4   :  { %v1697_v49 = vpop.permute.xlu1 %1696 }
0x1ad5   :  { %v1699_v18 = vmul.f32 %v1697_v49, %v1680_v12 }
0x1ad7   :  { %v1763_v47 = vpack.c.bf16 %v1699_v18, %v1699_v18  ;;  %1701 = vrot.lane.b32.xlu2 %v1699_v18, %s5254_s24 }
0x1ad9   :  { %1765 = vrot.lane.b32.xlu1 %v1763_v47, %s5254_s24 }
0x1adf   :  { %148 = vperm.xlu2 %4676, %v80_v48  }
0x1b18   :  { %v1639_v38 = vpop.permute.xlu0 %1638 }
0x1b19   :  { %v1641_v52 = vmul.f32 %v1639_v38, %v1622_v32 }
0x1b1b   :  { %1705 = vrot.lane.b32.xlu0 %v1641_v52, %s5253_s21 }
0x1b31   :  { %v1702_v56 = vpop.permute.xlu2 %1701 }
0x1b39   :  { %v5889_v33 = vpop.permute.xlu2 %148 }
0x1b3a   :  { %v186_v31 = vmul.f32 %v5894_v57, %v5889_v33 }
0x1b4b   :  { %v1766_v53 = vpop.permute.xlu1 %1765 }
0x1b4c   :  { %4547 = vmatmul.msk.bf16.vlgmr.msra.gmra.mxu0 %vm290_vm4, %v1766_v53 }
0x1b4d   :  { %2260 = vmatpush.bf16.msra.mxu0 %v5231_v37 }
0x1b51   :  { %2261 = vmatpush.bf16.msra.mxu0 %v5232_v55 }
0x1b8d   :  { %v1706_v29 = vpop.permute.xlu0 %1705 }
0x1b8e   :  { %v1708_v22 = vsel %vm290_vm4, %v1702_v56, %v1706_v29 }
0x1b8f   :  { %v1709_v43 = vpack.c.bf16 %v1708_v22, %v1708_v22 }
0x1b91   :  { %4545 = vmatmul.msk.bf16.vlgmr.msrb.gmra.mxu3 %vm378_vm5, %v1709_v43 }
0x1b92   :  { %2201 = vmatpush.bf16.msrb.mxu3 %v5684_v4  ;;  %v5901_v4 = vld [vmem:[%s6724_s4] ss:$0 sm:$0xff] }
0x1b96   :  { %2202 = vmatpush.bf16.msrb.mxu3 %v5690_v7  ;;  %v207_v7 = vadd.f32 %v5901_v4, %v186_v31 }
0x1b9a   :  { %2203 = vmatpush.bf16.msrb.mxu3 %v5696_v25 }
0x1b9e   :  { %2204 = vmatpush.bf16.msrb.mxu3 %v5702_v26 }
0x1bc9   :  { %v1779_v25 = vpop.f32.mrf.mxu0 }
0x1bca   :  { %v1783_v60 = vadd.f32 %v1779_v25, %v207_v7  ;;  %v81_v25 = vld [vmem:[%s6722_s25 + $0x68] sm:$0xff] }
0x1bcc   :  { %4876 = vtanh.f32 %v1783_v60  ;;  %v4548_v50 = vmul.f32 -1.442695, %v1783_v60 }
0x1bd1   :  { %v1781_v26 = vpop.f32.mrf.mxu0 }
0x1bd2   :  { %v4877_v62 = vpop.eup %4876 }
0x1bd3   :  { %1806 = vrot.lane.b32.xlu1 %v4877_v62, %s5253_s21 }
0x1c14   :  { %v1722_v2 = vpop.f32.mrf.mxu3 }
0x1c15   :  { %v1723_v6 = vadd.f32 %v5714_v46, %v1722_v2 }
0x1c17   :  { %4878 = vtanh.f32 %v1723_v6  ;;  %v4546_v61 = vmul.f32 -1.442695, %v1723_v6 }
0x1c18   :  { %4880 = vpow2.f32 %v4548_v50 }
0x1c1c   :  { %v1724_v10 = vpop.f32.mrf.mxu3 }
0x1c1d   :  { %v4879_v45 = vpop.eup %4878  ;;  %v5235_v10 = vld [vmem:[%s6696_s5 + $0x18] sm:$0xff] }
0x1c1e   :  { %1748 = vrot.lane.b32.xlu0 %v4879_v45, %s5253_s21  ;;  %v4881_v11 = vpop.eup %4880  ;;  %v5236_v45 = vld [vmem:[%s6696_s5 + $0x10] sm:$0xff] }
0x1c1f   :  { %v1787_v12 = vadd.f32 1.0, %v4881_v11  ;;  %v5237_v11 = vld [vmem:[%s6696_s5 + $0x8] sm:$0xff] }
0x1c21   :  { %4882 = vrcp.f32 %v1787_v12  ;;  %v1799_v54 = vand.u32 2147483648, %v1787_v12  ;;  %vm1793_vm11 = vweird.f32 %v1787_v12  ;;  %v1797_v9 = vand.u32 2147483647, %v1787_v12 }
0x1c22   :  { %4884 = vpow2.f32 %v4546_v61 }
0x1c23   :  { %v1800_v20 = vor.u32 1.1754944e-38, %v1799_v54  ;;  %vm1798_vm13 = vcmp.eq.f32.partialorder %v1797_v9, 8.507059e+37 }
0x1c27   :  { %v4883_v34 = vpop.eup %4882 }
0x1c28   :  { %v1789_v13 = vmul.f32 %v4883_v34, %v1787_v12  ;;  %vm1794_vm10 = vweird.f32 %v4883_v34  ;;  %v4885_v30 = vpop.eup %4884  ;;  %v5238_v12 = vld [vmem:[%s6696_s5] sm:$0xff] }
0x1c29   :  { %vm1795_vm12 = vmor %vm1793_vm11, %vm1794_vm10  ;;  %v1729_v32 = vadd.f32 1.0, %v4885_v30 }
0x1c2a   :  { %v1790_v63 = vsub.f32 1.0, %v1789_v13 }
0x1c2b   :  { %4886 = vrcp.f32 %v1729_v32  ;;  %v1741_v41 = vand.u32 2147483648, %v1729_v32  ;;  %vm1735_vm15 = vweird.f32 %v1729_v32  ;;  %v1739_v16 = vand.u32 2147483647, %v1729_v32 }
0x1c2c   :  { %v1791_v0 = vmul.f32 %v4883_v34, %v1790_v63 }
0x1c2d   :  { %v1742_v18 = vor.u32 1.1754944e-38, %v1741_v41  ;;  %vm1740_vm1 = vcmp.eq.f32.partialorder %v1739_v16, 8.507059e+37 }
0x1c2e   :  { %v1792_v17 = vadd.f32 %v4883_v34, %v1791_v0 }
0x1c30   :  { %v1796_v46 = vsel %vm1795_vm12, %v4883_v34, %v1792_v17 }
0x1c31   :  { %v1801_v24 = vsel %vm1798_vm13, %v1800_v20, %v1796_v46  ;;  %v4887_v8 = vpop.eup %4886 }
0x1c32   :  { %v1731_v59 = vmul.f32 %v4887_v8, %v1729_v32  ;;  %vm1736_vm14 = vweird.f32 %v4887_v8  ;;  %v1804_v52 = vmul.f32 %v1801_v24, %v5861_v36  ;;  %v5949_v32 = vld [vmem:[%s6697_s6] ss:$0 sm:$0xff] }
0x1c33   :  { %vm1737_vm0 = vmor %vm1735_vm15, %vm1736_vm14 }
0x1c34   :  { %v1732_v35 = vsub.f32 1.0, %v1731_v59 }
0x1c36   :  { %v1733_v14 = vmul.f32 %v4887_v8, %v1732_v35 }
0x1c38   :  { %v1734_v40 = vadd.f32 %v4887_v8, %v1733_v14 }
0x1c3a   :  { %v1738_v49 = vsel %vm1737_vm0, %v4887_v8, %v1734_v40 }
0x1c3b   :  { %v1743_v48 = vsel %vm1740_vm1, %v1742_v18, %v1738_v49 }
0x1c3c   :  { %v1746_v56 = vmul.f32 %v1743_v48, %v5866_v3 }
0x1c45   :  { %v1807_v23 = vpop.permute.xlu1 %1806 }
0x1c46   :  { %v1809_v39 = vmul.f32 %v1807_v23, %v1801_v24 }
0x1c48   :  { %1811 = vrot.lane.b32.xlu0 %v1809_v39, %s5254_s24 }
0x1c90   :  { %v1749_v47 = vpop.permute.xlu0 %1748 }
0x1c91   :  { %v1751_v38 = vmul.f32 %v1749_v47, %v1743_v48 }
0x1c93   :  { %1753 = vrot.lane.b32.xlu2 %v1751_v38, %s5254_s24 }
0x1cba   :  { %v1812_v53 = vpop.permute.xlu0 %1811 }
0x1cbb   :  { %v5910_v37 = vadd.f32 %v1812_v53, %v1804_v52 }
0x1cbd   :  { %4888 = vtanh.f32 %v5910_v37 }
0x1cc3   :  { %v4889_v55 = vpop.eup %4888 }
0x1cc4   :  { %1817 = vrot.lane.b32.xlu2 %v4889_v55, %s5253_s21 }
0x1ced   :  { %v1754_v29 = vpop.permute.xlu2 %1753 }
0x1cee   :  { %v5915_v22 = vadd.f32 %v1754_v29, %v1746_v56 }
0x1cf0   :  { %4890 = vtanh.f32 %v5915_v22 }
0x1cf6   :  { %v4891_v43 = vpop.eup %4890 }
0x1cf7   :  { %1759 = vrot.lane.b32.xlu1 %v4891_v43, %s5253_s21 }
0x1d1e   :  { %v1818_v31 = vpop.permute.xlu2 %1817 }
0x1d1f   :  { %v1820_v36 = vmul.f32 %v1818_v31, %v1801_v24 }
0x1d21   :  { %v1884_v7 = vpack.c.bf16 %v1820_v36, %v1820_v36  ;;  %1822 = vrot.lane.b32.xlu0 %v1820_v36, %s5254_s24 }
0x1d23   :  { %1886 = vrot.lane.b32.xlu2 %v1884_v7, %s5254_s24 }
0x1d29   :  { %153 = vperm.xlu0 %4674, %v81_v25  }
0x1d69   :  { %v1760_v3 = vpop.permute.xlu1 %1759 }
0x1d6a   :  { %v1762_v60 = vmul.f32 %v1760_v3, %v1743_v48 }
0x1d6c   :  { %1826 = vrot.lane.b32.xlu1 %v1762_v60, %s5253_s21 }
0x1d7d   :  { %v1887_v26 = vpop.permute.xlu2 %1886 }
0x1d7e   :  { %4551 = vmatmul.msk.bf16.vlgmr.msra.gmra.mxu1 %vm290_vm4, %v1887_v26 }
0x1d93   :  { %v1823_v62 = vpop.permute.xlu0 %1822 }
0x1d9b   :  { %v5940_v34 = vpop.permute.xlu0 %153 }
0x1d9c   :  { %v187_v13 = vmul.f32 %v5894_v57, %v5940_v34 }
0x1d9e   :  { %v208_v63 = vadd.f32 %v5901_v4, %v187_v13 }
0x1dde   :  { %v1827_v2 = vpop.permute.xlu1 %1826 }
0x1ddf   :  { %v1829_v6 = vsel %vm290_vm4, %v1823_v62, %v1827_v2 }
0x1de0   :  { %v1830_v50 = vpack.c.bf16 %v1829_v6, %v1829_v6 }
0x1de2   :  { %4549 = vmatmul.msk.bf16.vlgmr.msra.gmra.mxu2 %vm378_vm5, %v1830_v50 }
0x1de3   :  { %2322 = vmatpush.bf16.msra.mxu2 %v5235_v10 }
0x1de7   :  { %2323 = vmatpush.bf16.msra.mxu2 %v5236_v45 }
0x1deb   :  { %2324 = vmatpush.bf16.msra.mxu2 %v5237_v11 }
0x1def   :  { %2325 = vmatpush.bf16.msra.mxu2 %v5238_v12 }
0x1dfb   :  { %v1900_v0 = vpop.f32.mrf.mxu1 }
0x1dfc   :  { %v1904_v17 = vadd.f32 %v1900_v0, %v208_v63 }
0x1dfe   :  { %4892 = vtanh.f32 %v1904_v17  ;;  %v4552_v46 = vmul.f32 -1.442695, %v1904_v17 }
0x1e00   :  { %4894 = vpow2.f32 %v4552_v46 }
0x1e03   :  { %v1902_v54 = vpop.f32.mrf.mxu1 }
0x1e04   :  { %v4893_v9 = vpop.eup %4892  ;;  %v82_v54 = vld [vmem:[%s6722_s25 + $0x70] sm:$0xff] }
0x1e05   :  { %1927 = vrot.lane.b32.xlu2 %v4893_v9, %s5253_s21 }
0x1e06   :  { %v4895_v20 = vpop.eup %4894 }
0x1e07   :  { %v1908_v23 = vadd.f32 1.0, %v4895_v20 }
0x1e09   :  { %4896 = vrcp.f32 %v1908_v23  ;;  %v1920_v41 = vand.u32 2147483648, %v1908_v23  ;;  %vm1914_vm3 = vweird.f32 %v1908_v23  ;;  %v1918_v16 = vand.u32 2147483647, %v1908_v23 }
0x1e0b   :  { %v1921_v47 = vor.u32 1.1754944e-38, %v1920_v41  ;;  %vm1919_vm7 = vcmp.eq.f32.partialorder %v1918_v16, 8.507059e+37 }
0x1e0f   :  { %v4897_v24 = vpop.eup %4896 }
0x1e10   :  { %v1910_v39 = vmul.f32 %v4897_v24, %v1908_v23  ;;  %vm1915_vm2 = vweird.f32 %v4897_v24 }
0x1e11   :  { %vm1916_vm6 = vmor %vm1914_vm3, %vm1915_vm2 }
0x1e12   :  { %v1911_v61 = vsub.f32 1.0, %v1910_v39 }
0x1e14   :  { %v1912_v59 = vmul.f32 %v4897_v24, %v1911_v61 }
0x1e16   :  { %v1913_v35 = vadd.f32 %v4897_v24, %v1912_v59 }
0x1e18   :  { %v1917_v49 = vsel %vm1916_vm6, %v4897_v24, %v1913_v35 }
0x1e19   :  { %v1922_v48 = vsel %vm1919_vm7, %v1921_v47, %v1917_v49 }
0x1e1a   :  { %v1925_v6 = vmul.f32 %v1922_v48, %v5910_v37 }
0x1e5f   :  { %v1928_v18 = vpop.permute.xlu2 %1927 }
0x1e60   :  { %v1930_v38 = vmul.f32 %v1928_v18, %v1922_v48 }
0x1e65   :  { %v1843_v30 = vpop.f32.mrf.mxu2 }
0x1e66   :  { %v1844_v8 = vadd.f32 %v5949_v32, %v1843_v30 }
0x1e68   :  { %4898 = vtanh.f32 %v1844_v8  ;;  %v4550_v52 = vmul.f32 -1.442695, %v1844_v8 }
0x1e6a   :  { %4900 = vpow2.f32 %v4550_v52 }
0x1e6d   :  { %v1845_v14 = vpop.f32.mrf.mxu2 }
0x1e6e   :  { %v4899_v40 = vpop.eup %4898 }
0x1e6f   :  { %1869 = vrot.lane.b32.xlu1 %v4899_v40, %s5253_s21 }
0x1e70   :  { %v4901_v53 = vpop.eup %4900 }
0x1e71   :  { %v1850_v55 = vadd.f32 1.0, %v4901_v53 }
0x1e73   :  { %4902 = vrcp.f32 %v1850_v55  ;;  %v1862_v7 = vand.u32 2147483648, %v1850_v55  ;;  %vm1856_vm9 = vweird.f32 %v1850_v55  ;;  %v1860_v25 = vand.u32 2147483647, %v1850_v55 }
0x1e75   :  { %v1863_v60 = vor.u32 1.1754944e-38, %v1862_v7  ;;  %vm1861_vm11 = vcmp.eq.f32.partialorder %v1860_v25, 8.507059e+37 }
0x1e77   :  { %1932 = vrot.lane.b32.xlu1 %v1930_v38, %s5254_s24 }
0x1e79   :  { %v4903_v56 = vpop.eup %4902 }
0x1e7a   :  { %v1852_v29 = vmul.f32 %v4903_v56, %v1850_v55  ;;  %vm1857_vm8 = vweird.f32 %v4903_v56 }
0x1e7b   :  { %vm1858_vm10 = vmor %vm1856_vm9, %vm1857_vm8 }
0x1e7c   :  { %v1853_v43 = vsub.f32 1.0, %v1852_v29 }
0x1e7e   :  { %v1854_v31 = vmul.f32 %v4903_v56, %v1853_v43 }
0x1e80   :  { %v1855_v36 = vadd.f32 %v4903_v56, %v1854_v31 }
0x1e82   :  { %v1859_v3 = vsel %vm1858_vm10, %v4903_v56, %v1855_v36 }
0x1e83   :  { %v1864_v62 = vsel %vm1861_vm11, %v1863_v60, %v1859_v3 }
0x1e84   :  { %v1867_v11 = vmul.f32 %v1864_v62, %v5915_v22 }
0x1ee1   :  { %v1870_v26 = vpop.permute.xlu1 %1869 }
0x1ee2   :  { %v1872_v2 = vmul.f32 %v1870_v26, %v1864_v62 }
0x1ee4   :  { %1874 = vrot.lane.b32.xlu0 %v1872_v2, %s5254_s24 }
0x1ee9   :  { %v1933_v50 = vpop.permute.xlu1 %1932 }
0x1eea   :  { %v5956_v10 = vadd.f32 %v1933_v50, %v1925_v6 }
0x1eec   :  { %4904 = vtanh.f32 %v5956_v10 }
0x1ef2   :  { %v4905_v45 = vpop.eup %4904 }
0x1ef3   :  { %1938 = vrot.lane.b32.xlu0 %v4905_v45, %s5253_s21 }
0x1f56   :  { %v1875_v12 = vpop.permute.xlu0 %1874 }
0x1f57   :  { %v5961_v13 = vadd.f32 %v1875_v12, %v1867_v11 }
0x1f59   :  { %4906 = vtanh.f32 %v5961_v13 }
0x1f5f   :  { %v4907_v63 = vpop.eup %4906 }
0x1f60   :  { %1880 = vrot.lane.b32.xlu2 %v4907_v63, %s5253_s21 }
0x1f65   :  { %v1939_v0 = vpop.permute.xlu0 %1938 }
0x1f66   :  { %v1941_v37 = vmul.f32 %v1939_v0, %v1922_v48 }
0x1f68   :  { %v2005_v17 = vpack.c.bf16 %v1941_v37, %v1941_v37  ;;  %1943 = vrot.lane.b32.xlu1 %v1941_v37, %s5254_s24 }
0x1f6a   :  { %2007 = vrot.lane.b32.xlu0 %v2005_v17, %s5254_s24 }
0x1f70   :  { %158 = vperm.xlu1 %4675, %v82_v54  }
0x1fba   :  { %v1881_v22 = vpop.permute.xlu2 %1880 }
0x1fbb   :  { %v1883_v9 = vmul.f32 %v1881_v22, %v1864_v62 }
0x1fbd   :  { %1947 = vrot.lane.b32.xlu2 %v1883_v9, %s5253_s21 }
0x1fda   :  { %v1944_v20 = vpop.permute.xlu1 %1943 }
0x1fdc   :  { %v2008_v46 = vpop.permute.xlu0 %2007 }
0x1fdd   :  { %4555 = vmatmul.msk.bf16.vlgmr.msrb.gmra.mxu0 %vm290_vm4, %v2008_v46 }
0x1fe2   :  { %v5974_v61 = vpop.permute.xlu1 %158 }
0x1fe3   :  { %v188_v30 = vmul.f32 %v5894_v57, %v5974_v61 }
0x1fe5   :  { %v209_v8 = vadd.f32 %v5901_v4, %v188_v30 }
0x2017   :  { %v1948_v23 = vpop.permute.xlu2 %1947 }
0x2018   :  { %v1950_v24 = vsel %vm290_vm4, %v1944_v20, %v1948_v23 }
0x2019   :  { %v1951_v39 = vpack.c.bf16 %v1950_v24, %v1950_v24 }
0x201b   :  { %4553 = vmatmul.msk.bf16.vlgmr.msra.gmra.mxu3 %vm378_vm5, %v1951_v39 }
0x205a   :  { %v2021_v59 = vpop.f32.mrf.mxu0 }
0x205b   :  { %v2025_v35 = vadd.f32 %v2021_v59, %v209_v8 }
0x205d   :  { %4908 = vtanh.f32 %v2025_v35  ;;  %v4556_v47 = vmul.f32 -1.442695, %v2025_v35 }
0x2062   :  { %v2023_v14 = vpop.f32.mrf.mxu0 }
0x2063   :  { %v4909_v40 = vpop.eup %4908 }
0x2064   :  { %2048 = vrot.lane.b32.xlu0 %v4909_v40, %s5253_s21  ;;  %v83_v40 = vld [vmem:[%s6722_s25 + $0x78] sm:$0xff] }
0x209e   :  { %v1964_v41 = vpop.f32.mrf.mxu3 }
0x209f   :  { %v1965_v16 = vadd.f32 %v5949_v32, %v1964_v41 }
0x20a1   :  { %4910 = vtanh.f32 %v1965_v16  ;;  %v4554_v25 = vmul.f32 -1.442695, %v1965_v16 }
0x20a2   :  { %4912 = vpow2.f32 %v4556_v47 }
0x20a6   :  { %v1966_v49 = vpop.f32.mrf.mxu3 }
0x20a7   :  { %v4911_v18 = vpop.eup %4910 }
0x20a8   :  { %1990 = vrot.lane.b32.xlu2 %v4911_v18, %s5253_s21  ;;  %v4913_v48 = vpop.eup %4912 }
0x20a9   :  { %v2029_v38 = vadd.f32 1.0, %v4913_v48 }
0x20ab   :  { %4914 = vrcp.f32 %v2029_v38  ;;  %v2041_v43 = vand.u32 2147483648, %v2029_v38  ;;  %vm2035_vm13 = vweird.f32 %v2029_v38  ;;  %v2039_v31 = vand.u32 2147483647, %v2029_v38 }
0x20ac   :  { %4916 = vpow2.f32 %v4554_v25 }
0x20ad   :  { %v2042_v7 = vor.u32 1.1754944e-38, %v2041_v43  ;;  %vm2040_vm15 = vcmp.eq.f32.partialorder %v2039_v31, 8.507059e+37 }
0x20b1   :  { %v4915_v52 = vpop.eup %4914 }
0x20b2   :  { %v2031_v53 = vmul.f32 %v4915_v52, %v2029_v38  ;;  %vm2036_vm12 = vweird.f32 %v4915_v52  ;;  %v4917_v62 = vpop.eup %4916 }
0x20b3   :  { %vm2037_vm14 = vmor %vm2035_vm13, %vm2036_vm12  ;;  %v1971_v2 = vadd.f32 1.0, %v4917_v62 }
0x20b4   :  { %v2032_v55 = vsub.f32 1.0, %v2031_v53 }
0x20b5   :  { %4918 = vrcp.f32 %v1971_v2  ;;  %v1983_v63 = vand.u32 2147483648, %v1971_v2  ;;  %vm1977_vm1 = vweird.f32 %v1971_v2  ;;  %v1981_v0 = vand.u32 2147483647, %v1971_v2 }
0x20b6   :  { %v2033_v56 = vmul.f32 %v4915_v52, %v2032_v55 }
0x20b7   :  { %v1984_v17 = vor.u32 1.1754944e-38, %v1983_v63  ;;  %vm1982_vm3 = vcmp.eq.f32.partialorder %v1981_v0, 8.507059e+37 }
0x20b8   :  { %v2034_v29 = vadd.f32 %v4915_v52, %v2033_v56 }
0x20ba   :  { %v2038_v36 = vsel %vm2037_vm14, %v4915_v52, %v2034_v29 }
0x20bb   :  { %v2043_v60 = vsel %vm2040_vm15, %v2042_v7, %v2038_v36  ;;  %v4919_v6 = vpop.eup %4918 }
0x20bc   :  { %v1973_v50 = vmul.f32 %v4919_v6, %v1971_v2  ;;  %vm1978_vm0 = vweird.f32 %v4919_v6  ;;  %v2046_v46 = vmul.f32 %v2043_v60, %v5956_v10 }
0x20bd   :  { %vm1979_vm2 = vmor %vm1977_vm1, %vm1978_vm0 }
0x20be   :  { %v1974_v45 = vsub.f32 1.0, %v1973_v50 }
0x20c0   :  { %v1975_v11 = vmul.f32 %v4919_v6, %v1974_v45 }
0x20c2   :  { %v1976_v12 = vadd.f32 %v4919_v6, %v1975_v11 }
0x20c4   :  { %v1980_v37 = vsel %vm1979_vm2, %v4919_v6, %v1976_v12 }
0x20c5   :  { %v1985_v22 = vsel %vm1982_vm3, %v1984_v17, %v1980_v37 }
0x20c6   :  { %v1988_v39 = vmul.f32 %v1985_v22, %v5961_v13 }
0x20d6   :  { %v2049_v3 = vpop.permute.xlu0 %2048 }
0x20d7   :  { %v2051_v26 = vmul.f32 %v2049_v3, %v2043_v60 }
0x20d9   :  { %2053 = vrot.lane.b32.xlu2 %v2051_v26, %s5254_s24 }
0x2102   :  { %v1991_v54 = vpop.permute.xlu2 %1990 }
0x2103   :  { %v1993_v9 = vmul.f32 %v1991_v54, %v1985_v22 }
0x2105   :  { %1995 = vrot.lane.b32.xlu1 %v1993_v9, %s5254_s24 }
0x2133   :  { %v2054_v20 = vpop.permute.xlu2 %2053 }
0x2134   :  { %v5985_v23 = vadd.f32 %v2054_v20, %v2046_v46 }
0x2136   :  { %4920 = vtanh.f32 %v5985_v23 }
0x213c   :  { %v4921_v24 = vpop.eup %4920 }
0x213d   :  { %2059 = vrot.lane.b32.xlu1 %v4921_v24, %s5253_s21 }
0x2177   :  { %v1996_v30 = vpop.permute.xlu1 %1995 }
0x2178   :  { %v5990_v8 = vadd.f32 %v1996_v30, %v1988_v39 }
0x217a   :  { %4922 = vtanh.f32 %v5990_v8 }
0x2180   :  { %v4923_v59 = vpop.eup %4922 }
0x2181   :  { %2001 = vrot.lane.b32.xlu0 %v4923_v59, %s5253_s21 }
0x21af   :  { %v2060_v35 = vpop.permute.xlu1 %2059 }
0x21b0   :  { %v2062_v10 = vmul.f32 %v2060_v35, %v2043_v60 }
0x21b2   :  { %v2126_v14 = vpack.c.bf16 %v2062_v10, %v2062_v10  ;;  %2064 = vrot.lane.b32.xlu2 %v2062_v10, %s5254_s24 }
0x21b4   :  { %2128 = vrot.lane.b32.xlu1 %v2126_v14, %s5254_s24 }
0x21ba   :  { %163 = vperm.xlu2 %4676, %v83_v40  }
0x21f3   :  { %v2002_v13 = vpop.permute.xlu0 %2001 }
0x21f4   :  { %v2004_v41 = vmul.f32 %v2002_v13, %v1985_v22 }
0x21f6   :  { %2068 = vrot.lane.b32.xlu0 %v2004_v41, %s5253_s21 }
0x220c   :  { %v2065_v49 = vpop.permute.xlu2 %2064 }
0x2214   :  { %v6003_v38 = vpop.permute.xlu2 %163 }
0x2215   :  { %v189_v52 = vmul.f32 %v5894_v57, %v6003_v38 }
0x2217   :  { %v210_v53 = vadd.f32 %v5901_v4, %v189_v52 }
0x2226   :  { %v2129_v16 = vpop.permute.xlu1 %2128 }
0x2227   :  { %4559 = vmatmul.msk.bf16.vlgmr.msrb.gmra.mxu1 %vm290_vm4, %v2129_v16 }
0x2268   :  { %v2069_v18 = vpop.permute.xlu0 %2068 }
0x2269   :  { %v2071_v47 = vsel %vm290_vm4, %v2065_v49, %v2069_v18 }
0x226a   :  { %v2072_v48 = vpack.c.bf16 %v2071_v47, %v2071_v47 }
0x226c   :  { %4557 = vmatmul.msk.bf16.vlgmr.msrb.gmra.mxu2 %vm378_vm5, %v2072_v48 }
0x22a4   :  { %v2142_v55 = vpop.f32.mrf.mxu1 }
0x22a5   :  { %v2146_v56 = vadd.f32 %v2142_v55, %v210_v53 }
0x22a7   :  { %4924 = vtanh.f32 %v2146_v56  ;;  %v4560_v7 = vmul.f32 -1.442695, %v2146_v56 }
0x22ac   :  { %v2144_v29 = vpop.f32.mrf.mxu1 }
0x22ad   :  { %v4925_v43 = vpop.eup %4924 }
0x22ae   :  { %2169 = vrot.lane.b32.xlu1 %v4925_v43, %s5253_s21 }
0x22ef   :  { %v2085_v31 = vpop.f32.mrf.mxu2 }
0x22f0   :  { %v2086_v36 = vadd.f32 %v5949_v32, %v2085_v31  ;;  %v84_v31 = vld [vmem:[%s6722_s25 + $0x80] sm:$0xff] }
0x22f2   :  { %4926 = vtanh.f32 %v2086_v36  ;;  %v4558_v22 = vmul.f32 -1.442695, %v2086_v36 }
0x22f3   :  { %4928 = vpow2.f32 %v4560_v7 }
0x22f7   :  { %v2087_v25 = vpop.f32.mrf.mxu2 }
0x22f8   :  { %v4927_v3 = vpop.eup %4926 }
0x22f9   :  { %2111 = vrot.lane.b32.xlu0 %v4927_v3, %s5253_s21  ;;  %v4929_v60 = vpop.eup %4928 }
0x22fa   :  { %v2150_v26 = vadd.f32 1.0, %v4929_v60 }
0x22fc   :  { %4930 = vrcp.f32 %v2150_v26  ;;  %v2162_v11 = vand.u32 2147483648, %v2150_v26  ;;  %vm2156_vm7 = vweird.f32 %v2150_v26  ;;  %v2160_v12 = vand.u32 2147483647, %v2150_v26 }
0x22fd   :  { %4932 = vpow2.f32 %v4558_v22 }
0x22fe   :  { %v2163_v0 = vor.u32 1.1754944e-38, %v2162_v11  ;;  %vm2161_vm9 = vcmp.eq.f32.partialorder %v2160_v12, 8.507059e+37 }
0x2302   :  { %v4931_v62 = vpop.eup %4930 }
0x2303   :  { %v2152_v2 = vmul.f32 %v4931_v62, %v2150_v26  ;;  %vm2157_vm6 = vweird.f32 %v4931_v62  ;;  %v4933_v9 = vpop.eup %4932 }
0x2304   :  { %vm2158_vm8 = vmor %vm2156_vm7, %vm2157_vm6  ;;  %v2092_v46 = vadd.f32 1.0, %v4933_v9 }
0x2305   :  { %v2153_v6 = vsub.f32 1.0, %v2152_v2 }
0x2306   :  { %4934 = vrcp.f32 %v2092_v46  ;;  %v2104_v35 = vand.u32 2147483648, %v2092_v46  ;;  %vm2098_vm11 = vweird.f32 %v2092_v46  ;;  %v2102_v10 = vand.u32 2147483647, %v2092_v46 }
0x2307   :  { %v2154_v50 = vmul.f32 %v4931_v62, %v2153_v6 }
0x2308   :  { %v2105_v40 = vor.u32 1.1754944e-38, %v2104_v35  ;;  %vm2103_vm13 = vcmp.eq.f32.partialorder %v2102_v10, 8.507059e+37 }
0x2309   :  { %v2155_v45 = vadd.f32 %v4931_v62, %v2154_v50 }
0x230b   :  { %v2159_v63 = vsel %vm2158_vm8, %v4931_v62, %v2155_v45 }
0x230c   :  { %v2164_v17 = vsel %vm2161_vm9, %v2163_v0, %v2159_v63  ;;  %v4935_v20 = vpop.eup %4934 }
0x230d   :  { %v2094_v24 = vmul.f32 %v4935_v20, %v2092_v46  ;;  %vm2099_vm10 = vweird.f32 %v4935_v20  ;;  %v2167_v49 = vmul.f32 %v2164_v17, %v5985_v23 }
0x230e   :  { %vm2100_vm12 = vmor %vm2098_vm11, %vm2099_vm10 }
0x230f   :  { %v2095_v39 = vsub.f32 1.0, %v2094_v24 }
0x2311   :  { %v2096_v30 = vmul.f32 %v4935_v20, %v2095_v39 }
0x2313   :  { %v2097_v59 = vadd.f32 %v4935_v20, %v2096_v30 }
0x2315   :  { %v2101_v14 = vsel %vm2100_vm12, %v4935_v20, %v2097_v59  ;;  %vm2441_vm12 = vcmask 130048  }
0x2316   :  { %v2106_v41 = vsel %vm2103_vm13, %v2105_v40, %v2101_v14 }
0x2317   :  { %v2109_v52 = vmul.f32 %v2106_v41, %v5990_v8 }
0x2320   :  { %v2170_v37 = vpop.permute.xlu1 %2169 }
0x2321   :  { %v2172_v54 = vmul.f32 %v2170_v37, %v2164_v17 }
0x2323   :  { %2174 = vrot.lane.b32.xlu0 %v2172_v54, %s5254_s24 }
0x236b   :  { %v2112_v13 = vpop.permute.xlu0 %2111 }
0x236c   :  { %v2114_v16 = vmul.f32 %v2112_v13, %v2106_v41 }
0x236e   :  { %2116 = vrot.lane.b32.xlu2 %v2114_v16, %s5254_s24 }
0x2395   :  { %v2175_v18 = vpop.permute.xlu0 %2174 }
0x2396   :  { %v6014_v47 = vadd.f32 %v2175_v18, %v2167_v49 }
0x2398   :  { %4936 = vtanh.f32 %v6014_v47 }
0x239e   :  { %v4937_v48 = vpop.eup %4936 }
0x239f   :  { %2180 = vrot.lane.b32.xlu2 %v4937_v48, %s5253_s21 }
0x23c8   :  { %v2117_v53 = vpop.permute.xlu2 %2116 }
0x23c9   :  { %v6019_v55 = vadd.f32 %v2117_v53, %v2109_v52 }
0x23cb   :  { %4938 = vtanh.f32 %v6019_v55 }
0x23d1   :  { %v4939_v56 = vpop.eup %4938 }
0x23d2   :  { %2122 = vrot.lane.b32.xlu1 %v4939_v56, %s5253_s21 }
0x23f9   :  { %v2181_v29 = vpop.permute.xlu2 %2180 }
0x23fa   :  { %v2183_v23 = vmul.f32 %v2181_v29, %v2164_v17 }
0x23fc   :  { %v2247_v43 = vpack.c.bf16 %v2183_v23, %v2183_v23  ;;  %2185 = vrot.lane.b32.xlu0 %v2183_v23, %s5254_s24 }
0x23fe   :  { %2249 = vrot.lane.b32.xlu2 %v2247_v43, %s5254_s24 }
0x2404   :  { %168 = vperm.xlu0 %4674, %v84_v31  }
0x2444   :  { %v2123_v8 = vpop.permute.xlu1 %2122 }
0x2445   :  { %v2125_v36 = vmul.f32 %v2123_v8, %v2106_v41 }
0x2447   :  { %2189 = vrot.lane.b32.xlu1 %v2125_v36, %s5253_s21 }
0x2458   :  { %v2250_v7 = vpop.permute.xlu2 %2249 }
0x2459   :  { %4563 = vmatmul.msk.bf16.vlgmr.msra.gmra.mxu0 %vm290_vm4, %v2250_v7 }
0x246e   :  { %v2186_v25 = vpop.permute.xlu0 %2185 }
0x2476   :  { %v6032_v62 = vpop.permute.xlu0 %168 }
0x2477   :  { %v190_v2 = vmul.f32 %v5894_v57, %v6032_v62 }
0x2479   :  { %v211_v6 = vadd.f32 %v5901_v4, %v190_v2 }
0x24b9   :  { %v2190_v3 = vpop.permute.xlu1 %2189 }
0x24ba   :  { %v2192_v60 = vsel %vm290_vm4, %v2186_v25, %v2190_v3 }
0x24bb   :  { %v2193_v26 = vpack.c.bf16 %v2192_v60, %v2192_v60 }
0x24bd   :  { %4561 = vmatmul.msk.bf16.vlgmr.msrb.gmra.mxu3 %vm378_vm5, %v2193_v26 }
0x24d6   :  { %v2263_v50 = vpop.f32.mrf.mxu0 }
0x24d7   :  { %v2267_v45 = vadd.f32 %v2263_v50, %v211_v6 }
0x24d9   :  { %4940 = vtanh.f32 %v2267_v45  ;;  %v4564_v63 = vmul.f32 -1.442695, %v2267_v45 }
0x24db   :  { %4942 = vpow2.f32 %v4564_v63 }
0x24de   :  { %v2265_v11 = vpop.f32.mrf.mxu0 }
0x24df   :  { %v4941_v12 = vpop.eup %4940 }
0x24e0   :  { %2290 = vrot.lane.b32.xlu2 %v4941_v12, %s5253_s21 }
0x24e1   :  { %v4943_v0 = vpop.eup %4942 }
0x24e2   :  { %v2271_v37 = vadd.f32 1.0, %v4943_v0 }
0x24e4   :  { %4944 = vrcp.f32 %v2271_v37  ;;  %v2283_v39 = vand.u32 2147483648, %v2271_v37  ;;  %vm2277_vm15 = vweird.f32 %v2271_v37  ;;  %v2281_v30 = vand.u32 2147483647, %v2271_v37 }
0x24e6   :  { %v2284_v10 = vor.u32 1.1754944e-38, %v2283_v39  ;;  %vm2282_vm1 = vcmp.eq.f32.partialorder %v2281_v30, 8.507059e+37 }
0x24ea   :  { %v4945_v17 = vpop.eup %4944 }
0x24eb   :  { %v2273_v54 = vmul.f32 %v4945_v17, %v2271_v37  ;;  %vm2278_vm14 = vweird.f32 %v4945_v17 }
0x24ec   :  { %vm2279_vm0 = vmor %vm2277_vm15, %vm2278_vm14 }
0x24ed   :  { %v2274_v22 = vsub.f32 1.0, %v2273_v54 }
0x24ef   :  { %v2275_v4 = vmul.f32 %v4945_v17, %v2274_v22 }
0x24f1   :  { %v2276_v46 = vadd.f32 %v4945_v17, %v2275_v4 }
0x24f3   :  { %v2280_v59 = vsel %vm2279_vm0, %v4945_v17, %v2276_v46 }
0x24f4   :  { %v2285_v14 = vsel %vm2282_vm1, %v2284_v10, %v2280_v59 }
0x24f5   :  { %v2288_v7 = vmul.f32 %v2285_v14, %v6014_v47 }
0x253a   :  { %v2291_v35 = vpop.permute.xlu2 %2290 }
0x253b   :  { %v2293_v40 = vmul.f32 %v2291_v35, %v2285_v14 }
0x2540   :  { %v2206_v9 = vpop.f32.mrf.mxu3 }
0x2541   :  { %v2207_v57 = vadd.f32 %v5949_v32, %v2206_v9 }
0x2543   :  { %4946 = vtanh.f32 %v2207_v57  ;;  %v4562_v13 = vmul.f32 -1.442695, %v2207_v57 }
0x2545   :  { %4948 = vpow2.f32 %v4562_v13 }
0x2548   :  { %v2208_v20 = vpop.f32.mrf.mxu3 }
0x2549   :  { %v4947_v24 = vpop.eup %4946 }
0x254a   :  { %2232 = vrot.lane.b32.xlu1 %v4947_v24, %s5253_s21 }
0x254b   :  { %v4949_v41 = vpop.eup %4948 }
0x254c   :  { %v2213_v16 = vadd.f32 1.0, %v4949_v41 }
0x254e   :  { %4950 = vrcp.f32 %v2213_v16  ;;  %v2225_v56 = vand.u32 2147483648, %v2213_v16  ;;  %vm2219_vm3 = vweird.f32 %v2213_v16  ;;  %v2223_v29 = vand.u32 2147483647, %v2213_v16 }
0x2550   :  { %v2226_v43 = vor.u32 1.1754944e-38, %v2225_v56  ;;  %vm2224_vm7 = vcmp.eq.f32.partialorder %v2223_v29, 8.507059e+37  ;;  %v2371_v56 = vld [vmem:[%s6699_s7 + $0x18] sm:$0xff]  ;;  %v2370_v29 = vld [vmem:[%s6699_s7 + $0x10] sm:$0xff] }
0x2551   :  { %2393 = vmatpush.msra.mxu1 %v2371_v56 }
0x2552   :  { %2295 = vrot.lane.b32.xlu1 %v2293_v40, %s5254_s24 }
0x2553   :  { %2394 = vmatpush.msra.mxu1 %v2370_v29 }
0x2554   :  { %v4951_v49 = vpop.eup %4950 }
0x2555   :  { %v2215_v18 = vmul.f32 %v4951_v49, %v2213_v16  ;;  %vm2220_vm2 = vweird.f32 %v4951_v49 }
0x2556   :  { %vm2221_vm6 = vmor %vm2219_vm3, %vm2220_vm2 }
0x2557   :  { %v2216_v48 = vsub.f32 1.0, %v2215_v18 }
0x2559   :  { %v2217_v52 = vmul.f32 %v4951_v49, %v2216_v48 }
0x255b   :  { %v2218_v53 = vadd.f32 %v4951_v49, %v2217_v52  ;;  %v2404_v52 = vld [vmem:[%s6698_s9 + $0x18] sm:$0xff] }
0x255c   :  { %2421 = vmatpush.msra.mxu3 %v2404_v52 }
0x255d   :  { %v2222_v23 = vsel %vm2221_vm6, %v4951_v49, %v2218_v53  ;;  %v2403_v53 = vld [vmem:[%s6698_s9 + $0x10] sm:$0xff] }
0x255e   :  { %v2227_v8 = vsel %vm2224_vm7, %v2226_v43, %v2222_v23  ;;  %v2402_v23 = vld [vmem:[%s6698_s9 + $0x8] sm:$0xff]  ;;  %2422 = vmatpush.msra.mxu3 %v2403_v53 }
0x255f   :  { %v2230_v26 = vmul.f32 %v2227_v8, %v6019_v55  ;;  %v2369_v43 = vld [vmem:[%s6699_s7 + $0x8] sm:$0xff] }
0x2560   :  { %2423 = vmatpush.msra.mxu3 %v2402_v23  ;;  %2395 = vmatpush.msra.mxu1 %v2369_v43 }
0x25bc   :  { %v2233_v31 = vpop.permute.xlu1 %2232 }
0x25bd   :  { %v2235_v36 = vmul.f32 %v2233_v31, %v2227_v8  ;;  %v2401_v31 = vld [vmem:[%s6698_s9] sm:$0xff] }
0x25be   :  { %2424 = vmatpush.msra.mxu3 %v2401_v31 }
0x25bf   :  { %2237 = vrot.lane.b32.xlu0 %v2235_v36, %s5254_s24 }
0x25c4   :  { %v2296_v25 = vpop.permute.xlu1 %2295 }
0x25c5   :  { %v2298_v3 = vadd.f32 %v2296_v25, %v2288_v7 }
0x25c7   :  { %4952 = vtanh.f32 %v2298_v3  ;;  %v2436_v3 = vld [vmem:[%s6703_s11 + $0x8] sm:$0xff] }
0x25c8   :  { %2459 = vmatpush.msrb.mxu0 %v2436_v3 }
0x25cd   :  { %v4953_v60 = vpop.eup %4952 }
0x25ce   :  { %2301 = vrot.lane.b32.xlu0 %v4953_v60, %s5253_s21  ;;  %v2435_v60 = vld [vmem:[%s6703_s11] sm:$0xff] }
0x25cf   :  { %2460 = vmatpush.msrb.mxu0 %v2435_v60 }
0x2631   :  { %v2238_v2 = vpop.permute.xlu0 %2237 }
0x2632   :  { %v2240_v6 = vadd.f32 %v2238_v2, %v2230_v26  ;;  %v6090_v26 = vld [vmem:[%s6704_s15 + $0x8] sm:$0xff]  ;;  %v4687_v2 = vld [vmem:[%s6701_s10] ss:$0 sm:$0xff] }
0x2633   :  { %2635 = vmatpush.bf16.msrb.mxu3 %v6090_v26 }
0x2634   :  { %4954 = vtanh.f32 %v2240_v6 }
0x263a   :  { %v4955_v50 = vpop.eup %4954 }
0x263b   :  { %2243 = vrot.lane.b32.xlu2 %v4955_v50, %s5253_s21 }
0x2640   :  { %v2302_v45 = vpop.permute.xlu0 %2301 }
0x2641   :  { %v2304_v11 = vmul.f32 %v2302_v45, %v2285_v14 }
0x2643   :  { %2306 = vrot.lane.b32.xlu1 %v2304_v11, %s5254_s24 }
0x2695   :  { %v2244_v12 = vpop.permute.xlu2 %2243 }
0x2696   :  { %v2246_v47 = vmul.f32 %v2244_v12, %v2227_v8  ;;  %v2368_v8 = vld [vmem:[%s6699_s7] sm:$0xff] }
0x2697   :  { %2396 = vmatpush.msra.mxu1 %v2368_v8  ;;  %v4686_v12 = vld [vmem:[%s6700_s8] ss:$0 sm:$0xff] }
0x2698   :  { %2310 = vrot.lane.b32.xlu2 %v2246_v47, %s5253_s21 }
0x2699   :  { %2487 = vmatpush.bf16.msrb.mxu1 %v6090_v26 }
0x26b5   :  { %v2307_v63 = vpop.permute.xlu1 %2306 }
0x26f2   :  { %v2311_v0 = vpop.permute.xlu2 %2310 }
0x26f3   :  { %v2313_v37 = vsel %vm290_vm4, %v2307_v63, %v2311_v0  ;;  %v2429_v63 = vld [vmem:[%s6705_s1] sm:$0xff] }
0x26f4   :  { %v2314_v17 = vpack.c.bf16 %v2313_v37, %v2313_v37 }
0x26f6   :  { %4565 = vmatmul.msk.bf16.vlgmr.msra.gmra.mxu2 %vm378_vm5, %v2314_v17 }
0x2779   :  { %v2327_v55 = vpop.f32.mrf.mxu2 }
0x277a   :  { %v2328_v54 = vadd.f32 %v5949_v32, %v2327_v55 }
0x277c   :  { %4956 = vtanh.f32 %v2328_v54  ;;  %v4566_v57 = vmul.f32 -1.442695, %v2328_v54  ;;  %v6106_v54 = vld [vmem:[%s6704_s15] sm:$0xff] }
0x277d   :  { %2488 = vmatpush.bf16.msrb.mxu1 %v6106_v54  ;;  %2636 = vmatpush.bf16.msrb.mxu3 %v6106_v54 }
0x277e   :  { %4958 = vpow2.f32 %v4566_v57 }
0x2781   :  { %v2329_v22 = vpop.f32.mrf.mxu2 }
0x2782   :  { %v4957_v9 = vpop.eup %4956  ;;  %v4688_v22 = vld [vmem:[%s6702_s12] ss:$0 sm:$0xff] }
0x2783   :  { %2353 = vrot.lane.b32.xlu0 %v4957_v9, %s5253_s21 }
0x2784   :  { %v4959_v4 = vpop.eup %4958 }
0x2785   :  { %v2334_v46 = vadd.f32 1.0, %v4959_v4 }
0x2787   :  { %4960 = vrcp.f32 %v2334_v46  ;;  %v2346_v35 = vand.u32 2147483648, %v2334_v46  ;;  %vm2340_vm9 = vweird.f32 %v2334_v46  ;;  %v2344_v10 = vand.u32 2147483647, %v2334_v46 }
0x2789   :  { %v2347_v14 = vor.u32 1.1754944e-38, %v2346_v35  ;;  %vm2345_vm11 = vcmp.eq.f32.partialorder %v2344_v10, 8.507059e+37 }
0x278d   :  { %v4961_v20 = vpop.eup %4960 }
0x278e   :  { %v2336_v24 = vmul.f32 %v4961_v20, %v2334_v46  ;;  %vm2341_vm8 = vweird.f32 %v4961_v20  ;;  %v6123_v46 = vld [vmem:[%s6725_s27] ss:$0 sm:$0xff] }
0x278f   :  { %vm2342_vm10 = vmor %vm2340_vm9, %vm2341_vm8 }
0x2790   :  { %v2337_v39 = vsub.f32 1.0, %v2336_v24  ;;  %v6130_v24 = vld [vmem:[%s6695_s14] ss:$0 sm:$0xff] }
0x2792   :  { %v2338_v30 = vmul.f32 %v4961_v20, %v2337_v39 }
0x2794   :  { %v2339_v59 = vadd.f32 %v4961_v20, %v2338_v30 }
0x2796   :  { %v2343_v32 = vsel %vm2342_vm10, %v4961_v20, %v2339_v59  ;;  %v216_v20 = vmul.f32 %v6123_v46, %v5451_v44 }
0x2797   :  { %v2348_v13 = vsel %vm2345_vm11, %v2347_v14, %v2343_v32 }
0x2798   :  { %v2351_v16 = vmul.f32 %v2348_v13, %v2240_v6  ;;  %v236_v39 = vadd.f32 %v6130_v24, %v216_v20  ;;  %v6193_v20 = vld [vmem:[%s6707_s17] ss:$0 sm:$0xff] }
0x27f5   :  { %v2354_v40 = vpop.permute.xlu0 %2353 }
0x27f6   :  { %v2356_v41 = vmul.f32 %v2354_v40, %v2348_v13 }
0x27f8   :  { %2358 = vrot.lane.b32.xlu1 %v2356_v41, %s5254_s24 }
0x286a   :  { %v2359_v49 = vpop.permute.xlu1 %2358 }
0x286b   :  { %v2361_v18 = vadd.f32 %v2359_v49, %v2351_v16 }
0x286d   :  { %4962 = vtanh.f32 %v2361_v18 }
0x2873   :  { %v4963_v48 = vpop.eup %4962 }
0x2874   :  { %2364 = vrot.lane.b32.xlu2 %v4963_v48, %s5253_s21 }
0x28ce   :  { %v2365_v36 = vpop.permute.xlu2 %2364 }
0x28cf   :  { %v2367_v7 = vmul.f32 %v2365_v36, %v2348_v13 }
0x28d1   :  { %2377 = vrot.lane.b32.xlu0 %v2367_v7, %s5254_s24 }
0x2943   :  { %v2378_v25 = vpop.permute.xlu0 %2377 }
0x2944   :  { %4567 = vmatmul.msk.f32.vlgmr.msra.gmra.mxu1 %vm290_vm4, %v2378_v25  ;;  %4568 = vmatmul.msk.f32.vlgmr.msra.gmra.mxu3 %vm290_vm4, %v2378_v25 }
0x2945   :  { %2756 = vmatpush.bf16.msra.mxu1 %v6090_v26  ;;  %2877 = vmatpush.bf16.msra.mxu3 %v6090_v26 }
0x2949   :  { %2757 = vmatpush.bf16.msra.mxu1 %v6106_v54  ;;  %2878 = vmatpush.bf16.msra.mxu3 %v6106_v54 }
0x29c1   :  { %v2398_v47 = vpop.f32.mrf.mxu1 }
0x29c2   :  { %v2399_v37 = vadd.f32 %v4686_v12, %v2398_v47 }
0x29c7   :  { %v2426_v6 = vpop.f32.mrf.mxu3 }
0x29c8   :  { %v2427_v50 = vadd.f32 %v4687_v2, %v2426_v6  ;;  %v6144_v2 = vld [vmem:[%s6706_s16 + $0x18] sm:$0xff]  ;;  %v6150_v6 = vld [vmem:[%s6706_s16 + $0x10] sm:$0xff] }
0x29c9   :  { %2576 = vmatpush.bf16.msrb.mxu2 %v6144_v2  ;;  %2697 = vmatpush.bf16.msra.mxu0 %v6144_v2 }
0x29ca   :  { %v2430_v45 = vmul.f32 0.5, %v2427_v50  ;;  %v6157_v50 = vld [vmem:[%s6706_s16 + $0x8] sm:$0xff] }
0x29cc   :  { %v2431_v11 = vmul.f32 1.442695, %v2430_v45  ;;  %v6165_v45 = vld [vmem:[%s6706_s16] sm:$0xff] }
0x29cd   :  { %2577 = vmatpush.bf16.msrb.mxu2 %v6150_v6  ;;  %2698 = vmatpush.bf16.msra.mxu0 %v6150_v6 }
0x29ce   :  { %4964 = vpow2.f32 %v2431_v11 }
0x29d1   :  { %2578 = vmatpush.bf16.msrb.mxu2 %v6157_v50  ;;  %2699 = vmatpush.bf16.msra.mxu0 %v6157_v50 }
0x29d4   :  { %v4965_v0 = vpop.eup %4964 }
0x29d5   :  { %v2433_v17 = vmul.f32 %v4965_v0, %v2429_v63  ;;  %2579 = vmatpush.bf16.msrb.mxu2 %v6165_v45  ;;  %2700 = vmatpush.bf16.msra.mxu0 %v6165_v45 }
0x29d7   :  { %v2434_v55 = vadd.f32 %v2433_v17, %v2399_v37  ;;  %v217_v17 = vmul.f32 %v6123_v46, %v5490_v51 }
0x29d9   :  { %4569 = vmatmul.msk.f32.vlgmr.msrb.gmra.mxu0 %vm2441_vm12, %v2434_v55  ;;  %2818 = vmatpush.bf16.msra.mxu2 %v6144_v2  ;;  %v237_v55 = vadd.f32 %v6130_v24, %v217_v17 }
0x29da   :  { %2939 = vmatpush.bf16.msrb.mxu0 %v6144_v2 }
0x29dd   :  { %2819 = vmatpush.bf16.msra.mxu2 %v6150_v6 }
0x29de   :  { %2940 = vmatpush.bf16.msrb.mxu0 %v6150_v6 }
0x29e1   :  { %2820 = vmatpush.bf16.msra.mxu2 %v6157_v50 }
0x29e2   :  { %2941 = vmatpush.bf16.msrb.mxu0 %v6157_v50 }
0x29e5   :  { %2821 = vmatpush.bf16.msra.mxu2 %v6165_v45 }
0x29e6   :  { %2942 = vmatpush.bf16.msrb.mxu0 %v6165_v45 }
0x2a56   :  { %v2462_v9 = vpop.f32.mrf.mxu0 }
0x2a57   :  { %v2463_v57 = vadd.f32 %v4688_v22, %v2462_v9 }
0x2a59   :  { %v2465_v4 = vpack.c.bf16 %v2463_v57, %v2463_v57 }
0x2a5b   :  { %4578 = vmatmul.msk.bf16.vlgmr.msrb.gmra.mxu1 %vm290_vm4, %v2465_v4 }
0x2a5c   :  { %2998 = vmatpush.bf16.msrb.mxu1 %v6090_v26 }
0x2a60   :  { %2999 = vmatpush.bf16.msrb.mxu1 %v6106_v54 }
0x2ad8   :  { %v2490_v30 = vpop.f32.mrf.mxu1 }
0x2ad9   :  { %v2494_v59 = vadd.f32 %v2490_v30, %v236_v39 }
0x2adb   :  { %4966 = vtanh.f32 %v2494_v59  ;;  %v4579_v32 = vmul.f32 -1.442695, %v2494_v59 }
0x2add   :  { %4968 = vpow2.f32 %v4579_v32 }
0x2ae0   :  { %v2492_v35 = vpop.f32.mrf.mxu1 }
0x2ae1   :  { %v4967_v10 = vpop.eup %4966 }
0x2ae2   :  { %2517 = vrot.lane.b32.xlu1 %v4967_v10, %s5253_s21 }
0x2ae3   :  { %v4969_v14 = vpop.eup %4968 }
0x2ae4   :  { %v2498_v40 = vadd.f32 1.0, %v4969_v14 }
0x2ae6   :  { %4970 = vrcp.f32 %v2498_v40  ;;  %v2510_v18 = vand.u32 2147483648, %v2498_v40  ;;  %vm2504_vm14 = vweird.f32 %v2498_v40  ;;  %v2508_v48 = vand.u32 2147483647, %v2498_v40 }
0x2ae8   :  { %v2511_v53 = vor.u32 1.1754944e-38, %v2510_v18  ;;  %vm2509_vm0 = vcmp.eq.f32.partialorder %v2508_v48, 8.507059e+37 }
0x2aec   :  { %v4971_v44 = vpop.eup %4970 }
0x2aed   :  { %v2500_v13 = vmul.f32 %v4971_v44, %v2498_v40  ;;  %vm2505_vm13 = vweird.f32 %v4971_v44 }
0x2aee   :  { %vm2506_vm15 = vmor %vm2504_vm14, %vm2505_vm13 }
0x2aef   :  { %v2501_v41 = vsub.f32 1.0, %v2500_v13 }
0x2af1   :  { %v2502_v16 = vmul.f32 %v4971_v44, %v2501_v41 }
0x2af3   :  { %v2503_v49 = vadd.f32 %v4971_v44, %v2502_v16 }
0x2af5   :  { %v2507_v52 = vsel %vm2506_vm15, %v4971_v44, %v2503_v49 }
0x2af6   :  { %v2512_v29 = vsel %vm2509_vm0, %v2511_v53, %v2507_v52 }
0x2af7   :  { %v2515_v43 = vmul.f32 0.0, %v2512_v29 }
0x2b54   :  { %v2518_v56 = vpop.permute.xlu1 %2517 }
0x2b55   :  { %v2520_v23 = vmul.f32 %v2518_v56, %v2512_v29 }
0x2b57   :  { %2522 = vrot.lane.b32.xlu2 %v2520_v23, %s5254_s24 }
0x2bb1   :  { %v2523_v31 = vpop.permute.xlu2 %2522 }
0x2bb2   :  { %v6135_v8 = vadd.f32 %v2523_v31, %v2515_v43 }
0x2bb4   :  { %4972 = vtanh.f32 %v6135_v8 }
0x2bba   :  { %v4973_v36 = vpop.eup %4972 }
0x2bbb   :  { %2528 = vrot.lane.b32.xlu0 %v4973_v36, %s5253_s21 }
0x2c2d   :  { %v2529_v7 = vpop.permute.xlu0 %2528 }
0x2c2e   :  { %v2531_v25 = vmul.f32 %v2529_v7, %v2512_v29 }
0x2c30   :  { %v4677_v3 = vpack.i.bf16 %v2463_v57, %v2531_v25  ;;  %v2622_v60 = vpack.c.bf16 %v2531_v25, %v2531_v25 }
0x2c32   :  { %4678 = vrot.lane.b32.xlu1 %v4677_v3, %s5254_s24  ;;  %2624 = vrot.lane.b32.xlu2 %v2622_v60, %s5254_s24 }
0x2c8c   :  { %v2625_v11 = vpop.permute.xlu2 %2624 }
0x2c8d   :  { %4598 = vmatmul.msk.bf16.vlgmr.msrb.gmra.mxu3 %vm290_vm4, %v2625_v11 }
0x2c8e   :  { %3119 = vmatpush.bf16.msrb.mxu3 %v6090_v26 }
0x2c92   :  { %3120 = vmatpush.bf16.msrb.mxu3 %v6106_v54 }
0x2ca4   :  { %v4679_v12 = vpop.permute.xlu1 %4678 }
0x2ca5   :  { %v4681_v47 = vunpack.i.h.bf16 %v4679_v12  ;;  %v4680_v63 = vunpack.i.l.bf16 %v4679_v12 }
0x2ca7   :  { %v2540_v0 = vsel %vm290_vm4, %v4680_v63, %v4681_v47 }
0x2ca8   :  { %v2541_v37 = vpack.c.bf16 %v2540_v0, %v2540_v0 }
0x2caa   :  { %4596 = vmatmul.msk.bf16.vlgmr.msrb.gmra.mxu2 %vm378_vm5, %v2541_v37 }
0x2cab   :  { %3060 = vmatpush.bf16.msrb.mxu2 %v6144_v2 }
0x2caf   :  { %3061 = vmatpush.bf16.msrb.mxu2 %v6150_v6 }
0x2cb3   :  { %3062 = vmatpush.bf16.msrb.mxu2 %v6157_v50 }
0x2cb7   :  { %3063 = vmatpush.bf16.msrb.mxu2 %v6165_v45 }
0x2d10   :  { %v2638_v22 = vpop.f32.mrf.mxu3 }
0x2d11   :  { %v2642_v9 = vadd.f32 %v2638_v22, %v237_v55 }
0x2d13   :  { %4974 = vtanh.f32 %v2642_v9  ;;  %v4599_v35 = vmul.f32 -1.442695, %v2642_v9 }
0x2d18   :  { %v2640_v57 = vpop.f32.mrf.mxu3 }
0x2d19   :  { %v4975_v4 = vpop.eup %4974 }
0x2d1a   :  { %2665 = vrot.lane.b32.xlu1 %v4975_v4, %s5253_s21 }
0x2d2d   :  { %v2581_v39 = vpop.f32.mrf.mxu2 }
0x2d2e   :  { %v2582_v30 = vadd.f32 %v6193_v20, %v2581_v39 }
0x2d30   :  { %4976 = vtanh.f32 %v2582_v30  ;;  %v4597_v44 = vmul.f32 -1.442695, %v2582_v30 }
0x2d31   :  { %4978 = vpow2.f32 %v4599_v35 }
0x2d35   :  { %v2583_v59 = vpop.f32.mrf.mxu2 }
0x2d36   :  { %v4977_v51 = vpop.eup %4976 }
0x2d37   :  { %2607 = vrot.lane.b32.xlu0 %v4977_v51, %s5253_s21  ;;  %v4979_v10 = vpop.eup %4978 }
0x2d38   :  { %v2646_v32 = vadd.f32 1.0, %v4979_v10 }
0x2d3a   :  { %4980 = vrcp.f32 %v2646_v32  ;;  %v2658_v18 = vand.u32 2147483648, %v2646_v32  ;;  %vm2652_vm2 = vweird.f32 %v2646_v32  ;;  %v2656_v48 = vand.u32 2147483647, %v2646_v32 }
0x2d3b   :  { %4982 = vpow2.f32 %v4597_v44 }
0x2d3c   :  { %v2659_v56 = vor.u32 1.1754944e-38, %v2658_v18  ;;  %vm2657_vm6 = vcmp.eq.f32.partialorder %v2656_v48, 8.507059e+37 }
0x2d40   :  { %v4981_v14 = vpop.eup %4980 }
0x2d41   :  { %v2648_v40 = vmul.f32 %v4981_v14, %v2646_v32  ;;  %vm2653_vm1 = vweird.f32 %v4981_v14  ;;  %v4983_v49 = vpop.eup %4982 }
0x2d42   :  { %vm2654_vm3 = vmor %vm2652_vm2, %vm2653_vm1  ;;  %v2588_v52 = vadd.f32 1.0, %v4983_v49 }
0x2d43   :  { %v2649_v13 = vsub.f32 1.0, %v2648_v40 }
0x2d44   :  { %4984 = vrcp.f32 %v2588_v52  ;;  %v2600_v60 = vand.u32 2147483648, %v2588_v52  ;;  %vm2594_vm8 = vweird.f32 %v2588_v52  ;;  %v2598_v11 = vand.u32 2147483647, %v2588_v52 }
0x2d45   :  { %v2650_v41 = vmul.f32 %v4981_v14, %v2649_v13 }
0x2d46   :  { %v2601_v47 = vor.u32 1.1754944e-38, %v2600_v60  ;;  %vm2599_vm10 = vcmp.eq.f32.partialorder %v2598_v11, 8.507059e+37 }
0x2d47   :  { %v2651_v16 = vadd.f32 %v4981_v14, %v2650_v41  ;;  %v218_v41 = vmul.f32 %v6123_v46, %v5525_v58 }
0x2d49   :  { %v2655_v53 = vsel %vm2654_vm3, %v4981_v14, %v2651_v16  ;;  %v238_v16 = vadd.f32 %v6130_v24, %v218_v41 }
0x2d4a   :  { %v2660_v23 = vsel %vm2657_vm6, %v2659_v56, %v2655_v53  ;;  %v4985_v31 = vpop.eup %4984 }
0x2d4b   :  { %v2590_v36 = vmul.f32 %v4985_v31, %v2588_v52  ;;  %vm2595_vm7 = vweird.f32 %v4985_v31  ;;  %v2663_v17 = vmul.f32 %v2660_v23, %v6135_v8 }
0x2d4c   :  { %vm2596_vm9 = vmor %vm2594_vm8, %vm2595_vm7 }
0x2d4d   :  { %v2591_v7 = vsub.f32 1.0, %v2590_v36 }
0x2d4f   :  { %v2592_v25 = vmul.f32 %v4985_v31, %v2591_v7 }
0x2d51   :  { %v2593_v3 = vadd.f32 %v4985_v31, %v2592_v25 }
0x2d53   :  { %v2597_v12 = vsel %vm2596_vm9, %v4985_v31, %v2593_v3 }
0x2d54   :  { %v2602_v0 = vsel %vm2599_vm10, %v2601_v47, %v2597_v12 }
0x2d55   :  { %v2605_v9 = vmul.f32 0.0, %v2602_v0 }
0x2d8c   :  { %v2666_v29 = vpop.permute.xlu1 %2665 }
0x2d8d   :  { %v2668_v43 = vmul.f32 %v2666_v29, %v2660_v23 }
0x2d8f   :  { %2670 = vrot.lane.b32.xlu0 %v2668_v43, %s5254_s24 }
0x2da9   :  { %v2608_v63 = vpop.permute.xlu0 %2607 }
0x2daa   :  { %v2610_v37 = vmul.f32 %v2608_v63, %v2602_v0 }
0x2dac   :  { %2612 = vrot.lane.b32.xlu2 %v2610_v37, %s5254_s24 }
0x2e01   :  { %v2671_v55 = vpop.permute.xlu0 %2670 }
0x2e02   :  { %v6200_v22 = vadd.f32 %v2671_v55, %v2663_v17 }
0x2e04   :  { %4986 = vtanh.f32 %v6200_v22 }
0x2e06   :  { %v2613_v57 = vpop.permute.xlu2 %2612 }
0x2e07   :  { %v6203_v4 = vadd.f32 %v2613_v57, %v2605_v9 }
0x2e09   :  { %4988 = vtanh.f32 %v6203_v4 }
0x2e0a   :  { %v4987_v39 = vpop.eup %4986 }
0x2e0b   :  { %2676 = vrot.lane.b32.xlu2 %v4987_v39, %s5253_s21 }
0x2e0f   :  { %v4989_v30 = vpop.eup %4988 }
0x2e10   :  { %2618 = vrot.lane.b32.xlu1 %v4989_v30, %s5253_s21 }
0x2e65   :  { %v2677_v59 = vpop.permute.xlu2 %2676 }
0x2e66   :  { %v2679_v51 = vmul.f32 %v2677_v59, %v2660_v23 }
0x2e68   :  { %v2743_v8 = vpack.c.bf16 %v2679_v51, %v2679_v51  ;;  %2681 = vrot.lane.b32.xlu0 %v2679_v51, %s5254_s24 }
0x2e6a   :  { %2745 = vrot.lane.b32.xlu2 %v2743_v8, %s5254_s24 }
0x2e82   :  { %v2619_v35 = vpop.permute.xlu1 %2618 }
0x2e83   :  { %v2621_v10 = vmul.f32 %v2619_v35, %v2602_v0 }
0x2e85   :  { %2685 = vrot.lane.b32.xlu1 %v2621_v10, %s5253_s21 }
0x2ec4   :  { %v2746_v32 = vpop.permute.xlu2 %2745 }
0x2ec5   :  { %4602 = vmatmul.msk.bf16.vlgmr.msra.gmra.mxu1 %vm290_vm4, %v2746_v32 }
0x2ec6   :  { %3240 = vmatpush.bf16.msra.mxu1 %v6090_v26 }
0x2eca   :  { %3241 = vmatpush.bf16.msra.mxu1 %v6106_v54 }
0x2eda   :  { %v2682_v14 = vpop.permute.xlu0 %2681 }
0x2ef7   :  { %v2686_v40 = vpop.permute.xlu1 %2685 }
0x2ef8   :  { %v2688_v44 = vsel %vm290_vm4, %v2682_v14, %v2686_v40 }
0x2ef9   :  { %v2689_v13 = vpack.c.bf16 %v2688_v44, %v2688_v44 }
0x2efb   :  { %4600 = vmatmul.msk.bf16.vlgmr.msra.gmra.mxu0 %vm378_vm5, %v2689_v13 }
0x2efc   :  { %3181 = vmatpush.bf16.msra.mxu0 %v6144_v2 }
0x2f00   :  { %3182 = vmatpush.bf16.msra.mxu0 %v6150_v6 }
0x2f04   :  { %3183 = vmatpush.bf16.msra.mxu0 %v6157_v50 }
0x2f08   :  { %3184 = vmatpush.bf16.msra.mxu0 %v6165_v45 }
0x2f42   :  { %v2759_v49 = vpop.f32.mrf.mxu1 }
0x2f43   :  { %v2763_v18 = vadd.f32 %v2759_v49, %v238_v16 }
0x2f45   :  { %4990 = vtanh.f32 %v2763_v18  ;;  %v4603_v43 = vmul.f32 -1.442695, %v2763_v18 }
0x2f4a   :  { %v2761_v48 = vpop.f32.mrf.mxu1 }
0x2f4b   :  { %v4991_v52 = vpop.eup %4990 }
0x2f4c   :  { %2786 = vrot.lane.b32.xlu1 %v4991_v52, %s5253_s21 }
0x2f78   :  { %v2702_v53 = vpop.f32.mrf.mxu0 }
0x2f79   :  { %v2703_v56 = vadd.f32 %v6193_v20, %v2702_v53 }
0x2f7b   :  { %4992 = vtanh.f32 %v2703_v56  ;;  %v4601_v55 = vmul.f32 -1.442695, %v2703_v56 }
0x2f7c   :  { %4994 = vpow2.f32 %v4603_v43 }
0x2f80   :  { %v2704_v29 = vpop.f32.mrf.mxu0 }
0x2f81   :  { %v4993_v23 = vpop.eup %4992 }
0x2f82   :  { %2728 = vrot.lane.b32.xlu0 %v4993_v23, %s5253_s21  ;;  %v4995_v58 = vpop.eup %4994 }
0x2f83   :  { %v2767_v31 = vadd.f32 1.0, %v4995_v58 }
0x2f85   :  { %4996 = vrcp.f32 %v2767_v31  ;;  %v2779_v11 = vand.u32 2147483648, %v2767_v31  ;;  %vm2773_vm12 = vweird.f32 %v2767_v31  ;;  %v2777_v12 = vand.u32 2147483647, %v2767_v31 }
0x2f86   :  { %4998 = vpow2.f32 %v4601_v55 }
0x2f87   :  { %v2780_v63 = vor.u32 1.1754944e-38, %v2779_v11  ;;  %vm2778_vm14 = vcmp.eq.f32.partialorder %v2777_v12, 8.507059e+37 }
0x2f8b   :  { %v4997_v36 = vpop.eup %4996 }
0x2f8c   :  { %v2769_v7 = vmul.f32 %v4997_v36, %v2767_v31  ;;  %vm2774_vm11 = vweird.f32 %v4997_v36  ;;  %v4999_v9 = vpop.eup %4998 }
0x2f8d   :  { %vm2775_vm13 = vmor %vm2773_vm12, %vm2774_vm11  ;;  %v2709_v57 = vadd.f32 1.0, %v4999_v9 }
0x2f8e   :  { %v2770_v25 = vsub.f32 1.0, %v2769_v7 }
0x2f8f   :  { %5000 = vrcp.f32 %v2709_v57  ;;  %v2721_v35 = vand.u32 2147483648, %v2709_v57  ;;  %vm2715_vm0 = vweird.f32 %v2709_v57  ;;  %v2719_v10 = vand.u32 2147483647, %v2709_v57 }
0x2f90   :  { %v2771_v3 = vmul.f32 %v4997_v36, %v2770_v25 }
0x2f91   :  { %v2722_v14 = vor.u32 1.1754944e-38, %v2721_v35  ;;  %vm2720_vm2 = vcmp.eq.f32.partialorder %v2719_v10, 8.507059e+37 }
0x2f92   :  { %v2772_v60 = vadd.f32 %v4997_v36, %v2771_v3  ;;  %v219_v3 = vmul.f32 %v6123_v46, %v5560_v5 }
0x2f94   :  { %v2776_v47 = vsel %vm2775_vm13, %v4997_v36, %v2772_v60  ;;  %v239_v60 = vadd.f32 %v6130_v24, %v219_v3 }
0x2f95   :  { %v2781_v37 = vsel %vm2778_vm14, %v2780_v63, %v2776_v47  ;;  %v5001_v39 = vpop.eup %5000 }
0x2f96   :  { %v2711_v30 = vmul.f32 %v5001_v39, %v2709_v57  ;;  %vm2716_vm15 = vweird.f32 %v5001_v39  ;;  %v2784_v41 = vmul.f32 %v2781_v37, %v6200_v22 }
0x2f97   :  { %vm2717_vm1 = vmor %vm2715_vm0, %vm2716_vm15 }
0x2f98   :  { %v2712_v59 = vsub.f32 1.0, %v2711_v30 }
0x2f9a   :  { %v2713_v51 = vmul.f32 %v5001_v39, %v2712_v59 }
0x2f9c   :  { %v2714_v8 = vadd.f32 %v5001_v39, %v2713_v51 }
0x2f9e   :  { %v2718_v32 = vsel %vm2717_vm1, %v5001_v39, %v2714_v8 }
0x2f9f   :  { %v2723_v44 = vsel %vm2720_vm2, %v2722_v14, %v2718_v32 }
0x2fa0   :  { %v2726_v48 = vmul.f32 %v2723_v44, %v6203_v4 }
0x2fbe   :  { %v2787_v0 = vpop.permute.xlu1 %2786 }
0x2fbf   :  { %v2789_v17 = vmul.f32 %v2787_v0, %v2781_v37 }
0x2fc1   :  { %2791 = vrot.lane.b32.xlu0 %v2789_v17, %s5254_s24 }
0x2ff4   :  { %v2729_v40 = vpop.permute.xlu0 %2728 }
0x2ff5   :  { %v2731_v13 = vmul.f32 %v2729_v40, %v2723_v44 }
0x2ff7   :  { %2733 = vrot.lane.b32.xlu2 %v2731_v13, %s5254_s24 }
0x3033   :  { %v2792_v16 = vpop.permute.xlu0 %2791 }
0x3034   :  { %v6229_v49 = vadd.f32 %v2792_v16, %v2784_v41 }
0x3036   :  { %5002 = vtanh.f32 %v6229_v49 }
0x303c   :  { %v5003_v18 = vpop.eup %5002 }
0x303d   :  { %2797 = vrot.lane.b32.xlu2 %v5003_v18, %s5253_s21 }
0x3051   :  { %v2734_v52 = vpop.permute.xlu2 %2733 }
0x3052   :  { %v6234_v53 = vadd.f32 %v2734_v52, %v2726_v48 }
0x3054   :  { %5004 = vtanh.f32 %v6234_v53 }
0x305a   :  { %v5005_v56 = vpop.eup %5004 }
0x305b   :  { %2739 = vrot.lane.b32.xlu1 %v5005_v56, %s5253_s21 }
0x3097   :  { %v2798_v29 = vpop.permute.xlu2 %2797 }
0x3098   :  { %v2800_v22 = vmul.f32 %v2798_v29, %v2781_v37 }
0x309a   :  { %v2864_v23 = vpack.c.bf16 %v2800_v22, %v2800_v22  ;;  %2802 = vrot.lane.b32.xlu0 %v2800_v22, %s5254_s24 }
0x309c   :  { %2866 = vrot.lane.b32.xlu2 %v2864_v23, %s5254_s24 }
0x30cd   :  { %v2740_v43 = vpop.permute.xlu1 %2739 }
0x30ce   :  { %v2742_v58 = vmul.f32 %v2740_v43, %v2723_v44 }
0x30d0   :  { %2806 = vrot.lane.b32.xlu1 %v2742_v58, %s5253_s21 }
0x30f6   :  { %v2867_v4 = vpop.permute.xlu2 %2866 }
0x30f7   :  { %4606 = vmatmul.msk.bf16.vlgmr.msra.gmra.mxu3 %vm290_vm4, %v2867_v4 }
0x30f8   :  { %3361 = vmatpush.bf16.msra.mxu3 %v6090_v26 }
0x30fc   :  { %3362 = vmatpush.bf16.msra.mxu3 %v6106_v54 }
0x310c   :  { %v2803_v31 = vpop.permute.xlu0 %2802 }
0x3142   :  { %v2807_v36 = vpop.permute.xlu1 %2806 }
0x3143   :  { %v2809_v7 = vsel %vm290_vm4, %v2803_v31, %v2807_v36 }
0x3144   :  { %v2810_v25 = vpack.c.bf16 %v2809_v7, %v2809_v7 }
0x3146   :  { %4604 = vmatmul.msk.bf16.vlgmr.msra.gmra.mxu2 %vm378_vm5, %v2810_v25 }
0x3147   :  { %3302 = vmatpush.bf16.msra.mxu2 %v6144_v2 }
0x314b   :  { %3303 = vmatpush.bf16.msra.mxu2 %v6150_v6 }
0x314f   :  { %3304 = vmatpush.bf16.msra.mxu2 %v6157_v50 }
0x3153   :  { %3305 = vmatpush.bf16.msra.mxu2 %v6165_v45 }
0x317a   :  { %v2880_v11 = vpop.f32.mrf.mxu3 }
0x317b   :  { %v2884_v12 = vadd.f32 %v2880_v11, %v239_v60 }
0x317d   :  { %5006 = vtanh.f32 %v2884_v12  ;;  %v4607_v0 = vmul.f32 -1.442695, %v2884_v12 }
0x3182   :  { %v2882_v47 = vpop.f32.mrf.mxu3 }
0x3183   :  { %v5007_v63 = vpop.eup %5006 }
0x3184   :  { %2907 = vrot.lane.b32.xlu1 %v5007_v63, %s5253_s21 }
0x31c9   :  { %v2823_v37 = vpop.f32.mrf.mxu2 }
0x31ca   :  { %v2824_v17 = vadd.f32 %v6193_v20, %v2823_v37 }
0x31cc   :  { %5008 = vtanh.f32 %v2824_v17  ;;  %v4605_v41 = vmul.f32 -1.442695, %v2824_v17 }
0x31cd   :  { %5010 = vpow2.f32 %v4607_v0 }
0x31d1   :  { %v2825_v55 = vpop.f32.mrf.mxu2 }
0x31d2   :  { %v5009_v9 = vpop.eup %5008 }
0x31d3   :  { %v5011_v57 = vpop.eup %5010  ;;  %2849 = vrot.lane.b32.xlu0 %v5009_v9, %s5253_s21 }
0x31d4   :  { %v2888_v5 = vadd.f32 1.0, %v5011_v57 }
0x31d6   :  { %5012 = vrcp.f32 %v2888_v5  ;;  %v2900_v35 = vand.u32 2147483648, %v2888_v5  ;;  %vm2894_vm6 = vweird.f32 %v2888_v5  ;;  %v2898_v10 = vand.u32 2147483647, %v2888_v5 }
0x31d7   :  { %5014 = vpow2.f32 %v4605_v41 }
0x31d8   :  { %v2901_v14 = vor.u32 1.1754944e-38, %v2900_v35  ;;  %vm2899_vm8 = vcmp.eq.f32.partialorder %v2898_v10, 8.507059e+37 }
0x31dc   :  { %v5013_v39 = vpop.eup %5012 }
0x31dd   :  { %v2890_v30 = vmul.f32 %v5013_v39, %v2888_v5  ;;  %vm2895_vm3 = vweird.f32 %v5013_v39  ;;  %v5015_v16 = vpop.eup %5014 }
0x31de   :  { %vm2896_vm7 = vmor %vm2894_vm6, %vm2895_vm3  ;;  %v2830_v18 = vadd.f32 1.0, %v5015_v16 }
0x31df   :  { %v2891_v59 = vsub.f32 1.0, %v2890_v30 }
0x31e0   :  { %5016 = vrcp.f32 %v2830_v18  ;;  %v2842_v23 = vand.u32 2147483648, %v2830_v18  ;;  %vm2836_vm10 = vweird.f32 %v2830_v18  ;;  %v2840_v43 = vand.u32 2147483647, %v2830_v18 }
0x31e1   :  { %v2892_v51 = vmul.f32 %v5013_v39, %v2891_v59  ;;  %v220_v59 = vmul.f32 %v6123_v46, %v5595_v15 }
0x31e2   :  { %v2843_v4 = vor.u32 1.1754944e-38, %v2842_v23  ;;  %vm2841_vm12 = vcmp.eq.f32.partialorder %v2840_v43, 8.507059e+37 }
0x31e3   :  { %v2893_v8 = vadd.f32 %v5013_v39, %v2892_v51  ;;  %v240_v51 = vadd.f32 %v6130_v24, %v220_v59 }
0x31e5   :  { %v2897_v32 = vsel %vm2896_vm7, %v5013_v39, %v2893_v8 }
0x31e6   :  { %v2902_v44 = vsel %vm2899_vm8, %v2901_v14, %v2897_v32  ;;  %v5017_v48 = vpop.eup %5016 }
0x31e7   :  { %v2832_v52 = vmul.f32 %v5017_v48, %v2830_v18  ;;  %vm2837_vm9 = vweird.f32 %v5017_v48  ;;  %v2905_v25 = vmul.f32 %v2902_v44, %v6229_v49 }
0x31e8   :  { %vm2838_vm11 = vmor %vm2836_vm10, %vm2837_vm9 }
0x31e9   :  { %v2833_v56 = vsub.f32 1.0, %v2832_v52 }
0x31eb   :  { %v2834_v29 = vmul.f32 %v5017_v48, %v2833_v56 }
0x31ed   :  { %v2835_v22 = vadd.f32 %v5017_v48, %v2834_v29 }
0x31ef   :  { %v2839_v58 = vsel %vm2838_vm11, %v5017_v48, %v2835_v22 }
0x31f0   :  { %v2844_v36 = vsel %vm2841_vm12, %v2843_v4, %v2839_v58 }
0x31f1   :  { %v2847_v12 = vmul.f32 %v2844_v36, %v6234_v53 }
0x31f6   :  { %v2908_v40 = vpop.permute.xlu1 %2907 }
0x31f7   :  { %v2910_v13 = vmul.f32 %v2908_v40, %v2902_v44 }
0x31f9   :  { %2912 = vrot.lane.b32.xlu0 %v2910_v13, %s5254_s24 }
0x3245   :  { %v2850_v31 = vpop.permute.xlu0 %2849 }
0x3246   :  { %v2852_v7 = vmul.f32 %v2850_v31, %v2844_v36 }
0x3248   :  { %2854 = vrot.lane.b32.xlu2 %v2852_v7, %s5254_s24 }
0x326b   :  { %v2913_v3 = vpop.permute.xlu0 %2912 }
0x326c   :  { %v6259_v60 = vadd.f32 %v2913_v3, %v2905_v25 }
0x326e   :  { %5018 = vtanh.f32 %v6259_v60 }
0x3274   :  { %v5019_v11 = vpop.eup %5018 }
0x3275   :  { %2918 = vrot.lane.b32.xlu2 %v5019_v11, %s5253_s21 }
0x32a2   :  { %v2855_v47 = vpop.permute.xlu2 %2854 }
0x32a3   :  { %v6264_v63 = vadd.f32 %v2855_v47, %v2847_v12 }
0x32a5   :  { %5020 = vtanh.f32 %v6264_v63 }
0x32ab   :  { %v5021_v0 = vpop.eup %5020 }
0x32ac   :  { %2860 = vrot.lane.b32.xlu1 %v5021_v0, %s5253_s21 }
0x32cf   :  { %v2919_v37 = vpop.permute.xlu2 %2918 }
0x32d0   :  { %v2921_v49 = vmul.f32 %v2919_v37, %v2902_v44 }
0x32d2   :  { %v2985_v17 = vpack.c.bf16 %v2921_v49, %v2921_v49  ;;  %2923 = vrot.lane.b32.xlu0 %v2921_v49, %s5254_s24 }
0x32d4   :  { %2987 = vrot.lane.b32.xlu2 %v2985_v17, %s5254_s24 }
0x331e   :  { %v2861_v55 = vpop.permute.xlu1 %2860 }
0x331f   :  { %v2863_v9 = vmul.f32 %v2861_v55, %v2844_v36 }
0x3321   :  { %2927 = vrot.lane.b32.xlu1 %v2863_v9, %s5253_s21 }
0x332e   :  { %v2988_v53 = vpop.permute.xlu2 %2987 }
0x332f   :  { %4610 = vmatmul.msk.bf16.vlgmr.msrb.gmra.mxu1 %vm290_vm4, %v2988_v53 }
0x3330   :  { %3482 = vmatpush.bf16.msrb.mxu1 %v6090_v26 }
0x3334   :  { %3483 = vmatpush.bf16.msrb.mxu1 %v6106_v54 }
0x3344   :  { %v2924_v57 = vpop.permute.xlu0 %2923 }
0x3393   :  { %v2928_v5 = vpop.permute.xlu1 %2927 }
0x3394   :  { %v2930_v39 = vsel %vm290_vm4, %v2924_v57, %v2928_v5 }
0x3395   :  { %v2931_v30 = vpack.c.bf16 %v2930_v39, %v2930_v39 }
0x3397   :  { %4608 = vmatmul.msk.bf16.vlgmr.msrb.gmra.mxu0 %vm378_vm5, %v2931_v30 }
0x3398   :  { %3423 = vmatpush.bf16.msrb.mxu0 %v6144_v2 }
0x339c   :  { %3424 = vmatpush.bf16.msrb.mxu0 %v6150_v6 }
0x33a0   :  { %3425 = vmatpush.bf16.msrb.mxu0 %v6157_v50 }
0x33a4   :  { %3426 = vmatpush.bf16.msrb.mxu0 %v6165_v45 }
0x33ac   :  { %v3001_v8 = vpop.f32.mrf.mxu1 }
0x33ad   :  { %v3005_v35 = vadd.f32 %v3001_v8, %v240_v51 }
0x33af   :  { %5022 = vtanh.f32 %v3005_v35  ;;  %v4611_v14 = vmul.f32 -1.442695, %v3005_v35 }
0x33b1   :  { %5024 = vpow2.f32 %v4611_v14 }
0x33b4   :  { %v3003_v10 = vpop.f32.mrf.mxu1 }
0x33b5   :  { %v5023_v32 = vpop.eup %5022 }
0x33b6   :  { %3028 = vrot.lane.b32.xlu1 %v5023_v32, %s5253_s21 }
0x33b7   :  { %v5025_v40 = vpop.eup %5024 }
0x33b8   :  { %v3009_v44 = vadd.f32 1.0, %v5025_v40 }
0x33ba   :  { %5026 = vrcp.f32 %v3009_v44  ;;  %v3021_v22 = vand.u32 2147483648, %v3009_v44  ;;  %vm3015_vm14 = vweird.f32 %v3009_v44  ;;  %v3019_v23 = vand.u32 2147483647, %v3009_v44 }
0x33bc   :  { %v3022_v58 = vor.u32 1.1754944e-38, %v3021_v22  ;;  %vm3020_vm0 = vcmp.eq.f32.partialorder %v3019_v23, 8.507059e+37 }
0x33c0   :  { %v5027_v13 = vpop.eup %5026 }
0x33c1   :  { %v3011_v18 = vmul.f32 %v5027_v13, %v3009_v44  ;;  %vm3016_vm13 = vweird.f32 %v5027_v13 }
0x33c2   :  { %vm3017_vm15 = vmor %vm3015_vm14, %vm3016_vm13 }
0x33c3   :  { %v3012_v15 = vsub.f32 1.0, %v3011_v18  ;;  %v221_v18 = vmul.f32 %v6123_v46, %v5640_v21 }
0x33c5   :  { %v3013_v56 = vmul.f32 %v5027_v13, %v3012_v15 }
0x33c7   :  { %v3014_v29 = vadd.f32 %v5027_v13, %v3013_v56 }
0x33c9   :  { %v3018_v43 = vsel %vm3017_vm15, %v5027_v13, %v3014_v29 }
0x33ca   :  { %v3023_v31 = vsel %vm3020_vm0, %v3022_v58, %v3018_v43 }
0x33cb   :  { %v3026_v39 = vmul.f32 %v3023_v31, %v6259_v60 }
0x3414   :  { %v2944_v41 = vpop.f32.mrf.mxu0 }
0x3415   :  { %v2945_v16 = vadd.f32 %v6193_v20, %v2944_v41 }
0x3417   :  { %5028 = vtanh.f32 %v2945_v16  ;;  %v4609_v7 = vmul.f32 -1.442695, %v2945_v16 }
0x3419   :  { %5030 = vpow2.f32 %v4609_v7 }
0x341c   :  { %v2946_v48 = vpop.f32.mrf.mxu0 }
0x341d   :  { %v5029_v52 = vpop.eup %5028 }
0x341e   :  { %2970 = vrot.lane.b32.xlu0 %v5029_v52, %s5253_s21  ;;  %v241_v52 = vadd.f32 %v6130_v24, %v221_v18 }
0x341f   :  { %v5031_v25 = vpop.eup %5030 }
0x3420   :  { %v2951_v3 = vadd.f32 1.0, %v5031_v25 }
0x3422   :  { %5032 = vrcp.f32 %v2951_v3  ;;  %v2963_v49 = vand.u32 2147483648, %v2951_v3  ;;  %vm2957_vm2 = vweird.f32 %v2951_v3  ;;  %v2961_v17 = vand.u32 2147483647, %v2951_v3 }
0x3424   :  { %v2964_v9 = vor.u32 1.1754944e-38, %v2963_v49  ;;  %vm2962_vm6 = vcmp.eq.f32.partialorder %v2961_v17, 8.507059e+37 }
0x3428   :  { %v3029_v4 = vpop.permute.xlu1 %3028  ;;  %v5033_v11 = vpop.eup %5032 }
0x3429   :  { %v3031_v36 = vmul.f32 %v3029_v4, %v3023_v31  ;;  %v2953_v12 = vmul.f32 %v5033_v11, %v2951_v3  ;;  %vm2958_vm1 = vweird.f32 %v5033_v11 }
0x342a   :  { %vm2959_vm3 = vmor %vm2957_vm2, %vm2958_vm1 }
0x342b   :  { %3033 = vrot.lane.b32.xlu0 %v3031_v36, %s5254_s24  ;;  %v2954_v47 = vsub.f32 1.0, %v2953_v12 }
0x342d   :  { %v2955_v0 = vmul.f32 %v5033_v11, %v2954_v47 }
0x342f   :  { %v2956_v37 = vadd.f32 %v5033_v11, %v2955_v0 }
0x3431   :  { %v2960_v55 = vsel %vm2959_vm3, %v5033_v11, %v2956_v37 }
0x3432   :  { %v2965_v57 = vsel %vm2962_vm6, %v2964_v9, %v2960_v55 }
0x3433   :  { %v2968_v8 = vmul.f32 %v2965_v57, %v6264_v63 }
0x3490   :  { %v2971_v53 = vpop.permute.xlu0 %2970 }
0x3491   :  { %v2973_v5 = vmul.f32 %v2971_v53, %v2965_v57 }
0x3493   :  { %2975 = vrot.lane.b32.xlu2 %v2973_v5, %s5254_s24 }
0x349d   :  { %v3034_v30 = vpop.permute.xlu0 %3033 }
0x349e   :  { %v6289_v59 = vadd.f32 %v3034_v30, %v3026_v39 }
0x34a0   :  { %5034 = vtanh.f32 %v6289_v59 }
0x34a6   :  { %v5035_v51 = vpop.eup %5034 }
0x34a7   :  { %3039 = vrot.lane.b32.xlu2 %v5035_v51, %s5253_s21 }
0x34ed   :  { %v2976_v35 = vpop.permute.xlu2 %2975 }
0x34ee   :  { %v6294_v10 = vadd.f32 %v2976_v35, %v2968_v8 }
0x34f0   :  { %5036 = vtanh.f32 %v6294_v10 }
0x34f6   :  { %v5037_v32 = vpop.eup %5036 }
0x34f7   :  { %2981 = vrot.lane.b32.xlu1 %v5037_v32, %s5253_s21 }
0x3501   :  { %v3040_v14 = vpop.permute.xlu2 %3039 }
0x3502   :  { %v3042_v60 = vmul.f32 %v3040_v14, %v3023_v31 }
0x3504   :  { %v3106_v40 = vpack.c.bf16 %v3042_v60, %v3042_v60  ;;  %3044 = vrot.lane.b32.xlu0 %v3042_v60, %s5254_s24 }
0x3506   :  { %3108 = vrot.lane.b32.xlu2 %v3106_v40, %s5254_s24 }
0x3560   :  { %v3109_v44 = vpop.permute.xlu2 %3108 }
0x3561   :  { %4614 = vmatmul.msk.bf16.vlgmr.msrb.gmra.mxu3 %vm290_vm4, %v3109_v44 }
0x3562   :  { %3603 = vmatpush.bf16.msrb.mxu3 %v6090_v26 }
0x3566   :  { %3604 = vmatpush.bf16.msrb.mxu3 %v6106_v54 }
0x3569   :  { %v2982_v63 = vpop.permute.xlu1 %2981 }
0x356a   :  { %v2984_v13 = vmul.f32 %v2982_v63, %v2965_v57 }
0x356c   :  { %3048 = vrot.lane.b32.xlu1 %v2984_v13, %s5253_s21 }
0x3576   :  { %v3045_v41 = vpop.permute.xlu0 %3044 }
0x35de   :  { %v3049_v16 = vpop.permute.xlu1 %3048 }
0x35df   :  { %v3051_v15 = vsel %vm290_vm4, %v3045_v41, %v3049_v16 }
0x35e0   :  { %v3052_v48 = vpack.c.bf16 %v3051_v15, %v3051_v15 }
0x35e2   :  { %4612 = vmatmul.msk.bf16.vlgmr.msrb.gmra.mxu2 %vm378_vm5, %v3052_v48 }
0x35e3   :  { %3544 = vmatpush.bf16.msrb.mxu2 %v6144_v2 }
0x35e4   :  { %v3122_v26 = vpop.f32.mrf.mxu3 }
0x35e5   :  { %v3126_v54 = vadd.f32 %v3122_v26, %v241_v52 }
0x35e7   :  { %5038 = vtanh.f32 %v3126_v54  ;;  %3545 = vmatpush.bf16.msrb.mxu2 %v6150_v6  ;;  %v4615_v21 = vmul.f32 -1.442695, %v3126_v54 }
0x35e9   :  { %5040 = vpow2.f32 %v4615_v21 }
0x35eb   :  { %3546 = vmatpush.bf16.msrb.mxu2 %v6157_v50 }
0x35ec   :  { %v3124_v56 = vpop.f32.mrf.mxu3 }
0x35ed   :  { %v5039_v29 = vpop.eup %5038  ;;  %v6340_v56 = vld [vmem:[%s6704_s15] sm:$0xff] }
0x35ee   :  { %3149 = vrot.lane.b32.xlu1 %v5039_v29, %s5253_s21 }
0x35ef   :  { %3547 = vmatpush.bf16.msrb.mxu2 %v6165_v45  ;;  %v5041_v46 = vpop.eup %5040 }
0x35f0   :  { %v3130_v22 = vadd.f32 1.0, %v5041_v46  ;;  %v6347_v46 = vld [vmem:[%s6725_s27] ss:$0 sm:$0xff] }
0x35f2   :  { %5042 = vrcp.f32 %v3130_v22  ;;  %v3142_v3 = vand.u32 2147483648, %v3130_v22  ;;  %vm3136_vm8 = vweird.f32 %v3130_v22  ;;  %v3140_v11 = vand.u32 2147483647, %v3130_v22 }
0x35f4   :  { %v3143_v0 = vor.u32 1.1754944e-38, %v3142_v3  ;;  %vm3141_vm10 = vcmp.eq.f32.partialorder %v3140_v11, 8.507059e+37 }
0x35f8   :  { %v5043_v24 = vpop.eup %5042 }
0x35f9   :  { %v3132_v23 = vmul.f32 %v5043_v24, %v3130_v22  ;;  %vm3137_vm7 = vweird.f32 %v5043_v24  ;;  %v222_v22 = vmul.f32 %v6347_v46, %v5705_v27 }
0x35fa   :  { %vm3138_vm9 = vmor %vm3136_vm8, %vm3137_vm7 }
0x35fb   :  { %v3133_v43 = vsub.f32 1.0, %v3132_v23 }
0x35fd   :  { %v3134_v31 = vmul.f32 %v5043_v24, %v3133_v43 }
0x35ff   :  { %v3135_v36 = vadd.f32 %v5043_v24, %v3134_v31 }
0x3601   :  { %v3139_v12 = vsel %vm3138_vm9, %v5043_v24, %v3135_v36  ;;  %v6354_v24 = vld [vmem:[%s6695_s14] ss:$0 sm:$0xff] }
0x3602   :  { %v3144_v37 = vsel %vm3141_vm10, %v3143_v0, %v3139_v12  ;;  %v242_v23 = vadd.f32 %v6354_v24, %v222_v22 }
0x3603   :  { %v3147_v44 = vmul.f32 %v3144_v37, %v6289_v59 }
0x3660   :  { %v3150_v47 = vpop.permute.xlu1 %3149 }
0x3661   :  { %v3152_v49 = vmul.f32 %v3150_v47, %v3144_v37 }
0x3665   :  { %v3065_v58 = vpop.f32.mrf.mxu2 }
0x3666   :  { %v3066_v4 = vadd.f32 %v6193_v20, %v3065_v58 }
0x3668   :  { %5044 = vtanh.f32 %v3066_v4  ;;  %v4613_v17 = vmul.f32 -1.442695, %v3066_v4 }
0x366a   :  { %5046 = vpow2.f32 %v4613_v17 }
0x366d   :  { %v3067_v7 = vpop.f32.mrf.mxu2 }
0x366e   :  { %v5045_v25 = vpop.eup %5044 }
0x366f   :  { %3091 = vrot.lane.b32.xlu0 %v5045_v25, %s5253_s21 }
0x3670   :  { %v5047_v55 = vpop.eup %5046 }
0x3671   :  { %v3072_v9 = vadd.f32 1.0, %v5047_v55 }
0x3673   :  { %5048 = vrcp.f32 %v3072_v9  ;;  %v3084_v51 = vand.u32 2147483648, %v3072_v9  ;;  %vm3078_vm12 = vweird.f32 %v3072_v9  ;;  %v3082_v8 = vand.u32 2147483647, %v3072_v9 }
0x3675   :  { %v3085_v32 = vor.u32 1.1754944e-38, %v3084_v51  ;;  %vm3083_vm14 = vcmp.eq.f32.partialorder %v3082_v8, 8.507059e+37 }
0x3677   :  { %3154 = vrot.lane.b32.xlu0 %v3152_v49, %s5254_s24 }
0x3679   :  { %v5049_v53 = vpop.eup %5048 }
0x367a   :  { %v3074_v57 = vmul.f32 %v5049_v53, %v3072_v9  ;;  %vm3079_vm11 = vweird.f32 %v5049_v53 }
0x367b   :  { %vm3080_vm13 = vmor %vm3078_vm12, %vm3079_vm11 }
0x367c   :  { %v3075_v5 = vsub.f32 1.0, %v3074_v57 }
0x367e   :  { %v3076_v39 = vmul.f32 %v5049_v53, %v3075_v5 }
0x3680   :  { %v3077_v30 = vadd.f32 %v5049_v53, %v3076_v39 }
0x3682   :  { %v3081_v35 = vsel %vm3080_vm13, %v5049_v53, %v3077_v30 }
0x3683   :  { %v3086_v60 = vsel %vm3083_vm14, %v3085_v32, %v3081_v35 }
0x3684   :  { %v3089_v16 = vmul.f32 %v3086_v60, %v6294_v10  ;;  %v6334_v10 = vld [vmem:[%s6704_s15 + $0x8] sm:$0xff] }
0x36e1   :  { %v3092_v14 = vpop.permute.xlu0 %3091 }
0x36e2   :  { %v3094_v40 = vmul.f32 %v3092_v14, %v3086_v60 }
0x36e4   :  { %3096 = vrot.lane.b32.xlu2 %v3094_v40, %s5254_s24 }
0x36e9   :  { %v3155_v63 = vpop.permute.xlu0 %3154 }
0x36ea   :  { %v6319_v13 = vadd.f32 %v3155_v63, %v3147_v44 }
0x36ec   :  { %5050 = vtanh.f32 %v6319_v13 }
0x36f2   :  { %v5051_v41 = vpop.eup %5050 }
0x36f3   :  { %3160 = vrot.lane.b32.xlu2 %v5051_v41, %s5253_s21 }
0x373e   :  { %v3097_v18 = vpop.permute.xlu2 %3096 }
0x373f   :  { %v6324_v15 = vadd.f32 %v3097_v18, %v3089_v16 }
0x3741   :  { %5052 = vtanh.f32 %v6324_v15 }
0x3747   :  { %v5053_v48 = vpop.eup %5052 }
0x3748   :  { %3102 = vrot.lane.b32.xlu1 %v5053_v48, %s5253_s21 }
0x374d   :  { %v3161_v52 = vpop.permute.xlu2 %3160 }
0x374e   :  { %v3163_v59 = vmul.f32 %v3161_v52, %v3144_v37 }
0x3750   :  { %v3227_v26 = vpack.c.bf16 %v3163_v59, %v3163_v59  ;;  %3165 = vrot.lane.b32.xlu0 %v3163_v59, %s5254_s24 }
0x3752   :  { %3229 = vrot.lane.b32.xlu2 %v3227_v26, %s5254_s24 }
0x37ac   :  { %v3230_v54 = vpop.permute.xlu2 %3229 }
0x37ad   :  { %4618 = vmatmul.msk.bf16.vlgmr.msra.gmra.mxu1 %vm290_vm4, %v3230_v54 }
0x37ae   :  { %3724 = vmatpush.bf16.msra.mxu1 %v6334_v10 }
0x37b2   :  { %3725 = vmatpush.bf16.msra.mxu1 %v6340_v56 }
0x37ba   :  { %v3103_v29 = vpop.permute.xlu1 %3102 }
0x37bb   :  { %v3105_v21 = vmul.f32 %v3103_v29, %v3086_v60 }
0x37bd   :  { %3169 = vrot.lane.b32.xlu1 %v3105_v21, %s5253_s21 }
0x37c2   :  { %v3166_v4 = vpop.permute.xlu0 %3165 }
0x382a   :  { %v3243_v43 = vpop.f32.mrf.mxu1 }
0x382b   :  { %v3247_v58 = vadd.f32 %v3243_v43, %v242_v23 }
0x382d   :  { %5054 = vtanh.f32 %v3247_v58  ;;  %v4619_v27 = vmul.f32 -1.442695, %v3247_v58 }
0x382f   :  { %v3170_v31 = vpop.permute.xlu1 %3169  ;;  %5056 = vpow2.f32 %v4619_v27 }
0x3830   :  { %v3172_v36 = vsel %vm290_vm4, %v3166_v4, %v3170_v31 }
0x3831   :  { %v3173_v7 = vpack.c.bf16 %v3172_v36, %v3172_v36 }
0x3832   :  { %v3245_v25 = vpop.f32.mrf.mxu1 }
0x3833   :  { %v5055_v3 = vpop.eup %5054  ;;  %4616 = vmatmul.msk.bf16.vlgmr.msra.gmra.mxu0 %vm378_vm5, %v3173_v7  ;;  %v223_v7 = vmul.f32 %v6347_v46, %v5745_v28 }
0x3834   :  { %3270 = vrot.lane.b32.xlu1 %v5055_v3, %s5253_s21  ;;  %3665 = vmatpush.bf16.msra.mxu0 %v6144_v2 }
0x3835   :  { %v5057_v11 = vpop.eup %5056  ;;  %v243_v27 = vadd.f32 %v6354_v24, %v223_v7 }
0x3836   :  { %v3251_v12 = vadd.f32 1.0, %v5057_v11 }
0x3838   :  { %3666 = vmatpush.bf16.msra.mxu0 %v6150_v6  ;;  %5058 = vrcp.f32 %v3251_v12  ;;  %vm3257_vm0 = vweird.f32 %v3251_v12 }
0x383c   :  { %3667 = vmatpush.bf16.msra.mxu0 %v6157_v50  ;;  %v3263_v50 = vand.u32 2147483648, %v3251_v12 }
0x383e   :  { %v5059_v47 = vpop.eup %5058  ;;  %v3264_v5 = vor.u32 1.1754944e-38, %v3263_v50 }
0x383f   :  { %v3253_v0 = vmul.f32 %v5059_v47, %v3251_v12  ;;  %vm3258_vm15 = vweird.f32 %v5059_v47 }
0x3840   :  { %3668 = vmatpush.bf16.msra.mxu0 %v6165_v45  ;;  %v3261_v45 = vand.u32 2147483647, %v3251_v12  ;;  %vm3259_vm1 = vmor %vm3257_vm0, %vm3258_vm15 }
0x3841   :  { %v3254_v37 = vsub.f32 1.0, %v3253_v0 }
0x3842   :  { %vm3262_vm2 = vcmp.eq.f32.partialorder %v3261_v45, 8.507059e+37 }
0x3843   :  { %v3255_v55 = vmul.f32 %v5059_v47, %v3254_v37  ;;  %v6392_v37 = vld [vmem:[%s6706_s16 + $0x18] sm:$0xff] }
0x3845   :  { %v3256_v2 = vadd.f32 %v5059_v47, %v3255_v55  ;;  %v6405_v55 = vld [vmem:[%s6706_s16 + $0x8] sm:$0xff] }
0x3847   :  { %v3260_v53 = vsel %vm3259_vm1, %v5059_v47, %v3256_v2  ;;  %v6411_v2 = vld [vmem:[%s6706_s16] sm:$0xff] }
0x3848   :  { %v3265_v39 = vsel %vm3262_vm2, %v3264_v5, %v3260_v53 }
0x3849   :  { %v3268_v59 = vmul.f32 %v3265_v39, %v6319_v13 }
0x38a6   :  { %v3271_v57 = vpop.permute.xlu1 %3270 }
0x38a7   :  { %v3273_v30 = vmul.f32 %v3271_v57, %v3265_v39 }
0x38b0   :  { %v3186_v49 = vpop.f32.mrf.mxu0 }
0x38b1   :  { %v3187_v17 = vadd.f32 %v6193_v20, %v3186_v49  ;;  %v6398_v49 = vld [vmem:[%s6706_s16 + $0x10] sm:$0xff] }
0x38b3   :  { %5060 = vtanh.f32 %v3187_v17  ;;  %v4617_v20 = vmul.f32 -1.442695, %v3187_v17 }
0x38b5   :  { %5062 = vpow2.f32 %v4617_v20 }
0x38b8   :  { %v3188_v6 = vpop.f32.mrf.mxu0 }
0x38b9   :  { %v5061_v9 = vpop.eup %5060 }
0x38ba   :  { %3212 = vrot.lane.b32.xlu0 %v5061_v9, %s5253_s21 }
0x38bb   :  { %v5063_v51 = vpop.eup %5062 }
0x38bc   :  { %v3193_v8 = vadd.f32 1.0, %v5063_v51 }
0x38be   :  { %5064 = vrcp.f32 %v3193_v8  ;;  %v3205_v44 = vand.u32 2147483648, %v3193_v8  ;;  %vm3199_vm6 = vweird.f32 %v3193_v8  ;;  %v3203_v63 = vand.u32 2147483647, %v3193_v8 }
0x38c0   :  { %v3206_v16 = vor.u32 1.1754944e-38, %v3205_v44  ;;  %vm3204_vm8 = vcmp.eq.f32.partialorder %v3203_v63, 8.507059e+37 }
0x38c2   :  { %3275 = vrot.lane.b32.xlu0 %v3273_v30, %s5254_s24 }
0x38c4   :  { %v5065_v35 = vpop.eup %5064 }
0x38c5   :  { %v3195_v32 = vmul.f32 %v5065_v35, %v3193_v8  ;;  %vm3200_vm3 = vweird.f32 %v5065_v35 }
0x38c6   :  { %vm3201_vm7 = vmor %vm3199_vm6, %vm3200_vm3 }
0x38c7   :  { %v3196_v14 = vsub.f32 1.0, %v3195_v32 }
0x38c9   :  { %v3197_v60 = vmul.f32 %v5065_v35, %v3196_v14 }
0x38cb   :  { %v3198_v40 = vadd.f32 %v5065_v35, %v3197_v60 }
0x38cd   :  { %v3202_v41 = vsel %vm3201_vm7, %v5065_v35, %v3198_v40 }
0x38ce   :  { %v3207_v48 = vsel %vm3204_vm8, %v3206_v16, %v3202_v41 }
0x38cf   :  { %v3210_v21 = vmul.f32 %v3207_v48, %v6324_v15 }
0x392c   :  { %v3213_v18 = vpop.permute.xlu0 %3212 }
0x392d   :  { %v3215_v52 = vmul.f32 %v3213_v18, %v3207_v48 }
0x392f   :  { %3217 = vrot.lane.b32.xlu2 %v3215_v52, %s5254_s24 }
0x3934   :  { %v3276_v26 = vpop.permute.xlu0 %3275 }
0x3935   :  { %v6369_v54 = vadd.f32 %v3276_v26, %v3268_v59 }
0x3937   :  { %5066 = vtanh.f32 %v6369_v54 }
0x393d   :  { %v5067_v29 = vpop.eup %5066 }
0x393e   :  { %3281 = vrot.lane.b32.xlu2 %v5067_v29, %s5253_s21 }
0x3989   :  { %v3218_v22 = vpop.permute.xlu2 %3217 }
0x398a   :  { %v6374_v23 = vadd.f32 %v3218_v22, %v3210_v21 }
0x398c   :  { %5068 = vtanh.f32 %v6374_v23 }
0x3992   :  { %v5069_v43 = vpop.eup %5068 }
0x3993   :  { %3223 = vrot.lane.b32.xlu1 %v5069_v43, %s5253_s21 }
0x3998   :  { %v3282_v58 = vpop.permute.xlu2 %3281 }
0x3999   :  { %v3284_v13 = vmul.f32 %v3282_v58, %v3265_v39  ;;  %v6417_v39 = vld [vmem:[%s6707_s17] ss:$0 sm:$0xff] }
0x399b   :  { %v3348_v4 = vpack.c.bf16 %v3284_v13, %v3284_v13  ;;  %3286 = vrot.lane.b32.xlu0 %v3284_v13, %s5254_s24 }
0x399d   :  { %3350 = vrot.lane.b32.xlu2 %v3348_v4, %s5254_s24 }
0x39f7   :  { %v3351_v31 = vpop.permute.xlu2 %3350 }
0x39f8   :  { %4622 = vmatmul.msk.bf16.vlgmr.msra.gmra.mxu3 %vm290_vm4, %v3351_v31 }
0x39f9   :  { %3845 = vmatpush.bf16.msra.mxu3 %v6334_v10 }
0x39fd   :  { %3846 = vmatpush.bf16.msra.mxu3 %v6340_v56 }
0x3a05   :  { %v3224_v15 = vpop.permute.xlu1 %3223 }
0x3a06   :  { %v3226_v36 = vmul.f32 %v3224_v15, %v3207_v48 }
0x3a08   :  { %3290 = vrot.lane.b32.xlu1 %v3226_v36, %s5253_s21 }
0x3a0d   :  { %v3287_v25 = vpop.permute.xlu0 %3286 }
0x3a7a   :  { %v3291_v3 = vpop.permute.xlu1 %3290 }
0x3a7b   :  { %v3293_v11 = vsel %vm290_vm4, %v3287_v25, %v3291_v3  ;;  %v3364_v12 = vpop.f32.mrf.mxu3 }
0x3a7c   :  { %v3294_v47 = vpack.c.bf16 %v3293_v11, %v3293_v11  ;;  %v3368_v0 = vadd.f32 %v3364_v12, %v243_v27 }
0x3a7e   :  { %5070 = vtanh.f32 %v3368_v0  ;;  %4620 = vmatmul.msk.bf16.vlgmr.msra.gmra.mxu2 %vm378_vm5, %v3294_v47  ;;  %v4623_v6 = vmul.f32 -1.442695, %v3368_v0 }
0x3a7f   :  { %3786 = vmatpush.bf16.msra.mxu2 %v6392_v37 }
0x3a80   :  { %5072 = vpow2.f32 %v4623_v6 }
0x3a83   :  { %v3366_v28 = vpop.f32.mrf.mxu3  ;;  %3787 = vmatpush.bf16.msra.mxu2 %v6398_v49 }
0x3a84   :  { %v5071_v17 = vpop.eup %5070 }
0x3a85   :  { %3391 = vrot.lane.b32.xlu1 %v5071_v17, %s5253_s21 }
0x3a86   :  { %v5073_v9 = vpop.eup %5072 }
0x3a87   :  { %3788 = vmatpush.bf16.msra.mxu2 %v6405_v55  ;;  %v3372_v50 = vadd.f32 1.0, %v5073_v9  ;;  %v224_v9 = vmul.f32 %v6347_v46, %v5780_v1 }
0x3a89   :  { %5074 = vrcp.f32 %v3372_v50  ;;  %v3384_v32 = vand.u32 2147483648, %v3372_v50  ;;  %vm3378_vm10 = vweird.f32 %v3372_v50  ;;  %v3382_v14 = vand.u32 2147483647, %v3372_v50 }
0x3a8b   :  { %3789 = vmatpush.bf16.msra.mxu2 %v6411_v2  ;;  %v3385_v44 = vor.u32 1.1754944e-38, %v3384_v32  ;;  %vm3383_vm12 = vcmp.eq.f32.partialorder %v3382_v14, 8.507059e+37 }
0x3a8f   :  { %v5075_v45 = vpop.eup %5074 }
0x3a90   :  { %v3374_v53 = vmul.f32 %v5075_v45, %v3372_v50  ;;  %vm3379_vm9 = vweird.f32 %v5075_v45  ;;  %v244_v50 = vadd.f32 %v6354_v24, %v224_v9 }
0x3a91   :  { %vm3380_vm11 = vmor %vm3378_vm10, %vm3379_vm9 }
0x3a92   :  { %v3375_v57 = vsub.f32 1.0, %v3374_v53 }
0x3a94   :  { %v3376_v20 = vmul.f32 %v5075_v45, %v3375_v57 }
0x3a96   :  { %v3377_v51 = vadd.f32 %v5075_v45, %v3376_v20 }
0x3a98   :  { %v3381_v60 = vsel %vm3380_vm11, %v5075_v45, %v3377_v51 }
0x3a99   :  { %v3386_v63 = vsel %vm3383_vm12, %v3385_v44, %v3381_v60 }
0x3a9a   :  { %v3389_v36 = vmul.f32 %v3386_v63, %v6369_v54 }
0x3af7   :  { %v3392_v40 = vpop.permute.xlu1 %3391 }
0x3af8   :  { %v3394_v41 = vmul.f32 %v3392_v40, %v3386_v63 }
0x3b01   :  { %v3307_v5 = vpop.f32.mrf.mxu2 }
0x3b02   :  { %v3308_v30 = vadd.f32 %v6417_v39, %v3307_v5 }
0x3b04   :  { %5076 = vtanh.f32 %v3308_v30  ;;  %v4621_v16 = vmul.f32 -1.442695, %v3308_v30 }
0x3b06   :  { %5078 = vpow2.f32 %v4621_v16 }
0x3b09   :  { %v3309_v8 = vpop.f32.mrf.mxu2 }
0x3b0a   :  { %v5077_v35 = vpop.eup %5076 }
0x3b0b   :  { %3333 = vrot.lane.b32.xlu0 %v5077_v35, %s5253_s21 }
0x3b0c   :  { %v5079_v18 = vpop.eup %5078 }
0x3b0d   :  { %v3314_v48 = vadd.f32 1.0, %v5079_v18 }
0x3b0f   :  { %5080 = vrcp.f32 %v3314_v48  ;;  %v3326_v22 = vand.u32 2147483648, %v3314_v48  ;;  %vm3320_vm14 = vweird.f32 %v3314_v48  ;;  %v3324_v43 = vand.u32 2147483647, %v3314_v48 }
0x3b11   :  { %v3327_v13 = vor.u32 1.1754944e-38, %v3326_v22  ;;  %vm3325_vm0 = vcmp.eq.f32.partialorder %v3324_v43, 8.507059e+37 }
0x3b13   :  { %3396 = vrot.lane.b32.xlu0 %v3394_v41, %s5254_s24 }
0x3b15   :  { %v5081_v52 = vpop.eup %5080 }
0x3b16   :  { %v3316_v59 = vmul.f32 %v5081_v52, %v3314_v48  ;;  %vm3321_vm13 = vweird.f32 %v5081_v52 }
0x3b17   :  { %vm3322_vm15 = vmor %vm3320_vm14, %vm3321_vm13 }
0x3b18   :  { %v3317_v26 = vsub.f32 1.0, %v3316_v59 }
0x3b1a   :  { %v3318_v29 = vmul.f32 %v5081_v52, %v3317_v26 }
0x3b1c   :  { %v3319_v21 = vadd.f32 %v5081_v52, %v3318_v29 }
0x3b1e   :  { %v3323_v58 = vsel %vm3322_vm15, %v5081_v52, %v3319_v21 }
0x3b1f   :  { %v3328_v31 = vsel %vm3325_vm0, %v3327_v13, %v3323_v58 }
0x3b20   :  { %v3331_v27 = vmul.f32 %v3328_v31, %v6374_v23 }
0x3b7d   :  { %v3334_v4 = vpop.permute.xlu0 %3333 }
0x3b7e   :  { %v3336_v15 = vmul.f32 %v3334_v4, %v3328_v31 }
0x3b80   :  { %3338 = vrot.lane.b32.xlu2 %v3336_v15, %s5254_s24 }
0x3b85   :  { %v3397_v7 = vpop.permute.xlu0 %3396 }
0x3b86   :  { %v6424_v25 = vadd.f32 %v3397_v7, %v3389_v36 }
0x3b88   :  { %5082 = vtanh.f32 %v6424_v25 }
0x3b8e   :  { %v5083_v3 = vpop.eup %5082 }
0x3b8f   :  { %3402 = vrot.lane.b32.xlu2 %v5083_v3, %s5253_s21 }
0x3bda   :  { %v3339_v11 = vpop.permute.xlu2 %3338 }
0x3bdb   :  { %v6429_v12 = vadd.f32 %v3339_v11, %v3331_v27 }
0x3bdd   :  { %5084 = vtanh.f32 %v6429_v12 }
0x3be3   :  { %v5085_v47 = vpop.eup %5084 }
0x3be4   :  { %3344 = vrot.lane.b32.xlu1 %v5085_v47, %s5253_s21 }
0x3be9   :  { %v3403_v0 = vpop.permute.xlu2 %3402 }
0x3bea   :  { %v3405_v54 = vmul.f32 %v3403_v0, %v3386_v63 }
0x3bec   :  { %v3469_v28 = vpack.c.bf16 %v3405_v54, %v3405_v54  ;;  %3407 = vrot.lane.b32.xlu0 %v3405_v54, %s5254_s24 }
0x3bee   :  { %3471 = vrot.lane.b32.xlu2 %v3469_v28, %s5254_s24 }
0x3c48   :  { %v3472_v17 = vpop.permute.xlu2 %3471 }
0x3c49   :  { %4626 = vmatmul.msk.bf16.vlgmr.msrb.gmra.mxu1 %vm290_vm4, %v3472_v17 }
0x3c4a   :  { %3966 = vmatpush.bf16.msrb.mxu1 %v6334_v10 }
0x3c4e   :  { %3967 = vmatpush.bf16.msrb.mxu1 %v6340_v56 }
0x3c56   :  { %v3345_v23 = vpop.permute.xlu1 %3344 }
0x3c57   :  { %v3347_v6 = vmul.f32 %v3345_v23, %v3328_v31 }
0x3c59   :  { %3411 = vrot.lane.b32.xlu1 %v3347_v6, %s5253_s21 }
0x3c5e   :  { %v3408_v57 = vpop.permute.xlu0 %3407 }
0x3cc6   :  { %v3485_v45 = vpop.f32.mrf.mxu1 }
0x3cc7   :  { %v3489_v53 = vadd.f32 %v3485_v45, %v244_v50 }
0x3cc9   :  { %5086 = vtanh.f32 %v3489_v53  ;;  %v4627_v1 = vmul.f32 -1.442695, %v3489_v53 }
0x3ccb   :  { %v3412_v5 = vpop.permute.xlu1 %3411  ;;  %5088 = vpow2.f32 %v4627_v1  ;;  %v225_v1 = vmul.f32 %v6347_v46, %v5815_v19 }
0x3ccc   :  { %v3414_v30 = vsel %vm290_vm4, %v3408_v57, %v3412_v5 }
0x3ccd   :  { %v3415_v20 = vpack.c.bf16 %v3414_v30, %v3414_v30 }
0x3cce   :  { %v3487_v51 = vpop.f32.mrf.mxu1 }
0x3ccf   :  { %v5087_v8 = vpop.eup %5086  ;;  %4624 = vmatmul.msk.bf16.vlgmr.msrb.gmra.mxu0 %vm378_vm5, %v3415_v20 }
0x3cd0   :  { %3512 = vrot.lane.b32.xlu1 %v5087_v8, %s5253_s21  ;;  %3907 = vmatpush.bf16.msrb.mxu0 %v6392_v37 }
0x3cd1   :  { %v5089_v35 = vpop.eup %5088 }
0x3cd2   :  { %v3493_v32 = vadd.f32 1.0, %v5089_v35 }
0x3cd4   :  { %3908 = vmatpush.bf16.msrb.mxu0 %v6398_v49  ;;  %5090 = vrcp.f32 %v3493_v32  ;;  %v3505_v52 = vand.u32 2147483648, %v3493_v32  ;;  %vm3499_vm2 = vweird.f32 %v3493_v32  ;;  %v3503_v59 = vand.u32 2147483647, %v3493_v32 }
0x3cd6   :  { %v3506_v21 = vor.u32 1.1754944e-38, %v3505_v52  ;;  %vm3504_vm6 = vcmp.eq.f32.partialorder %v3503_v59, 8.507059e+37 }
0x3cd8   :  { %3909 = vmatpush.bf16.msrb.mxu0 %v6405_v55 }
0x3cda   :  { %v5091_v14 = vpop.eup %5090 }
0x3cdb   :  { %v3495_v60 = vmul.f32 %v5091_v14, %v3493_v32  ;;  %vm3500_vm1 = vweird.f32 %v5091_v14 }
0x3cdc   :  { %3910 = vmatpush.bf16.msrb.mxu0 %v6411_v2  ;;  %vm3501_vm3 = vmor %vm3499_vm2, %vm3500_vm1 }
0x3cdd   :  { %v3496_v40 = vsub.f32 1.0, %v3495_v60 }
0x3cdf   :  { %v3497_v41 = vmul.f32 %v5091_v14, %v3496_v40 }
0x3ce1   :  { %v3498_v16 = vadd.f32 %v5091_v14, %v3497_v41 }
0x3ce3   :  { %v3502_v26 = vsel %vm3501_vm3, %v5091_v14, %v3498_v16  ;;  %v245_v14 = vadd.f32 %v6354_v24, %v225_v1 }
0x3ce4   :  { %v3507_v22 = vsel %vm3504_vm6, %v3506_v21, %v3502_v26 }
0x3ce5   :  { %v3510_v23 = vmul.f32 %v3507_v22, %v6424_v25 }
0x3d42   :  { %v3513_v29 = vpop.permute.xlu1 %3512 }
0x3d43   :  { %v3515_v43 = vmul.f32 %v3513_v29, %v3507_v22 }
0x3d4c   :  { %v3428_v44 = vpop.f32.mrf.mxu0 }
0x3d4d   :  { %v3429_v63 = vadd.f32 %v6417_v39, %v3428_v44 }
0x3d4f   :  { %5092 = vtanh.f32 %v3429_v63  ;;  %v4625_v58 = vmul.f32 -1.442695, %v3429_v63 }
0x3d51   :  { %5094 = vpow2.f32 %v4625_v58 }
0x3d54   :  { %v3430_v18 = vpop.f32.mrf.mxu0 }
0x3d55   :  { %v5093_v48 = vpop.eup %5092 }
0x3d56   :  { %3454 = vrot.lane.b32.xlu0 %v5093_v48, %s5253_s21 }
0x3d57   :  { %v5095_v13 = vpop.eup %5094 }
0x3d58   :  { %v3435_v4 = vadd.f32 1.0, %v5095_v13 }
0x3d5a   :  { %5096 = vrcp.f32 %v3435_v4  ;;  %v3447_v27 = vand.u32 2147483648, %v3435_v4  ;;  %vm3441_vm8 = vweird.f32 %v3435_v4  ;;  %v3445_v11 = vand.u32 2147483647, %v3435_v4 }
0x3d5c   :  { %v3448_v0 = vor.u32 1.1754944e-38, %v3447_v27  ;;  %vm3446_vm10 = vcmp.eq.f32.partialorder %v3445_v11, 8.507059e+37 }
0x3d5e   :  { %3517 = vrot.lane.b32.xlu0 %v3515_v43, %s5254_s24 }
0x3d60   :  { %v5097_v31 = vpop.eup %5096 }
0x3d61   :  { %v3437_v15 = vmul.f32 %v5097_v31, %v3435_v4  ;;  %vm3442_vm7 = vweird.f32 %v5097_v31 }
0x3d62   :  { %vm3443_vm9 = vmor %vm3441_vm8, %vm3442_vm7 }
0x3d63   :  { %v3438_v36 = vsub.f32 1.0, %v3437_v15 }
0x3d65   :  { %v3439_v7 = vmul.f32 %v5097_v31, %v3438_v36 }
0x3d67   :  { %v3440_v3 = vadd.f32 %v5097_v31, %v3439_v7 }
0x3d69   :  { %v3444_v47 = vsel %vm3443_vm9, %v5097_v31, %v3440_v3 }
0x3d6a   :  { %v3449_v28 = vsel %vm3446_vm10, %v3448_v0, %v3444_v47 }
0x3d6b   :  { %v3452_v45 = vmul.f32 %v3449_v28, %v6429_v12 }
0x3dc8   :  { %v3455_v54 = vpop.permute.xlu0 %3454 }
0x3dc9   :  { %v3457_v17 = vmul.f32 %v3455_v54, %v3449_v28 }
0x3dcb   :  { %3459 = vrot.lane.b32.xlu2 %v3457_v17, %s5254_s24 }
0x3dd0   :  { %v3518_v6 = vpop.permute.xlu0 %3517 }
0x3dd1   :  { %v6454_v9 = vadd.f32 %v3518_v6, %v3510_v23 }
0x3dd3   :  { %5098 = vtanh.f32 %v6454_v9 }
0x3dd9   :  { %v5099_v50 = vpop.eup %5098 }
0x3dda   :  { %3523 = vrot.lane.b32.xlu2 %v5099_v50, %s5253_s21 }
0x3e25   :  { %v3460_v53 = vpop.permute.xlu2 %3459 }
0x3e26   :  { %v6459_v57 = vadd.f32 %v3460_v53, %v3452_v45 }
0x3e28   :  { %5100 = vtanh.f32 %v6459_v57 }
0x3e2e   :  { %v5101_v5 = vpop.eup %5100 }
0x3e2f   :  { %3465 = vrot.lane.b32.xlu1 %v5101_v5, %s5253_s21 }
0x3e34   :  { %v3524_v30 = vpop.permute.xlu2 %3523 }
0x3e35   :  { %v3526_v25 = vmul.f32 %v3524_v30, %v3507_v22 }
0x3e37   :  { %v3590_v20 = vpack.c.bf16 %v3526_v25, %v3526_v25  ;;  %3528 = vrot.lane.b32.xlu0 %v3526_v25, %s5254_s24 }
0x3e39   :  { %3592 = vrot.lane.b32.xlu2 %v3590_v20, %s5254_s24 }
0x3e93   :  { %v3593_v51 = vpop.permute.xlu2 %3592 }
0x3e94   :  { %4630 = vmatmul.msk.bf16.vlgmr.msrb.gmra.mxu3 %vm290_vm4, %v3593_v51 }
0x3e95   :  { %4087 = vmatpush.bf16.msrb.mxu3 %v6334_v10 }
0x3e99   :  { %4088 = vmatpush.bf16.msrb.mxu3 %v6340_v56 }
0x3ea1   :  { %v3466_v12 = vpop.permute.xlu1 %3465 }
0x3ea2   :  { %v3468_v8 = vmul.f32 %v3466_v12, %v3449_v28 }
0x3ea4   :  { %3532 = vrot.lane.b32.xlu1 %v3468_v8, %s5253_s21 }
0x3ea9   :  { %v3529_v35 = vpop.permute.xlu0 %3528 }
0x3f16   :  { %v3533_v32 = vpop.permute.xlu1 %3532 }
0x3f17   :  { %v3535_v60 = vsel %vm290_vm4, %v3529_v35, %v3533_v32  ;;  %v3606_v40 = vpop.f32.mrf.mxu3 }
0x3f18   :  { %v3536_v44 = vpack.c.bf16 %v3535_v60, %v3535_v60  ;;  %v3610_v63 = vadd.f32 %v3606_v40, %v245_v14 }
0x3f1a   :  { %5102 = vtanh.f32 %v3610_v63  ;;  %4628 = vmatmul.msk.bf16.vlgmr.msrb.gmra.mxu2 %vm378_vm5, %v3536_v44  ;;  %v4631_v19 = vmul.f32 -1.442695, %v3610_v63 }
0x3f1b   :  { %4028 = vmatpush.bf16.msrb.mxu2 %v6392_v37 }
0x3f1c   :  { %5104 = vpow2.f32 %v4631_v19 }
0x3f1f   :  { %v3608_v41 = vpop.f32.mrf.mxu3  ;;  %4029 = vmatpush.bf16.msrb.mxu2 %v6398_v49 }
0x3f20   :  { %v5103_v16 = vpop.eup %5102 }
0x3f21   :  { %3633 = vrot.lane.b32.xlu1 %v5103_v16, %s5253_s21  ;;  %v226_v16 = vmul.f32 %v6347_v46, %v5850_v42 }
0x3f22   :  { %v5105_v18 = vpop.eup %5104 }
0x3f23   :  { %4030 = vmatpush.bf16.msrb.mxu2 %v6405_v55  ;;  %v3614_v48 = vadd.f32 1.0, %v5105_v18  ;;  %v246_v19 = vadd.f32 %v6354_v24, %v226_v16 }
0x3f25   :  { %5106 = vrcp.f32 %v3614_v48  ;;  %v3626_v4 = vand.u32 2147483648, %v3614_v48  ;;  %vm3620_vm12 = vweird.f32 %v3614_v48  ;;  %v3624_v31 = vand.u32 2147483647, %v3614_v48 }
0x3f27   :  { %4031 = vmatpush.bf16.msrb.mxu2 %v6411_v2  ;;  %v3627_v7 = vor.u32 1.1754944e-38, %v3626_v4  ;;  %vm3625_vm14 = vcmp.eq.f32.partialorder %v3624_v31, 8.507059e+37 }
0x3f2b   :  { %v5107_v52 = vpop.eup %5106 }
0x3f2c   :  { %v3616_v59 = vmul.f32 %v5107_v52, %v3614_v48  ;;  %vm3621_vm11 = vweird.f32 %v5107_v52 }
0x3f2d   :  { %vm3622_vm13 = vmor %vm3620_vm12, %vm3621_vm11 }
0x3f2e   :  { %v3617_v26 = vsub.f32 1.0, %v3616_v59 }
0x3f30   :  { %v3618_v22 = vmul.f32 %v5107_v52, %v3617_v26 }
0x3f32   :  { %v3619_v43 = vadd.f32 %v5107_v52, %v3618_v22 }
0x3f34   :  { %v3623_v15 = vsel %vm3622_vm13, %v5107_v52, %v3619_v43 }
0x3f35   :  { %v3628_v3 = vsel %vm3625_vm14, %v3627_v7, %v3623_v15 }
0x3f36   :  { %v3631_v51 = vmul.f32 %v3628_v3, %v6454_v9 }
0x3f93   :  { %v3634_v36 = vpop.permute.xlu1 %3633 }
0x3f94   :  { %v3636_v27 = vmul.f32 %v3634_v36, %v3628_v3 }
0x3f9d   :  { %v3549_v29 = vpop.f32.mrf.mxu2 }
0x3f9e   :  { %v3550_v21 = vadd.f32 %v6417_v39, %v3549_v29 }
0x3fa0   :  { %5108 = vtanh.f32 %v3550_v21  ;;  %v4629_v11 = vmul.f32 -1.442695, %v3550_v21 }
0x3fa2   :  { %5110 = vpow2.f32 %v4629_v11 }
0x3fa5   :  { %v3551_v58 = vpop.f32.mrf.mxu2 }
0x3fa6   :  { %v5109_v13 = vpop.eup %5108 }
0x3fa7   :  { %3575 = vrot.lane.b32.xlu0 %v5109_v13, %s5253_s21 }
0x3fa8   :  { %v5111_v47 = vpop.eup %5110 }
0x3fa9   :  { %v3556_v0 = vadd.f32 1.0, %v5111_v47 }
0x3fab   :  { %5112 = vrcp.f32 %v3556_v0  ;;  %v3568_v50 = vand.u32 2147483648, %v3556_v0  ;;  %vm3562_vm0 = vweird.f32 %v3556_v0  ;;  %v3566_v45 = vand.u32 2147483647, %v3556_v0 }
0x3fad   :  { %v3569_v5 = vor.u32 1.1754944e-38, %v3568_v50  ;;  %vm3567_vm2 = vcmp.eq.f32.partialorder %v3566_v45, 8.507059e+37 }
0x3faf   :  { %3638 = vrot.lane.b32.xlu0 %v3636_v27, %s5254_s24 }
0x3fb1   :  { %v5113_v54 = vpop.eup %5112 }
0x3fb2   :  { %v3558_v28 = vmul.f32 %v5113_v54, %v3556_v0  ;;  %vm3563_vm15 = vweird.f32 %v5113_v54 }
0x3fb3   :  { %vm3564_vm1 = vmor %vm3562_vm0, %vm3563_vm15 }
0x3fb4   :  { %v3559_v17 = vsub.f32 1.0, %v3558_v28 }
0x3fb6   :  { %v3560_v23 = vmul.f32 %v5113_v54, %v3559_v17 }
0x3fb8   :  { %v3561_v6 = vadd.f32 %v5113_v54, %v3560_v23 }
0x3fba   :  { %v3565_v53 = vsel %vm3564_vm1, %v5113_v54, %v3561_v6 }
0x3fbb   :  { %v3570_v25 = vsel %vm3567_vm2, %v3569_v5, %v3565_v53 }
0x3fbc   :  { %v3573_v35 = vmul.f32 %v3570_v25, %v6459_v57 }
0x4019   :  { %v3576_v30 = vpop.permute.xlu0 %3575 }
0x401a   :  { %v3578_v20 = vmul.f32 %v3576_v30, %v3570_v25 }
0x401c   :  { %3580 = vrot.lane.b32.xlu2 %v3578_v20, %s5254_s24 }
0x4021   :  { %v3639_v12 = vpop.permute.xlu0 %3638 }
0x4022   :  { %v6484_v8 = vadd.f32 %v3639_v12, %v3631_v51 }
0x4024   :  { %5114 = vtanh.f32 %v6484_v8 }
0x402a   :  { %v5115_v1 = vpop.eup %5114 }
0x402b   :  { %3644 = vrot.lane.b32.xlu2 %v5115_v1, %s5253_s21 }
0x4076   :  { %v3581_v32 = vpop.permute.xlu2 %3580 }
0x4077   :  { %v6489_v14 = vadd.f32 %v3581_v32, %v3573_v35 }
0x4079   :  { %5116 = vtanh.f32 %v6489_v14 }
0x407f   :  { %v5117_v60 = vpop.eup %5116 }
0x4080   :  { %3586 = vrot.lane.b32.xlu1 %v5117_v60, %s5253_s21 }
0x4085   :  { %v3645_v40 = vpop.permute.xlu2 %3644 }
0x4086   :  { %v3647_v9 = vmul.f32 %v3645_v40, %v3628_v3 }
0x4088   :  { %v3711_v44 = vpack.c.bf16 %v3647_v9, %v3647_v9  ;;  %3649 = vrot.lane.b32.xlu0 %v3647_v9, %s5254_s24 }
0x408a   :  { %3713 = vrot.lane.b32.xlu2 %v3711_v44, %s5254_s24 }
0x40e4   :  { %v3714_v63 = vpop.permute.xlu2 %3713 }
0x40e5   :  { %4634 = vmatmul.msk.bf16.vlgmr.msra.gmra.mxu1 %vm290_vm4, %v3714_v63 }
0x40e6   :  { %4208 = vmatpush.bf16.msra.mxu1 %v6334_v10 }
0x40ea   :  { %4209 = vmatpush.bf16.msra.mxu1 %v6340_v56 }
0x40f2   :  { %v3587_v57 = vpop.permute.xlu1 %3586 }
0x40f3   :  { %v3589_v41 = vmul.f32 %v3587_v57, %v3570_v25 }
0x40f5   :  { %3653 = vrot.lane.b32.xlu1 %v3589_v41, %s5253_s21 }
0x40fa   :  { %v3650_v52 = vpop.permute.xlu0 %3649 }
0x4162   :  { %v3727_v18 = vpop.f32.mrf.mxu1 }
0x4163   :  { %v3731_v48 = vadd.f32 %v3727_v18, %v246_v19 }
0x4165   :  { %5118 = vtanh.f32 %v3731_v48  ;;  %v4635_v42 = vmul.f32 -1.442695, %v3731_v48 }
0x4167   :  { %v3654_v59 = vpop.permute.xlu1 %3653  ;;  %5120 = vpow2.f32 %v4635_v42 }
0x4168   :  { %v3656_v26 = vsel %vm290_vm4, %v3650_v52, %v3654_v59 }
0x4169   :  { %v3657_v29 = vpack.c.bf16 %v3656_v26, %v3656_v26 }
0x416a   :  { %v3729_v21 = vpop.f32.mrf.mxu1 }
0x416b   :  { %v5119_v22 = vpop.eup %5118  ;;  %4632 = vmatmul.msk.bf16.vlgmr.msra.gmra.mxu0 %vm378_vm5, %v3657_v29  ;;  %v227_v21 = vmul.f32 %v6347_v46, %v5889_v33 }
0x416c   :  { %3754 = vrot.lane.b32.xlu1 %v5119_v22, %s5253_s21  ;;  %4149 = vmatpush.bf16.msra.mxu0 %v6392_v37 }
0x416d   :  { %v5121_v43 = vpop.eup %5120 }
0x416e   :  { %v3735_v58 = vadd.f32 1.0, %v5121_v43  ;;  %v247_v43 = vadd.f32 %v6354_v24, %v227_v21 }
0x4170   :  { %4150 = vmatpush.bf16.msra.mxu0 %v6398_v49  ;;  %5122 = vrcp.f32 %v3735_v58  ;;  %v3747_v47 = vand.u32 2147483648, %v3735_v58  ;;  %vm3741_vm6 = vweird.f32 %v3735_v58  ;;  %v3745_v0 = vand.u32 2147483647, %v3735_v58 }
0x4172   :  { %v3748_v17 = vor.u32 1.1754944e-38, %v3747_v47  ;;  %vm3746_vm8 = vcmp.eq.f32.partialorder %v3745_v0, 8.507059e+37 }
0x4174   :  { %4151 = vmatpush.bf16.msra.mxu0 %v6405_v55 }
0x4176   :  { %v5123_v13 = vpop.eup %5122 }
0x4177   :  { %v3737_v4 = vmul.f32 %v5123_v13, %v3735_v58  ;;  %vm3742_vm3 = vweird.f32 %v5123_v13 }
0x4178   :  { %4152 = vmatpush.bf16.msra.mxu0 %v6411_v2  ;;  %vm3743_vm7 = vmor %vm3741_vm6, %vm3742_vm3 }
0x4179   :  { %v3738_v31 = vsub.f32 1.0, %v3737_v4 }
0x417b   :  { %v3739_v7 = vmul.f32 %v5123_v13, %v3738_v31 }
0x417d   :  { %v3740_v3 = vadd.f32 %v5123_v13, %v3739_v7 }
0x417f   :  { %v3744_v54 = vsel %vm3743_vm7, %v5123_v13, %v3740_v3 }
0x4180   :  { %v3749_v23 = vsel %vm3746_vm8, %v3748_v17, %v3744_v54 }
0x4181   :  { %v3752_v44 = vmul.f32 %v3749_v23, %v6484_v8 }
0x41de   :  { %v3755_v28 = vpop.permute.xlu1 %3754 }
0x41df   :  { %v3757_v6 = vmul.f32 %v3755_v28, %v3749_v23 }
0x41e8   :  { %v3670_v15 = vpop.f32.mrf.mxu0 }
0x41e9   :  { %v3671_v36 = vadd.f32 %v6417_v39, %v3670_v15 }
0x41eb   :  { %5124 = vtanh.f32 %v3671_v36  ;;  %v4633_v50 = vmul.f32 -1.442695, %v3671_v36 }
0x41ed   :  { %5126 = vpow2.f32 %v4633_v50 }
0x41f0   :  { %v3672_v27 = vpop.f32.mrf.mxu0 }
0x41f1   :  { %v5125_v11 = vpop.eup %5124 }
0x41f2   :  { %3696 = vrot.lane.b32.xlu0 %v5125_v11, %s5253_s21 }
0x41f3   :  { %v5127_v45 = vpop.eup %5126 }
0x41f4   :  { %v3677_v53 = vadd.f32 1.0, %v5127_v45 }
0x41f6   :  { %5128 = vrcp.f32 %v3677_v53  ;;  %v3689_v12 = vand.u32 2147483648, %v3677_v53  ;;  %vm3683_vm10 = vweird.f32 %v3677_v53  ;;  %v3687_v1 = vand.u32 2147483647, %v3677_v53 }
0x41f8   :  { %v3690_v32 = vor.u32 1.1754944e-38, %v3689_v12  ;;  %vm3688_vm12 = vcmp.eq.f32.partialorder %v3687_v1, 8.507059e+37 }
0x41fa   :  { %3759 = vrot.lane.b32.xlu0 %v3757_v6, %s5254_s24 }
0x41fc   :  { %v5129_v5 = vpop.eup %5128 }
0x41fd   :  { %v3679_v30 = vmul.f32 %v5129_v5, %v3677_v53  ;;  %vm3684_vm9 = vweird.f32 %v5129_v5 }
0x41fe   :  { %vm3685_vm11 = vmor %vm3683_vm10, %vm3684_vm9 }
0x41ff   :  { %v3680_v25 = vsub.f32 1.0, %v3679_v30 }
0x4201   :  { %v3681_v20 = vmul.f32 %v5129_v5, %v3680_v25 }
0x4203   :  { %v3682_v51 = vadd.f32 %v5129_v5, %v3681_v20 }
0x4205   :  { %v3686_v35 = vsel %vm3685_vm11, %v5129_v5, %v3682_v51 }
0x4206   :  { %v3691_v40 = vsel %vm3688_vm12, %v3690_v32, %v3686_v35 }
0x4207   :  { %v3694_v16 = vmul.f32 %v3691_v40, %v6489_v14 }
0x4264   :  { %v3697_v60 = vpop.permute.xlu0 %3696 }
0x4265   :  { %v3699_v9 = vmul.f32 %v3697_v60, %v3691_v40 }
0x4267   :  { %3701 = vrot.lane.b32.xlu2 %v3699_v9, %s5254_s24 }
0x426c   :  { %v3760_v63 = vpop.permute.xlu0 %3759 }
0x426d   :  { %v6514_v57 = vadd.f32 %v3760_v63, %v3752_v44 }
0x426f   :  { %5130 = vtanh.f32 %v6514_v57 }
0x4275   :  { %v5131_v41 = vpop.eup %5130 }
0x4276   :  { %3765 = vrot.lane.b32.xlu2 %v5131_v41, %s5253_s21 }
0x42c1   :  { %v3702_v19 = vpop.permute.xlu2 %3701 }
0x42c2   :  { %v6519_v18 = vadd.f32 %v3702_v19, %v3694_v16 }
0x42c4   :  { %5132 = vtanh.f32 %v6519_v18 }
0x42ca   :  { %v5133_v48 = vpop.eup %5132 }
0x42cb   :  { %3707 = vrot.lane.b32.xlu1 %v5133_v48, %s5253_s21 }
0x42d0   :  { %v3766_v52 = vpop.permute.xlu2 %3765 }
0x42d1   :  { %v3768_v8 = vmul.f32 %v3766_v52, %v3749_v23 }
0x42d3   :  { %v3832_v59 = vpack.c.bf16 %v3768_v8, %v3768_v8  ;;  %3770 = vrot.lane.b32.xlu0 %v3768_v8, %s5254_s24 }
0x42d5   :  { %3834 = vrot.lane.b32.xlu2 %v3832_v59, %s5254_s24 }
0x432f   :  { %v3835_v26 = vpop.permute.xlu2 %3834 }
0x4330   :  { %4638 = vmatmul.msk.bf16.vlgmr.msra.gmra.mxu3 %vm290_vm4, %v3835_v26 }
0x4331   :  { %4329 = vmatpush.bf16.msra.mxu3 %v6334_v10 }
0x4335   :  { %4330 = vmatpush.bf16.msra.mxu3 %v6340_v56 }
0x433d   :  { %v3708_v14 = vpop.permute.xlu1 %3707 }
0x433e   :  { %v3710_v29 = vmul.f32 %v3708_v14, %v3691_v40 }
0x4340   :  { %3774 = vrot.lane.b32.xlu1 %v3710_v29, %s5253_s21 }
0x4345   :  { %v3771_v22 = vpop.permute.xlu0 %3770 }
0x43b2   :  { %v3775_v42 = vpop.permute.xlu1 %3774 }
0x43b3   :  { %v3777_v58 = vsel %vm290_vm4, %v3771_v22, %v3775_v42  ;;  %v3848_v13 = vpop.f32.mrf.mxu3 }
0x43b4   :  { %v3778_v4 = vpack.c.bf16 %v3777_v58, %v3777_v58  ;;  %v3852_v31 = vadd.f32 %v3848_v13, %v247_v43  ;;  %v6560_v43 = vld [vmem:[%s6725_s27] ss:$0 sm:$0xff] }
0x43b5   :  { %v228_v58 = vmul.f32 %v6560_v43, %v5940_v34  ;;  %v6567_v13 = vld [vmem:[%s6695_s14] ss:$0 sm:$0xff] }
0x43b6   :  { %5134 = vtanh.f32 %v3852_v31  ;;  %4636 = vmatmul.msk.bf16.vlgmr.msra.gmra.mxu2 %vm378_vm5, %v3778_v4  ;;  %v4639_v33 = vmul.f32 -1.442695, %v3852_v31 }
0x43b7   :  { %4270 = vmatpush.bf16.msra.mxu2 %v6392_v37  ;;  %v248_v4 = vadd.f32 %v6567_v13, %v228_v58 }
0x43b8   :  { %5136 = vpow2.f32 %v4639_v33 }
0x43bb   :  { %v3850_v10 = vpop.f32.mrf.mxu3  ;;  %4271 = vmatpush.bf16.msra.mxu2 %v6398_v49 }
0x43bc   :  { %v5135_v56 = vpop.eup %5134 }
0x43bd   :  { %3875 = vrot.lane.b32.xlu1 %v5135_v56, %s5253_s21 }
0x43be   :  { %v5137_v46 = vpop.eup %5136 }
0x43bf   :  { %4272 = vmatpush.bf16.msra.mxu2 %v6405_v55  ;;  %v3856_v24 = vadd.f32 1.0, %v5137_v46 }
0x43c1   :  { %5138 = vrcp.f32 %v3856_v24  ;;  %v3868_v28 = vand.u32 2147483648, %v3856_v24  ;;  %vm3862_vm14 = vweird.f32 %v3856_v24  ;;  %v3866_v17 = vand.u32 2147483647, %v3856_v24 }
0x43c3   :  { %4273 = vmatpush.bf16.msra.mxu2 %v6411_v2  ;;  %v3869_v50 = vor.u32 1.1754944e-38, %v3868_v28  ;;  %vm3867_vm0 = vcmp.eq.f32.partialorder %v3866_v17, 8.507059e+37 }
0x43c7   :  { %v5139_v15 = vpop.eup %5138 }
0x43c8   :  { %v3858_v36 = vmul.f32 %v5139_v15, %v3856_v24  ;;  %vm3863_vm13 = vweird.f32 %v5139_v15 }
0x43c9   :  { %vm3864_vm15 = vmor %vm3862_vm14, %vm3863_vm13 }
0x43ca   :  { %v3859_v7 = vsub.f32 1.0, %v3858_v36 }
0x43cc   :  { %v3860_v11 = vmul.f32 %v5139_v15, %v3859_v7 }
0x43ce   :  { %v3861_v47 = vadd.f32 %v5139_v15, %v3860_v11 }
0x43d0   :  { %v3865_v23 = vsel %vm3864_vm15, %v5139_v15, %v3861_v47 }
0x43d1   :  { %v3870_v45 = vsel %vm3867_vm0, %v3869_v50, %v3865_v23 }
0x43d2   :  { %v3873_v16 = vmul.f32 %v3870_v45, %v6514_v57 }
0x442f   :  { %v3876_v6 = vpop.permute.xlu1 %3875 }
0x4430   :  { %v3878_v53 = vmul.f32 %v3876_v6, %v3870_v45 }
0x4439   :  { %v3791_v3 = vpop.f32.mrf.mxu2 }
0x443a   :  { %v3792_v27 = vadd.f32 %v6417_v39, %v3791_v3 }
0x443c   :  { %5140 = vtanh.f32 %v3792_v27  ;;  %v4637_v5 = vmul.f32 -1.442695, %v3792_v27 }
0x443e   :  { %5142 = vpow2.f32 %v4637_v5 }
0x4441   :  { %v3793_v0 = vpop.f32.mrf.mxu2 }
0x4442   :  { %v5141_v54 = vpop.eup %5140 }
0x4443   :  { %3817 = vrot.lane.b32.xlu0 %v5141_v54, %s5253_s21 }
0x4444   :  { %v5143_v30 = vpop.eup %5142 }
0x4445   :  { %v3798_v25 = vadd.f32 1.0, %v5143_v30 }
0x4447   :  { %5144 = vrcp.f32 %v3798_v25  ;;  %v3810_v32 = vand.u32 2147483648, %v3798_v25  ;;  %vm3804_vm2 = vweird.f32 %v3798_v25  ;;  %v3808_v60 = vand.u32 2147483647, %v3798_v25 }
0x4449   :  { %v3811_v9 = vor.u32 1.1754944e-38, %v3810_v32  ;;  %vm3809_vm6 = vcmp.eq.f32.partialorder %v3808_v60, 8.507059e+37 }
0x444b   :  { %3880 = vrot.lane.b32.xlu0 %v3878_v53, %s5254_s24 }
0x444d   :  { %v5145_v20 = vpop.eup %5144 }
0x444e   :  { %v3800_v51 = vmul.f32 %v5145_v20, %v3798_v25  ;;  %vm3805_vm1 = vweird.f32 %v5145_v20 }
0x444f   :  { %vm3806_vm3 = vmor %vm3804_vm2, %vm3805_vm1 }
0x4450   :  { %v3801_v12 = vsub.f32 1.0, %v3800_v51 }
0x4452   :  { %v3802_v1 = vmul.f32 %v5145_v20, %v3801_v12 }
0x4454   :  { %v3803_v35 = vadd.f32 %v5145_v20, %v3802_v1 }
0x4456   :  { %v3807_v40 = vsel %vm3806_vm3, %v5145_v20, %v3803_v35 }
0x4457   :  { %v3812_v63 = vsel %vm3809_vm6, %v3811_v9, %v3807_v40 }
0x4458   :  { %v3815_v8 = vmul.f32 %v3812_v63, %v6519_v18 }
0x44b5   :  { %v3818_v44 = vpop.permute.xlu0 %3817 }
0x44b6   :  { %v3820_v41 = vmul.f32 %v3818_v44, %v3812_v63 }
0x44b8   :  { %3822 = vrot.lane.b32.xlu2 %v3820_v41, %s5254_s24 }
0x44bd   :  { %v3881_v19 = vpop.permute.xlu0 %3880 }
0x44be   :  { %v6544_v48 = vadd.f32 %v3881_v19, %v3873_v16 }
0x44c0   :  { %5146 = vtanh.f32 %v6544_v48 }
0x44c6   :  { %v5147_v52 = vpop.eup %5146 }
0x44c7   :  { %3886 = vrot.lane.b32.xlu2 %v5147_v52, %s5253_s21 }
0x4512   :  { %v3823_v59 = vpop.permute.xlu2 %3822 }
0x4513   :  { %v6549_v26 = vadd.f32 %v3823_v59, %v3815_v8 }
0x4515   :  { %5148 = vtanh.f32 %v6549_v26 }
0x451b   :  { %v5149_v14 = vpop.eup %5148 }
0x451c   :  { %3828 = vrot.lane.b32.xlu1 %v5149_v14, %s5253_s21 }
0x4521   :  { %v3887_v29 = vpop.permute.xlu2 %3886 }
0x4522   :  { %v3889_v57 = vmul.f32 %v3887_v29, %v3870_v45 }
0x4524   :  { %v3953_v21 = vpack.c.bf16 %v3889_v57, %v3889_v57  ;;  %3891 = vrot.lane.b32.xlu0 %v3889_v57, %s5254_s24 }
0x4526   :  { %3955 = vrot.lane.b32.xlu2 %v3953_v21, %s5254_s24 }
0x4580   :  { %v3956_v22 = vpop.permute.xlu2 %3955 }
0x4581   :  { %4642 = vmatmul.msk.bf16.vlgmr.msrb.gmra.mxu1 %vm290_vm4, %v3956_v22 }
0x458e   :  { %v3829_v42 = vpop.permute.xlu1 %3828 }
0x458f   :  { %v3831_v18 = vmul.f32 %v3829_v42, %v3812_v63 }
0x4591   :  { %3895 = vrot.lane.b32.xlu1 %v3831_v18, %s5253_s21  ;;  %v229_v18 = vmul.f32 %v6560_v43, %v5974_v61 }
0x4596   :  { %v3892_v56 = vpop.permute.xlu0 %3891 }
0x45fe   :  { %v3969_v31 = vpop.f32.mrf.mxu1 }
0x45ff   :  { %v3973_v10 = vadd.f32 %v3969_v31, %v248_v4  ;;  %v249_v31 = vadd.f32 %v6567_v13, %v229_v18 }
0x4601   :  { %5150 = vtanh.f32 %v3973_v10  ;;  %v4643_v34 = vmul.f32 -1.442695, %v3973_v10 }
0x4603   :  { %v3896_v33 = vpop.permute.xlu1 %3895  ;;  %5152 = vpow2.f32 %v4643_v34 }
0x4604   :  { %v3898_v46 = vsel %vm290_vm4, %v3892_v56, %v3896_v33 }
0x4605   :  { %v3899_v24 = vpack.c.bf16 %v3898_v46, %v3898_v46 }
0x4606   :  { %v3971_v15 = vpop.f32.mrf.mxu1 }
0x4607   :  { %v5151_v36 = vpop.eup %5150  ;;  %4640 = vmatmul.msk.bf16.vlgmr.msrb.gmra.mxu0 %vm378_vm5, %v3899_v24 }
0x4608   :  { %3996 = vrot.lane.b32.xlu1 %v5151_v36, %s5253_s21  ;;  %4391 = vmatpush.bf16.msrb.mxu0 %v6392_v37 }
0x4609   :  { %v5153_v7 = vpop.eup %5152 }
0x460a   :  { %v3977_v3 = vadd.f32 1.0, %v5153_v7 }
0x460c   :  { %4392 = vmatpush.bf16.msrb.mxu0 %v6398_v49  ;;  %5154 = vrcp.f32 %v3977_v3  ;;  %vm3983_vm8 = vweird.f32 %v3977_v3 }
0x4610   :  { %4393 = vmatpush.bf16.msrb.mxu0 %v6405_v55  ;;  %v3989_v55 = vand.u32 2147483648, %v3977_v3 }
0x4612   :  { %v5155_v27 = vpop.eup %5154  ;;  %v3990_v50 = vor.u32 1.1754944e-38, %v3989_v55 }
0x4613   :  { %v3979_v11 = vmul.f32 %v5155_v27, %v3977_v3  ;;  %vm3984_vm7 = vweird.f32 %v5155_v27 }
0x4614   :  { %4394 = vmatpush.bf16.msrb.mxu0 %v6411_v2  ;;  %v3987_v2 = vand.u32 2147483647, %v3977_v3  ;;  %vm3985_vm9 = vmor %vm3983_vm8, %vm3984_vm7 }
0x4615   :  { %v3980_v47 = vsub.f32 1.0, %v3979_v11 }
0x4616   :  { %vm3988_vm10 = vcmp.eq.f32.partialorder %v3987_v2, 8.507059e+37 }
0x4617   :  { %v3981_v28 = vmul.f32 %v5155_v27, %v3980_v47  ;;  %v6604_v47 = vld [vmem:[%s6707_s17] ss:$0 sm:$0xff] }
0x4619   :  { %v3982_v37 = vadd.f32 %v5155_v27, %v3981_v28 }
0x461b   :  { %v3986_v23 = vsel %vm3985_vm9, %v5155_v27, %v3982_v37 }
0x461c   :  { %v3991_v45 = vsel %vm3988_vm10, %v3990_v50, %v3986_v23 }
0x461d   :  { %v3994_v41 = vmul.f32 %v3991_v45, %v6544_v48 }
0x467a   :  { %v3997_v6 = vpop.permute.xlu1 %3996 }
0x467b   :  { %v3999_v53 = vmul.f32 %v3997_v6, %v3991_v45 }
0x4684   :  { %v3912_v0 = vpop.f32.mrf.mxu0 }
0x4685   :  { %v3913_v54 = vadd.f32 %v6417_v39, %v3912_v0 }
0x4687   :  { %5156 = vtanh.f32 %v3913_v54  ;;  %v4641_v39 = vmul.f32 -1.442695, %v3913_v54 }
0x4689   :  { %5158 = vpow2.f32 %v4641_v39 }
0x468c   :  { %v3914_v49 = vpop.f32.mrf.mxu0 }
0x468d   :  { %v5157_v17 = vpop.eup %5156 }
0x468e   :  { %3938 = vrot.lane.b32.xlu0 %v5157_v17, %s5253_s21 }
0x468f   :  { %v5159_v5 = vpop.eup %5158 }
0x4690   :  { %v3919_v30 = vadd.f32 1.0, %v5159_v5 }
0x4692   :  { %5160 = vrcp.f32 %v3919_v30  ;;  %v3931_v35 = vand.u32 2147483648, %v3919_v30  ;;  %vm3925_vm12 = vweird.f32 %v3919_v30  ;;  %v3929_v32 = vand.u32 2147483647, %v3919_v30 }
0x4694   :  { %v3932_v40 = vor.u32 1.1754944e-38, %v3931_v35  ;;  %vm3930_vm14 = vcmp.eq.f32.partialorder %v3929_v32, 8.507059e+37 }
0x4696   :  { %4001 = vrot.lane.b32.xlu0 %v3999_v53, %s5254_s24 }
0x4698   :  { %v5161_v25 = vpop.eup %5160 }
0x4699   :  { %v3921_v20 = vmul.f32 %v5161_v25, %v3919_v30  ;;  %vm3926_vm11 = vweird.f32 %v5161_v25 }
0x469a   :  { %vm3927_vm13 = vmor %vm3925_vm12, %vm3926_vm11 }
0x469b   :  { %v3922_v51 = vsub.f32 1.0, %v3921_v20 }
0x469d   :  { %v3923_v12 = vmul.f32 %v5161_v25, %v3922_v51 }
0x469f   :  { %v3924_v1 = vadd.f32 %v5161_v25, %v3923_v12 }
0x46a1   :  { %v3928_v60 = vsel %vm3927_vm13, %v5161_v25, %v3924_v1 }
0x46a2   :  { %v3933_v44 = vsel %vm3930_vm14, %v3932_v40, %v3928_v60 }
0x46a3   :  { %v3936_v8 = vmul.f32 %v3933_v44, %v6549_v26 }
0x4700   :  { %v3939_v9 = vpop.permute.xlu0 %3938 }
0x4701   :  { %v3941_v63 = vmul.f32 %v3939_v9, %v3933_v44 }
0x4703   :  { %3943 = vrot.lane.b32.xlu2 %v3941_v63, %s5254_s24 }
0x4708   :  { %v4002_v16 = vpop.permute.xlu0 %4001 }
0x4709   :  { %v6582_v19 = vadd.f32 %v4002_v16, %v3994_v41 }
0x470b   :  { %5162 = vtanh.f32 %v6582_v19 }
0x4711   :  { %v5163_v52 = vpop.eup %5162 }
0x4712   :  { %4007 = vrot.lane.b32.xlu2 %v5163_v52, %s5253_s21 }
0x475d   :  { %v3944_v59 = vpop.permute.xlu2 %3943 }
0x475e   :  { %v6587_v14 = vadd.f32 %v3944_v59, %v3936_v8 }
0x4760   :  { %5164 = vtanh.f32 %v6587_v14 }
0x4766   :  { %v5165_v29 = vpop.eup %5164 }
0x4767   :  { %3949 = vrot.lane.b32.xlu1 %v5165_v29, %s5253_s21 }
0x476c   :  { %v4008_v57 = vpop.permute.xlu2 %4007 }
0x476d   :  { %v4010_v48 = vmul.f32 %v4008_v57, %v3991_v45 }
0x476f   :  { %v4074_v21 = vpack.c.bf16 %v4010_v48, %v4010_v48  ;;  %4012 = vrot.lane.b32.xlu0 %v4010_v48, %s5254_s24 }
0x4771   :  { %4076 = vrot.lane.b32.xlu2 %v4074_v21, %s5254_s24 }
0x47cb   :  { %v4077_v22 = vpop.permute.xlu2 %4076 }
0x47cc   :  { %4646 = vmatmul.msk.bf16.vlgmr.msrb.gmra.mxu3 %vm290_vm4, %v4077_v22 }
0x47d9   :  { %v3950_v42 = vpop.permute.xlu1 %3949 }
0x47da   :  { %v3952_v26 = vmul.f32 %v3950_v42, %v3933_v44 }
0x47dc   :  { %4016 = vrot.lane.b32.xlu1 %v3952_v26, %s5253_s21  ;;  %v230_v26 = vmul.f32 %v6560_v43, %v6003_v38 }
0x47de   :  { %v250_v18 = vadd.f32 %v6567_v13, %v230_v26 }
0x47e1   :  { %v4013_v58 = vpop.permute.xlu0 %4012 }
0x484e   :  { %v4017_v4 = vpop.permute.xlu1 %4016 }
0x484f   :  { %v4019_v10 = vsel %vm290_vm4, %v4013_v58, %v4017_v4  ;;  %v4090_v56 = vpop.f32.mrf.mxu3 }
0x4850   :  { %v4020_v33 = vpack.c.bf16 %v4019_v10, %v4019_v10  ;;  %v4094_v46 = vadd.f32 %v4090_v56, %v249_v31 }
0x4852   :  { %5166 = vtanh.f32 %v4094_v46  ;;  %4644 = vmatmul.msk.bf16.vlgmr.msrb.gmra.mxu2 %vm378_vm5, %v4020_v33  ;;  %v4647_v36 = vmul.f32 -1.442695, %v4094_v46 }
0x4854   :  { %5168 = vpow2.f32 %v4647_v36 }
0x4857   :  { %v4092_v24 = vpop.f32.mrf.mxu3 }
0x4858   :  { %v5167_v15 = vpop.eup %5166 }
0x4859   :  { %4117 = vrot.lane.b32.xlu1 %v5167_v15, %s5253_s21 }
0x485a   :  { %v5169_v34 = vpop.eup %5168 }
0x485b   :  { %v4098_v61 = vadd.f32 1.0, %v5169_v34 }
0x485d   :  { %5170 = vrcp.f32 %v4098_v61  ;;  %v4110_v17 = vand.u32 2147483648, %v4098_v61  ;;  %vm4104_vm0 = vweird.f32 %v4098_v61  ;;  %v4108_v55 = vand.u32 2147483647, %v4098_v61 }
0x485f   :  { %v4111_v6 = vor.u32 1.1754944e-38, %v4110_v17  ;;  %vm4109_vm2 = vcmp.eq.f32.partialorder %v4108_v55, 8.507059e+37 }
0x4863   :  { %v5171_v7 = vpop.eup %5170 }
0x4864   :  { %v4100_v3 = vmul.f32 %v5171_v7, %v4098_v61  ;;  %vm4105_vm15 = vweird.f32 %v5171_v7 }
0x4865   :  { %vm4106_vm1 = vmor %vm4104_vm0, %vm4105_vm15 }
0x4866   :  { %v4101_v27 = vsub.f32 1.0, %v4100_v3 }
0x4868   :  { %v4102_v54 = vmul.f32 %v5171_v7, %v4101_v27 }
0x486a   :  { %v4103_v28 = vadd.f32 %v5171_v7, %v4102_v54 }
0x486c   :  { %v4107_v2 = vsel %vm4106_vm1, %v5171_v7, %v4103_v28 }
0x486d   :  { %v4112_v50 = vsel %vm4109_vm2, %v4111_v6, %v4107_v2 }
0x486e   :  { %v4115_v63 = vmul.f32 %v4112_v50, %v6582_v19 }
0x48cb   :  { %v4118_v23 = vpop.permute.xlu1 %4117 }
0x48cc   :  { %v4120_v45 = vmul.f32 %v4118_v23, %v4112_v50 }
0x48d5   :  { %v4033_v11 = vpop.f32.mrf.mxu2 }
0x48d6   :  { %v4034_v0 = vadd.f32 %v6604_v47, %v4033_v11 }
0x48d8   :  { %5172 = vtanh.f32 %v4034_v0  ;;  %v4645_v53 = vmul.f32 -1.442695, %v4034_v0 }
0x48da   :  { %5174 = vpow2.f32 %v4645_v53 }
0x48dd   :  { %v4035_v37 = vpop.f32.mrf.mxu2 }
0x48de   :  { %v5173_v49 = vpop.eup %5172 }
0x48df   :  { %4059 = vrot.lane.b32.xlu0 %v5173_v49, %s5253_s21 }
0x48e0   :  { %v5175_v39 = vpop.eup %5174 }
0x48e1   :  { %v4040_v5 = vadd.f32 1.0, %v5175_v39 }
0x48e3   :  { %5176 = vrcp.f32 %v4040_v5  ;;  %v4052_v1 = vand.u32 2147483648, %v4040_v5  ;;  %vm4046_vm6 = vweird.f32 %v4040_v5  ;;  %v4050_v35 = vand.u32 2147483647, %v4040_v5 }
0x48e5   :  { %v4053_v60 = vor.u32 1.1754944e-38, %v4052_v1  ;;  %vm4051_vm8 = vcmp.eq.f32.partialorder %v4050_v35, 8.507059e+37 }
0x48e7   :  { %4122 = vrot.lane.b32.xlu0 %v4120_v45, %s5254_s24 }
0x48e9   :  { %v5177_v30 = vpop.eup %5176 }
0x48ea   :  { %v4042_v25 = vmul.f32 %v5177_v30, %v4040_v5  ;;  %vm4047_vm3 = vweird.f32 %v5177_v30 }
0x48eb   :  { %vm4048_vm7 = vmor %vm4046_vm6, %vm4047_vm3 }
0x48ec   :  { %v4043_v20 = vsub.f32 1.0, %v4042_v25 }
0x48ee   :  { %v4044_v51 = vmul.f32 %v5177_v30, %v4043_v20 }
0x48f0   :  { %v4045_v12 = vadd.f32 %v5177_v30, %v4044_v51 }
0x48f2   :  { %v4049_v32 = vsel %vm4048_vm7, %v5177_v30, %v4045_v12 }
0x48f3   :  { %v4054_v9 = vsel %vm4051_vm8, %v4053_v60, %v4049_v32 }
0x48f4   :  { %v4057_v8 = vmul.f32 %v4054_v9, %v6587_v14 }
0x4951   :  { %v4060_v40 = vpop.permute.xlu0 %4059 }
0x4952   :  { %v4062_v44 = vmul.f32 %v4060_v40, %v4054_v9 }
0x4954   :  { %4064 = vrot.lane.b32.xlu2 %v4062_v44, %s5254_s24 }
0x4959   :  { %v4123_v41 = vpop.permute.xlu0 %4122 }
0x495a   :  { %v6611_v16 = vadd.f32 %v4123_v41, %v4115_v63 }
0x495c   :  { %5178 = vtanh.f32 %v6611_v16 }
0x4962   :  { %v5179_v52 = vpop.eup %5178 }
0x4963   :  { %4128 = vrot.lane.b32.xlu2 %v5179_v52, %s5253_s21 }
0x49ae   :  { %v4065_v59 = vpop.permute.xlu2 %4064 }
0x49af   :  { %v6616_v29 = vadd.f32 %v4065_v59, %v4057_v8 }
0x49b1   :  { %5180 = vtanh.f32 %v6616_v29 }
0x49b7   :  { %v5181_v57 = vpop.eup %5180 }
0x49b8   :  { %4070 = vrot.lane.b32.xlu1 %v5181_v57, %s5253_s21 }
0x49bd   :  { %v4129_v48 = vpop.permute.xlu2 %4128 }
0x49be   :  { %v4131_v19 = vmul.f32 %v4129_v48, %v4112_v50 }
0x49c0   :  { %v4195_v21 = vpack.c.bf16 %v4131_v19, %v4131_v19  ;;  %4133 = vrot.lane.b32.xlu0 %v4131_v19, %s5254_s24 }
0x49c2   :  { %4197 = vrot.lane.b32.xlu2 %v4195_v21, %s5254_s24 }
0x4a1c   :  { %v4198_v22 = vpop.permute.xlu2 %4197 }
0x4a1d   :  { %4650 = vmatmul.msk.bf16.vlgmr.msra.gmra.mxu1 %vm290_vm4, %v4198_v22 }
0x4a2a   :  { %v4071_v42 = vpop.permute.xlu1 %4070 }
0x4a2b   :  { %v4073_v14 = vmul.f32 %v4071_v42, %v4054_v9  ;;  %v231_v42 = vmul.f32 %v6560_v43, %v6032_v62 }
0x4a2d   :  { %4137 = vrot.lane.b32.xlu1 %v4073_v14, %s5253_s21 }
0x4a32   :  { %v4134_v31 = vpop.permute.xlu0 %4133 }
0x4a9a   :  { %v4211_v58 = vpop.f32.mrf.mxu1 }
0x4a9b   :  { %v4215_v4 = vadd.f32 %v4211_v58, %v250_v18  ;;  %v251_v18 = vadd.f32 %v6567_v13, %v231_v42 }
0x4a9d   :  { %5182 = vtanh.f32 %v4215_v4  ;;  %v4651_v15 = vmul.f32 -1.442695, %v4215_v4 }
0x4a9f   :  { %v4138_v10 = vpop.permute.xlu1 %4137  ;;  %5184 = vpow2.f32 %v4651_v15 }
0x4aa0   :  { %v4140_v56 = vsel %vm290_vm4, %v4134_v31, %v4138_v10 }
0x4aa1   :  { %v4141_v33 = vpack.c.bf16 %v4140_v56, %v4140_v56 }
0x4aa2   :  { %v4213_v46 = vpop.f32.mrf.mxu1 }
0x4aa3   :  { %v5183_v24 = vpop.eup %5182  ;;  %4648 = vmatmul.msk.bf16.vlgmr.msra.gmra.mxu0 %vm378_vm5, %v4141_v33 }
0x4aa4   :  { %4238 = vrot.lane.b32.xlu1 %v5183_v24, %s5253_s21 }
0x4aa5   :  { %v5185_v36 = vpop.eup %5184 }
0x4aa6   :  { %v4219_v38 = vadd.f32 1.0, %v5185_v36 }
0x4aa8   :  { %5186 = vrcp.f32 %v4219_v38  ;;  %v4231_v37 = vand.u32 2147483648, %v4219_v38  ;;  %vm4225_vm10 = vweird.f32 %v4219_v38  ;;  %v4229_v49 = vand.u32 2147483647, %v4219_v38 }
0x4aaa   :  { %v4232_v2 = vor.u32 1.1754944e-38, %v4231_v37  ;;  %vm4230_vm12 = vcmp.eq.f32.partialorder %v4229_v49, 8.507059e+37 }
0x4aae   :  { %v5187_v34 = vpop.eup %5186 }
0x4aaf   :  { %v4221_v61 = vmul.f32 %v5187_v34, %v4219_v38  ;;  %vm4226_vm9 = vweird.f32 %v5187_v34 }
0x4ab0   :  { %vm4227_vm11 = vmor %vm4225_vm10, %vm4226_vm9 }
0x4ab1   :  { %v4222_v7 = vsub.f32 1.0, %v4221_v61 }
0x4ab3   :  { %v4223_v11 = vmul.f32 %v5187_v34, %v4222_v7 }
0x4ab5   :  { %v4224_v0 = vadd.f32 %v5187_v34, %v4223_v11 }
0x4ab7   :  { %v4228_v17 = vsel %vm4227_vm11, %v5187_v34, %v4224_v0 }
0x4ab8   :  { %v4233_v23 = vsel %vm4230_vm12, %v4232_v2, %v4228_v17 }
0x4ab9   :  { %v4236_v9 = vmul.f32 %v4233_v23, %v6611_v16 }
0x4b16   :  { %v4239_v55 = vpop.permute.xlu1 %4238 }
0x4b17   :  { %v4241_v6 = vmul.f32 %v4239_v55, %v4233_v23 }
0x4b20   :  { %v4154_v3 = vpop.f32.mrf.mxu0 }
0x4b21   :  { %v4155_v27 = vadd.f32 %v6604_v47, %v4154_v3 }
0x4b23   :  { %5188 = vtanh.f32 %v4155_v27  ;;  %v4649_v50 = vmul.f32 -1.442695, %v4155_v27 }
0x4b25   :  { %5190 = vpow2.f32 %v4649_v50 }
0x4b28   :  { %v4156_v54 = vpop.f32.mrf.mxu0 }
0x4b29   :  { %v5189_v28 = vpop.eup %5188 }
0x4b2a   :  { %4180 = vrot.lane.b32.xlu0 %v5189_v28, %s5253_s21 }
0x4b2b   :  { %v5191_v45 = vpop.eup %5190 }
0x4b2c   :  { %v4161_v53 = vadd.f32 1.0, %v5191_v45 }
0x4b2e   :  { %5192 = vrcp.f32 %v4161_v53  ;;  %v4173_v51 = vand.u32 2147483648, %v4161_v53  ;;  %vm4167_vm14 = vweird.f32 %v4161_v53  ;;  %v4171_v12 = vand.u32 2147483647, %v4161_v53 }
0x4b30   :  { %v4174_v35 = vor.u32 1.1754944e-38, %v4173_v51  ;;  %vm4172_vm0 = vcmp.eq.f32.partialorder %v4171_v12, 8.507059e+37 }
0x4b32   :  { %4243 = vrot.lane.b32.xlu0 %v4241_v6, %s5254_s24 }
0x4b34   :  { %v5193_v39 = vpop.eup %5192 }
0x4b35   :  { %v4163_v5 = vmul.f32 %v5193_v39, %v4161_v53  ;;  %vm4168_vm13 = vweird.f32 %v5193_v39 }
0x4b36   :  { %vm4169_vm15 = vmor %vm4167_vm14, %vm4168_vm13  ;;  %vm4470_vm14 = vcmask 7168  }
0x4b37   :  { %v4164_v30 = vsub.f32 1.0, %v4163_v5 }
0x4b39   :  { %v4165_v25 = vmul.f32 %v5193_v39, %v4164_v30 }
0x4b3b   :  { %v4166_v20 = vadd.f32 %v5193_v39, %v4165_v25 }
0x4b3d   :  { %v4170_v1 = vsel %vm4169_vm15, %v5193_v39, %v4166_v20 }
0x4b3e   :  { %v4175_v60 = vsel %vm4172_vm0, %v4174_v35, %v4170_v1 }
0x4b3f   :  { %v4178_v52 = vmul.f32 %v4175_v60, %v6616_v29 }
0x4b9c   :  { %v4181_v32 = vpop.permute.xlu0 %4180 }
0x4b9d   :  { %v4183_v40 = vmul.f32 %v4181_v32, %v4175_v60 }
0x4b9f   :  { %4185 = vrot.lane.b32.xlu2 %v4183_v40, %s5254_s24 }
0x4ba4   :  { %v4244_v44 = vpop.permute.xlu0 %4243 }
0x4ba5   :  { %v6635_v63 = vadd.f32 %v4244_v44, %v4236_v9 }
0x4ba7   :  { %5194 = vtanh.f32 %v6635_v63 }
0x4bad   :  { %v5195_v41 = vpop.eup %5194 }
0x4bae   :  { %4249 = vrot.lane.b32.xlu2 %v5195_v41, %s5253_s21 }
0x4bf9   :  { %v4186_v8 = vpop.permute.xlu2 %4185 }
0x4bfa   :  { %v6640_v59 = vadd.f32 %v4186_v8, %v4178_v52 }
0x4bfc   :  { %5196 = vtanh.f32 %v6640_v59 }
0x4c02   :  { %v5197_v57 = vpop.eup %5196 }
0x4c03   :  { %4191 = vrot.lane.b32.xlu1 %v5197_v57, %s5253_s21 }
0x4c08   :  { %v4250_v48 = vpop.permute.xlu2 %4249 }
0x4c09   :  { %v4252_v16 = vmul.f32 %v4250_v48, %v4233_v23 }
0x4c0b   :  { %v4316_v19 = vpack.c.bf16 %v4252_v16, %v4252_v16  ;;  %4254 = vrot.lane.b32.xlu0 %v4252_v16, %s5254_s24 }
0x4c0d   :  { %4318 = vrot.lane.b32.xlu2 %v4316_v19, %s5254_s24 }
0x4c67   :  { %v4319_v21 = vpop.permute.xlu2 %4318 }
0x4c68   :  { %4654 = vmatmul.msk.bf16.vlgmr.msra.gmra.mxu3 %vm290_vm4, %v4319_v21 }
0x4c75   :  { %v4192_v22 = vpop.permute.xlu1 %4191 }
0x4c76   :  { %v4194_v29 = vmul.f32 %v4192_v22, %v4175_v60 }
0x4c78   :  { %4258 = vrot.lane.b32.xlu1 %v4194_v29, %s5253_s21 }
0x4c7d   :  { %v4255_v14 = vpop.permute.xlu0 %4254 }
0x4cea   :  { %v4259_v26 = vpop.permute.xlu1 %4258 }
0x4ceb   :  { %v4261_v58 = vsel %vm290_vm4, %v4255_v14, %v4259_v26  ;;  %v4332_v4 = vpop.f32.mrf.mxu3 }
0x4cec   :  { %v4262_v31 = vpack.c.bf16 %v4261_v58, %v4261_v58  ;;  %v4336_v10 = vadd.f32 %v4332_v4, %v251_v18 }
0x4cee   :  { %5198 = vtanh.f32 %v4336_v10  ;;  %4652 = vmatmul.msk.bf16.vlgmr.msra.gmra.mxu2 %vm378_vm5, %v4262_v31  ;;  %v4655_v46 = vmul.f32 -1.442695, %v4336_v10 }
0x4cf0   :  { %5200 = vpow2.f32 %v4655_v46 }
0x4cf3   :  { %v4334_v56 = vpop.f32.mrf.mxu3 }
0x4cf4   :  { %v5199_v33 = vpop.eup %5198 }
0x4cf5   :  { %4359 = vrot.lane.b32.xlu1 %v5199_v33, %s5253_s21 }
0x4cf6   :  { %v5201_v24 = vpop.eup %5200 }
0x4cf7   :  { %v4340_v62 = vadd.f32 1.0, %v5201_v24 }
0x4cf9   :  { %5202 = vrcp.f32 %v4340_v62  ;;  %v4352_v27 = vand.u32 2147483648, %v4340_v62  ;;  %vm4346_vm2 = vweird.f32 %v4340_v62  ;;  %v4350_v11 = vand.u32 2147483647, %v4340_v62 }
0x4cfb   :  { %v4353_v28 = vor.u32 1.1754944e-38, %v4352_v27  ;;  %vm4351_vm6 = vcmp.eq.f32.partialorder %v4350_v11, 8.507059e+37  ;;  %v4437_v27 = vld [vmem:[%s6708_s18] sm:$0xff] }
0x4cff   :  { %v5203_v43 = vpop.eup %5202 }
0x4d00   :  { %v4342_v15 = vmul.f32 %v5203_v43, %v4340_v62  ;;  %vm4347_vm1 = vweird.f32 %v5203_v43 }
0x4d01   :  { %vm4348_vm3 = vmor %vm4346_vm2, %vm4347_vm1 }
0x4d02   :  { %v4343_v13 = vsub.f32 1.0, %v4342_v15 }
0x4d04   :  { %v4344_v34 = vmul.f32 %v5203_v43, %v4343_v13 }
0x4d06   :  { %v4345_v61 = vadd.f32 %v5203_v43, %v4344_v34 }
0x4d08   :  { %v4349_v0 = vsel %vm4348_vm3, %v5203_v43, %v4345_v61  ;;  %v4440_v61 = vld [vmem:[%s6708_s18 + $0x18] sm:$0xff] }
0x4d09   :  { %v4354_v37 = vsel %vm4351_vm6, %v4353_v28, %v4349_v0  ;;  %4462 = vmatpush.msrb.mxu1 %v4440_v61 }
0x4d0a   :  { %v4357_v1 = vmul.f32 %v4354_v37, %v6635_v63 }
0x4d67   :  { %v4360_v54 = vpop.permute.xlu1 %4359 }
0x4d68   :  { %v4362_v49 = vmul.f32 %v4360_v54, %v4354_v37  ;;  %v25_v54 = vstv %s6709_s19 }
0x4d69   :  { %26 = vst [vmem:[#allocation2] sm:$0x1] %v25_v54 }
0x4d71   :  { %v4275_v36 = vpop.f32.mrf.mxu2 }
0x4d72   :  { %v4276_v38 = vadd.f32 %v6604_v47, %v4275_v36 }
0x4d74   :  { %5204 = vtanh.f32 %v4276_v38  ;;  %v4653_v17 = vmul.f32 -1.442695, %v4276_v38 }
0x4d76   :  { %5206 = vpow2.f32 %v4653_v17 }
0x4d79   :  { %v4277_v7 = vpop.f32.mrf.mxu2 }
0x4d7a   :  { %v5205_v3 = vpop.eup %5204  ;;  %v4439_v7 = vld [vmem:[%s6708_s18 + $0x10] sm:$0xff] }
0x4d7b   :  { %4301 = vrot.lane.b32.xlu0 %v5205_v3, %s5253_s21  ;;  %v4438_v3 = vld [vmem:[%s6708_s18 + $0x8] sm:$0xff]  ;;  %4463 = vmatpush.msrb.mxu1 %v4439_v7 }
0x4d7c   :  { %v5207_v55 = vpop.eup %5206 }
0x4d7d   :  { %v4282_v2 = vadd.f32 1.0, %v5207_v55  ;;  %4464 = vmatpush.msrb.mxu1 %v4438_v3 }
0x4d7f   :  { %5208 = vrcp.f32 %v4282_v2  ;;  %v4294_v39 = vand.u32 2147483648, %v4282_v2  ;;  %vm4288_vm8 = vweird.f32 %v4282_v2  ;;  %v4292_v5 = vand.u32 2147483647, %v4282_v2  ;;  %4465 = vmatpush.msrb.mxu1 %v4437_v27 }
0x4d81   :  { %v4295_v25 = vor.u32 1.1754944e-38, %v4294_v39  ;;  %vm4293_vm10 = vcmp.eq.f32.partialorder %v4292_v5, 8.507059e+37 }
0x4d83   :  { %4364 = vrot.lane.b32.xlu0 %v4362_v49, %s5254_s24 }
0x4d85   :  { %v5209_v23 = vpop.eup %5208 }
0x4d86   :  { %v4284_v6 = vmul.f32 %v5209_v23, %v4282_v2  ;;  %vm4289_vm7 = vweird.f32 %v5209_v23 }
0x4d87   :  { %vm4290_vm9 = vmor %vm4288_vm8, %vm4289_vm7 }
0x4d88   :  { %v4285_v50 = vsub.f32 1.0, %v4284_v6 }
0x4d8a   :  { %v4286_v45 = vmul.f32 %v5209_v23, %v4285_v50 }
0x4d8c   :  { %v4287_v53 = vadd.f32 %v5209_v23, %v4286_v45 }
0x4d8e   :  { %v4291_v30 = vsel %vm4290_vm9, %v5209_v23, %v4287_v53 }
0x4d8f   :  { %v4296_v51 = vsel %vm4293_vm10, %v4295_v25, %v4291_v30 }
0x4d90   :  { %v4299_v40 = vmul.f32 %v4296_v51, %v6640_v59 }
0x4ded   :  { %v4302_v20 = vpop.permute.xlu0 %4301 }
0x4dee   :  { %v4304_v12 = vmul.f32 %v4302_v20, %v4296_v51 }
0x4df0   :  { %4306 = vrot.lane.b32.xlu2 %v4304_v12, %s5254_s24 }
0x4df5   :  { %v4365_v35 = vpop.permute.xlu0 %4364 }
0x4df6   :  { %v4367_v32 = vadd.f32 %v4365_v35, %v4357_v1 }
0x4df8   :  { %5210 = vtanh.f32 %v4367_v32 }
0x4dfe   :  { %v5211_v60 = vpop.eup %5210 }
0x4dff   :  { %4370 = vrot.lane.b32.xlu2 %v5211_v60, %s5253_s21 }
0x4e4a   :  { %v4307_v9 = vpop.permute.xlu2 %4306 }
0x4e4b   :  { %v4309_v44 = vadd.f32 %v4307_v9, %v4299_v40 }
0x4e4d   :  { %5212 = vtanh.f32 %v4309_v44 }
0x4e53   :  { %v5213_v41 = vpop.eup %5212 }
0x4e54   :  { %4312 = vrot.lane.b32.xlu1 %v5213_v41, %s5253_s21 }
0x4e59   :  { %v4371_v52 = vpop.permute.xlu2 %4370 }
0x4e5a   :  { %v4373_v8 = vmul.f32 %v4371_v52, %v4354_v37  ;;  %v4691_v37 = vld [vmem:[#allocation2] ss:$0 sm:$0xff] }
0x4e5c   :  { %4375 = vrot.lane.b32.xlu0 %v4373_v8, %s5254_s24 }
0x4ec6   :  { %v4313_v57 = vpop.permute.xlu1 %4312 }
0x4ec7   :  { %v4315_v63 = vmul.f32 %v4313_v57, %v4296_v51 }
0x4ec9   :  { %4379 = vrot.lane.b32.xlu1 %v4315_v63, %s5253_s21 }
0x4ece   :  { %v4376_v48 = vpop.permute.xlu0 %4375 }
0x4f3b   :  { %v4380_v16 = vpop.permute.xlu1 %4379 }
0x4f3c   :  { %v4382_v19 = vsel %vm290_vm4, %v4376_v48, %v4380_v16 }
0x4f3d   :  { %v4383_v21 = vpack.c.bf16 %v4382_v19, %v4382_v19 }
0x4f3f   :  { %4656 = vmatmul.msk.bf16.vlgmr.msrb.gmra.mxu0 %vm378_vm5, %v4383_v21 }
0x4fbc   :  { %v4396_v59 = vpop.f32.mrf.mxu0 }
0x4fbd   :  { %v4397_v22 = vadd.f32 %v6604_v47, %v4396_v59 }
0x4fbf   :  { %5214 = vtanh.f32 %v4397_v22  ;;  %v4657_v14 = vmul.f32 -1.442695, %v4397_v22 }
0x4fc1   :  { %5216 = vpow2.f32 %v4657_v14 }
0x4fc4   :  { %v4398_v29 = vpop.f32.mrf.mxu0 }
0x4fc5   :  { %v5215_v42 = vpop.eup %5214 }
0x4fc6   :  { %4422 = vrot.lane.b32.xlu2 %v5215_v42, %s5253_s21 }
0x4fc7   :  { %v5217_v26 = vpop.eup %5216 }
0x4fc8   :  { %v4403_v18 = vadd.f32 1.0, %v5217_v26 }
0x4fca   :  { %5218 = vrcp.f32 %v4403_v18  ;;  %v4415_v33 = vand.u32 2147483648, %v4403_v18  ;;  %vm4409_vm5 = vweird.f32 %v4403_v18  ;;  %v4413_v46 = vand.u32 2147483647, %v4403_v18 }
0x4fcc   :  { %v4416_v24 = vor.u32 1.1754944e-38, %v4415_v33  ;;  %vm4414_vm13 = vcmp.eq.f32.partialorder %v4413_v46, 8.507059e+37 }
0x4fd0   :  { %v5219_v58 = vpop.eup %5218 }
0x4fd1   :  { %v4405_v4 = vmul.f32 %v5219_v58, %v4403_v18  ;;  %vm4410_vm11 = vweird.f32 %v5219_v58 }
0x4fd2   :  { %vm4411_vm12 = vmor %vm4409_vm5, %vm4410_vm11 }
0x4fd3   :  { %v4406_v31 = vsub.f32 1.0, %v4405_v4 }
0x4fd5   :  { %v4407_v10 = vmul.f32 %v5219_v58, %v4406_v31 }
0x4fd7   :  { %v4408_v56 = vadd.f32 %v5219_v58, %v4407_v10 }
0x4fd9   :  { %v4412_v47 = vsel %vm4411_vm12, %v5219_v58, %v4408_v56 }
0x4fda   :  { %v4417_v43 = vsel %vm4414_vm13, %v4416_v24, %v4412_v47 }
0x4fdb   :  { %v4420_v13 = vmul.f32 %v4417_v43, %v4309_v44 }
0x5020   :  { %v4423_v62 = vpop.permute.xlu2 %4422 }
0x5021   :  { %v4425_v15 = vmul.f32 %v4423_v62, %v4417_v43 }
0x5023   :  { %4427 = vrot.lane.b32.xlu0 %v4425_v15, %s5254_s24 }
0x5095   :  { %v4428_v36 = vpop.permute.xlu0 %4427 }
0x5096   :  { %v4430_v38 = vadd.f32 %v4428_v36, %v4420_v13 }
0x5098   :  { %5220 = vtanh.f32 %v4430_v38 }
0x509e   :  { %v5221_v34 = vpop.eup %5220 }
0x509f   :  { %4433 = vrot.lane.b32.xlu1 %v5221_v34, %s5253_s21 }
0x5111   :  { %v4434_v11 = vpop.permute.xlu1 %4433 }
0x5112   :  { %v4436_v0 = vmul.f32 %v4434_v11, %v4417_v43 }
0x5114   :  { %4446 = vrot.lane.b32.xlu2 %v4436_v0, %s5254_s24 }
0x516e   :  { %v4447_v28 = vpop.permute.xlu2 %4446 }
0x516f   :  { %4658 = vmatmul.msk.f32.vlgmr.msrb.gmra.mxu1 %vm290_vm4, %v4447_v28 }
0x51ec   :  { %v4467_v49 = vpop.f32.mrf.mxu1 }
0x51ed   :  { %v4468_v17 = vadd.f32 %v4691_v37, %v4467_v49 }
0x51ef   :  { %4471 = vst.msk [vmem:[%s6710_s20] sm:$0xff] %vm4470_vm14, %v4468_v17 }

</bundles_post_ra>
